<compile_context>
chip_gen: v5e
topology: v5e:2x2
jax: 0.10.0
libtpu: 0.0.40
codegen_flags: <defaults>
</compile_context>

<pallas_src>
import functools

import jax
import jax.numpy as jnp
from jax.experimental import pallas as pl
from jax.experimental.pallas import tpu as pltpu


def _round_up(x, m):
    return (x + m - 1) // m * m


# ----------------------------------------------------------------------------
# Pallas kernel: fused matmul + bias + optional ReLU (the hot path of every layer)
# ----------------------------------------------------------------------------
def _matmul_bias_kernel(a_ref, w_ref, b_ref, o_ref, *, relu):
    acc = jnp.dot(a_ref[...], w_ref[...], preferred_element_type=jnp.float32)
    acc = acc + b_ref[...]                     # (1, Np) f32 broadcasts over rows
    if relu:
        acc = jnp.maximum(acc, 0.0)
    o_ref[...] = acc.astype(o_ref.dtype)


def matmul_bias(a, w, bias2d, *, relu, out_dtype, tm=256):
    """out = relu?(a @ w + bias).

    a:       (M, K)  bfloat16 activations / im2col patches
    w:       (K, Np) bfloat16 pre-packed weight (Np multiple of 128)
    bias2d:  (1, Np) float32  pre-packed bias
    returns  (M, Np) out_dtype

    Tiled over M only.  tm=256 (multiple of the bf16 sublane packing) keeps the
    double-buffered tiles well inside VMEM on every generation (incl. v7x's
    64 MiB) while feeding the MXU full-width; ragged final M tiles are handled
    by Pallas.  Weight/bias index maps are constant so they stay resident.
    """
    M, K = a.shape
    Kw, Np = w.shape
    assert K == Kw and Np % 128 == 0
    tm_eff = M if M <= tm else tm              # full-M single block, or 256-row tiles
    grid_m = pl.cdiv(M, tm_eff)

    return pl.pallas_call(
        functools.partial(_matmul_bias_kernel, relu=relu),
        out_shape=jax.ShapeDtypeStruct((M, Np), out_dtype),
        grid=(grid_m,),
        in_specs=[
            pl.BlockSpec((tm_eff, K), lambda i: (i, 0)),   # activation tiles stream
            pl.BlockSpec((K, Np), lambda i: (0, 0)),       # weight stays resident
            pl.BlockSpec((1, Np), lambda i: (0, 0)),       # bias stays resident
        ],
        out_specs=pl.BlockSpec((tm_eff, Np), lambda i: (i, 0)),
        compiler_params=pltpu.CompilerParams(
            dimension_semantics=("parallel",)),            # megacore sharding on v7x
    )(a, w, bias2d)


# ----------------------------------------------------------------------------
# im2col glue (pure gather / reshape, no arithmetic) — NHWC input, bf16
# ----------------------------------------------------------------------------
def im2col_nhwc(x, K, S):
    """x: (B, H, W, C) -> patches (B*Ho*Wo, K*K*C) with column order (kh, kw, c)."""
    B, H, W, C = x.shape
    Ho = (H - K) // S + 1
    Wo = (W - K) // S + 1
    ki = jnp.arange(K)
    rows = jnp.arange(Ho)[:, None] * S + ki[None, :]       # (Ho, K)
    cols = jnp.arange(Wo)[:, None] * S + ki[None, :]       # (Wo, K)
    p = x[:, rows]                                         # (B, Ho, Kh, W, C)
    p = p[:, :, :, cols]                                   # (B, Ho, Kh, Wo, Kw, C)
    p = p.transpose(0, 1, 3, 2, 4, 5)                      # (B, Ho, Wo, Kh, Kw, C)
    return p.reshape(B * Ho * Wo, K * K * C), Ho, Wo


# ----------------------------------------------------------------------------
# Parameters: raw (PyTorch layout) + one-time packing to TPU matmul layout
# ----------------------------------------------------------------------------
def init_cnn_params(key, c, output_dim):
    ks = jax.random.split(key, 10)

    def u(k, shape, fan_in):
        bound = 1.0 / float(fan_in) ** 0.5
        return jax.random.uniform(k, shape, jnp.float32, -bound, bound)

    return {
        "conv1_w": u(ks[0], (32, c, 8, 8), c * 8 * 8),
        "conv1_b": u(ks[1], (32,), c * 8 * 8),
        "conv2_w": u(ks[2], (64, 32, 4, 4), 32 * 4 * 4),
        "conv2_b": u(ks[3], (64,), 32 * 4 * 4),
        "conv3_w": u(ks[4], (64, 64, 3, 3), 64 * 3 * 3),
        "conv3_b": u(ks[5], (64,), 64 * 3 * 3),
        "fc1_w": u(ks[6], (512, 3136), 3136),   # PyTorch Linear: (out, in)
        "fc1_b": u(ks[7], (512,), 3136),
        "fc2_w": u(ks[8], (output_dim, 512), 512),
        "fc2_b": u(ks[9], (output_dim,), 512),
    }


def pack_params(raw):
    """One-time repack: (K, Np) bf16 matmul weights + (1, Np) f32 biases."""

    def pad_w(w2d):                      # (K, N) -> (K, Np) bf16, zero-padded cols
        K, N = w2d.shape
        Np = _round_up(N, 128)
        out = jnp.zeros((K, Np), jnp.bfloat16)
        return out.at[:, :N].set(w2d.astype(jnp.bfloat16))

    def pad_b(b):                        # (N,) -> (1, Np) f32
        N = b.shape[0]
        Np = _round_up(N, 128)
        return jnp.zeros((1, Np), jnp.float32).at[0, :N].set(b.astype(jnp.float32))

    packed = {}
    for i in (1, 2, 3):
        w = raw[f"conv{i}_w"]                                   # (Cout, Cin, K, K)
        Cout, Cin, K, _ = w.shape
        # column order (kh, kw, cin) to match NHWC im2col patches
        wmat = jnp.transpose(w, (2, 3, 1, 0)).reshape(K * K * Cin, Cout)
        packed[f"conv{i}_w"] = pad_w(wmat)
        packed[f"conv{i}_b"] = pad_b(raw[f"conv{i}_b"])

    # fc1 input index goes from PyTorch flatten order (c, h, w) to NHWC (h, w, c)
    fc1 = raw["fc1_w"].reshape(512, 64, 7, 7)
    fc1 = jnp.transpose(fc1, (0, 2, 3, 1)).reshape(512, 3136)
    packed["fc1_w"] = pad_w(fc1.T)                              # (3136, 512)
    packed["fc1_b"] = pad_b(raw["fc1_b"])
    packed["fc2_w"] = pad_w(raw["fc2_w"].T)                     # (512, Np_out)
    packed["fc2_b"] = pad_b(raw["fc2_b"])
    return packed


# ----------------------------------------------------------------------------
# Forward pass
# ----------------------------------------------------------------------------
_CONV_CFG = (("conv1", 32, 8, 4), ("conv2", 64, 4, 2), ("conv3", 64, 3, 1))


def cnn_forward(packed, x, output_dim):
    """x: (B, C, 84, 84) NCHW float32 -> (B, output_dim) float32."""
    B = x.shape[0]
    x = jnp.transpose(x, (0, 2, 3, 1)).astype(jnp.bfloat16)     # NHWC, bf16 once
    for name, cout, k, s in _CONV_CFG:
        a, Ho, Wo = im2col_nhwc(x, k, s)                        # (B*Ho*Wo, k*k*Cin)
        y = matmul_bias(a, packed[f"{name}_w"], packed[f"{name}_b"],
                        relu=True, out_dtype=jnp.bfloat16)      # (B*Ho*Wo, Np)
        x = y[:, :cout].reshape(B, Ho, Wo, cout)                # stay NHWC
    x = x.reshape(B, 7 * 7 * 64)                                # (h, w, c) flatten; fc1
    x = matmul_bias(x, packed["fc1_w"], packed["fc1_b"],        # weight was permuted
                    relu=True, out_dtype=jnp.bfloat16)          # (B, 512)
    x = matmul_bias(x, packed["fc2_w"], packed["fc2_b"],
                    relu=False, out_dtype=jnp.float32)          # (B, Np_out)
    return x[:, :output_dim]


def reference_forward(raw, x):
    """Pure-JAX f32 reference of the PyTorch module (for correctness checking)."""
    def conv(x, w, b, s):
        y = jax.lax.conv_general_dilated(
            x, w, window_strides=(s, s), padding="VALID",
            dimension_numbers=("NCHW", "OIHW", "NCHW"))
        return jax.nn.relu(y + b[None, :, None, None])

    x = conv(x, raw["conv1_w"], raw["conv1_b"], 4)
    x = conv(x, raw["conv2_w"], raw["conv2_b"], 2)
    x = conv(x, raw["conv3_w"], raw["conv3_b"], 1)
    x = x.reshape(x.shape[0], -1)
    x = jax.nn.relu(x @ raw["fc1_w"].T + raw["fc1_b"])
    return x @ raw["fc2_w"].T + raw["fc2_b"]


class DQNNet:
    """Pallas/JAX port of the PyTorch DQNNet (online + frozen target copy)."""

    def __init__(self, input_dim, output_dim, key):
        c, h, w = input_dim
        if h != 84:
            raise ValueError(f"Expecting input height: 84, got: {h}")
        if w != 84:
            raise ValueError(f"Expecting input width: 84, got: {w}")
        self.output_dim = output_dim
        self.online_raw = init_cnn_params(key, c, output_dim)
        self.online = pack_params(self.online_raw)
        # target.load_state_dict(online.state_dict()) -> identical copy, no grads.
        self.target = {k: jnp.asarray(v) for k, v in self.online.items()}
        self._fwd = jax.jit(lambda p, x: cnn_forward(p, x, output_dim))

    def forward(self, x, model):
        if model == "online":
            return self._fwd(self.online, x)
        elif model == "target":
            return self._fwd(self.target, x)


if __name__ == "__main__":
    key = jax.random.PRNGKey(0)
    k_x, k_p = jax.random.split(key)

    B, C, H, W = 2, 4, 84, 84          # module hard-requires 84x84 spatial
    output_dim = 6
    x = jax.random.normal(k_x, (B, C, H, W), jnp.float32)

    net = DQNNet((C, H, W), output_dim, k_p)

    q_online = net.forward(x, "online")
    q_target = net.forward(x, "target")
    jax.block_until_ready(q_online)
    jax.block_until_ready(q_target)

    assert q_online.shape == (B, output_dim)
    assert q_target.shape == (B, output_dim)
    # target is an exact copy of online at init
    assert bool(jnp.allclose(q_online, q_target))

    # numerical check vs pure-JAX f32 reference (bf16 MXU inputs -> loose tolerance)
    ref = reference_forward(net.online_raw, x)
    assert bool(jnp.allclose(q_online, ref, atol=5e-2, rtol=5e-2)), (
        float(jnp.max(jnp.abs(q_online - ref))))

    print("KERNEL_OK")
</pallas_src>

<mosaic_0001>
module attributes {stable_mosaic.version = 11 : i64} {
  func.func @_matmul_bias_kernel(%arg0: i32, %arg1: memref<256x256xbf16, #tpu.memory_space<vmem>>, %arg2: memref<256x128xbf16, #tpu.memory_space<vmem>>, %arg3: memref<1x128xf32, #tpu.memory_space<vmem>>, %arg4: memref<256x128xbf16, #tpu.memory_space<vmem>>) attributes {dimension_semantics = [#tpu.dimension_semantics<parallel>], iteration_bounds = array<i64: 4>, scalar_prefetch = 0 : i64, scratch_operands = 0 : i64, tpu.core_type = #tpu.core_type<tc>, window_params = [{transform_indices = @transform_0, window_bounds = array<i64: 256, 256>}, {pipeline_mode = #tpu.pipeline_mode<synchronous>, transform_indices = @transform_1, window_bounds = array<i64: 256, 128>}, {pipeline_mode = #tpu.pipeline_mode<synchronous>, transform_indices = @transform_2, window_bounds = array<i64: 1, 128>}, {transform_indices = @transform_3, window_bounds = array<i64: 256, 128>}]} {
    %c0 = arith.constant 0 : index
    %c0_0 = arith.constant 0 : index
    %0 = vector.load %arg1[%c0, %c0_0] : memref<256x256xbf16, #tpu.memory_space<vmem>>, vector<256x256xbf16>
    %c0_1 = arith.constant 0 : index
    %c0_2 = arith.constant 0 : index
    %1 = vector.load %arg2[%c0_1, %c0_2] : memref<256x128xbf16, #tpu.memory_space<vmem>>, vector<256x128xbf16>
    %cst = arith.constant dense<0.000000e+00> : vector<256x128xf32>
    %2 = tpu.matmul %0, %1, %cst {dimension_numbers = #tpu.dot_dimension_numbers<[1], [0], [0], [1], [0, 0, 1, 1], [], []>} : vector<256x256xbf16>, vector<256x128xbf16>, vector<256x128xf32> -> vector<256x128xf32>
    %c0_3 = arith.constant 0 : index
    %c0_4 = arith.constant 0 : index
    %3 = vector.load %arg3[%c0_3, %c0_4] : memref<1x128xf32, #tpu.memory_space<vmem>>, vector<1x128xf32>
    %4 = vector.broadcast %3 : vector<1x128xf32> to vector<256x128xf32>
    %5 = arith.addf %2, %4 : vector<256x128xf32>
    %cst_5 = arith.constant 0.000000e+00 : f32
    %6 = vector.broadcast %cst_5 : f32 to vector<256x128xf32>
    %7 = arith.maximumf %5, %6 : vector<256x128xf32>
    %8 = arith.truncf %7 : vector<256x128xf32> to vector<256x128xbf16>
    %c0_6 = arith.constant 0 : index
    %c0_7 = arith.constant 0 : index
    %9 = vector.load %arg4[%c0_6, %c0_7] : memref<256x128xbf16, #tpu.memory_space<vmem>>, vector<256x128xbf16>
    tpu.vector_store %arg4[%c0_6, %c0_7], %8 {strides = array<i32>} : memref<256x128xbf16, #tpu.memory_space<vmem>>, vector<256x128xbf16>,
    return
  }
  func.func @transform_0(%arg0: i32) -> (i32, i32) {
    %c0_i32 = arith.constant 0 : i32
    %c0_i32_0 = arith.constant 0 : i32
    return %arg0, %c0_i32 : i32, i32
  }
  func.func @transform_1(%arg0: i32) -> (i32, i32) {
    %c0_i32 = arith.constant 0 : i32
    %c0_i32_0 = arith.constant 0 : i32
    %c0_i32_1 = arith.constant 0 : i32
    return %c0_i32, %c0_i32_0 : i32, i32
  }
  func.func @transform_2(%arg0: i32) -> (i32, i32) {
    %c0_i32 = arith.constant 0 : i32
    %c0_i32_0 = arith.constant 0 : i32
    %c0_i32_1 = arith.constant 0 : i32
    return %c0_i32, %c0_i32_0 : i32, i32
  }
  func.func @transform_3(%arg0: i32) -> (i32, i32) {
    %c0_i32 = arith.constant 0 : i32
    %c0_i32_0 = arith.constant 0 : i32
    return %arg0, %c0_i32 : i32, i32
  }
}

module attributes {stable_mosaic.version = 11 : i64} {
  func.func @_matmul_bias_kernel(%arg0: i32, %arg1: memref<162x512xbf16, #tpu.memory_space<vmem>>, %arg2: memref<512x128xbf16, #tpu.memory_space<vmem>>, %arg3: memref<1x128xf32, #tpu.memory_space<vmem>>, %arg4: memref<162x128xbf16, #tpu.memory_space<vmem>>) attributes {dimension_semantics = [#tpu.dimension_semantics<parallel>], iteration_bounds = array<i64: 1>, scalar_prefetch = 0 : i64, scratch_operands = 0 : i64, tpu.core_type = #tpu.core_type<tc>, window_params = [{transform_indices = @transform_0, window_bounds = array<i64: 162, 512>}, {pipeline_mode = #tpu.pipeline_mode<synchronous>, transform_indices = @transform_1, window_bounds = array<i64: 512, 128>}, {pipeline_mode = #tpu.pipeline_mode<synchronous>, transform_indices = @transform_2, window_bounds = array<i64: 1, 128>}, {transform_indices = @transform_3, window_bounds = array<i64: 162, 128>}]} {
    %c0 = arith.constant 0 : index
    %c0_0 = arith.constant 0 : index
    %0 = vector.load %arg1[%c0, %c0_0] : memref<162x512xbf16, #tpu.memory_space<vmem>>, vector<162x512xbf16>
    %c0_1 = arith.constant 0 : index
    %c0_2 = arith.constant 0 : index
    %1 = vector.load %arg2[%c0_1, %c0_2] : memref<512x128xbf16, #tpu.memory_space<vmem>>, vector<512x128xbf16>
    %cst = arith.constant dense<0.000000e+00> : vector<162x128xf32>
    %2 = tpu.matmul %0, %1, %cst {dimension_numbers = #tpu.dot_dimension_numbers<[1], [0], [0], [1], [0, 0, 1, 1], [], []>} : vector<162x512xbf16>, vector<512x128xbf16>, vector<162x128xf32> -> vector<162x128xf32>
    %c0_3 = arith.constant 0 : index
    %c0_4 = arith.constant 0 : index
    %3 = vector.load %arg3[%c0_3, %c0_4] : memref<1x128xf32, #tpu.memory_space<vmem>>, vector<1x128xf32>
    %4 = vector.broadcast %3 : vector<1x128xf32> to vector<162x128xf32>
    %5 = arith.addf %2, %4 : vector<162x128xf32>
    %cst_5 = arith.constant 0.000000e+00 : f32
    %6 = vector.broadcast %cst_5 : f32 to vector<162x128xf32>
    %7 = arith.maximumf %5, %6 : vector<162x128xf32>
    %8 = arith.truncf %7 : vector<162x128xf32> to vector<162x128xbf16>
    %c0_6 = arith.constant 0 : index
    %c0_7 = arith.constant 0 : index
    %9 = vector.load %arg4[%c0_6, %c0_7] : memref<162x128xbf16, #tpu.memory_space<vmem>>, vector<162x128xbf16>
    tpu.vector_store %arg4[%c0_6, %c0_7], %8 {strides = array<i32>} : memref<162x128xbf16, #tpu.memory_space<vmem>>, vector<162x128xbf16>,
    return
  }
  func.func @transform_0(%arg0: i32) -> (i32, i32) {
    %c0_i32 = arith.constant 0 : i32
    %c0_i32_0 = arith.constant 0 : i32
    return %arg0, %c0_i32 : i32, i32
  }
  func.func @transform_1(%arg0: i32) -> (i32, i32) {
    %c0_i32 = arith.constant 0 : i32
    %c0_i32_0 = arith.constant 0 : i32
    %c0_i32_1 = arith.constant 0 : i32
    return %c0_i32, %c0_i32_0 : i32, i32
  }
  func.func @transform_2(%arg0: i32) -> (i32, i32) {
    %c0_i32 = arith.constant 0 : i32
    %c0_i32_0 = arith.constant 0 : i32
    %c0_i32_1 = arith.constant 0 : i32
    return %c0_i32, %c0_i32_0 : i32, i32
  }
  func.func @transform_3(%arg0: i32) -> (i32, i32) {
    %c0_i32 = arith.constant 0 : i32
    %c0_i32_0 = arith.constant 0 : i32
    return %arg0, %c0_i32 : i32, i32
  }
}

module attributes {stable_mosaic.version = 11 : i64} {
  func.func @_matmul_bias_kernel(%arg0: i32, %arg1: memref<98x576xbf16, #tpu.memory_space<vmem>>, %arg2: memref<576x128xbf16, #tpu.memory_space<vmem>>, %arg3: memref<1x128xf32, #tpu.memory_space<vmem>>, %arg4: memref<98x128xbf16, #tpu.memory_space<vmem>>) attributes {dimension_semantics = [#tpu.dimension_semantics<parallel>], iteration_bounds = array<i64: 1>, scalar_prefetch = 0 : i64, scratch_operands = 0 : i64, tpu.core_type = #tpu.core_type<tc>, window_params = [{transform_indices = @transform_0, window_bounds = array<i64: 98, 576>}, {pipeline_mode = #tpu.pipeline_mode<synchronous>, transform_indices = @transform_1, window_bounds = array<i64: 576, 128>}, {pipeline_mode = #tpu.pipeline_mode<synchronous>, transform_indices = @transform_2, window_bounds = array<i64: 1, 128>}, {transform_indices = @transform_3, window_bounds = array<i64: 98, 128>}]} {
    %c0 = arith.constant 0 : index
    %c0_0 = arith.constant 0 : index
    %0 = vector.load %arg1[%c0, %c0_0] : memref<98x576xbf16, #tpu.memory_space<vmem>>, vector<98x576xbf16>
    %c0_1 = arith.constant 0 : index
    %c0_2 = arith.constant 0 : index
    %1 = vector.load %arg2[%c0_1, %c0_2] : memref<576x128xbf16, #tpu.memory_space<vmem>>, vector<576x128xbf16>
    %cst = arith.constant dense<0.000000e+00> : vector<98x128xf32>
    %2 = tpu.matmul %0, %1, %cst {dimension_numbers = #tpu.dot_dimension_numbers<[1], [0], [0], [1], [0, 0, 1, 1], [], []>} : vector<98x576xbf16>, vector<576x128xbf16>, vector<98x128xf32> -> vector<98x128xf32>
    %c0_3 = arith.constant 0 : index
    %c0_4 = arith.constant 0 : index
    %3 = vector.load %arg3[%c0_3, %c0_4] : memref<1x128xf32, #tpu.memory_space<vmem>>, vector<1x128xf32>
    %4 = vector.broadcast %3 : vector<1x128xf32> to vector<98x128xf32>
    %5 = arith.addf %2, %4 : vector<98x128xf32>
    %cst_5 = arith.constant 0.000000e+00 : f32
    %6 = vector.broadcast %cst_5 : f32 to vector<98x128xf32>
    %7 = arith.maximumf %5, %6 : vector<98x128xf32>
    %8 = arith.truncf %7 : vector<98x128xf32> to vector<98x128xbf16>
    %c0_6 = arith.constant 0 : index
    %c0_7 = arith.constant 0 : index
    %9 = vector.load %arg4[%c0_6, %c0_7] : memref<98x128xbf16, #tpu.memory_space<vmem>>, vector<98x128xbf16>
    tpu.vector_store %arg4[%c0_6, %c0_7], %8 {strides = array<i32>} : memref<98x128xbf16, #tpu.memory_space<vmem>>, vector<98x128xbf16>,
    return
  }
  func.func @transform_0(%arg0: i32) -> (i32, i32) {
    %c0_i32 = arith.constant 0 : i32
    %c0_i32_0 = arith.constant 0 : i32
    return %arg0, %c0_i32 : i32, i32
  }
  func.func @transform_1(%arg0: i32) -> (i32, i32) {
    %c0_i32 = arith.constant 0 : i32
    %c0_i32_0 = arith.constant 0 : i32
    %c0_i32_1 = arith.constant 0 : i32
    return %c0_i32, %c0_i32_0 : i32, i32
  }
  func.func @transform_2(%arg0: i32) -> (i32, i32) {
    %c0_i32 = arith.constant 0 : i32
    %c0_i32_0 = arith.constant 0 : i32
    %c0_i32_1 = arith.constant 0 : i32
    return %c0_i32, %c0_i32_0 : i32, i32
  }
  func.func @transform_3(%arg0: i32) -> (i32, i32) {
    %c0_i32 = arith.constant 0 : i32
    %c0_i32_0 = arith.constant 0 : i32
    return %arg0, %c0_i32 : i32, i32
  }
}

module attributes {stable_mosaic.version = 11 : i64} {
  func.func @_matmul_bias_kernel(%arg0: i32, %arg1: memref<2x3136xbf16, #tpu.memory_space<vmem>>, %arg2: memref<3136x512xbf16, #tpu.memory_space<vmem>>, %arg3: memref<1x512xf32, #tpu.memory_space<vmem>>, %arg4: memref<2x512xbf16, #tpu.memory_space<vmem>>) attributes {dimension_semantics = [#tpu.dimension_semantics<parallel>], iteration_bounds = array<i64: 1>, scalar_prefetch = 0 : i64, scratch_operands = 0 : i64, tpu.core_type = #tpu.core_type<tc>, window_params = [{transform_indices = @transform_0, window_bounds = array<i64: 2, 3136>}, {pipeline_mode = #tpu.pipeline_mode<synchronous>, transform_indices = @transform_1, window_bounds = array<i64: 3136, 512>}, {pipeline_mode = #tpu.pipeline_mode<synchronous>, transform_indices = @transform_2, window_bounds = array<i64: 1, 512>}, {transform_indices = @transform_3, window_bounds = array<i64: 2, 512>}]} {
    %c0 = arith.constant 0 : index
    %c0_0 = arith.constant 0 : index
    %0 = vector.load %arg1[%c0, %c0_0] : memref<2x3136xbf16, #tpu.memory_space<vmem>>, vector<2x3136xbf16>
    %c0_1 = arith.constant 0 : index
    %c0_2 = arith.constant 0 : index
    %1 = vector.load %arg2[%c0_1, %c0_2] : memref<3136x512xbf16, #tpu.memory_space<vmem>>, vector<3136x512xbf16>
    %cst = arith.constant dense<0.000000e+00> : vector<2x512xf32>
    %2 = tpu.matmul %0, %1, %cst {dimension_numbers = #tpu.dot_dimension_numbers<[1], [0], [0], [1], [0, 0, 1, 1], [], []>} : vector<2x3136xbf16>, vector<3136x512xbf16>, vector<2x512xf32> -> vector<2x512xf32>
    %c0_3 = arith.constant 0 : index
    %c0_4 = arith.constant 0 : index
    %3 = vector.load %arg3[%c0_3, %c0_4] : memref<1x512xf32, #tpu.memory_space<vmem>>, vector<1x512xf32>
    %4 = vector.broadcast %3 : vector<1x512xf32> to vector<2x512xf32>
    %5 = arith.addf %2, %4 : vector<2x512xf32>
    %cst_5 = arith.constant 0.000000e+00 : f32
    %6 = vector.broadcast %cst_5 : f32 to vector<2x512xf32>
    %7 = arith.maximumf %5, %6 : vector<2x512xf32>
    %8 = arith.truncf %7 : vector<2x512xf32> to vector<2x512xbf16>
    %c0_6 = arith.constant 0 : index
    %c0_7 = arith.constant 0 : index
    %9 = vector.load %arg4[%c0_6, %c0_7] : memref<2x512xbf16, #tpu.memory_space<vmem>>, vector<2x512xbf16>
    tpu.vector_store %arg4[%c0_6, %c0_7], %8 {strides = array<i32>} : memref<2x512xbf16, #tpu.memory_space<vmem>>, vector<2x512xbf16>,
    return
  }
  func.func @transform_0(%arg0: i32) -> (i32, i32) {
    %c0_i32 = arith.constant 0 : i32
    %c0_i32_0 = arith.constant 0 : i32
    return %arg0, %c0_i32 : i32, i32
  }
  func.func @transform_1(%arg0: i32) -> (i32, i32) {
    %c0_i32 = arith.constant 0 : i32
    %c0_i32_0 = arith.constant 0 : i32
    %c0_i32_1 = arith.constant 0 : i32
    return %c0_i32, %c0_i32_0 : i32, i32
  }
  func.func @transform_2(%arg0: i32) -> (i32, i32) {
    %c0_i32 = arith.constant 0 : i32
    %c0_i32_0 = arith.constant 0 : i32
    %c0_i32_1 = arith.constant 0 : i32
    return %c0_i32, %c0_i32_0 : i32, i32
  }
  func.func @transform_3(%arg0: i32) -> (i32, i32) {
    %c0_i32 = arith.constant 0 : i32
    %c0_i32_0 = arith.constant 0 : i32
    return %arg0, %c0_i32 : i32, i32
  }
}

module attributes {stable_mosaic.version = 11 : i64} {
  func.func @_matmul_bias_kernel(%arg0: i32, %arg1: memref<2x512xbf16, #tpu.memory_space<vmem>>, %arg2: memref<512x128xbf16, #tpu.memory_space<vmem>>, %arg3: memref<1x128xf32, #tpu.memory_space<vmem>>, %arg4: memref<2x128xf32, #tpu.memory_space<vmem>>) attributes {dimension_semantics = [#tpu.dimension_semantics<parallel>], iteration_bounds = array<i64: 1>, scalar_prefetch = 0 : i64, scratch_operands = 0 : i64, tpu.core_type = #tpu.core_type<tc>, window_params = [{transform_indices = @transform_0, window_bounds = array<i64: 2, 512>}, {pipeline_mode = #tpu.pipeline_mode<synchronous>, transform_indices = @transform_1, window_bounds = array<i64: 512, 128>}, {pipeline_mode = #tpu.pipeline_mode<synchronous>, transform_indices = @transform_2, window_bounds = array<i64: 1, 128>}, {transform_indices = @transform_3, window_bounds = array<i64: 2, 128>}]} {
    %c0 = arith.constant 0 : index
    %c0_0 = arith.constant 0 : index
    %0 = vector.load %arg1[%c0, %c0_0] : memref<2x512xbf16, #tpu.memory_space<vmem>>, vector<2x512xbf16>
    %c0_1 = arith.constant 0 : index
    %c0_2 = arith.constant 0 : index
    %1 = vector.load %arg2[%c0_1, %c0_2] : memref<512x128xbf16, #tpu.memory_space<vmem>>, vector<512x128xbf16>
    %cst = arith.constant dense<0.000000e+00> : vector<2x128xf32>
    %2 = tpu.matmul %0, %1, %cst {dimension_numbers = #tpu.dot_dimension_numbers<[1], [0], [0], [1], [0, 0, 1, 1], [], []>} : vector<2x512xbf16>, vector<512x128xbf16>, vector<2x128xf32> -> vector<2x128xf32>
    %c0_3 = arith.constant 0 : index
    %c0_4 = arith.constant 0 : index
    %3 = vector.load %arg3[%c0_3, %c0_4] : memref<1x128xf32, #tpu.memory_space<vmem>>, vector<1x128xf32>
    %4 = vector.broadcast %3 : vector<1x128xf32> to vector<2x128xf32>
    %5 = arith.addf %2, %4 : vector<2x128xf32>
    %c0_5 = arith.constant 0 : index
    %c0_6 = arith.constant 0 : index
    %6 = vector.load %arg4[%c0_5, %c0_6] : memref<2x128xf32, #tpu.memory_space<vmem>>, vector<2x128xf32>
    tpu.vector_store %arg4[%c0_5, %c0_6], %5 {strides = array<i32>} : memref<2x128xf32, #tpu.memory_space<vmem>>, vector<2x128xf32>,
    return
  }
  func.func @transform_0(%arg0: i32) -> (i32, i32) {
    %c0_i32 = arith.constant 0 : i32
    %c0_i32_0 = arith.constant 0 : i32
    return %arg0, %c0_i32 : i32, i32
  }
  func.func @transform_1(%arg0: i32) -> (i32, i32) {
    %c0_i32 = arith.constant 0 : i32
    %c0_i32_0 = arith.constant 0 : i32
    %c0_i32_1 = arith.constant 0 : i32
    return %c0_i32, %c0_i32_0 : i32, i32
  }
  func.func @transform_2(%arg0: i32) -> (i32, i32) {
    %c0_i32 = arith.constant 0 : i32
    %c0_i32_0 = arith.constant 0 : i32
    %c0_i32_1 = arith.constant 0 : i32
    return %c0_i32, %c0_i32_0 : i32, i32
  }
  func.func @transform_3(%arg0: i32) -> (i32, i32) {
    %c0_i32 = arith.constant 0 : i32
    %c0_i32_0 = arith.constant 0 : i32
    return %arg0, %c0_i32 : i32, i32
  }
}

</mosaic_0001>

<bundles_post_ra>
// kernel: _lambda_.5
= control target key start
LH: loop header
LB: loop body
LE: loop exit
PB: predicated region body
PF: predicated region fallthrough
CT: control target
= control target key end

     0   :  { %s1715_s12 = smov 0   ;;  %s1717_s13 = smov 0   ;;  %s2064_s0 = inlined_call_operand.vmem [shape: bf16[800,256], index: 0, kind: input, shape index: {}]   ;;  %s2065_s1 = inlined_call_operand.vmem [shape: bf16[256,128], index: 1, kind: input, shape index: {}]   ;;  %s2066_s2 = inlined_call_operand.vmem [shape: f32[1,128], index: 2, kind: input, shape index: {}]   ;;  %s2067_s3 = inlined_call_operand.vmem [shape: bf16[800,128], index: 3, kind: output, shape index: {}]  }
   0x1   :  { %s1719_s14 = smov 0  }
   0x2 LB: > { %s1728_s15 = sadd.s32 4294967295, %s1661_s14   ;;  %s1730_s16 = sadd.s32 1, %s1661_s14   ;;  %s1661_s14 = sphi %s1719_s14, %s2076_s14   ;;  %s1657_s13 = sphi %s1717_s13, %s2075_s13   ;;  %s1653_s12 = sphi %s1715_s12, %s2074_s12  }
   0x3   : > { %s85_s17 = ssub.s32 %s1661_s14, %s1730_s16  ;;  %s88_s18 = sadd.s32 1, %s1657_s13 }
   0x4   : > { %p86_p0 = scmp.eq.s32.totalorder %s85_s17, 0  ;;  %p98_p1 = scmp.ne.s32.totalorder %s1657_s13, %s1653_s12 }
   0x5   : > { %p99_p2 = scmp.eq.s32.totalorder %s1728_s15, 3  ;;  %p1141_p3 = scmp.ge.s32.totalorder %s1661_s14, 1 }
   0x6   : > { %s1738_s19 = scalar_select %p86_p0, %s1657_s13, %s88_s18  }
   0x7   : > { %p1740_p4 = por %p99_p2, %p98_p1  ;;  %p149_p5 = scmp.lt.s32.totalorder %s1661_s14, 5 }
   0x9   : > { %p150_p6 = pnand %p1141_p3, %p149_p5 }
   0xa   : > { %s1763_s6 = sshll.u32 (!%p150_p6), %s1728_s15, 5  ;;  %s175_s18 = sand.u32 (!%p150_p6), 1, %s1653_s12  }
   0xb   : > { %153 = sbr.rel (%p150_p6) target bundleno = 373 (0x175), region = 32  ;;  %p184_p7 = scmp.lt.s32.totalorder (!%p150_p6), %s1763_s6, 99 }
  0x10   : > { %v1395_v0 = vld [vmem:[%s2065_s1 + $0x38] sm:$0xff]  ;;  %v1394_v2 = vld [vmem:[%s2065_s1 + $0x30] sm:$0xff]  ;;  %v1393_v4 = vld [vmem:[%s2065_s1 + $0x28] sm:$0xff]  ;;  %s185_s21 = scalar_select %p184_p7, %s1763_s6, 99 }
  0x11   : > { %v1403_v1 = vld [vmem:[%s2065_s1 + $0x78] sm:$0xff]  ;;  %524 = vmatpush.bf16.msra.mxu0 %v1395_v0  ;;  %1502 = vmatpush.bf16.msra.mxu2 %v1395_v0  ;;  %v1402_v3 = vld [vmem:[%s2065_s1 + $0x70] sm:$0xff]  ;;  %v1401_v5 = vld [vmem:[%s2065_s1 + $0x68] sm:$0xff]  ;;  %s806_s12 = ssub.s32 (%p1740_p4), 100, %s1763_s6  ;;  %s1404_s23 = sshll.u32 (%p1740_p4), %s1728_s15, 7 }
  0x12   : > { %613 = vmatpush.bf16.msra.mxu1 %v1403_v1  ;;  %1510 = vmatpush.bf16.msra.mxu3 %v1403_v1  ;;  %v1392_v6 = vld [vmem:[%s2065_s1 + $0x20] sm:$0xff]  ;;  %v1391_v8 = vld [vmem:[%s2065_s1 + $0x18] sm:$0xff]  ;;  %v1390_v10 = vld [vmem:[%s2065_s1 + $0x10] sm:$0xff]  ;;  %s1355_s26 = sshll.u32 %s185_s21, 3  ;;  %s1142_s21 = sshll.u32 %s175_s18, 7 }
  0x13   : > { %v1400_v7 = vld [vmem:[%s2065_s1 + $0x60] sm:$0xff]  ;;  %v1399_v9 = vld [vmem:[%s2065_s1 + $0x58] sm:$0xff]  ;;  %v1398_v11 = vld [vmem:[%s2065_s1 + $0x50] sm:$0xff]  ;;  %s1791_s4 = scalar_lea.vmem %s2064_s0, %s1355_s26  ;;  %s1876_s22 = scalar_lea.vmem [#allocation2], %s1142_s21  }
  0x14   : > { %v1389_v12 = vld [vmem:[%s2065_s1 + $0x8] sm:$0xff]  ;;  %v1388_v14 = vld [vmem:[%s2065_s1] sm:$0xff]  ;;  %v1156_v28 = vld [vmem:[%s1791_s4 + $0x10] sm:$0xf]  ;;  %p807_p8 = scmp.lt.s32.totalorder (%p1740_p4), %s806_s12, 32  ;;  %s1929_s26 = scalar_lea.vmem (%p1740_p4), %s2067_s3, %s1404_s23  }
  0x15   : > { %525 = vmatpush.bf16.msra.mxu0 %v1394_v2  ;;  %1503 = vmatpush.bf16.msra.mxu2 %v1394_v2  ;;  %v1397_v13 = vld [vmem:[%s2065_s1 + $0x48] sm:$0xff]  ;;  %v1396_v15 = vld [vmem:[%s2065_s1 + $0x40] sm:$0xff]  ;;  %v1359_v29 = vld [vmem:[%s1791_s4 + $0x14] sm:$0xf0] }
  0x16   : > { %614 = vmatpush.bf16.msra.mxu1 %v1402_v3  ;;  %1511 = vmatpush.bf16.msra.mxu3 %v1402_v3  ;;  %v1148_v16 = vld [vmem:[%s1791_s4] sm:$0xf]  ;;  %v1357_v17 = vld [vmem:[%s1791_s4 + $0x4] sm:$0xf0]  ;;  %v1356_v20 = vld [vmem:[%s1791_s4 + $0x4] sm:$0xf]  ;;  %v1157_v36 = vor.u32 %v1359_v29, %v1156_v28 }
  0x17   : > { %v1212_v18 = vld [vmem:[%s1791_s4 + $0x80] sm:$0xf]  ;;  %v1373_v19 = vld [vmem:[%s1791_s4 + $0x84] sm:$0xf0]  ;;  %v1150_v21 = vld [vmem:[%s1791_s4 + $0x8] sm:$0xf0]  ;;  %v1149_v24 = vor.u32 %v1357_v17, %v1148_v16 }
  0x18   : > { %v1372_v22 = vld [vmem:[%s1791_s4 + $0x84] sm:$0xf]  ;;  %v1214_v23 = vld [vmem:[%s1791_s4 + $0x88] sm:$0xf0]  ;;  %v1213_v25 = vor.u32 %v1373_v19, %v1212_v18  ;;  %v1153_v26 = vor.u32 %v1356_v20, %v1150_v21  ;;  %v1220_v30 = vld [vmem:[%s1791_s4 + $0x90] sm:$0xf] }
  0x19   : > { %526 = vmatpush.bf16.msra.mxu0 %v1393_v4  ;;  %1504 = vmatpush.bf16.msra.mxu2 %v1393_v4  ;;  %v1217_v27 = vor.u32 %v1372_v22, %v1214_v23  ;;  %v1375_v31 = vld [vmem:[%s1791_s4 + $0x94] sm:$0xf0]  ;;  %v1358_v32 = vld [vmem:[%s1791_s4 + $0x14] sm:$0xf]  ;;  %v1158_v33 = vld [vmem:[%s1791_s4 + $0x18] sm:$0xf0] }
  0x1a   : > { %615 = vmatpush.bf16.msra.mxu1 %v1401_v5  ;;  %1512 = vmatpush.bf16.msra.mxu3 %v1401_v5  ;;  %v1374_v34 = vld [vmem:[%s1791_s4 + $0x94] sm:$0xf]  ;;  %v1222_v35 = vld [vmem:[%s1791_s4 + $0x98] sm:$0xf0]  ;;  %v1221_v37 = vor.u32 %v1375_v31, %v1220_v30  ;;  %v1161_v38 = vor.u32 %v1358_v32, %v1158_v33  ;;  %v1164_v40 = vld [vmem:[%s1791_s4 + $0x20] sm:$0xf] }
  0x1b   : > { %v1225_v39 = vor.u32 %v1374_v34, %v1222_v35  ;;  %v1361_v41 = vld [vmem:[%s1791_s4 + $0x24] sm:$0xf0]  ;;  %v1228_v42 = vld [vmem:[%s1791_s4 + $0xa0] sm:$0xf]  ;;  %v1360_v44 = vld [vmem:[%s1791_s4 + $0x24] sm:$0xf] }
  0x1c   : > { %v1377_v43 = vld [vmem:[%s1791_s4 + $0xa4] sm:$0xf0]  ;;  %v1166_v45 = vld [vmem:[%s1791_s4 + $0x28] sm:$0xf0]  ;;  %v1376_v46 = vld [vmem:[%s1791_s4 + $0xa4] sm:$0xf]  ;;  %v1165_v48 = vor.u32 %v1361_v41, %v1164_v40 }
  0x1d   : > { %527 = vmatpush.bf16.msra.mxu0 %v1392_v6  ;;  %1505 = vmatpush.bf16.msra.mxu2 %v1392_v6  ;;  %v1230_v47 = vld [vmem:[%s1791_s4 + $0xa8] sm:$0xf0]  ;;  %v1229_v49 = vor.u32 %v1377_v43, %v1228_v42  ;;  %v1169_v50 = vor.u32 %v1360_v44, %v1166_v45  ;;  %v1172_v52 = vld [vmem:[%s1791_s4 + $0x30] sm:$0xf]  ;;  %v1363_v53 = vld [vmem:[%s1791_s4 + $0x34] sm:$0xf0] }
  0x1e   : > { %616 = vmatpush.bf16.msra.mxu1 %v1400_v7  ;;  %1513 = vmatpush.bf16.msra.mxu3 %v1400_v7  ;;  %v1233_v51 = vor.u32 %v1376_v46, %v1230_v47  ;;  %v1236_v54 = vld [vmem:[%s1791_s4 + $0xb0] sm:$0xf]  ;;  %v1379_v55 = vld [vmem:[%s1791_s4 + $0xb4] sm:$0xf0]  ;;  %v1362_v56 = vld [vmem:[%s1791_s4 + $0x34] sm:$0xf]  ;;  %v1173_v60 = vor.u32 %v1363_v53, %v1172_v52 }
  0x1f   : > { %v1174_v57 = vld [vmem:[%s1791_s4 + $0x38] sm:$0xf0]  ;;  %v1378_v58 = vld [vmem:[%s1791_s4 + $0xb4] sm:$0xf]  ;;  %v1237_v61 = vor.u32 %v1379_v55, %v1236_v54  ;;  %v1180_v0 = vld [vmem:[%s1791_s4 + $0x40] sm:$0xf] }
  0x20   : > { %v1238_v59 = vld [vmem:[%s1791_s4 + $0xb8] sm:$0xf0]  ;;  %v1177_v62 = vor.u32 %v1362_v56, %v1174_v57  ;;  %v1365_v1 = vld [vmem:[%s1791_s4 + $0x44] sm:$0xf0]  ;;  %v1244_v2 = vld [vmem:[%s1791_s4 + $0xc0] sm:$0xf] }
  0x21   : > { %528 = vmatpush.bf16.msra.mxu0 %v1391_v8  ;;  %1506 = vmatpush.bf16.msra.mxu2 %v1391_v8  ;;  %v1241_v63 = vor.u32 %v1378_v58, %v1238_v59  ;;  %v1381_v3 = vld [vmem:[%s1791_s4 + $0xc4] sm:$0xf0]  ;;  %v1364_v4 = vld [vmem:[%s1791_s4 + $0x44] sm:$0xf]  ;;  %v1182_v5 = vld [vmem:[%s1791_s4 + $0x48] sm:$0xf0]  ;;  %v1181_v8 = vor.u32 %v1365_v1, %v1180_v0 }
  0x22   : > { %617 = vmatpush.bf16.msra.mxu1 %v1399_v9  ;;  %1514 = vmatpush.bf16.msra.mxu3 %v1399_v9  ;;  %v1380_v6 = vld [vmem:[%s1791_s4 + $0xc4] sm:$0xf]  ;;  %v1246_v7 = vld [vmem:[%s1791_s4 + $0xc8] sm:$0xf0]  ;;  %v1245_v9 = vor.u32 %v1381_v3, %v1244_v2  ;;  %v1366_v16 = vld [vmem:[%s1791_s4 + $0x54] sm:$0xf] }
  0x23   : > { %v1190_v17 = vld [vmem:[%s1791_s4 + $0x58] sm:$0xf0]  ;;  %v1382_v18 = vld [vmem:[%s1791_s4 + $0xd4] sm:$0xf]  ;;  %v1368_v28 = vld [vmem:[%s1791_s4 + $0x64] sm:$0xf] }
  0x24   : > { %v1254_v19 = vld [vmem:[%s1791_s4 + $0xd8] sm:$0xf0]  ;;  %v1193_v22 = vor.u32 %v1366_v16, %v1190_v17  ;;  %v1198_v29 = vld [vmem:[%s1791_s4 + $0x68] sm:$0xf0]  ;;  %v1384_v30 = vld [vmem:[%s1791_s4 + $0xe4] sm:$0xf] }
  0x25   : > { %529 = vmatpush.bf16.msra.mxu0 %v1390_v10  ;;  %1507 = vmatpush.bf16.msra.mxu2 %v1390_v10  ;;  %v1185_v10 = vor.u32 %v1364_v4, %v1182_v5  ;;  %v1257_v23 = vor.u32 %v1382_v18, %v1254_v19  ;;  %v1262_v31 = vld [vmem:[%s1791_s4 + $0xe8] sm:$0xf0]  ;;  %v1201_v34 = vor.u32 %v1368_v28, %v1198_v29  ;;  %v1370_v40 = vld [vmem:[%s1791_s4 + $0x74] sm:$0xf]  ;;  %v1206_v41 = vld [vmem:[%s1791_s4 + $0x78] sm:$0xf0] }
  0x26   : > { %618 = vmatpush.bf16.msra.mxu1 %v1398_v11  ;;  %1515 = vmatpush.bf16.msra.mxu3 %v1398_v11  ;;  %v1249_v11 = vor.u32 %v1380_v6, %v1246_v7  ;;  %v1265_v35 = vor.u32 %v1384_v30, %v1262_v31  ;;  %v1386_v42 = vld [vmem:[%s1791_s4 + $0xf4] sm:$0xf]  ;;  %v1270_v43 = vld [vmem:[%s1791_s4 + $0xf8] sm:$0xf0]  ;;  %v1209_v46 = vor.u32 %v1370_v40, %v1206_v41 }
  0x27   : > { %v1273_v47 = vor.u32 %v1386_v42, %v1270_v43 }
  0x29   : > { %530 = vmatpush.bf16.msra.mxu0 %v1389_v12  ;;  %1508 = vmatpush.bf16.msra.mxu2 %v1389_v12  ;;  %v1188_v12 = vld [vmem:[%s1791_s4 + $0x50] sm:$0xf] }
  0x2a   : > { %619 = vmatpush.bf16.msra.mxu1 %v1397_v13  ;;  %1516 = vmatpush.bf16.msra.mxu3 %v1397_v13  ;;  %v1367_v13 = vld [vmem:[%s1791_s4 + $0x54] sm:$0xf0] }
  0x2b   : > { %v1189_v20 = vor.u32 %v1367_v13, %v1188_v12 }
  0x2d   : > { %531 = vmatpush.bf16.msra.mxu0 %v1388_v14  ;;  %1509 = vmatpush.bf16.msra.mxu2 %v1388_v14  ;;  %v1252_v14 = vld [vmem:[%s1791_s4 + $0xd0] sm:$0xf] }
  0x2e   : > { %620 = vmatpush.bf16.msra.mxu1 %v1396_v15  ;;  %1517 = vmatpush.bf16.msra.mxu3 %v1396_v15  ;;  %v1383_v15 = vld [vmem:[%s1791_s4 + $0xd4] sm:$0xf0] }
  0x2f   : > { %v1253_v21 = vor.u32 %v1383_v15, %v1252_v14 }
  0x30   : > { %532 = vmatmul.bf16.vlgmr.msra.gmra.mxu0 %v1149_v24  ;;  %572 = vmatmul.bf16.vlgmr.msra.gmra.mxu2 %v1213_v25  ;;  %v1196_v24 = vld [vmem:[%s1791_s4 + $0x60] sm:$0xf]  ;;  %v1369_v25 = vld [vmem:[%s1791_s4 + $0x64] sm:$0xf0] }
  0x31   : > { %621 = vmatmul.bf16.vlgmr.msra.gmra.mxu1 %v1153_v26  ;;  %661 = vmatmul.bf16.vlgmr.msra.gmra.mxu3 %v1217_v27  ;;  %v1260_v26 = vld [vmem:[%s1791_s4 + $0xe0] sm:$0xf]  ;;  %v1385_v27 = vld [vmem:[%s1791_s4 + $0xe4] sm:$0xf0]  ;;  %v1197_v32 = vor.u32 %v1369_v25, %v1196_v24 }
  0x32   : > { %v1261_v33 = vor.u32 %v1385_v27, %v1260_v26 }
  0x40   : > { %537 = vmatmul.bf16.gmra.mxu0 %v1157_v36  ;;  %577 = vmatmul.bf16.gmra.mxu2 %v1221_v37  ;;  %v1204_v36 = vld [vmem:[%s1791_s4 + $0x70] sm:$0xf]  ;;  %v1371_v37 = vld [vmem:[%s1791_s4 + $0x74] sm:$0xf0] }
  0x41   : > { %626 = vmatmul.bf16.gmra.mxu1 %v1161_v38  ;;  %666 = vmatmul.bf16.gmra.mxu3 %v1225_v39  ;;  %v1268_v38 = vld [vmem:[%s1791_s4 + $0xf0] sm:$0xf]  ;;  %v1387_v39 = vld [vmem:[%s1791_s4 + $0xf4] sm:$0xf0]  ;;  %v1205_v44 = vor.u32 %v1371_v37, %v1204_v36 }
  0x42   : > { %v1269_v45 = vor.u32 %v1387_v39, %v1268_v38 }
  0x50   : > { %542 = vmatmul.bf16.gmra.mxu0 %v1165_v48  ;;  %582 = vmatmul.bf16.gmra.mxu2 %v1229_v49  ;;  %v1869_v49 = vld [vmem:[%s2066_s2] ss:$0 sm:$0xff] }
  0x51   : > { %631 = vmatmul.bf16.gmra.mxu1 %v1169_v50  ;;  %671 = vmatmul.bf16.gmra.mxu3 %v1233_v51 }
  0x60   : > { %547 = vmatmul.bf16.gmra.mxu0 %v1173_v60  ;;  %587 = vmatmul.bf16.gmra.mxu2 %v1237_v61 }
  0x61   : > { %636 = vmatmul.bf16.gmra.mxu1 %v1177_v62  ;;  %676 = vmatmul.bf16.gmra.mxu3 %v1241_v63 }
  0x70   : > { %552 = vmatmul.bf16.gmra.mxu0 %v1181_v8  ;;  %592 = vmatmul.bf16.gmra.mxu2 %v1245_v9 }
  0x71   : > { %641 = vmatmul.bf16.gmra.mxu1 %v1185_v10  ;;  %681 = vmatmul.bf16.gmra.mxu3 %v1249_v11 }
  0x80   : > { %557 = vmatmul.bf16.gmra.mxu0 %v1189_v20  ;;  %597 = vmatmul.bf16.gmra.mxu2 %v1253_v21 }
  0x81   : > { %646 = vmatmul.bf16.gmra.mxu1 %v1193_v22  ;;  %686 = vmatmul.bf16.gmra.mxu3 %v1257_v23 }
  0x90   : > { %562 = vmatmul.bf16.gmra.mxu0 %v1197_v32  ;;  %602 = vmatmul.bf16.gmra.mxu2 %v1261_v33 }
  0x91   : > { %651 = vmatmul.bf16.gmra.mxu1 %v1201_v34  ;;  %691 = vmatmul.bf16.gmra.mxu3 %v1265_v35 }
  0xa0   : > { %567 = vmatmul.bf16.gmra.mxu0 %v1205_v44  ;;  %607 = vmatmul.bf16.gmra.mxu2 %v1269_v45 }
  0xa1   : > { %656 = vmatmul.bf16.gmra.mxu1 %v1209_v46  ;;  %696 = vmatmul.bf16.gmra.mxu3 %v1273_v47 }
  0xad   : > { %v533_v48 = vpop.f32.mrf.mxu0 }
  0xae   : > { %v622_v50 = vpop.f32.mrf.mxu1  ;;  %v534_v51 = vadd.f32 %v1869_v49, %v533_v48 }
  0xb0   : > { %v623_v55 = vadd.f32 %v622_v50, %v534_v51 }
  0xb2   : > { %v702_v60 = vmax.f32 %v623_v55, 0.0 }
  0xb3   : > { %v573_v52 = vpop.f32.mrf.mxu2 }
  0xb4   : > { %v662_v53 = vpop.f32.mrf.mxu3  ;;  %v574_v58 = vadd.f32 %v1869_v49, %v573_v52 }
  0xb5   : > { %v535_v54 = vpop.f32.mrf.mxu0 }
  0xb6   : > { %v536_v56 = vadd.f32 %v1869_v49, %v535_v54  ;;  %v624_v57 = vpop.f32.mrf.mxu1  ;;  %v663_v63 = vadd.f32 %v662_v53, %v574_v58 }
  0xb8   : > { %v625_v59 = vadd.f32 %v624_v57, %v536_v56  ;;  %v718_v6 = vmax.f32 %v663_v63, 0.0 }
  0xba   : > { %v703_v61 = vmax.f32 %v625_v59, 0.0 }
  0xbb   : > { %v575_v62 = vpop.f32.mrf.mxu2 }
  0xbc   : > { %v1410_v0 = vpack.c.bf16 %v703_v61, %v702_v60  ;;  %v576_v1 = vadd.f32 %v1869_v49, %v575_v62  ;;  %v664_v2 = vpop.f32.mrf.mxu3 }
  0xbd   : > { %v538_v3 = vpop.f32.mrf.mxu0 }
  0xbe   : > { %1411 = vst [vmem:[%s1876_s22] sm:$0xff] %v1410_v0   ;;  %v665_v4 = vadd.f32 %v664_v2, %v576_v1  ;;  %v627_v5 = vpop.f32.mrf.mxu1  ;;  %v539_v9 = vadd.f32 %v1869_v49, %v538_v3 }
  0xc0   : > { %v719_v7 = vmax.f32 %v665_v4, 0.0  ;;  %v628_v13 = vadd.f32 %v627_v5, %v539_v9 }
  0xc2   : > { %v1450_v8 = vpack.c.bf16 %v719_v7, %v718_v6  ;;  %v704_v18 = vmax.f32 %v628_v13, 0.0 }
  0xc3   : > { %v578_v10 = vpop.f32.mrf.mxu2 }
  0xc4   : > { %1494 = vst [vmem:[%s1876_s22 + $0x40] sm:$0xff] %v1450_v8   ;;  %v667_v11 = vpop.f32.mrf.mxu3  ;;  %v579_v16 = vadd.f32 %v1869_v49, %v578_v10 }
  0xc5   : > { %v540_v12 = vpop.f32.mrf.mxu0 }
  0xc6   : > { %v541_v14 = vadd.f32 %v1869_v49, %v540_v12  ;;  %v629_v15 = vpop.f32.mrf.mxu1  ;;  %v668_v21 = vadd.f32 %v667_v11, %v579_v16 }
  0xc8   : > { %v630_v17 = vadd.f32 %v629_v15, %v541_v14  ;;  %v720_v28 = vmax.f32 %v668_v21, 0.0 }
  0xca   : > { %v705_v19 = vmax.f32 %v630_v17, 0.0 }
  0xcb   : > { %v580_v20 = vpop.f32.mrf.mxu2 }
  0xcc   : > { %v1415_v22 = vpack.c.bf16 %v705_v19, %v704_v18  ;;  %v581_v23 = vadd.f32 %v1869_v49, %v580_v20  ;;  %v669_v24 = vpop.f32.mrf.mxu3 }
  0xcd   : > { %v543_v25 = vpop.f32.mrf.mxu0 }
  0xce   : > { %1487 = vst [vmem:[%s1876_s22 + $0x8] sm:$0xff] %v1415_v22   ;;  %v670_v26 = vadd.f32 %v669_v24, %v581_v23  ;;  %v632_v27 = vpop.f32.mrf.mxu1  ;;  %v544_v31 = vadd.f32 %v1869_v49, %v543_v25 }
  0xd0   : > { %v721_v29 = vmax.f32 %v670_v26, 0.0  ;;  %v633_v35 = vadd.f32 %v632_v27, %v544_v31 }
  0xd2   : > { %v1455_v30 = vpack.c.bf16 %v721_v29, %v720_v28  ;;  %v706_v40 = vmax.f32 %v633_v35, 0.0 }
  0xd3   : > { %v583_v32 = vpop.f32.mrf.mxu2 }
  0xd4   : > { %1495 = vst [vmem:[%s1876_s22 + $0x48] sm:$0xff] %v1455_v30   ;;  %v672_v33 = vpop.f32.mrf.mxu3  ;;  %v584_v38 = vadd.f32 %v1869_v49, %v583_v32 }
  0xd5   : > { %v545_v34 = vpop.f32.mrf.mxu0 }
  0xd6   : > { %v546_v36 = vadd.f32 %v1869_v49, %v545_v34  ;;  %v634_v37 = vpop.f32.mrf.mxu1  ;;  %v673_v43 = vadd.f32 %v672_v33, %v584_v38 }
  0xd8   : > { %v635_v39 = vadd.f32 %v634_v37, %v546_v36  ;;  %v722_v51 = vmax.f32 %v673_v43, 0.0 }
  0xda   : > { %v707_v41 = vmax.f32 %v635_v39, 0.0 }
  0xdb   : > { %v585_v42 = vpop.f32.mrf.mxu2 }
  0xdc   : > { %v1420_v44 = vpack.c.bf16 %v707_v41, %v706_v40  ;;  %v586_v45 = vadd.f32 %v1869_v49, %v585_v42  ;;  %v674_v46 = vpop.f32.mrf.mxu3 }
  0xdd   : > { %v548_v47 = vpop.f32.mrf.mxu0 }
  0xde   : > { %1488 = vst [vmem:[%s1876_s22 + $0x10] sm:$0xff] %v1420_v44   ;;  %v675_v48 = vadd.f32 %v674_v46, %v586_v45  ;;  %v637_v50 = vpop.f32.mrf.mxu1  ;;  %v549_v54 = vadd.f32 %v1869_v49, %v548_v47 }
  0xe0   : > { %v723_v52 = vmax.f32 %v675_v48, 0.0  ;;  %v638_v58 = vadd.f32 %v637_v50, %v549_v54 }
  0xe2   : > { %v1460_v53 = vpack.c.bf16 %v723_v52, %v722_v51  ;;  %v708_v63 = vmax.f32 %v638_v58, 0.0 }
  0xe3   : > { %v588_v55 = vpop.f32.mrf.mxu2 }
  0xe4   : > { %1496 = vst [vmem:[%s1876_s22 + $0x50] sm:$0xff] %v1460_v53   ;;  %v677_v56 = vpop.f32.mrf.mxu3  ;;  %v589_v61 = vadd.f32 %v1869_v49, %v588_v55 }
  0xe5   : > { %v550_v57 = vpop.f32.mrf.mxu0 }
  0xe6   : > { %v551_v59 = vadd.f32 %v1869_v49, %v550_v57  ;;  %v639_v60 = vpop.f32.mrf.mxu1  ;;  %v678_v2 = vadd.f32 %v677_v56, %v589_v61 }
  0xe8   : > { %v640_v62 = vadd.f32 %v639_v60, %v551_v59  ;;  %v724_v9 = vmax.f32 %v678_v2, 0.0 }
  0xea   : > { %v709_v0 = vmax.f32 %v640_v62, 0.0 }
  0xeb   : > { %v590_v1 = vpop.f32.mrf.mxu2 }
  0xec   : > { %v1425_v3 = vpack.c.bf16 %v709_v0, %v708_v63  ;;  %v591_v4 = vadd.f32 %v1869_v49, %v590_v1  ;;  %v679_v5 = vpop.f32.mrf.mxu3 }
  0xed   : > { %v553_v6 = vpop.f32.mrf.mxu0 }
  0xee   : > { %1489 = vst [vmem:[%s1876_s22 + $0x18] sm:$0xff] %v1425_v3   ;;  %v680_v7 = vadd.f32 %v679_v5, %v591_v4  ;;  %v642_v8 = vpop.f32.mrf.mxu1  ;;  %v554_v12 = vadd.f32 %v1869_v49, %v553_v6 }
  0xf0   : > { %v725_v10 = vmax.f32 %v680_v7, 0.0  ;;  %v643_v16 = vadd.f32 %v642_v8, %v554_v12 }
  0xf2   : > { %v1465_v11 = vpack.c.bf16 %v725_v10, %v724_v9  ;;  %v710_v21 = vmax.f32 %v643_v16, 0.0 }
  0xf3   : > { %v593_v13 = vpop.f32.mrf.mxu2 }
  0xf4   : > { %1497 = vst [vmem:[%s1876_s22 + $0x58] sm:$0xff] %v1465_v11   ;;  %v682_v14 = vpop.f32.mrf.mxu3  ;;  %v594_v19 = vadd.f32 %v1869_v49, %v593_v13 }
  0xf5   : > { %v555_v15 = vpop.f32.mrf.mxu0 }
  0xf6   : > { %v556_v17 = vadd.f32 %v1869_v49, %v555_v15  ;;  %v644_v18 = vpop.f32.mrf.mxu1  ;;  %v683_v24 = vadd.f32 %v682_v14, %v594_v19 }
  0xf8   : > { %v645_v20 = vadd.f32 %v644_v18, %v556_v17  ;;  %v726_v31 = vmax.f32 %v683_v24, 0.0 }
  0xfa   : > { %v711_v22 = vmax.f32 %v645_v20, 0.0 }
  0xfb   : > { %v595_v23 = vpop.f32.mrf.mxu2 }
  0xfc   : > { %v1430_v25 = vpack.c.bf16 %v711_v22, %v710_v21  ;;  %v596_v26 = vadd.f32 %v1869_v49, %v595_v23  ;;  %v684_v27 = vpop.f32.mrf.mxu3 }
  0xfd   : > { %v558_v28 = vpop.f32.mrf.mxu0 }
  0xfe   : > { %1490 = vst [vmem:[%s1876_s22 + $0x20] sm:$0xff] %v1430_v25   ;;  %v685_v29 = vadd.f32 %v684_v27, %v596_v26  ;;  %v647_v30 = vpop.f32.mrf.mxu1  ;;  %v559_v34 = vadd.f32 %v1869_v49, %v558_v28 }
 0x100   : > { %v727_v32 = vmax.f32 %v685_v29, 0.0  ;;  %v648_v38 = vadd.f32 %v647_v30, %v559_v34 }
 0x102   : > { %v1470_v33 = vpack.c.bf16 %v727_v32, %v726_v31  ;;  %v712_v43 = vmax.f32 %v648_v38, 0.0 }
 0x103   : > { %v598_v35 = vpop.f32.mrf.mxu2 }
 0x104   : > { %1498 = vst [vmem:[%s1876_s22 + $0x60] sm:$0xff] %v1470_v33   ;;  %v687_v36 = vpop.f32.mrf.mxu3  ;;  %v599_v41 = vadd.f32 %v1869_v49, %v598_v35 }
 0x105   : > { %v560_v37 = vpop.f32.mrf.mxu0 }
 0x106   : > { %v561_v39 = vadd.f32 %v1869_v49, %v560_v37  ;;  %v649_v40 = vpop.f32.mrf.mxu1  ;;  %v688_v46 = vadd.f32 %v687_v36, %v599_v41 }
 0x108   : > { %v650_v42 = vadd.f32 %v649_v40, %v561_v39  ;;  %v728_v54 = vmax.f32 %v688_v46, 0.0 }
 0x10a   : > { %v713_v44 = vmax.f32 %v650_v42, 0.0 }
 0x10b   : > { %v600_v45 = vpop.f32.mrf.mxu2 }
 0x10c   : > { %v1435_v47 = vpack.c.bf16 %v713_v44, %v712_v43  ;;  %v601_v48 = vadd.f32 %v1869_v49, %v600_v45  ;;  %v689_v50 = vpop.f32.mrf.mxu3 }
 0x10d   : > { %v563_v51 = vpop.f32.mrf.mxu0 }
 0x10e   : > { %1491 = vst [vmem:[%s1876_s22 + $0x28] sm:$0xff] %v1435_v47   ;;  %v690_v52 = vadd.f32 %v689_v50, %v601_v48  ;;  %v652_v53 = vpop.f32.mrf.mxu1  ;;  %v564_v57 = vadd.f32 %v1869_v49, %v563_v51 }
 0x110   : > { %v729_v55 = vmax.f32 %v690_v52, 0.0  ;;  %v653_v61 = vadd.f32 %v652_v53, %v564_v57 }
 0x112   : > { %v1475_v56 = vpack.c.bf16 %v729_v55, %v728_v54  ;;  %v714_v2 = vmax.f32 %v653_v61, 0.0 }
 0x113   : > { %v603_v58 = vpop.f32.mrf.mxu2 }
 0x114   : > { %1499 = vst [vmem:[%s1876_s22 + $0x68] sm:$0xff] %v1475_v56   ;;  %v692_v59 = vpop.f32.mrf.mxu3  ;;  %v604_v0 = vadd.f32 %v1869_v49, %v603_v58 }
 0x115   : > { %v565_v60 = vpop.f32.mrf.mxu0 }
 0x116   : > { %v566_v62 = vadd.f32 %v1869_v49, %v565_v60  ;;  %v654_v63 = vpop.f32.mrf.mxu1  ;;  %v693_v5 = vadd.f32 %v692_v59, %v604_v0 }
 0x118   : > { %v655_v1 = vadd.f32 %v654_v63, %v566_v62  ;;  %v730_v12 = vmax.f32 %v693_v5, 0.0 }
 0x11a   : > { %v715_v3 = vmax.f32 %v655_v1, 0.0 }
 0x11b   : > { %v605_v4 = vpop.f32.mrf.mxu2 }
 0x11c   : > { %v1440_v6 = vpack.c.bf16 %v715_v3, %v714_v2  ;;  %v606_v7 = vadd.f32 %v1869_v49, %v605_v4  ;;  %v694_v8 = vpop.f32.mrf.mxu3 }
 0x11d   : > { %v568_v9 = vpop.f32.mrf.mxu0 }
 0x11e   : > { %1492 = vst [vmem:[%s1876_s22 + $0x30] sm:$0xff] %v1440_v6   ;;  %v695_v10 = vadd.f32 %v694_v8, %v606_v7  ;;  %v657_v11 = vpop.f32.mrf.mxu1  ;;  %v569_v15 = vadd.f32 %v1869_v49, %v568_v9 }
 0x120   : > { %v731_v13 = vmax.f32 %v695_v10, 0.0  ;;  %v658_v19 = vadd.f32 %v657_v11, %v569_v15 }
 0x122   : > { %v1480_v14 = vpack.c.bf16 %v731_v13, %v730_v12  ;;  %v716_v24 = vmax.f32 %v658_v19, 0.0 }
 0x123   : > { %v608_v16 = vpop.f32.mrf.mxu2 }
 0x124   : > { %1500 = vst [vmem:[%s1876_s22 + $0x70] sm:$0xff] %v1480_v14   ;;  %v697_v17 = vpop.f32.mrf.mxu3  ;;  %v609_v22 = vadd.f32 %v1869_v49, %v608_v16 }
 0x125   : > { %v570_v18 = vpop.f32.mrf.mxu0 }
 0x126   : > { %v571_v20 = vadd.f32 %v1869_v49, %v570_v18  ;;  %v659_v21 = vpop.f32.mrf.mxu1  ;;  %v698_v27 = vadd.f32 %v697_v17, %v609_v22 }
 0x128   : > { %v660_v23 = vadd.f32 %v659_v21, %v571_v20  ;;  %v732_v32 = vmax.f32 %v698_v27, 0.0 }
 0x12a   : > { %v717_v25 = vmax.f32 %v660_v23, 0.0 }
 0x12b   : > { %v610_v26 = vpop.f32.mrf.mxu2 }
 0x12c   : > { %v1445_v28 = vpack.c.bf16 %v717_v25, %v716_v24  ;;  %v611_v29 = vadd.f32 %v1869_v49, %v610_v26  ;;  %v699_v30 = vpop.f32.mrf.mxu3 }
 0x12e   : > { %1493 = vst [vmem:[%s1876_s22 + $0x38] sm:$0xff] %v1445_v28   ;;  %v700_v31 = vadd.f32 %v699_v30, %v611_v29 }
 0x130   : > { %v733_v33 = vmax.f32 %v700_v31, 0.0  ;;  %804 = sbr.rel (!%p1740_p4) target bundleno = 373 (0x175), region = 36 }
 0x132   : > { %v1485_v34 = vpack.c.bf16 %v733_v33, %v732_v32 }
 0x134   : > { %1501 = vst [vmem:[%s1876_s22 + $0x78] sm:$0xff] %v1485_v34  }
 0x135   : > { %s2078_s12 = smov (!%p807_p8, %s806_s12), 32 }
 0x136   : > { %s1340_s27 = sshll.u32 %s2078_s12, 2 }
 0x137   : > { %p1343_p9 = scmp.eq.s32.totalorder %s1340_s27, 0 }
 0x138   : > { %s1935_s28 = sshrl.u32 (!%p1343_p9), %s2078_s12, 5 }
 0x139   : > { %815 = sbr.rel (%p1343_p9) target bundleno = 373 (0x175), region = 40  ;;  %p1344_p10 = scmp.le.s32.totalorder (!%p1343_p9), %s1935_s28, 0 }
 0x13e   : > { %1094 = sbr.rel (%p1344_p10) target bundleno = 356 (0x164), region = 112  ;;  %s2069_s15 = smov (!%p1344_p10), %s1929_s26 }
 0x13f   : > { %s2070_s20 = smov (!%p1344_p10), %s1876_s22  ;;  %s1944_s6 = smov (!%p1344_p10), 0  }
 0x140   : > { %s1946_s29 = smov (!%p1344_p10), 0  }
 0x143 LB: >> { %v832_v49 = vld [vmem:[%s1669_s20] sm:$0xf]  ;;  %v834_v35 = vld [vmem:[%s1669_s20 + $0x4] sm:$0xf]  ;;  %v836_v36 = vld [vmem:[%s1669_s20 + $0x8] sm:$0xf]  ;;  %s1677_s29 = sphi %s1946_s29, %s826_s29   ;;  %s1673_s6 = sphi %s1944_s6, %s2073_s6   ;;  %s1669_s20 = sphi %s2070_s20, %s2072_s20   ;;  %s1665_s15 = sphi %s2069_s15, %s2071_s15  }
 0x144   : >> { %833 = vst [vmem:[%s1665_s15] sm:$0xf] %v832_v49  ;;  %v838_v37 = vld [vmem:[%s1669_s20 + $0xc] sm:$0xf]  ;;  %v840_v38 = vld [vmem:[%s1669_s20 + $0x10] sm:$0xf]  ;;  %s896_s30 = sadd.s32 1, %s1673_s6 }
 0x145   : >> { %835 = vst [vmem:[%s1665_s15 + $0x4] sm:$0xf] %v834_v35  ;;  %v842_v39 = vld [vmem:[%s1669_s20 + $0x14] sm:$0xf]  ;;  %v844_v40 = vld [vmem:[%s1669_s20 + $0x18] sm:$0xf]  ;;  %p897_p11 = scmp.ge.s32.totalorder %s896_s30, %s1935_s28 }
 0x146   : >> { %837 = vst [vmem:[%s1665_s15 + $0x8] sm:$0xf] %v836_v36  ;;  %v846_v41 = vld [vmem:[%s1669_s20 + $0x1c] sm:$0xf]  ;;  %v848_v42 = vld [vmem:[%s1669_s20 + $0x20] sm:$0xf] }
 0x147   : >> { %839 = vst [vmem:[%s1665_s15 + $0xc] sm:$0xf] %v838_v37  ;;  %v850_v43 = vld [vmem:[%s1669_s20 + $0x24] sm:$0xf]  ;;  %v852_v44 = vld [vmem:[%s1669_s20 + $0x28] sm:$0xf] }
 0x148   : >> { %841 = vst [vmem:[%s1665_s15 + $0x10] sm:$0xf] %v840_v38  ;;  %v854_v45 = vld [vmem:[%s1669_s20 + $0x2c] sm:$0xf]  ;;  %v856_v46 = vld [vmem:[%s1669_s20 + $0x30] sm:$0xf] }
 0x149   : >> { %843 = vst [vmem:[%s1665_s15 + $0x14] sm:$0xf] %v842_v39  ;;  %v858_v47 = vld [vmem:[%s1669_s20 + $0x34] sm:$0xf]  ;;  %v860_v48 = vld [vmem:[%s1669_s20 + $0x38] sm:$0xf] }
 0x14a   : >> { %845 = vst [vmem:[%s1665_s15 + $0x18] sm:$0xf] %v844_v40  ;;  %v862_v50 = vld [vmem:[%s1669_s20 + $0x3c] sm:$0xf]  ;;  %v864_v51 = vld [vmem:[%s1669_s20 + $0x40] sm:$0xf] }
 0x14b   : >> { %847 = vst [vmem:[%s1665_s15 + $0x1c] sm:$0xf] %v846_v41  ;;  %v866_v52 = vld [vmem:[%s1669_s20 + $0x44] sm:$0xf]  ;;  %s2080_s30 = smov (%p897_p11, %s896_s30), 0  ;;  %s826_s29 = sadd.s32 1, %s1677_s29  }
 0x14c   : >> { %849 = vst [vmem:[%s1665_s15 + $0x20] sm:$0xf] %v848_v42  ;;  %v868_v53 = vld [vmem:[%s1669_s20 + $0x48] sm:$0xf]  ;;  %v870_v54 = vld [vmem:[%s1669_s20 + $0x4c] sm:$0xf]  ;;  %p825_p12 = scmp.ge.s32.totalorder %s826_s29, %s1935_s28  ;;  %s2073_s6 = smov %s2080_s30 }
 0x14d   : >> { %851 = vst [vmem:[%s1665_s15 + $0x24] sm:$0xf] %v850_v43  ;;  %s1345_s4 = sshll.u32 %s2080_s30, 7  ;;  %v872_v55 = vld [vmem:[%s1669_s20 + $0x50] sm:$0xf] }
 0x14e   : >> { %853 = vst [vmem:[%s1665_s15 + $0x28] sm:$0xf] %v852_v44  ;;  %s2005_s5 = scalar_lea.vmem %s1876_s22, %s1345_s4 [#allocation2]   ;;  %s902_s7 = scalar_lea.vmem %s1929_s26, %s1345_s4   ;;  %v874_v56 = vld [vmem:[%s1669_s20 + $0x54] sm:$0xf]  ;;  %v876_v57 = vld [vmem:[%s1669_s20 + $0x58] sm:$0xf] }
 0x14f   : >> { %855 = vst [vmem:[%s1665_s15 + $0x2c] sm:$0xf] %v854_v45  ;;  %v878_v58 = vld [vmem:[%s1669_s20 + $0x5c] sm:$0xf]  ;;  %v880_v59 = vld [vmem:[%s1669_s20 + $0x60] sm:$0xf] }
 0x150   : >> { %857 = vst [vmem:[%s1665_s15 + $0x30] sm:$0xf] %v856_v46  ;;  %v882_v60 = vld [vmem:[%s1669_s20 + $0x64] sm:$0xf]  ;;  %v884_v61 = vld [vmem:[%s1669_s20 + $0x68] sm:$0xf] }
 0x151   : >> { %859 = vst [vmem:[%s1665_s15 + $0x34] sm:$0xf] %v858_v47  ;;  %v886_v62 = vld [vmem:[%s1669_s20 + $0x6c] sm:$0xf]  ;;  %v888_v63 = vld [vmem:[%s1669_s20 + $0x70] sm:$0xf] }
 0x152   : >> { %861 = vst [vmem:[%s1665_s15 + $0x38] sm:$0xf] %v860_v48  ;;  %v890_v0 = vld [vmem:[%s1669_s20 + $0x74] sm:$0xf]  ;;  %v892_v1 = vld [vmem:[%s1669_s20 + $0x78] sm:$0xf] }
 0x153   : >> { %863 = vst [vmem:[%s1665_s15 + $0x3c] sm:$0xf] %v862_v50  ;;  %v894_v2 = vld [vmem:[%s1669_s20 + $0x7c] sm:$0xf]  ;;  %s2072_s20 = smov %s2005_s5 }
 0x154   : >> { %865 = vst [vmem:[%s1665_s15 + $0x40] sm:$0xf] %v864_v51 }
 0x155   : >> { %867 = vst [vmem:[%s1665_s15 + $0x44] sm:$0xf] %v866_v52 }
 0x156   : >> { %869 = vst [vmem:[%s1665_s15 + $0x48] sm:$0xf] %v868_v53 }
 0x157   : >> { %871 = vst [vmem:[%s1665_s15 + $0x4c] sm:$0xf] %v870_v54 }
 0x158   : >> { %873 = vst [vmem:[%s1665_s15 + $0x50] sm:$0xf] %v872_v55 }
 0x159   : >> { %875 = vst [vmem:[%s1665_s15 + $0x54] sm:$0xf] %v874_v56 }
 0x15a   : >> { %877 = vst [vmem:[%s1665_s15 + $0x58] sm:$0xf] %v876_v57 }
 0x15b   : >> { %879 = vst [vmem:[%s1665_s15 + $0x5c] sm:$0xf] %v878_v58 }
 0x15c   : >> { %881 = vst [vmem:[%s1665_s15 + $0x60] sm:$0xf] %v880_v59 }
 0x15d   : >> { %883 = vst [vmem:[%s1665_s15 + $0x64] sm:$0xf] %v882_v60 }
 0x15e   : >> { %885 = vst [vmem:[%s1665_s15 + $0x68] sm:$0xf] %v884_v61 }
 0x15f   : >> { %887 = vst [vmem:[%s1665_s15 + $0x6c] sm:$0xf] %v886_v62  ;;  %828 = sbr.rel (!%p825_p12) target bundleno = 323 (0x143), region = 118 }
 0x160   : >> { %889 = vst [vmem:[%s1665_s15 + $0x70] sm:$0xf] %v888_v63 }
 0x161   : >> { %891 = vst [vmem:[%s1665_s15 + $0x74] sm:$0xf] %v890_v0 }
 0x162   : >> { %893 = vst [vmem:[%s1665_s15 + $0x78] sm:$0xf] %v892_v1 }
 0x163   : >> { %895 = vst [vmem:[%s1665_s15 + $0x7c] sm:$0xf] %v894_v2  ;;  %s2071_s15 = smov %s902_s7 }
 0x164 PF: > { %s2046_s8 = sand.u32 31, %s2078_s12   ;;  %s1405_s9 = sshll.u32 %s1935_s28, 7 }
 0x165   : > { %s907_s10 = scalar_lea.vmem %s1876_s22, %s1405_s9 [#allocation2]   ;;  %s909_s11 = scalar_lea.vmem %s1929_s26, %s1405_s9  }
 0x166   : > { %p1350_p13 = scmp.le.s32.totalorder %s2046_s8, 0 }
 0x167   : > { %s1679_s14 = smov (!%p1350_p13), %s909_s11   ;;  %s1683_s17 = smov (!%p1350_p13), %s907_s10  }
 0x168   : > { %1108 = sbr.rel (%p1350_p13) target bundleno = 373 (0x175), region = 123  ;;  %s1687_s18 = smov (!%p1350_p13), 0  }
 0x169   : > { %s1691_s21 = smov (!%p1350_p13), 0  }
 0x16d LB: >> { %v919_v3 = vld [vmem:[%s1685_s17] sm:$0xf]  ;;  %s921_s12 = sadd.s32 1, %s1689_s18  ;;  %s913_s21 = sadd.s32 1, %s1693_s21   ;;  %s1693_s21 = sphi %s1691_s21, %s913_s21   ;;  %s1689_s18 = sphi %s1687_s18, %s1688_s18   ;;  %s1685_s17 = sphi %s1683_s17, %s926_s17   ;;  %s1681_s14 = sphi %s1679_s14, %s927_s14  }
 0x16e   : >> { %920 = vst [vmem:[%s1681_s14] sm:$0xf] %v919_v3  ;;  %p922_p0 = scmp.ge.s32.totalorder %s921_s12, %s2046_s8  ;;  %p912_p1 = scmp.ge.s32.totalorder %s913_s21, %s2046_s8 }
 0x170   : >> { %s2082_s12 = smov (%p922_p0, %s921_s12), 0  ;;  %915 = sbr.rel (!%p912_p1) target bundleno = 365 (0x16d), region = 129 }
 0x171   : >> { %s1351_s22 = sshll.u32 %s2082_s12, 2  ;;  %s1688_s18 = smov %s2082_s12  }
 0x172   : >> { %s926_s17 = scalar_lea.vmem %s907_s10, %s1351_s22 [#allocation2]   ;;  %s927_s14 = scalar_lea.vmem %s909_s11, %s1351_s22  }
 0x175 PF: > { %p10_p2 = scmp.ge.s32.totalorder %s1730_s16, 6   ;;  %s2074_s12 = smov %s1657_s13 }
 0x176   : > { %s2075_s13 = smov %s1738_s19  ;;  %s2076_s14 = smov %s1730_s16 }
 0x177   :  { %12 = sbr.rel (!%p10_p2) target bundleno = 2 (0x2), region = 140 }

// kernel: _lambda_.6
= control target key start
LH: loop header
LB: loop body
LE: loop exit
PB: predicated region body
PF: predicated region fallthrough
CT: control target
= control target key end

     0   :  { %s1690_s1 = inlined_call_operand.vmem [shape: bf16[512,128], index: 1, kind: input, shape index: {}]   ;;  %s1691_s2 = inlined_call_operand.vmem [shape: f32[1,128], index: 2, kind: input, shape index: {}]   ;;  %s1692_s0 = inlined_call_operand.vmem [shape: bf16[162,512], index: 0, kind: input, shape index: {}]   ;;  %s1693_s3 = inlined_call_operand.vmem [shape: bf16[162,128], index: 3, kind: output, shape index: {}]  }
   0x1   :  { %v1184_v0 = vld [vmem:[%s1690_s1 + $0x38] sm:$0xff]  ;;  %v1183_v4 = vld [vmem:[%s1690_s1 + $0x30] sm:$0xff]  ;;  %v1182_v8 = vld [vmem:[%s1690_s1 + $0x28] sm:$0xff] }
   0x2   :  { %v1192_v1 = vld [vmem:[%s1690_s1 + $0x78] sm:$0xff]  ;;  %530 = vmatpush.bf16.msra.mxu0 %v1184_v0  ;;  %v1191_v5 = vld [vmem:[%s1690_s1 + $0x70] sm:$0xff]  ;;  %v1190_v9 = vld [vmem:[%s1690_s1 + $0x68] sm:$0xff] }
   0x3   :  { %v1200_v2 = vld [vmem:[%s1690_s1 + $0xb8] sm:$0xff]  ;;  %593 = vmatpush.bf16.msra.mxu1 %v1192_v1  ;;  %v1199_v6 = vld [vmem:[%s1690_s1 + $0xb0] sm:$0xff]  ;;  %v1198_v10 = vld [vmem:[%s1690_s1 + $0xa8] sm:$0xff] }
   0x4   :  { %v1208_v3 = vld [vmem:[%s1690_s1 + $0xf8] sm:$0xff]  ;;  %656 = vmatpush.bf16.msra.mxu2 %v1200_v2  ;;  %v1207_v7 = vld [vmem:[%s1690_s1 + $0xf0] sm:$0xff]  ;;  %v1206_v11 = vld [vmem:[%s1690_s1 + $0xe8] sm:$0xff] }
   0x5   :  { %719 = vmatpush.bf16.msra.mxu3 %v1208_v3  ;;  %v1181_v12 = vld [vmem:[%s1690_s1 + $0x20] sm:$0xff]  ;;  %v1180_v16 = vld [vmem:[%s1690_s1 + $0x18] sm:$0xff]  ;;  %v1179_v20 = vld [vmem:[%s1690_s1 + $0x10] sm:$0xff] }
   0x6   :  { %531 = vmatpush.bf16.msra.mxu0 %v1183_v4  ;;  %v1189_v13 = vld [vmem:[%s1690_s1 + $0x60] sm:$0xff]  ;;  %v1188_v17 = vld [vmem:[%s1690_s1 + $0x58] sm:$0xff]  ;;  %v1187_v21 = vld [vmem:[%s1690_s1 + $0x50] sm:$0xff] }
   0x7   :  { %594 = vmatpush.bf16.msra.mxu1 %v1191_v5  ;;  %v1197_v14 = vld [vmem:[%s1690_s1 + $0xa0] sm:$0xff]  ;;  %v1196_v18 = vld [vmem:[%s1690_s1 + $0x98] sm:$0xff]  ;;  %v1195_v22 = vld [vmem:[%s1690_s1 + $0x90] sm:$0xff] }
   0x8   :  { %657 = vmatpush.bf16.msra.mxu2 %v1199_v6  ;;  %v1205_v15 = vld [vmem:[%s1690_s1 + $0xe0] sm:$0xff]  ;;  %v1204_v19 = vld [vmem:[%s1690_s1 + $0xd8] sm:$0xff]  ;;  %v1203_v23 = vld [vmem:[%s1690_s1 + $0xd0] sm:$0xff] }
   0x9   :  { %720 = vmatpush.bf16.msra.mxu3 %v1207_v7  ;;  %v1178_v24 = vld [vmem:[%s1690_s1 + $0x8] sm:$0xff]  ;;  %v1177_v28 = vld [vmem:[%s1690_s1] sm:$0xff]  ;;  %v1139_v33 = vld [vmem:[%s1692_s0 + $0xc] sm:$0xf0] }
   0xa   :  { %532 = vmatpush.bf16.msra.mxu0 %v1182_v8  ;;  %v1186_v25 = vld [vmem:[%s1690_s1 + $0x48] sm:$0xff]  ;;  %v1185_v29 = vld [vmem:[%s1690_s1 + $0x40] sm:$0xff]  ;;  %v853_v35 = vld [vmem:[%s1692_s0 + $0x10] sm:$0xf0] }
   0xb   :  { %595 = vmatpush.bf16.msra.mxu1 %v1190_v9  ;;  %v1194_v26 = vld [vmem:[%s1690_s1 + $0x88] sm:$0xff]  ;;  %v1193_v30 = vld [vmem:[%s1690_s1 + $0x80] sm:$0xff]  ;;  %v1140_v37 = vld [vmem:[%s1692_s0 + $0x14] sm:$0xf0] }
   0xc   :  { %658 = vmatpush.bf16.msra.mxu2 %v1198_v10  ;;  %v1202_v27 = vld [vmem:[%s1690_s1 + $0xc8] sm:$0xff]  ;;  %v1201_v31 = vld [vmem:[%s1690_s1 + $0xc0] sm:$0xff]  ;;  %v861_v39 = vld [vmem:[%s1692_s0 + $0x18] sm:$0xf0] }
   0xd   :  { %721 = vmatpush.bf16.msra.mxu3 %v1206_v11  ;;  %v851_v32 = vld [vmem:[%s1692_s0] sm:$0xf]  ;;  %v1137_v34 = vld [vmem:[%s1692_s0 + $0x4] sm:$0xf]  ;;  %v859_v36 = vld [vmem:[%s1692_s0 + $0x8] sm:$0xf] }
   0xe   :  { %533 = vmatpush.bf16.msra.mxu0 %v1181_v12  ;;  %v1138_v38 = vld [vmem:[%s1692_s0 + $0xc] sm:$0xf]  ;;  %v852_v40 = vor.u32 %v1139_v33, %v851_v32  ;;  %v856_v41 = vor.u32 %v1137_v34, %v853_v35  ;;  %v860_v42 = vor.u32 %v1140_v37, %v859_v36  ;;  %v867_v44 = vld [vmem:[%s1692_s0 + $0x20] sm:$0xf]  ;;  %v1143_v45 = vld [vmem:[%s1692_s0 + $0x2c] sm:$0xf0] }
   0xf   :  { %596 = vmatpush.bf16.msra.mxu1 %v1189_v13  ;;  %v864_v43 = vor.u32 %v1138_v38, %v861_v39  ;;  %v1141_v46 = vld [vmem:[%s1692_s0 + $0x24] sm:$0xf]  ;;  %v869_v47 = vld [vmem:[%s1692_s0 + $0x30] sm:$0xf0]  ;;  %v875_v48 = vld [vmem:[%s1692_s0 + $0x28] sm:$0xf]  ;;  %v868_v52 = vor.u32 %v1143_v45, %v867_v44 }
  0x10   :  { %659 = vmatpush.bf16.msra.mxu2 %v1197_v14  ;;  %v1144_v49 = vld [vmem:[%s1692_s0 + $0x34] sm:$0xf0]  ;;  %v1142_v50 = vld [vmem:[%s1692_s0 + $0x2c] sm:$0xf]  ;;  %v877_v51 = vld [vmem:[%s1692_s0 + $0x38] sm:$0xf0]  ;;  %v872_v53 = vor.u32 %v1141_v46, %v869_v47 }
  0x11   :  { %722 = vmatpush.bf16.msra.mxu3 %v1205_v15  ;;  %v876_v54 = vor.u32 %v1144_v49, %v875_v48  ;;  %v880_v55 = vor.u32 %v1142_v50, %v877_v51  ;;  %v883_v56 = vld [vmem:[%s1692_s0 + $0x40] sm:$0xf]  ;;  %v1147_v57 = vld [vmem:[%s1692_s0 + $0x4c] sm:$0xf0]  ;;  %v1145_v58 = vld [vmem:[%s1692_s0 + $0x44] sm:$0xf] }
  0x12   :  { %534 = vmatpush.bf16.msra.mxu0 %v1180_v16  ;;  %v885_v59 = vld [vmem:[%s1692_s0 + $0x50] sm:$0xf0]  ;;  %v891_v60 = vld [vmem:[%s1692_s0 + $0x48] sm:$0xf]  ;;  %v1148_v61 = vld [vmem:[%s1692_s0 + $0x54] sm:$0xf0]  ;;  %v884_v0 = vor.u32 %v1147_v57, %v883_v56 }
  0x13   :  { %597 = vmatpush.bf16.msra.mxu1 %v1188_v17  ;;  %v1146_v62 = vld [vmem:[%s1692_s0 + $0x4c] sm:$0xf]  ;;  %v893_v63 = vld [vmem:[%s1692_s0 + $0x58] sm:$0xf0]  ;;  %v888_v1 = vor.u32 %v1145_v58, %v885_v59  ;;  %v892_v2 = vor.u32 %v1148_v61, %v891_v60  ;;  %v899_v4 = vld [vmem:[%s1692_s0 + $0x60] sm:$0xf] }
  0x14   :  { %660 = vmatpush.bf16.msra.mxu2 %v1196_v18  ;;  %v896_v3 = vor.u32 %v1146_v62, %v893_v63  ;;  %v1151_v5 = vld [vmem:[%s1692_s0 + $0x6c] sm:$0xf0]  ;;  %v1149_v6 = vld [vmem:[%s1692_s0 + $0x64] sm:$0xf]  ;;  %v901_v7 = vld [vmem:[%s1692_s0 + $0x70] sm:$0xf0] }
  0x15   :  { %723 = vmatpush.bf16.msra.mxu3 %v1204_v19  ;;  %v907_v8 = vld [vmem:[%s1692_s0 + $0x68] sm:$0xf]  ;;  %v1152_v9 = vld [vmem:[%s1692_s0 + $0x74] sm:$0xf0]  ;;  %v1150_v10 = vld [vmem:[%s1692_s0 + $0x6c] sm:$0xf]  ;;  %v900_v12 = vor.u32 %v1151_v5, %v899_v4  ;;  %v904_v13 = vor.u32 %v1149_v6, %v901_v7 }
  0x16   :  { %535 = vmatpush.bf16.msra.mxu0 %v1179_v20  ;;  %v909_v11 = vld [vmem:[%s1692_s0 + $0x78] sm:$0xf0]  ;;  %v908_v14 = vor.u32 %v1152_v9, %v907_v8  ;;  %v915_v16 = vld [vmem:[%s1692_s0 + $0x80] sm:$0xf]  ;;  %v1155_v17 = vld [vmem:[%s1692_s0 + $0x8c] sm:$0xf0] }
  0x17   :  { %598 = vmatpush.bf16.msra.mxu1 %v1187_v21  ;;  %v912_v15 = vor.u32 %v1150_v10, %v909_v11  ;;  %v1153_v18 = vld [vmem:[%s1692_s0 + $0x84] sm:$0xf]  ;;  %v917_v19 = vld [vmem:[%s1692_s0 + $0x90] sm:$0xf0]  ;;  %v923_v20 = vld [vmem:[%s1692_s0 + $0x88] sm:$0xf] }
  0x18   :  { %661 = vmatpush.bf16.msra.mxu2 %v1195_v22  ;;  %v1156_v21 = vld [vmem:[%s1692_s0 + $0x94] sm:$0xf0]  ;;  %v1154_v22 = vld [vmem:[%s1692_s0 + $0x8c] sm:$0xf]  ;;  %v939_v32 = vld [vmem:[%s1692_s0 + $0xa8] sm:$0xf] }
  0x19   :  { %724 = vmatpush.bf16.msra.mxu3 %v1203_v23  ;;  %v925_v23 = vld [vmem:[%s1692_s0 + $0x98] sm:$0xf0]  ;;  %v1160_v33 = vld [vmem:[%s1692_s0 + $0xb4] sm:$0xf0]  ;;  %v1158_v34 = vld [vmem:[%s1692_s0 + $0xac] sm:$0xf] }
  0x1a   :  { %536 = vmatpush.bf16.msra.mxu0 %v1178_v24  ;;  %v916_v24 = vor.u32 %v1155_v17, %v915_v16  ;;  %v941_v35 = vld [vmem:[%s1692_s0 + $0xb8] sm:$0xf0]  ;;  %v940_v38 = vor.u32 %v1160_v33, %v939_v32  ;;  %v955_v44 = vld [vmem:[%s1692_s0 + $0xc8] sm:$0xf]  ;;  %v1164_v45 = vld [vmem:[%s1692_s0 + $0xd4] sm:$0xf0] }
  0x1b   :  { %599 = vmatpush.bf16.msra.mxu1 %v1186_v25  ;;  %v920_v25 = vor.u32 %v1153_v18, %v917_v19  ;;  %v944_v39 = vor.u32 %v1158_v34, %v941_v35  ;;  %v1162_v46 = vld [vmem:[%s1692_s0 + $0xcc] sm:$0xf]  ;;  %v957_v47 = vld [vmem:[%s1692_s0 + $0xd8] sm:$0xf0]  ;;  %v956_v50 = vor.u32 %v1164_v45, %v955_v44  ;;  %v971_v56 = vld [vmem:[%s1692_s0 + $0xe8] sm:$0xf] }
  0x1c   :  { %662 = vmatpush.bf16.msra.mxu2 %v1194_v26  ;;  %v924_v26 = vor.u32 %v1156_v21, %v923_v20  ;;  %v960_v51 = vor.u32 %v1162_v46, %v957_v47  ;;  %v1168_v57 = vld [vmem:[%s1692_s0 + $0xf4] sm:$0xf0]  ;;  %v1166_v58 = vld [vmem:[%s1692_s0 + $0xec] sm:$0xf]  ;;  %v973_v59 = vld [vmem:[%s1692_s0 + $0xf8] sm:$0xf0] }
  0x1d   :  { %725 = vmatpush.bf16.msra.mxu3 %v1202_v27  ;;  %v928_v27 = vor.u32 %v1154_v22, %v925_v23  ;;  %v972_v62 = vor.u32 %v1168_v57, %v971_v56  ;;  %v976_v63 = vor.u32 %v1166_v58, %v973_v59  ;;  %v987_v4 = vld [vmem:[%s1692_s0 + $0x108] sm:$0xf]  ;;  %v1172_v5 = vld [vmem:[%s1692_s0 + $0x114] sm:$0xf0]  ;;  %v1170_v6 = vld [vmem:[%s1692_s0 + $0x10c] sm:$0xf] }
  0x1e   :  { %537 = vmatpush.bf16.msra.mxu0 %v1177_v28  ;;  %v931_v28 = vld [vmem:[%s1692_s0 + $0xa0] sm:$0xf]  ;;  %v989_v7 = vld [vmem:[%s1692_s0 + $0x118] sm:$0xf0]  ;;  %v1175_v23 = vld [vmem:[%s1692_s0 + $0x12c] sm:$0xf0] }
  0x1f   :  { %600 = vmatpush.bf16.msra.mxu1 %v1185_v29  ;;  %v1159_v29 = vld [vmem:[%s1692_s0 + $0xac] sm:$0xf0]  ;;  %v1604_v10 = vld [vmem:[%s1691_s2] ss:$0 sm:$0xff] }
  0x20   :  { %663 = vmatpush.bf16.msra.mxu2 %v1193_v30  ;;  %v1157_v30 = vld [vmem:[%s1692_s0 + $0xa4] sm:$0xf]  ;;  %v932_v36 = vor.u32 %v1159_v29, %v931_v28  ;;  %v995_v22 = vld [vmem:[%s1692_s0 + $0x120] sm:$0xf]  ;;  %v1176_v28 = vld [vmem:[%s1692_s0 + $0x134] sm:$0xf0] }
  0x21   :  { %726 = vmatpush.bf16.msra.mxu3 %v1201_v31  ;;  %538 = vmatmul.bf16.vlgmr.msra.gmra.mxu0 %v852_v40  ;;  %v933_v31 = vld [vmem:[%s1692_s0 + $0xb0] sm:$0xf0]  ;;  %v947_v40 = vld [vmem:[%s1692_s0 + $0xc0] sm:$0xf]  ;;  %v1174_v29 = vld [vmem:[%s1692_s0 + $0x12c] sm:$0xf]  ;;  %v996_v34 = vor.u32 %v1175_v23, %v995_v22 }
  0x22   :  { %601 = vmatmul.bf16.vlgmr.msra.gmra.mxu1 %v856_v41  ;;  %v936_v37 = vor.u32 %v1157_v30, %v933_v31  ;;  %v1163_v41 = vld [vmem:[%s1692_s0 + $0xcc] sm:$0xf0]  ;;  %v1005_v30 = vld [vmem:[%s1692_s0 + $0x138] sm:$0xf0] }
  0x23   :  { %664 = vmatmul.bf16.vlgmr.msra.gmra.mxu2 %v860_v42  ;;  %v1161_v42 = vld [vmem:[%s1692_s0 + $0xc4] sm:$0xf]  ;;  %v948_v48 = vor.u32 %v1163_v41, %v947_v40  ;;  %v1008_v41 = vor.u32 %v1174_v29, %v1005_v30 }
  0x24   :  { %727 = vmatmul.bf16.vlgmr.msra.gmra.mxu3 %v864_v43  ;;  %v949_v43 = vld [vmem:[%s1692_s0 + $0xd0] sm:$0xf0] }
  0x25   :  { %v952_v49 = vor.u32 %v1161_v42, %v949_v43 }
  0x31   :  { %543 = vmatmul.bf16.gmra.mxu0 %v868_v52  ;;  %v963_v52 = vld [vmem:[%s1692_s0 + $0xe0] sm:$0xf] }
  0x32   :  { %606 = vmatmul.bf16.gmra.mxu1 %v872_v53  ;;  %v1167_v53 = vld [vmem:[%s1692_s0 + $0xec] sm:$0xf0] }
  0x33   :  { %669 = vmatmul.bf16.gmra.mxu2 %v876_v54  ;;  %v1165_v54 = vld [vmem:[%s1692_s0 + $0xe4] sm:$0xf]  ;;  %v964_v60 = vor.u32 %v1167_v53, %v963_v52  ;;  %v55_v53 = vld [vmem:[%s1692_s0 + $0x148] sm:$0x11] }
  0x34   :  { %732 = vmatmul.bf16.gmra.mxu3 %v880_v55  ;;  %v965_v55 = vld [vmem:[%s1692_s0 + $0xf0] sm:$0xf0]  ;;  %v54_v52 = vld [vmem:[%s1692_s0 + $0x140] sm:$0x11]  ;;  %v248_v58 = vunpack.c.l.b16 %v55_v53  ;;  %v249_v59 = vunpack.c.h.b16 %v55_v53 }
  0x35   :  { %v968_v61 = vor.u32 %v1165_v54, %v965_v55  ;;  %v246_v55 = vunpack.c.l.b16 %v54_v52  ;;  %v247_v56 = vunpack.c.h.b16 %v54_v52 }
  0x41   :  { %548 = vmatmul.bf16.gmra.mxu0 %v884_v0  ;;  %v979_v0 = vld [vmem:[%s1692_s0 + $0x100] sm:$0xf] }
  0x42   :  { %611 = vmatmul.bf16.gmra.mxu1 %v888_v1  ;;  %v1171_v1 = vld [vmem:[%s1692_s0 + $0x10c] sm:$0xf0] }
  0x43   :  { %674 = vmatmul.bf16.gmra.mxu2 %v892_v2  ;;  %v1169_v2 = vld [vmem:[%s1692_s0 + $0x104] sm:$0xf]  ;;  %v980_v8 = vor.u32 %v1171_v1, %v979_v0  ;;  %v291_v0 = vpack.c.b16 %v247_v56, %v247_v56 }
  0x44   :  { %737 = vmatmul.bf16.gmra.mxu3 %v896_v3  ;;  %v981_v3 = vld [vmem:[%s1692_s0 + $0x110] sm:$0xf0] }
  0x45   :  { %v984_v9 = vor.u32 %v1169_v2, %v981_v3 }
  0x51   :  { %553 = vmatmul.bf16.gmra.mxu0 %v900_v12 }
  0x52   :  { %616 = vmatmul.bf16.gmra.mxu1 %v904_v13  ;;  %v988_v13 = vor.u32 %v1172_v5, %v987_v4  ;;  %v292_v5 = vpack.c.b16 %v248_v58, %v248_v58 }
  0x53   :  { %679 = vmatmul.bf16.gmra.mxu2 %v908_v14  ;;  %v992_v14 = vor.u32 %v1170_v6, %v989_v7  ;;  %v293_v6 = vpack.c.b16 %v249_v59, %v249_v59 }
  0x54   :  { %742 = vmatmul.bf16.gmra.mxu3 %v912_v15 }
  0x61   :  { %558 = vmatmul.bf16.gmra.mxu0 %v916_v24 }
  0x62   :  { %621 = vmatmul.bf16.gmra.mxu1 %v920_v25  ;;  %v1173_v25 = vld [vmem:[%s1692_s0 + $0x124] sm:$0xf] }
  0x63   :  { %684 = vmatmul.bf16.gmra.mxu2 %v924_v26  ;;  %v997_v26 = vld [vmem:[%s1692_s0 + $0x130] sm:$0xf0] }
  0x64   :  { %747 = vmatmul.bf16.gmra.mxu3 %v928_v27  ;;  %v1003_v27 = vld [vmem:[%s1692_s0 + $0x128] sm:$0xf]  ;;  %v1000_v35 = vor.u32 %v1173_v25, %v997_v26 }
  0x65   :  { %v1004_v40 = vor.u32 %v1176_v28, %v1003_v27 }
  0x71   :  { %563 = vmatmul.bf16.gmra.mxu0 %v932_v36 }
  0x72   :  { %626 = vmatmul.bf16.gmra.mxu1 %v936_v37 }
  0x73   :  { %689 = vmatmul.bf16.gmra.mxu2 %v940_v38 }
  0x74   :  { %752 = vmatmul.bf16.gmra.mxu3 %v944_v39 }
  0x81   :  { %568 = vmatmul.bf16.gmra.mxu0 %v948_v48 }
  0x82   :  { %631 = vmatmul.bf16.gmra.mxu1 %v952_v49 }
  0x83   :  { %694 = vmatmul.bf16.gmra.mxu2 %v956_v50 }
  0x84   :  { %757 = vmatmul.bf16.gmra.mxu3 %v960_v51 }
  0x91   :  { %573 = vmatmul.bf16.gmra.mxu0 %v964_v60 }
  0x92   :  { %636 = vmatmul.bf16.gmra.mxu1 %v968_v61 }
  0x93   :  { %699 = vmatmul.bf16.gmra.mxu2 %v972_v62 }
  0x94   :  { %762 = vmatmul.bf16.gmra.mxu3 %v976_v63  ;;  %v290_v63 = vpack.c.b16 %v246_v55, %v246_v55 }
  0x9e   :  { %v539_v11 = vpop.f32.mrf.mxu0 }
  0x9f   :  { %v602_v12 = vpop.f32.mrf.mxu1  ;;  %v540_v15 = vadd.f32 %v1604_v10, %v539_v11 }
  0xa1   :  { %578 = vmatmul.bf16.gmra.mxu0 %v980_v8  ;;  %v603_v18 = vadd.f32 %v602_v12, %v540_v15 }
  0xa2   :  { %641 = vmatmul.bf16.gmra.mxu1 %v984_v9 }
  0xa3   :  { %704 = vmatmul.bf16.gmra.mxu2 %v988_v13 }
  0xa4   :  { %767 = vmatmul.bf16.gmra.mxu3 %v992_v14 }
  0xa6   :  { %v665_v16 = vpop.f32.mrf.mxu2  ;;  %v541_v19 = vpop.f32.mrf.mxu0 }
  0xa7   :  { %v728_v17 = vpop.f32.mrf.mxu3  ;;  %v604_v20 = vpop.f32.mrf.mxu1  ;;  %v542_v21 = vadd.f32 %v1604_v10, %v541_v19  ;;  %v666_v24 = vadd.f32 %v665_v16, %v603_v18 }
  0xa9   :  { %v605_v31 = vadd.f32 %v604_v20, %v542_v21  ;;  %v729_v36 = vadd.f32 %v728_v17, %v666_v24 }
  0xab   :  { %v782_v43 = vmax.f32 %v729_v36, 0.0 }
  0xae   :  { %v667_v32 = vpop.f32.mrf.mxu2  ;;  %v544_v38 = vpop.f32.mrf.mxu0 }
  0xaf   :  { %v730_v33 = vpop.f32.mrf.mxu3  ;;  %v668_v37 = vadd.f32 %v667_v32, %v605_v31  ;;  %v607_v39 = vpop.f32.mrf.mxu1  ;;  %v545_v45 = vadd.f32 %v1604_v10, %v544_v38 }
  0xb1   :  { %v731_v42 = vadd.f32 %v730_v33, %v668_v37  ;;  %583 = vmatmul.bf16.gmra.mxu0 %v996_v34  ;;  %v608_v49 = vadd.f32 %v607_v39, %v545_v45 }
  0xb2   :  { %646 = vmatmul.bf16.gmra.mxu1 %v1000_v35 }
  0xb3   :  { %v783_v44 = vmax.f32 %v731_v42, 0.0  ;;  %709 = vmatmul.bf16.gmra.mxu2 %v1004_v40 }
  0xb4   :  { %772 = vmatmul.bf16.gmra.mxu3 %v1008_v41 }
  0xb5   :  { %v1212_v46 = vpack.c.bf16 %v783_v44, %v782_v43 }
  0xb6   :  { %v670_v47 = vpop.f32.mrf.mxu2  ;;  %v546_v50 = vpop.f32.mrf.mxu0 }
  0xb7   :  { %v733_v48 = vpop.f32.mrf.mxu3  ;;  %1213 = vst [vmem:[%s1693_s3] sm:$0xff] %v1212_v46   ;;  %v609_v51 = vpop.f32.mrf.mxu1  ;;  %v547_v54 = vadd.f32 %v1604_v10, %v546_v50  ;;  %v671_v57 = vadd.f32 %v670_v47, %v608_v49 }
  0xb9   :  { %v610_v60 = vadd.f32 %v609_v51, %v547_v54  ;;  %v734_v1 = vadd.f32 %v733_v48, %v671_v57 }
  0xbb   :  { %v784_v8 = vmax.f32 %v734_v1, 0.0 }
  0xbe   :  { %v672_v61 = vpop.f32.mrf.mxu2  ;;  %v549_v3 = vpop.f32.mrf.mxu0 }
  0xbf   :  { %v735_v62 = vpop.f32.mrf.mxu3  ;;  %v673_v2 = vadd.f32 %v672_v61, %v610_v60  ;;  %v612_v4 = vpop.f32.mrf.mxu1  ;;  %v550_v11 = vadd.f32 %v1604_v10, %v549_v3 }
  0xc1   :  { %v736_v7 = vadd.f32 %v735_v62, %v673_v2  ;;  %588 = vmatmul.bf16.gmra.mxu0 %v290_v63  ;;  %v613_v15 = vadd.f32 %v612_v4, %v550_v11 }
  0xc2   :  { %651 = vmatmul.bf16.gmra.mxu1 %v291_v0 }
  0xc3   :  { %v785_v9 = vmax.f32 %v736_v7, 0.0  ;;  %714 = vmatmul.bf16.gmra.mxu2 %v292_v5 }
  0xc4   :  { %777 = vmatmul.bf16.gmra.mxu3 %v293_v6 }
  0xc5   :  { %v1217_v12 = vpack.c.bf16 %v785_v9, %v784_v8 }
  0xc6   :  { %v675_v13 = vpop.f32.mrf.mxu2  ;;  %v551_v16 = vpop.f32.mrf.mxu0 }
  0xc7   :  { %v738_v14 = vpop.f32.mrf.mxu3  ;;  %1259 = vst [vmem:[%s1693_s3 + $0x8] sm:$0xff] %v1217_v12   ;;  %v614_v17 = vpop.f32.mrf.mxu1  ;;  %v552_v18 = vadd.f32 %v1604_v10, %v551_v16  ;;  %v676_v19 = vadd.f32 %v675_v13, %v613_v15 }
  0xc9   :  { %v615_v20 = vadd.f32 %v614_v17, %v552_v18  ;;  %v739_v23 = vadd.f32 %v738_v14, %v676_v19 }
  0xcb   :  { %v786_v28 = vmax.f32 %v739_v23, 0.0 }
  0xce   :  { %v677_v21 = vpop.f32.mrf.mxu2  ;;  %v554_v25 = vpop.f32.mrf.mxu0 }
  0xcf   :  { %v740_v22 = vpop.f32.mrf.mxu3  ;;  %v678_v24 = vadd.f32 %v677_v21, %v615_v20  ;;  %v617_v26 = vpop.f32.mrf.mxu1  ;;  %v555_v30 = vadd.f32 %v1604_v10, %v554_v25 }
  0xd1   :  { %v741_v27 = vadd.f32 %v740_v22, %v678_v24  ;;  %v618_v34 = vadd.f32 %v617_v26, %v555_v30 }
  0xd3   :  { %v787_v29 = vmax.f32 %v741_v27, 0.0 }
  0xd5   :  { %v1222_v31 = vpack.c.bf16 %v787_v29, %v786_v28 }
  0xd6   :  { %v680_v32 = vpop.f32.mrf.mxu2  ;;  %v556_v35 = vpop.f32.mrf.mxu0 }
  0xd7   :  { %v743_v33 = vpop.f32.mrf.mxu3  ;;  %1260 = vst [vmem:[%s1693_s3 + $0x10] sm:$0xff] %v1222_v31   ;;  %v619_v36 = vpop.f32.mrf.mxu1  ;;  %v557_v37 = vadd.f32 %v1604_v10, %v556_v35  ;;  %v681_v38 = vadd.f32 %v680_v32, %v618_v34 }
  0xd9   :  { %v620_v39 = vadd.f32 %v619_v36, %v557_v37  ;;  %v744_v42 = vadd.f32 %v743_v33, %v681_v38 }
  0xdb   :  { %v788_v47 = vmax.f32 %v744_v42, 0.0 }
  0xde   :  { %v682_v40 = vpop.f32.mrf.mxu2  ;;  %v559_v44 = vpop.f32.mrf.mxu0 }
  0xdf   :  { %v745_v41 = vpop.f32.mrf.mxu3  ;;  %v683_v43 = vadd.f32 %v682_v40, %v620_v39  ;;  %v622_v45 = vpop.f32.mrf.mxu1  ;;  %v560_v49 = vadd.f32 %v1604_v10, %v559_v44 }
  0xe1   :  { %v746_v46 = vadd.f32 %v745_v41, %v683_v43  ;;  %v623_v53 = vadd.f32 %v622_v45, %v560_v49 }
  0xe3   :  { %v789_v48 = vmax.f32 %v746_v46, 0.0 }
  0xe5   :  { %v1227_v50 = vpack.c.bf16 %v789_v48, %v788_v47 }
  0xe6   :  { %v685_v51 = vpop.f32.mrf.mxu2  ;;  %v561_v54 = vpop.f32.mrf.mxu0 }
  0xe7   :  { %v748_v52 = vpop.f32.mrf.mxu3  ;;  %1261 = vst [vmem:[%s1693_s3 + $0x18] sm:$0xff] %v1227_v50   ;;  %v624_v55 = vpop.f32.mrf.mxu1  ;;  %v562_v56 = vadd.f32 %v1604_v10, %v561_v54  ;;  %v686_v57 = vadd.f32 %v685_v51, %v623_v53 }
  0xe9   :  { %v625_v58 = vadd.f32 %v624_v55, %v562_v56  ;;  %v749_v61 = vadd.f32 %v748_v52, %v686_v57 }
  0xeb   :  { %v790_v2 = vmax.f32 %v749_v61, 0.0 }
  0xee   :  { %v687_v59 = vpop.f32.mrf.mxu2  ;;  %v564_v63 = vpop.f32.mrf.mxu0 }
  0xef   :  { %v750_v60 = vpop.f32.mrf.mxu3  ;;  %v688_v62 = vadd.f32 %v687_v59, %v625_v58  ;;  %v627_v0 = vpop.f32.mrf.mxu1  ;;  %v565_v4 = vadd.f32 %v1604_v10, %v564_v63 }
  0xf1   :  { %v751_v1 = vadd.f32 %v750_v60, %v688_v62  ;;  %v628_v8 = vadd.f32 %v627_v0, %v565_v4 }
  0xf3   :  { %v791_v3 = vmax.f32 %v751_v1, 0.0 }
  0xf5   :  { %v1232_v5 = vpack.c.bf16 %v791_v3, %v790_v2 }
  0xf6   :  { %v690_v6 = vpop.f32.mrf.mxu2  ;;  %v566_v9 = vpop.f32.mrf.mxu0 }
  0xf7   :  { %v753_v7 = vpop.f32.mrf.mxu3  ;;  %1262 = vst [vmem:[%s1693_s3 + $0x20] sm:$0xff] %v1232_v5   ;;  %v629_v11 = vpop.f32.mrf.mxu1  ;;  %v567_v12 = vadd.f32 %v1604_v10, %v566_v9  ;;  %v691_v13 = vadd.f32 %v690_v6, %v628_v8 }
  0xf9   :  { %v630_v14 = vadd.f32 %v629_v11, %v567_v12  ;;  %v754_v17 = vadd.f32 %v753_v7, %v691_v13 }
  0xfb   :  { %v792_v22 = vmax.f32 %v754_v17, 0.0 }
  0xfe   :  { %v692_v15 = vpop.f32.mrf.mxu2  ;;  %v569_v19 = vpop.f32.mrf.mxu0 }
  0xff   :  { %v755_v16 = vpop.f32.mrf.mxu3  ;;  %v693_v18 = vadd.f32 %v692_v15, %v630_v14  ;;  %v632_v20 = vpop.f32.mrf.mxu1  ;;  %v570_v24 = vadd.f32 %v1604_v10, %v569_v19 }
 0x101   :  { %v756_v21 = vadd.f32 %v755_v16, %v693_v18  ;;  %v633_v28 = vadd.f32 %v632_v20, %v570_v24 }
 0x103   :  { %v793_v23 = vmax.f32 %v756_v21, 0.0 }
 0x105   :  { %v1237_v25 = vpack.c.bf16 %v793_v23, %v792_v22 }
 0x106   :  { %v695_v26 = vpop.f32.mrf.mxu2  ;;  %v571_v29 = vpop.f32.mrf.mxu0 }
 0x107   :  { %v758_v27 = vpop.f32.mrf.mxu3  ;;  %1263 = vst [vmem:[%s1693_s3 + $0x28] sm:$0xff] %v1237_v25   ;;  %v634_v30 = vpop.f32.mrf.mxu1  ;;  %v572_v31 = vadd.f32 %v1604_v10, %v571_v29  ;;  %v696_v32 = vadd.f32 %v695_v26, %v633_v28 }
 0x109   :  { %v635_v33 = vadd.f32 %v634_v30, %v572_v31  ;;  %v759_v36 = vadd.f32 %v758_v27, %v696_v32 }
 0x10b   :  { %v794_v41 = vmax.f32 %v759_v36, 0.0 }
 0x10e   :  { %v697_v34 = vpop.f32.mrf.mxu2  ;;  %v574_v38 = vpop.f32.mrf.mxu0 }
 0x10f   :  { %v760_v35 = vpop.f32.mrf.mxu3  ;;  %v698_v37 = vadd.f32 %v697_v34, %v635_v33  ;;  %v637_v39 = vpop.f32.mrf.mxu1  ;;  %v575_v43 = vadd.f32 %v1604_v10, %v574_v38 }
 0x111   :  { %v761_v40 = vadd.f32 %v760_v35, %v698_v37  ;;  %v638_v47 = vadd.f32 %v637_v39, %v575_v43 }
 0x113   :  { %v795_v42 = vmax.f32 %v761_v40, 0.0 }
 0x115   :  { %v1242_v44 = vpack.c.bf16 %v795_v42, %v794_v41 }
 0x116   :  { %v700_v45 = vpop.f32.mrf.mxu2  ;;  %v576_v48 = vpop.f32.mrf.mxu0 }
 0x117   :  { %v763_v46 = vpop.f32.mrf.mxu3  ;;  %1264 = vst [vmem:[%s1693_s3 + $0x30] sm:$0xff] %v1242_v44   ;;  %v639_v49 = vpop.f32.mrf.mxu1  ;;  %v577_v50 = vadd.f32 %v1604_v10, %v576_v48  ;;  %v701_v51 = vadd.f32 %v700_v45, %v638_v47 }
 0x119   :  { %v640_v52 = vadd.f32 %v639_v49, %v577_v50  ;;  %v764_v55 = vadd.f32 %v763_v46, %v701_v51 }
 0x11b   :  { %v796_v60 = vmax.f32 %v764_v55, 0.0 }
 0x11e   :  { %v702_v53 = vpop.f32.mrf.mxu2  ;;  %v579_v57 = vpop.f32.mrf.mxu0 }
 0x11f   :  { %v765_v54 = vpop.f32.mrf.mxu3  ;;  %v703_v56 = vadd.f32 %v702_v53, %v640_v52  ;;  %v642_v58 = vpop.f32.mrf.mxu1  ;;  %v580_v62 = vadd.f32 %v1604_v10, %v579_v57 }
 0x121   :  { %v766_v59 = vadd.f32 %v765_v54, %v703_v56  ;;  %v643_v2 = vadd.f32 %v642_v58, %v580_v62 }
 0x123   :  { %v797_v61 = vmax.f32 %v766_v59, 0.0 }
 0x125   :  { %v1247_v63 = vpack.c.bf16 %v797_v61, %v796_v60 }
 0x126   :  { %v705_v0 = vpop.f32.mrf.mxu2  ;;  %v581_v3 = vpop.f32.mrf.mxu0 }
 0x127   :  { %v768_v1 = vpop.f32.mrf.mxu3  ;;  %1265 = vst [vmem:[%s1693_s3 + $0x38] sm:$0xff] %v1247_v63   ;;  %v644_v4 = vpop.f32.mrf.mxu1  ;;  %v582_v5 = vadd.f32 %v1604_v10, %v581_v3  ;;  %v706_v6 = vadd.f32 %v705_v0, %v643_v2 }
 0x129   :  { %v645_v7 = vadd.f32 %v644_v4, %v582_v5  ;;  %v769_v11 = vadd.f32 %v768_v1, %v706_v6 }
 0x12b   :  { %v798_v16 = vmax.f32 %v769_v11, 0.0 }
 0x12e   :  { %v707_v8 = vpop.f32.mrf.mxu2  ;;  %v584_v13 = vpop.f32.mrf.mxu0 }
 0x12f   :  { %v770_v9 = vpop.f32.mrf.mxu3  ;;  %v708_v12 = vadd.f32 %v707_v8, %v645_v7  ;;  %v647_v14 = vpop.f32.mrf.mxu1  ;;  %v585_v18 = vadd.f32 %v1604_v10, %v584_v13 }
 0x131   :  { %v771_v15 = vadd.f32 %v770_v9, %v708_v12  ;;  %v648_v22 = vadd.f32 %v647_v14, %v585_v18 }
 0x133   :  { %v799_v17 = vmax.f32 %v771_v15, 0.0 }
 0x135   :  { %v1252_v19 = vpack.c.bf16 %v799_v17, %v798_v16 }
 0x136   :  { %v710_v20 = vpop.f32.mrf.mxu2  ;;  %v586_v23 = vpop.f32.mrf.mxu0 }
 0x137   :  { %v773_v21 = vpop.f32.mrf.mxu3  ;;  %1266 = vst [vmem:[%s1693_s3 + $0x40] sm:$0xff] %v1252_v19   ;;  %v649_v24 = vpop.f32.mrf.mxu1  ;;  %v587_v25 = vadd.f32 %v1604_v10, %v586_v23  ;;  %v711_v26 = vadd.f32 %v710_v20, %v648_v22 }
 0x139   :  { %v650_v27 = vadd.f32 %v649_v24, %v587_v25  ;;  %v774_v30 = vadd.f32 %v773_v21, %v711_v26 }
 0x13b   :  { %v800_v36 = vmax.f32 %v774_v30, 0.0 }
 0x13e   :  { %v712_v28 = vpop.f32.mrf.mxu2  ;;  %v589_v32 = vpop.f32.mrf.mxu0 }
 0x13f   :  { %v775_v29 = vpop.f32.mrf.mxu3  ;;  %v713_v31 = vadd.f32 %v712_v28, %v650_v27  ;;  %v652_v33 = vpop.f32.mrf.mxu1  ;;  %v590_v34 = vadd.f32 %v1604_v10, %v589_v32 }
 0x141   :  { %v776_v35 = vadd.f32 %v775_v29, %v713_v31  ;;  %v653_v38 = vadd.f32 %v652_v33, %v590_v34 }
 0x143   :  { %v801_v37 = vmax.f32 %v776_v35, 0.0 }
 0x145   :  { %v1257_v39 = vpack.c.bf16 %v801_v37, %v800_v36 }
 0x146   :  { %v715_v40 = vpop.f32.mrf.mxu2  ;;  %v591_v43 = vpop.f32.mrf.mxu0 }
 0x147   :  { %v778_v41 = vpop.f32.mrf.mxu3  ;;  %1267 = vst [vmem:[%s1693_s3 + $0x48] sm:$0xff] %v1257_v39   ;;  %v716_v42 = vadd.f32 %v715_v40, %v653_v38  ;;  %v654_v44 = vpop.f32.mrf.mxu1 }
 0x149   :  { %v779_v45 = vadd.f32 %v778_v41, %v716_v42 }
 0x14b   :  { %v802_v46 = vmax.f32 %v779_v45, 0.0 }
 0x14d   :  { %v823_v47 = vpack.c.bf16 %v802_v46, %v802_v46 }
 0x14e   :  { %v717_v48 = vpop.f32.mrf.mxu2 }
 0x14f   :  { %v780_v49 = vpop.f32.mrf.mxu3  ;;  %844 = vst [vmem:[%s1693_s3 + $0x50] sm:$0x1] %v823_v47 }

// kernel: _lambda_.7
= control target key start
LH: loop header
LB: loop body
LE: loop exit
PB: predicated region body
PF: predicated region fallthrough
CT: control target
= control target key end

     0   :  { %vm513_vm0 = vcmask 523264   ;;  %s1584_s1 = inlined_call_operand.vmem [shape: bf16[576,128], index: 1, kind: input, shape index: {}]   ;;  %s1585_s2 = inlined_call_operand.vmem [shape: f32[1,128], index: 2, kind: input, shape index: {}]   ;;  %s1586_s0 = inlined_call_operand.vmem [shape: bf16[98,576], index: 0, kind: input, shape index: {}]   ;;  %s1587_s3 = inlined_call_operand.vmem [shape: bf16[98,128], index: 3, kind: output, shape index: {}]  }
   0x1   :  { %v1101_v0 = vld [vmem:[%s1584_s1 + $0x38] sm:$0xff]  ;;  %v1100_v1 = vld [vmem:[%s1584_s1 + $0x30] sm:$0xff]  ;;  %v1099_v2 = vld [vmem:[%s1584_s1 + $0x28] sm:$0xff] }
   0x2   :  { %1165 = vmatpush.bf16.msra.mxu1 %v1101_v0  ;;  %1166 = vmatpush.bf16.msra.mxu2 %v1101_v0  ;;  %v1098_v3 = vld [vmem:[%s1584_s1 + $0x20] sm:$0xff]  ;;  %v1097_v4 = vld [vmem:[%s1584_s1 + $0x18] sm:$0xff]  ;;  %v1096_v5 = vld [vmem:[%s1584_s1 + $0x10] sm:$0xff] }
   0x3   :  { %1167 = vmatpush.bf16.msra.mxu3 %v1101_v0  ;;  %535 = vmatpush.bf16.msra.mxu0 %v1101_v0  ;;  %v1095_v6 = vld [vmem:[%s1584_s1 + $0x8] sm:$0xff]  ;;  %v1234_v7 = vld [vmem:[%s1586_s0 + $0xf0] sm:$0x11]  ;;  %v1094_v8 = vld [vmem:[%s1584_s1] sm:$0xff] }
   0x4   :  { %v835_v9 = vld [vmem:[%s1586_s0 + $0x50] sm:$0xf]  ;;  %v1076_v10 = vld [vmem:[%s1586_s0 + $0x60] sm:$0xf0]  ;;  %v875_v11 = vld [vmem:[%s1586_s0 + $0xa0] sm:$0xf]  ;;  %v229_v15 = vunpack.c.l.b16 %v1234_v7 }
   0x5   :  { %v1086_v12 = vld [vmem:[%s1586_s0 + $0xb0] sm:$0xf0]  ;;  %v795_v13 = vld [vmem:[%s1586_s0] sm:$0xf]  ;;  %v1125_v16 = vld [vmem:[%s1584_s1 + $0xf8] sm:$0xff]  ;;  %v836_v18 = vor.u32 %v1076_v10, %v835_v9 }
   0x6   :  { %1168 = vmatpush.bf16.msra.mxu1 %v1100_v1  ;;  %1169 = vmatpush.bf16.msra.mxu2 %v1100_v1  ;;  %v1066_v14 = vld [vmem:[%s1586_s0 + $0x10] sm:$0xf0]  ;;  %v1117_v17 = vld [vmem:[%s1584_s1 + $0xb8] sm:$0xff]  ;;  %v876_v19 = vor.u32 %v1086_v12, %v875_v11  ;;  %v264_v23 = vpack.c.b16 %v229_v15, %v229_v15  ;;  %v1123_v28 = vld [vmem:[%s1584_s1 + $0xe8] sm:$0xff] }
   0x7   :  { %1170 = vmatpush.bf16.msra.mxu3 %v1100_v1  ;;  %536 = vmatpush.bf16.msra.mxu0 %v1100_v1  ;;  %v796_v20 = vor.u32 %v1066_v14, %v795_v13  ;;  %v1109_v21 = vld [vmem:[%s1584_s1 + $0x78] sm:$0xff]  ;;  %v1124_v24 = vld [vmem:[%s1584_s1 + $0xf0] sm:$0xff]  ;;  %v1115_v29 = vld [vmem:[%s1584_s1 + $0xa8] sm:$0xff] }
   0x8   :  { %v1129_v22 = vld [vmem:[%s1584_s1 + $0x118] sm:$0xff]  ;;  %v1116_v25 = vld [vmem:[%s1584_s1 + $0xb0] sm:$0xff]  ;;  %v1107_v30 = vld [vmem:[%s1584_s1 + $0x68] sm:$0xff] }
   0x9   :  { %v1108_v26 = vld [vmem:[%s1584_s1 + $0x70] sm:$0xff]  ;;  %v1127_v31 = vld [vmem:[%s1584_s1 + $0x108] sm:$0xff]  ;;  %v1122_v32 = vld [vmem:[%s1584_s1 + $0xe0] sm:$0xff] }
   0xa   :  { %1171 = vmatpush.bf16.msra.mxu1 %v1099_v2  ;;  %1172 = vmatpush.bf16.msra.mxu2 %v1099_v2  ;;  %v1128_v27 = vld [vmem:[%s1584_s1 + $0x110] sm:$0xff]  ;;  %v1114_v33 = vld [vmem:[%s1584_s1 + $0xa0] sm:$0xff]  ;;  %v855_v35 = vld [vmem:[%s1586_s0 + $0x78] sm:$0xf] }
   0xb   :  { %1173 = vmatpush.bf16.msra.mxu3 %v1099_v2  ;;  %537 = vmatpush.bf16.msra.mxu0 %v1099_v2  ;;  %v1106_v34 = vld [vmem:[%s1584_s1 + $0x60] sm:$0xff]  ;;  %v1081_v36 = vld [vmem:[%s1586_s0 + $0x88] sm:$0xf0]  ;;  %v895_v37 = vld [vmem:[%s1586_s0 + $0xc8] sm:$0xf] }
   0xc   :  { %v1091_v38 = vld [vmem:[%s1586_s0 + $0xd8] sm:$0xf0]  ;;  %v815_v39 = vld [vmem:[%s1586_s0 + $0x28] sm:$0xf]  ;;  %v1126_v41 = vld [vmem:[%s1584_s1 + $0x100] sm:$0xff]  ;;  %v856_v44 = vor.u32 %v1081_v36, %v855_v35 }
   0xd   :  { %v1071_v40 = vld [vmem:[%s1586_s0 + $0x38] sm:$0xf0]  ;;  %v896_v45 = vor.u32 %v1091_v38, %v895_v37  ;;  %v1120_v48 = vld [vmem:[%s1584_s1 + $0xd0] sm:$0xff]  ;;  %v1119_v51 = vld [vmem:[%s1584_s1 + $0xc8] sm:$0xff] }
   0xe   :  { %1174 = vmatpush.bf16.msra.mxu1 %v1098_v3  ;;  %1175 = vmatpush.bf16.msra.mxu2 %v1098_v3  ;;  %v1121_v42 = vld [vmem:[%s1584_s1 + $0xd8] sm:$0xff]  ;;  %v816_v46 = vor.u32 %v1071_v40, %v815_v39  ;;  %v1112_v49 = vld [vmem:[%s1584_s1 + $0x90] sm:$0xff]  ;;  %v1111_v52 = vld [vmem:[%s1584_s1 + $0x88] sm:$0xff] }
   0xf   :  { %1176 = vmatpush.bf16.msra.mxu3 %v1098_v3  ;;  %538 = vmatpush.bf16.msra.mxu0 %v1098_v3  ;;  %v1113_v43 = vld [vmem:[%s1584_s1 + $0x98] sm:$0xff]  ;;  %v1104_v50 = vld [vmem:[%s1584_s1 + $0x50] sm:$0xff]  ;;  %v1103_v53 = vld [vmem:[%s1584_s1 + $0x48] sm:$0xff] }
  0x10   :  { %v1105_v47 = vld [vmem:[%s1584_s1 + $0x58] sm:$0xff]  ;;  %v1118_v54 = vld [vmem:[%s1584_s1 + $0xc0] sm:$0xff]  ;;  %v1065_v56 = vld [vmem:[%s1586_s0 + $0xc] sm:$0xf] }
  0x11   :  { %v1110_v55 = vld [vmem:[%s1584_s1 + $0x80] sm:$0xff]  ;;  %v797_v60 = vld [vmem:[%s1586_s0 + $0x14] sm:$0xf0]  ;;  %v803_v61 = vld [vmem:[%s1586_s0 + $0x8] sm:$0xf] }
  0x12   :  { %1177 = vmatpush.bf16.msra.mxu1 %v1097_v4  ;;  %1178 = vmatpush.bf16.msra.mxu2 %v1097_v4  ;;  %v805_v57 = vld [vmem:[%s1586_s0 + $0x1c] sm:$0xf0]  ;;  %v1064_v59 = vld [vmem:[%s1586_s0 + $0x4] sm:$0xf]  ;;  %v1067_v62 = vld [vmem:[%s1586_s0 + $0x18] sm:$0xf0] }
  0x13   :  { %1179 = vmatpush.bf16.msra.mxu3 %v1097_v4  ;;  %539 = vmatpush.bf16.msra.mxu0 %v1097_v4  ;;  %v1102_v58 = vld [vmem:[%s1584_s1 + $0x40] sm:$0xff]  ;;  %v808_v63 = vor.u32 %v1065_v56, %v805_v57  ;;  %v811_v0 = vld [vmem:[%s1586_s0 + $0x10] sm:$0xf]  ;;  %v800_v2 = vor.u32 %v1064_v59, %v797_v60  ;;  %v804_v3 = vor.u32 %v1067_v62, %v803_v61  ;;  %v831_v13 = vld [vmem:[%s1586_s0 + $0x38] sm:$0xf] }
  0x14   :  { %v1068_v1 = vld [vmem:[%s1586_s0 + $0x20] sm:$0xf0]  ;;  %v817_v9 = vld [vmem:[%s1586_s0 + $0x3c] sm:$0xf0]  ;;  %v823_v10 = vld [vmem:[%s1586_s0 + $0x30] sm:$0xf] }
  0x15   :  { %v812_v4 = vor.u32 %v1068_v1, %v811_v0  ;;  %v1072_v11 = vld [vmem:[%s1586_s0 + $0x40] sm:$0xf0]  ;;  %v1073_v14 = vld [vmem:[%s1586_s0 + $0x48] sm:$0xf0]  ;;  %v1082_v35 = vld [vmem:[%s1586_s0 + $0x90] sm:$0xf0] }
  0x16   :  { %1180 = vmatpush.bf16.msra.mxu1 %v1096_v5  ;;  %1181 = vmatpush.bf16.msra.mxu2 %v1096_v5  ;;  %v871_v37 = vld [vmem:[%s1586_s0 + $0x88] sm:$0xf]  ;;  %v1083_v38 = vld [vmem:[%s1586_s0 + $0x98] sm:$0xf0]  ;;  %v1089_v56 = vld [vmem:[%s1586_s0 + $0xcc] sm:$0xf] }
  0x17   :  { %1182 = vmatpush.bf16.msra.mxu3 %v1096_v5  ;;  %540 = vmatpush.bf16.msra.mxu0 %v1096_v5  ;;  %v1070_v5 = vld [vmem:[%s1586_s0 + $0x34] sm:$0xf]  ;;  %v897_v57 = vld [vmem:[%s1586_s0 + $0xdc] sm:$0xf0]  ;;  %v1092_v59 = vld [vmem:[%s1586_s0 + $0xe0] sm:$0xf0] }
  0x18   :  { %v911_v61 = vld [vmem:[%s1586_s0 + $0xd8] sm:$0xf]  ;;  %v1093_v62 = vld [vmem:[%s1586_s0 + $0xe8] sm:$0xf0] }
  0x19   :  { %v912_v1 = vor.u32 %v1093_v62, %v911_v61 }
  0x1a   :  { %1183 = vmatpush.bf16.msra.mxu1 %v1095_v6  ;;  %1184 = vmatpush.bf16.msra.mxu2 %v1095_v6 }
  0x1b   :  { %1185 = vmatpush.bf16.msra.mxu3 %v1095_v6  ;;  %541 = vmatpush.bf16.msra.mxu0 %v1095_v6  ;;  %v825_v6 = vld [vmem:[%s1586_s0 + $0x44] sm:$0xf0] }
  0x1c   :  { %v828_v12 = vor.u32 %v1070_v5, %v825_v6  ;;  %v230_v5 = vunpack.c.h.b16 %v1234_v7 }
  0x1e   :  { %1186 = vmatpush.bf16.msra.mxu1 %v1094_v8  ;;  %1187 = vmatpush.bf16.msra.mxu2 %v1094_v8 }
  0x1f   :  { %1188 = vmatpush.bf16.msra.mxu3 %v1094_v8  ;;  %542 = vmatpush.bf16.msra.mxu0 %v1094_v8  ;;  %v1069_v8 = vld [vmem:[%s1586_s0 + $0x2c] sm:$0xf] }
  0x20   :  { %v820_v15 = vor.u32 %v1069_v8, %v817_v9 }
  0x21   :  { %553 = vmatmul.bf16.vlgmr.msra.gmra.mxu1 %v836_v18  ;;  %563 = vmatmul.bf16.vlgmr.msra.gmra.mxu2 %v876_v19  ;;  %v1075_v18 = vld [vmem:[%s1586_s0 + $0x5c] sm:$0xf]  ;;  %v845_v19 = vld [vmem:[%s1586_s0 + $0x6c] sm:$0xf0] }
  0x22   :  { %621 = vmatpush.bf16.msrb.mxu2 %v1117_v17  ;;  %543 = vmatmul.bf16.vlgmr.msra.gmra.mxu0 %v796_v20  ;;  %v832_v17 = vor.u32 %v1073_v14, %v831_v13  ;;  %v1074_v20 = vld [vmem:[%s1586_s0 + $0x54] sm:$0xf] }
  0x23   :  { %664 = vmatpush.bf16.msrb.mxu3 %v1125_v16  ;;  %578 = vmatpush.bf16.msrb.mxu1 %v1109_v21  ;;  %v824_v16 = vor.u32 %v1072_v11, %v823_v10  ;;  %v837_v21 = vld [vmem:[%s1586_s0 + $0x64] sm:$0xf0]  ;;  %v265_v10 = vpack.c.b16 %v230_v5, %v230_v5 }
  0x24   :  { %711 = vmatpush.bf16.msrb.mxu0 %v1129_v22  ;;  %573 = vmatmul.bf16.vlgmr.msra.gmra.mxu3 %v264_v23  ;;  %v843_v22 = vld [vmem:[%s1586_s0 + $0x58] sm:$0xf]  ;;  %v1077_v23 = vld [vmem:[%s1586_s0 + $0x68] sm:$0xf0] }
  0x26   :  { %622 = vmatpush.bf16.msrb.mxu2 %v1116_v25  ;;  %v851_v25 = vld [vmem:[%s1586_s0 + $0x60] sm:$0xf] }
  0x27   :  { %665 = vmatpush.bf16.msrb.mxu3 %v1124_v24  ;;  %579 = vmatpush.bf16.msrb.mxu1 %v1108_v26  ;;  %v848_v24 = vor.u32 %v1075_v18, %v845_v19  ;;  %v1078_v26 = vld [vmem:[%s1586_s0 + $0x70] sm:$0xf0] }
  0x28   :  { %712 = vmatpush.bf16.msrb.mxu0 %v1128_v27  ;;  %v840_v27 = vor.u32 %v1074_v20, %v837_v21 }
  0x2a   :  { %623 = vmatpush.bf16.msrb.mxu2 %v1115_v29  ;;  %v852_v29 = vor.u32 %v1078_v26, %v851_v25 }
  0x2b   :  { %666 = vmatpush.bf16.msrb.mxu3 %v1123_v28  ;;  %580 = vmatpush.bf16.msrb.mxu1 %v1107_v30  ;;  %v844_v28 = vor.u32 %v1077_v23, %v843_v22  ;;  %v1080_v30 = vld [vmem:[%s1586_s0 + $0x84] sm:$0xf] }
  0x2c   :  { %713 = vmatpush.bf16.msrb.mxu0 %v1127_v31  ;;  %v865_v31 = vld [vmem:[%s1586_s0 + $0x94] sm:$0xf0] }
  0x2d   :  { %v868_v36 = vor.u32 %v1080_v30, %v865_v31 }
  0x2e   :  { %624 = vmatpush.bf16.msrb.mxu2 %v1114_v33  ;;  %v857_v33 = vld [vmem:[%s1586_s0 + $0x8c] sm:$0xf0] }
  0x2f   :  { %667 = vmatpush.bf16.msrb.mxu3 %v1122_v32  ;;  %581 = vmatpush.bf16.msrb.mxu1 %v1106_v34  ;;  %v1079_v32 = vld [vmem:[%s1586_s0 + $0x7c] sm:$0xf]  ;;  %v863_v34 = vld [vmem:[%s1586_s0 + $0x80] sm:$0xf] }
  0x30   :  { %714 = vmatpush.bf16.msrb.mxu0 %v1126_v41  ;;  %v860_v39 = vor.u32 %v1079_v32, %v857_v33  ;;  %v864_v40 = vor.u32 %v1082_v35, %v863_v34  ;;  %v872_v41 = vor.u32 %v1083_v38, %v871_v37 }
  0x31   :  { %558 = vmatmul.bf16.gmra.mxu1 %v856_v44  ;;  %568 = vmatmul.bf16.gmra.mxu2 %v896_v45  ;;  %v1084_v44 = vld [vmem:[%s1586_s0 + $0xa4] sm:$0xf]  ;;  %v877_v45 = vld [vmem:[%s1586_s0 + $0xb4] sm:$0xf0] }
  0x32   :  { %625 = vmatpush.bf16.msrb.mxu2 %v1113_v43  ;;  %548 = vmatmul.bf16.gmra.mxu0 %v816_v46  ;;  %v885_v43 = vld [vmem:[%s1586_s0 + $0xbc] sm:$0xf0]  ;;  %v883_v46 = vld [vmem:[%s1586_s0 + $0xa8] sm:$0xf] }
  0x33   :  { %668 = vmatpush.bf16.msrb.mxu3 %v1121_v42  ;;  %582 = vmatpush.bf16.msrb.mxu1 %v1105_v47  ;;  %v1085_v42 = vld [vmem:[%s1586_s0 + $0xac] sm:$0xf]  ;;  %v1087_v47 = vld [vmem:[%s1586_s0 + $0xb8] sm:$0xf0] }
  0x36   :  { %626 = vmatpush.bf16.msrb.mxu2 %v1112_v49  ;;  %v891_v49 = vld [vmem:[%s1586_s0 + $0xb0] sm:$0xf] }
  0x37   :  { %669 = vmatpush.bf16.msrb.mxu3 %v1120_v48  ;;  %583 = vmatpush.bf16.msrb.mxu1 %v1104_v50  ;;  %v888_v48 = vor.u32 %v1085_v42, %v885_v43  ;;  %v1088_v50 = vld [vmem:[%s1586_s0 + $0xc0] sm:$0xf0] }
  0x3a   :  { %627 = vmatpush.bf16.msrb.mxu2 %v1111_v52  ;;  %v884_v52 = vor.u32 %v1087_v47, %v883_v46 }
  0x3b   :  { %670 = vmatpush.bf16.msrb.mxu3 %v1119_v51  ;;  %584 = vmatpush.bf16.msrb.mxu1 %v1103_v53  ;;  %v880_v51 = vor.u32 %v1084_v44, %v877_v45  ;;  %v892_v53 = vor.u32 %v1088_v50, %v891_v49 }
  0x3e   :  { %628 = vmatpush.bf16.msrb.mxu2 %v1110_v55  ;;  %v905_v55 = vld [vmem:[%s1586_s0 + $0xe4] sm:$0xf0] }
  0x3f   :  { %671 = vmatpush.bf16.msrb.mxu3 %v1118_v54  ;;  %585 = vmatpush.bf16.msrb.mxu1 %v1102_v58  ;;  %v1090_v54 = vld [vmem:[%s1586_s0 + $0xd4] sm:$0xf]  ;;  %v903_v58 = vld [vmem:[%s1586_s0 + $0xd0] sm:$0xf] }
  0x40   :  { %v908_v60 = vor.u32 %v1090_v54, %v905_v55  ;;  %v904_v0 = vor.u32 %v1092_v59, %v903_v58 }
  0x41   :  { %629 = vmatmul.bf16.vlgmr.msrb.gmra.mxu2 %v804_v3 }
  0x42   :  { %672 = vmatmul.bf16.vlgmr.msrb.gmra.mxu3 %v808_v63  ;;  %586 = vmatmul.bf16.vlgmr.msrb.gmra.mxu1 %v800_v2  ;;  %v900_v63 = vor.u32 %v1089_v56, %v897_v57  ;;  %v52_v2 = vld [vmem:[%s1586_s0 + $0xf8] sm:$0x11] }
  0x43   :  { %1057 = vmatmul.msk.bf16.vlgmr.msrb.gmra.mxu0 %vm513_vm0, %v812_v4  ;;  %v232_v3 = vunpack.c.h.b16 %v52_v2  ;;  %v53_v4 = vld [vmem:[%s1586_s0 + $0x100] sm:$0x1]  ;;  %v231_v6 = vunpack.c.l.b16 %v52_v2 }
  0x44   :  { %v233_v8 = vunpack.c.l.b16 %v53_v4 }
  0x45   :  { %v267_v9 = vpack.c.b16 %v232_v3, %v232_v3  ;;  %v266_v11 = vpack.c.b16 %v231_v6, %v231_v6 }
  0x46   :  { %v268_v13 = vpack.c.b16 %v233_v8, %v233_v8 }
  0x51   :  { %634 = vmatmul.bf16.gmra.mxu2 %v824_v16 }
  0x52   :  { %677 = vmatmul.bf16.gmra.mxu3 %v828_v12  ;;  %591 = vmatmul.bf16.gmra.mxu1 %v820_v15  ;;  %v1523_v15 = vld [vmem:[%s1585_s2] ss:$0 sm:$0xff] }
  0x53   :  { %1058 = vmatmul.msk.bf16.gmra.mxu0 %vm513_vm0, %v832_v17 }
  0x61   :  { %639 = vmatmul.bf16.gmra.mxu2 %v844_v28 }
  0x62   :  { %682 = vmatmul.bf16.gmra.mxu3 %v848_v24  ;;  %596 = vmatmul.bf16.gmra.mxu1 %v840_v27 }
  0x63   :  { %1059 = vmatmul.msk.bf16.gmra.mxu0 %vm513_vm0, %v852_v29 }
  0x71   :  { %644 = vmatmul.bf16.gmra.mxu2 %v864_v40 }
  0x72   :  { %687 = vmatmul.bf16.gmra.mxu3 %v868_v36  ;;  %601 = vmatmul.bf16.gmra.mxu1 %v860_v39 }
  0x73   :  { %1060 = vmatmul.msk.bf16.gmra.mxu0 %vm513_vm0, %v872_v41 }
  0x81   :  { %649 = vmatmul.bf16.gmra.mxu2 %v884_v52 }
  0x82   :  { %692 = vmatmul.bf16.gmra.mxu3 %v888_v48  ;;  %606 = vmatmul.bf16.gmra.mxu1 %v880_v51 }
  0x83   :  { %1061 = vmatmul.msk.bf16.gmra.mxu0 %vm513_vm0, %v892_v53 }
  0x91   :  { %654 = vmatmul.bf16.gmra.mxu2 %v904_v0 }
  0x92   :  { %697 = vmatmul.bf16.gmra.mxu3 %v908_v60  ;;  %611 = vmatmul.bf16.gmra.mxu1 %v900_v63 }
  0x93   :  { %1062 = vmatmul.msk.bf16.gmra.mxu0 %vm513_vm0, %v912_v1 }
  0x9e   :  { %v1517_v12 = vpop.f32.mrf.mxu1 }
  0x9f   :  { %v544_v14 = vpop.f32.mrf.mxu0 }
  0xa0   :  { %v545_v35 = vadd.f32 %v1523_v15, %v544_v14 }
  0xa1   :  { %659 = vmatmul.bf16.gmra.mxu2 %v266_v11  ;;  %v555_v11 = vadd.f32 %v1523_v15, %v1517_v12 }
  0xa2   :  { %702 = vmatmul.bf16.gmra.mxu3 %v267_v9  ;;  %616 = vmatmul.bf16.gmra.mxu1 %v265_v10 }
  0xa3   :  { %1063 = vmatmul.msk.bf16.gmra.mxu0 %vm513_vm0, %v268_v13 }
  0xa4   :  { %v564_v7 = vpop.f32.mrf.mxu2 }
  0xa5   :  { %v1526_v16 = vadd.f32 %v1523_v15, %v564_v7 }
  0xa6   :  { %v1528_v17 = vpop.f32.mrf.mxu1 }
  0xa7   :  { %v574_v18 = vpop.f32.mrf.mxu3  ;;  %v546_v19 = vpop.f32.mrf.mxu0 }
  0xa8   :  { %v1531_v20 = vadd.f32 %v1523_v15, %v574_v18  ;;  %v547_v41 = vadd.f32 %v1523_v15, %v546_v19 }
  0xac   :  { %v566_v21 = vpop.f32.mrf.mxu2 }
  0xad   :  { %v1534_v22 = vadd.f32 %v1523_v15, %v566_v21 }
  0xae   :  { %v1536_v23 = vpop.f32.mrf.mxu1 }
  0xaf   :  { %v576_v24 = vpop.f32.mrf.mxu3  ;;  %v549_v25 = vpop.f32.mrf.mxu0 }
  0xb0   :  { %v550_v53 = vadd.f32 %v1523_v15, %v549_v25 }
  0xb4   :  { %v569_v26 = vpop.f32.mrf.mxu2 }
  0xb5   :  { %v1539_v27 = vadd.f32 %v1523_v15, %v569_v26  ;;  %v557_v26 = vadd.f32 %v1523_v15, %v1528_v17 }
  0xb6   :  { %v1541_v28 = vpop.f32.mrf.mxu1 }
  0xb7   :  { %v551_v29 = vpop.f32.mrf.mxu0 }
  0xb8   :  { %v552_v62 = vadd.f32 %v1523_v15, %v551_v29 }
  0xbc   :  { %v571_v30 = vpop.f32.mrf.mxu2 }
  0xbd   :  { %v1544_v31 = vadd.f32 %v1523_v15, %v571_v30 }
  0xbf   :  { %v587_v32 = vpop.f32.mrf.mxu1 }
  0xc0   :  { %v716_v33 = vpop.f32.mrf.mxu0  ;;  %v588_v37 = vadd.f32 %v587_v32, %v545_v35 }
  0xc4   :  { %v630_v36 = vpop.f32.mrf.mxu2 }
  0xc5   :  { %v673_v34 = vpop.f32.mrf.mxu3  ;;  %v631_v39 = vadd.f32 %v630_v36, %v588_v37 }
  0xc7   :  { %v589_v38 = vpop.f32.mrf.mxu1  ;;  %v674_v43 = vadd.f32 %v673_v34, %v631_v39 }
  0xc8   :  { %v718_v40 = vpop.f32.mrf.mxu0  ;;  %v590_v44 = vadd.f32 %v589_v38, %v547_v41 }
  0xc9   :  { %v717_v48 = vadd.f32 %v716_v33, %v674_v43 }
  0xcb   :  { %v750_v54 = vmax.f32 %v717_v48, 0.0  ;;  %v562_v48 = vadd.f32 %v1523_v15, %v1541_v28 }
  0xcc   :  { %v632_v45 = vpop.f32.mrf.mxu2 }
  0xcd   :  { %v675_v42 = vpop.f32.mrf.mxu3  ;;  %v633_v46 = vadd.f32 %v632_v45, %v590_v44 }
  0xcf   :  { %v592_v47 = vpop.f32.mrf.mxu1  ;;  %v676_v49 = vadd.f32 %v675_v42, %v633_v46 }
  0xd0   :  { %v721_v50 = vpop.f32.mrf.mxu0  ;;  %v593_v58 = vadd.f32 %v592_v47, %v550_v53 }
  0xd1   :  { %v719_v51 = vadd.f32 %v718_v40, %v676_v49  ;;  %v560_v40 = vadd.f32 %v1523_v15, %v1536_v23 }
  0xd3   :  { %v751_v55 = vmax.f32 %v719_v51, 0.0 }
  0xd4   :  { %v635_v56 = vpop.f32.mrf.mxu2 }
  0xd5   :  { %v678_v52 = vpop.f32.mrf.mxu3  ;;  %v1133_v57 = vpack.c.bf16 %v751_v55, %v750_v54  ;;  %v636_v60 = vadd.f32 %v635_v56, %v593_v58 }
  0xd7   :  { %v594_v59 = vpop.f32.mrf.mxu1  ;;  %1134 = vst [vmem:[%s1587_s3] sm:$0xff] %v1133_v57   ;;  %v679_v0 = vadd.f32 %v678_v52, %v636_v60 }
  0xd8   :  { %v723_v61 = vpop.f32.mrf.mxu0  ;;  %v595_v1 = vadd.f32 %v594_v59, %v552_v62 }
  0xd9   :  { %v722_v5 = vadd.f32 %v721_v50, %v679_v0 }
  0xdb   :  { %v752_v13 = vmax.f32 %v722_v5, 0.0 }
  0xdc   :  { %v637_v2 = vpop.f32.mrf.mxu2 }
  0xdd   :  { %v680_v63 = vpop.f32.mrf.mxu3  ;;  %v638_v3 = vadd.f32 %v637_v2, %v595_v1 }
  0xdf   :  { %v597_v4 = vpop.f32.mrf.mxu1  ;;  %v681_v6 = vadd.f32 %v680_v63, %v638_v3 }
  0xe0   :  { %v726_v8 = vpop.f32.mrf.mxu0  ;;  %v598_v19 = vadd.f32 %v597_v4, %v555_v11 }
  0xe1   :  { %v724_v9 = vadd.f32 %v723_v61, %v681_v6 }
  0xe3   :  { %v753_v14 = vmax.f32 %v724_v9, 0.0 }
  0xe4   :  { %v640_v7 = vpop.f32.mrf.mxu2 }
  0xe5   :  { %v683_v10 = vpop.f32.mrf.mxu3  ;;  %v1138_v18 = vpack.c.bf16 %v753_v14, %v752_v13  ;;  %v641_v24 = vadd.f32 %v640_v7, %v598_v19 }
  0xe7   :  { %v599_v21 = vpop.f32.mrf.mxu1  ;;  %1160 = vst [vmem:[%s1587_s3 + $0x8] sm:$0xff] %v1138_v18   ;;  %v684_v30 = vadd.f32 %v683_v10, %v641_v24 }
  0xe8   :  { %v728_v25 = vpop.f32.mrf.mxu0  ;;  %v600_v32 = vadd.f32 %v599_v21, %v557_v26 }
  0xe9   :  { %v727_v35 = vadd.f32 %v726_v8, %v684_v30 }
  0xeb   :  { %v754_v41 = vmax.f32 %v727_v35, 0.0 }
  0xec   :  { %v642_v33 = vpop.f32.mrf.mxu2 }
  0xed   :  { %v685_v29 = vpop.f32.mrf.mxu3  ;;  %v643_v12 = vadd.f32 %v642_v33, %v600_v32 }
  0xef   :  { %v602_v34 = vpop.f32.mrf.mxu1  ;;  %v686_v36 = vadd.f32 %v685_v29, %v643_v12 }
  0xf0   :  { %v731_v37 = vpop.f32.mrf.mxu0  ;;  %v603_v45 = vadd.f32 %v602_v34, %v560_v40 }
  0xf1   :  { %v729_v38 = vadd.f32 %v728_v25, %v686_v36 }
  0xf3   :  { %v755_v42 = vmax.f32 %v729_v38, 0.0 }
  0xf4   :  { %v645_v43 = vpop.f32.mrf.mxu2 }
  0xf5   :  { %v688_v39 = vpop.f32.mrf.mxu3  ;;  %v1143_v44 = vpack.c.bf16 %v755_v42, %v754_v41  ;;  %v646_v46 = vadd.f32 %v645_v43, %v603_v45 }
  0xf7   :  { %v604_v17 = vpop.f32.mrf.mxu1  ;;  %1161 = vst [vmem:[%s1587_s3 + $0x10] sm:$0xff] %v1143_v44   ;;  %v689_v50 = vadd.f32 %v688_v39, %v646_v46 }
  0xf8   :  { %v733_v47 = vpop.f32.mrf.mxu0  ;;  %v605_v51 = vadd.f32 %v604_v17, %v562_v48 }
  0xf9   :  { %v732_v54 = vadd.f32 %v731_v37, %v689_v50 }
  0xfb   :  { %v756_v59 = vmax.f32 %v732_v54, 0.0 }
  0xfc   :  { %v647_v52 = vpop.f32.mrf.mxu2 }
  0xfd   :  { %v690_v49 = vpop.f32.mrf.mxu3  ;;  %v648_v23 = vadd.f32 %v647_v52, %v605_v51 }
  0xff   :  { %v607_v53 = vpop.f32.mrf.mxu1  ;;  %v691_v55 = vadd.f32 %v690_v49, %v648_v23 }
 0x100   :  { %v736_v56 = vpop.f32.mrf.mxu0  ;;  %v608_v63 = vadd.f32 %v607_v53, %v1526_v16 }
 0x101   :  { %v734_v57 = vadd.f32 %v733_v47, %v691_v55 }
 0x103   :  { %v757_v60 = vmax.f32 %v734_v57, 0.0 }
 0x104   :  { %v650_v61 = vpop.f32.mrf.mxu2 }
 0x105   :  { %v693_v58 = vpop.f32.mrf.mxu3  ;;  %v1148_v62 = vpack.c.bf16 %v757_v60, %v756_v59  ;;  %v651_v15 = vadd.f32 %v650_v61, %v608_v63 }
 0x107   :  { %v609_v0 = vpop.f32.mrf.mxu1  ;;  %1162 = vst [vmem:[%s1587_s3 + $0x18] sm:$0xff] %v1148_v62   ;;  %v694_v2 = vadd.f32 %v693_v58, %v651_v15 }
 0x108   :  { %v738_v28 = vpop.f32.mrf.mxu0  ;;  %v610_v3 = vadd.f32 %v609_v0, %v1534_v22 }
 0x109   :  { %v737_v8 = vadd.f32 %v736_v56, %v694_v2 }
 0x10b   :  { %v758_v16 = vmax.f32 %v737_v8, 0.0 }
 0x10c   :  { %v652_v4 = vpop.f32.mrf.mxu2 }
 0x10d   :  { %v695_v1 = vpop.f32.mrf.mxu3  ;;  %v653_v5 = vadd.f32 %v652_v4, %v610_v3 }
 0x10f   :  { %v612_v6 = vpop.f32.mrf.mxu1  ;;  %v696_v9 = vadd.f32 %v695_v1, %v653_v5 }
 0x110   :  { %v741_v10 = vpop.f32.mrf.mxu0  ;;  %v613_v19 = vadd.f32 %v612_v6, %v1539_v27 }
 0x111   :  { %v739_v11 = vadd.f32 %v738_v28, %v696_v9 }
 0x113   :  { %v759_v14 = vmax.f32 %v739_v11, 0.0 }
 0x114   :  { %v655_v7 = vpop.f32.mrf.mxu2 }
 0x115   :  { %v698_v13 = vpop.f32.mrf.mxu3  ;;  %v1153_v18 = vpack.c.bf16 %v759_v14, %v758_v16  ;;  %v656_v22 = vadd.f32 %v655_v7, %v613_v19 }
 0x117   :  { %v614_v21 = vpop.f32.mrf.mxu1  ;;  %1163 = vst [vmem:[%s1587_s3 + $0x20] sm:$0xff] %v1153_v18   ;;  %v699_v26 = vadd.f32 %v698_v13, %v656_v22 }
 0x118   :  { %v743_v24 = vpop.f32.mrf.mxu0  ;;  %v615_v29 = vadd.f32 %v614_v21, %v1544_v31 }
 0x119   :  { %v742_v12 = vadd.f32 %v741_v10, %v699_v26 }
 0x11b   :  { %v760_v27 = vmax.f32 %v742_v12, 0.0 }
 0x11c   :  { %v657_v30 = vpop.f32.mrf.mxu2 }
 0x11d   :  { %v700_v25 = vpop.f32.mrf.mxu3  ;;  %v658_v32 = vadd.f32 %v657_v30, %v615_v29 }
 0x11f   :  { %v617_v33 = vpop.f32.mrf.mxu1  ;;  %v701_v34 = vadd.f32 %v700_v25, %v658_v32 }
 0x120   :  { %v746_v35 = vpop.f32.mrf.mxu0  ;;  %v618_v39 = vadd.f32 %v617_v33, %v1531_v20 }
 0x121   :  { %v744_v36 = vadd.f32 %v743_v24, %v701_v34 }
 0x123   :  { %v761_v38 = vmax.f32 %v744_v36, 0.0 }
 0x124   :  { %v660_v40 = vpop.f32.mrf.mxu2 }
 0x125   :  { %v703_v37 = vpop.f32.mrf.mxu3  ;;  %v1158_v41 = vpack.c.bf16 %v761_v38, %v760_v27  ;;  %v661_v42 = vadd.f32 %v660_v40, %v618_v39 }
 0x127   :  { %v619_v43 = vpop.f32.mrf.mxu1  ;;  %1164 = vst [vmem:[%s1587_s3 + $0x28] sm:$0xff] %v1158_v41   ;;  %v704_v31 = vadd.f32 %v703_v37, %v661_v42 }
 0x128   :  { %v748_v44 = vpop.f32.mrf.mxu0 }
 0x129   :  { %v747_v45 = vadd.f32 %v746_v35, %v704_v31 }
 0x12b   :  { %v762_v46 = vmax.f32 %v747_v45, 0.0 }
 0x12c   :  { %v662_v47 = vpop.f32.mrf.mxu2 }
 0x12d   :  { %v705_v17 = vpop.f32.mrf.mxu3  ;;  %v775_v48 = vpack.c.bf16 %v762_v46, %v762_v46 }
 0x12f   :  { %788 = vst [vmem:[%s1587_s3 + $0x30] sm:$0x1] %v775_v48 }

// kernel: _lambda_.9
= control target key start
LH: loop header
LB: loop body
LE: loop exit
PB: predicated region body
PF: predicated region fallthrough
CT: control target
= control target key end

     0   :  { %s669_s0 = inlined_call_operand.vmem [shape: bf16[2,512], index: 0, kind: input, shape index: {}]   ;;  %s670_s1 = inlined_call_operand.vmem [shape: bf16[512,128], index: 1, kind: input, shape index: {}]   ;;  %s671_s2 = inlined_call_operand.vmem [shape: f32[1,128], index: 2, kind: input, shape index: {}]   ;;  %s672_s3 = inlined_call_operand.hbm [shape: f32[2,128], index: 3, kind: output, shape index: {}]  }
   0x1   :  { %v490_v0 = vld [vmem:[%s670_s1 + $0x38] sm:$0xff]  ;;  %v489_v4 = vld [vmem:[%s670_s1 + $0x30] sm:$0xff]  ;;  %v488_v8 = vld [vmem:[%s670_s1 + $0x28] sm:$0xff] }
   0x2   :  { %v498_v1 = vld [vmem:[%s670_s1 + $0x78] sm:$0xff]  ;;  %286 = vmatpush.bf16.msra.mxu0 %v490_v0  ;;  %v497_v5 = vld [vmem:[%s670_s1 + $0x70] sm:$0xff]  ;;  %v496_v9 = vld [vmem:[%s670_s1 + $0x68] sm:$0xff] }
   0x3   :  { %v506_v2 = vld [vmem:[%s670_s1 + $0xb8] sm:$0xff]  ;;  %299 = vmatpush.bf16.msra.mxu1 %v498_v1  ;;  %v505_v6 = vld [vmem:[%s670_s1 + $0xb0] sm:$0xff]  ;;  %v504_v10 = vld [vmem:[%s670_s1 + $0xa8] sm:$0xff] }
   0x4   :  { %v514_v3 = vld [vmem:[%s670_s1 + $0xf8] sm:$0xff]  ;;  %312 = vmatpush.bf16.msra.mxu2 %v506_v2  ;;  %v513_v7 = vld [vmem:[%s670_s1 + $0xf0] sm:$0xff]  ;;  %v512_v11 = vld [vmem:[%s670_s1 + $0xe8] sm:$0xff] }
   0x5   :  { %325 = vmatpush.bf16.msra.mxu3 %v514_v3  ;;  %v487_v12 = vld [vmem:[%s670_s1 + $0x20] sm:$0xff] }
   0x6   :  { %287 = vmatpush.bf16.msra.mxu0 %v489_v4  ;;  %v495_v13 = vld [vmem:[%s670_s1 + $0x60] sm:$0xff] }
   0x7   :  { %300 = vmatpush.bf16.msra.mxu1 %v497_v5  ;;  %v15_v14 = vld [vmem:[%s669_s0] sm:$0xf] }
   0x8   :  { %313 = vmatpush.bf16.msra.mxu2 %v505_v6  ;;  %v503_v15 = vld [vmem:[%s670_s1 + $0xa0] sm:$0xff]  ;;  %85 = vst [vmem:[#allocation1] ss:$9 sm:$0xff] %v15_v14 }
   0x9   :  { %326 = vmatpush.bf16.msra.mxu3 %v513_v7  ;;  %v511_v16 = vld [vmem:[%s670_s1 + $0xe0] sm:$0xff] }
   0xa   :  { %288 = vmatpush.bf16.msra.mxu0 %v488_v8 }
   0xb   :  { %301 = vmatpush.bf16.msra.mxu1 %v496_v9 }
   0xc   :  { %314 = vmatpush.bf16.msra.mxu2 %v504_v10 }
   0xd   :  { %327 = vmatpush.bf16.msra.mxu3 %v512_v11 }
   0xe   :  { %8 = vsyncpa [#allocation3], 0  ;;  %289 = vmatpush.bf16.msra.mxu0 %v487_v12  ;;  %v486_v17 = vld [vmem:[%s670_s1 + $0x18] sm:$0xff]  ;;  %v485_v21 = vld [vmem:[%s670_s1 + $0x10] sm:$0xff]  ;;  %s346_s27 = sshll.u32 %s672_s3, 4  ;;  %s347_s27 = int_to_ptr.hbm [resolvable:$true] %s346_s27 }
   0xf   :  { %302 = vmatpush.bf16.msra.mxu1 %v495_v13  ;;  %v494_v18 = vld [vmem:[%s670_s1 + $0x58] sm:$0xff]  ;;  %v493_v22 = vld [vmem:[%s670_s1 + $0x50] sm:$0xff]  ;;  %v484_v25 = vld [vmem:[%s670_s1 + $0x8] sm:$0xff] }
  0x10   :  { %315 = vmatpush.bf16.msra.mxu2 %v503_v15  ;;  %v502_v19 = vld [vmem:[%s670_s1 + $0x98] sm:$0xff]  ;;  %v501_v23 = vld [vmem:[%s670_s1 + $0x90] sm:$0xff]  ;;  %v492_v26 = vld [vmem:[%s670_s1 + $0x48] sm:$0xff] }
  0x11   :  { %328 = vmatpush.bf16.msra.mxu3 %v511_v16  ;;  %v510_v20 = vld [vmem:[%s670_s1 + $0xd8] sm:$0xff]  ;;  %v509_v24 = vld [vmem:[%s670_s1 + $0xd0] sm:$0xff]  ;;  %v500_v27 = vld [vmem:[%s670_s1 + $0x88] sm:$0xff] }
  0x12   :  { %290 = vmatpush.bf16.msra.mxu0 %v486_v17  ;;  %v508_v28 = vld [vmem:[%s670_s1 + $0xc8] sm:$0xff]  ;;  %v483_v29 = vld [vmem:[%s670_s1] sm:$0xff]  ;;  %v88_v35 = vld [vmem:[#allocation1 + $0x12] sm:$0xff] }
  0x13   :  { %303 = vmatpush.bf16.msra.mxu1 %v494_v18  ;;  %v491_v30 = vld [vmem:[%s670_s1 + $0x40] sm:$0xff]  ;;  %v87_v34 = vld [vmem:[#allocation1 + $0x9] sm:$0xff] }
  0x14   :  { %316 = vmatpush.bf16.msra.mxu2 %v502_v19  ;;  %v499_v31 = vld [vmem:[%s670_s1 + $0x80] sm:$0xff] }
  0x15   :  { %329 = vmatpush.bf16.msra.mxu3 %v510_v20  ;;  %v507_v32 = vld [vmem:[%s670_s1 + $0xc0] sm:$0xff]  ;;  %s543_s1 = smov [#allocation2]  }
  0x16   :  { %291 = vmatpush.bf16.msra.mxu0 %v485_v21  ;;  %v86_v33 = vld [vmem:[#allocation1] sm:$0xff]  ;;  %s344_s24 = sshll.u32 %s543_s1, 4  ;;  %s345_s24 = int_to_ptr.vmem [resolvable:$true] %s344_s24 }
  0x17   :  { %304 = vmatpush.bf16.msra.mxu1 %v493_v22  ;;  %v89_v36 = vld [vmem:[#allocation1 + $0x1b] sm:$0xff] }
  0x18   :  { %317 = vmatpush.bf16.msra.mxu2 %v501_v23  ;;  %v516_v37 = vld [vmem:[%s671_s2] ss:$0 sm:$0xff] }
  0x19   :  { %330 = vmatpush.bf16.msra.mxu3 %v509_v24 }
  0x1a   :  { %292 = vmatpush.bf16.msra.mxu0 %v484_v25 }
  0x1b   :  { %305 = vmatpush.bf16.msra.mxu1 %v492_v26 }
  0x1c   :  { %318 = vmatpush.bf16.msra.mxu2 %v500_v27 }
  0x1d   :  { %331 = vmatpush.bf16.msra.mxu3 %v508_v28 }
  0x1e   :  { %293 = vmatpush.bf16.msra.mxu0 %v483_v29 }
  0x1f   :  { %306 = vmatpush.bf16.msra.mxu1 %v491_v30 }
  0x20   :  { %319 = vmatpush.bf16.msra.mxu2 %v499_v31 }
  0x21   :  { %332 = vmatpush.bf16.msra.mxu3 %v507_v32  ;;  %294 = vmatmul.bf16.vlgmr.msra.gmra.mxu0 %v86_v33 }
  0x22   :  { %307 = vmatmul.bf16.vlgmr.msra.gmra.mxu1 %v87_v34 }
  0x23   :  { %320 = vmatmul.bf16.vlgmr.msra.gmra.mxu2 %v88_v35 }
  0x24   :  { %333 = vmatmul.bf16.vlgmr.msra.gmra.mxu3 %v89_v36 }
  0x9e   :  { %v295_v38 = vpop.f32.mrf.mxu0 }
  0x9f   :  { %v308_v39 = vpop.f32.mrf.mxu1  ;;  %v296_v40 = vadd.f32 %v516_v37, %v295_v38 }
  0xa1   :  { %v309_v41 = vadd.f32 %v308_v39, %v296_v40 }
  0xa6   :  { %v321_v42 = vpop.f32.mrf.mxu2  ;;  %v297_v45 = vpop.f32.mrf.mxu0 }
  0xa7   :  { %v334_v43 = vpop.f32.mrf.mxu3  ;;  %v322_v44 = vadd.f32 %v321_v42, %v309_v41  ;;  %v310_v46 = vpop.f32.mrf.mxu1 }
  0xa9   :  { %v335_v47 = vadd.f32 %v334_v43, %v322_v44 }
  0xab   :  { %338 = vst [vmem:[#allocation2] sm:$0x3] %v335_v47 }
  0xac   :  { %349 = dma.vmem_to_hbm [thread:$0]  %s345_s24, 32, %s347_s27, [#allocation3]  }
  0xae   :  { %v323_v48 = vpop.f32.mrf.mxu2 }
  0xaf   :  { %v336_v49 = vpop.f32.mrf.mxu3 }
  0xb0   :  { %541 = dma.done.wait [#allocation3], 32  }
  0xb1   :  { %542 = vsyncadd [#allocation3], 4294967264 }
  0xb2   :  { %354 = vsyncpa [#allocation3], 1 }

// kernel: _lambda_.8
= control target key start
LH: loop header
LB: loop body
LE: loop exit
PB: predicated region body
PF: predicated region fallthrough
CT: control target
= control target key end

     0   :  { %vm4790_vm0 = vcmask 523264   ;;  %vm6104_vm1 = vcmask 1040384   ;;  %vm6108_vm2 = vcmask 1042434   ;;  %vm6112_vm3 = vcmask 1041408   ;;  %s15004_s1 = inlined_call_operand.vmem [shape: bf16[3136,512], index: 1, kind: input, shape index: {}]   ;;  %s15005_s0 = inlined_call_operand.vmem [shape: bf16[2,3136], index: 0, kind: input, shape index: {}]   ;;  %s15006_s2 = inlined_call_operand.vmem [shape: f32[1,512], index: 2, kind: input, shape index: {}]   ;;  %s15007_s3 = inlined_call_operand.vmem [shape: bf16[2,512], index: 3, kind: output, shape index: {}]  }
   0x1   :  { %v6234_v0 = vld [vmem:[%s15004_s1 + $0xe0] sm:$0xf]  ;;  %v9290_v1 = vld [vmem:[%s15004_s1 + $0xec] sm:$0xf0] }
   0x2   :  { %v6362_v2 = vld [vmem:[%s15004_s1 + $0x1e0] sm:$0xf]  ;;  %v6235_v3 = vor.u32 %v9290_v1, %v6234_v0  ;;  %v9322_v4 = vld [vmem:[%s15004_s1 + $0x1ec] sm:$0xf0] }
   0x3   :  { %v6490_v5 = vld [vmem:[%s15004_s1 + $0x2e0] sm:$0xf]  ;;  %v9354_v6 = vld [vmem:[%s15004_s1 + $0x2ec] sm:$0xf0]  ;;  %v6363_v7 = vor.u32 %v9322_v4, %v6362_v2 }
   0x4   :  { %v6491_v8 = vor.u32 %v9354_v6, %v6490_v5  ;;  %v6618_v9 = vld [vmem:[%s15004_s1 + $0x3e0] sm:$0xf]  ;;  %v9386_v10 = vld [vmem:[%s15004_s1 + $0x3ec] sm:$0xf0]  ;;  %4793 = vmatpush.bf16.msra.mxu0 %v6235_v3 }
   0x5   :  { %v6218_v11 = vld [vmem:[%s15004_s1 + $0xc0] sm:$0xf]  ;;  %v6619_v12 = vor.u32 %v9386_v10, %v6618_v9  ;;  %v9286_v13 = vld [vmem:[%s15004_s1 + $0xcc] sm:$0xf0]  ;;  %4806 = vmatpush.bf16.msra.mxu1 %v6363_v7 }
   0x6   :  { %v6346_v14 = vld [vmem:[%s15004_s1 + $0x1c0] sm:$0xf]  ;;  %v9318_v15 = vld [vmem:[%s15004_s1 + $0x1cc] sm:$0xf0]  ;;  %4819 = vmatpush.bf16.msra.mxu2 %v6491_v8  ;;  %v6219_v16 = vor.u32 %v9286_v13, %v6218_v11 }
   0x7   :  { %v6347_v17 = vor.u32 %v9318_v15, %v6346_v14  ;;  %v6474_v18 = vld [vmem:[%s15004_s1 + $0x2c0] sm:$0xf]  ;;  %v9350_v19 = vld [vmem:[%s15004_s1 + $0x2cc] sm:$0xf0]  ;;  %4832 = vmatpush.bf16.msra.mxu3 %v6619_v12 }
   0x8   :  { %v6602_v20 = vld [vmem:[%s15004_s1 + $0x3c0] sm:$0xf]  ;;  %v6475_v21 = vor.u32 %v9350_v19, %v6474_v18  ;;  %v9382_v22 = vld [vmem:[%s15004_s1 + $0x3cc] sm:$0xf0]  ;;  %4794 = vmatpush.bf16.msra.mxu0 %v6219_v16 }
   0x9   :  { %v6202_v23 = vld [vmem:[%s15004_s1 + $0xa0] sm:$0xf]  ;;  %v9282_v24 = vld [vmem:[%s15004_s1 + $0xac] sm:$0xf0]  ;;  %v6603_v25 = vor.u32 %v9382_v22, %v6602_v20  ;;  %4807 = vmatpush.bf16.msra.mxu1 %v6347_v17 }
   0xa   :  { %v6330_v26 = vld [vmem:[%s15004_s1 + $0x1a0] sm:$0xf]  ;;  %v9314_v27 = vld [vmem:[%s15004_s1 + $0x1ac] sm:$0xf0]  ;;  %v6203_v29 = vor.u32 %v9282_v24, %v6202_v23  ;;  %4820 = vmatpush.bf16.msra.mxu2 %v6475_v21 }
   0xb   :  { %v6458_v28 = vld [vmem:[%s15004_s1 + $0x2a0] sm:$0xf]  ;;  %v9346_v30 = vld [vmem:[%s15004_s1 + $0x2ac] sm:$0xf0]  ;;  %v6331_v33 = vor.u32 %v9314_v27, %v6330_v26  ;;  %4833 = vmatpush.bf16.msra.mxu3 %v6603_v25 }
   0xc   :  { %v6586_v31 = vld [vmem:[%s15004_s1 + $0x3a0] sm:$0xf]  ;;  %v9378_v32 = vld [vmem:[%s15004_s1 + $0x3ac] sm:$0xf0]  ;;  %v6459_v34 = vor.u32 %v9346_v30, %v6458_v28  ;;  %4795 = vmatpush.bf16.msra.mxu0 %v6203_v29 }
   0xd   :  { %v6186_v35 = vld [vmem:[%s15004_s1 + $0x80] sm:$0xf]  ;;  %v9278_v36 = vld [vmem:[%s15004_s1 + $0x8c] sm:$0xf0]  ;;  %v6587_v38 = vor.u32 %v9378_v32, %v6586_v31  ;;  %4808 = vmatpush.bf16.msra.mxu1 %v6331_v33 }
   0xe   :  { %v6314_v37 = vld [vmem:[%s15004_s1 + $0x180] sm:$0xf]  ;;  %v9310_v39 = vld [vmem:[%s15004_s1 + $0x18c] sm:$0xf0]  ;;  %v6187_v44 = vor.u32 %v9278_v36, %v6186_v35  ;;  %4821 = vmatpush.bf16.msra.mxu2 %v6459_v34 }
   0xf   :  { %v6442_v40 = vld [vmem:[%s15004_s1 + $0x280] sm:$0xf]  ;;  %v9342_v41 = vld [vmem:[%s15004_s1 + $0x28c] sm:$0xf0]  ;;  %v6315_v45 = vor.u32 %v9310_v39, %v6314_v37  ;;  %4834 = vmatpush.bf16.msra.mxu3 %v6587_v38 }
  0x10   :  { %v6570_v42 = vld [vmem:[%s15004_s1 + $0x380] sm:$0xf]  ;;  %v9374_v43 = vld [vmem:[%s15004_s1 + $0x38c] sm:$0xf0]  ;;  %v6443_v46 = vor.u32 %v9342_v41, %v6442_v40  ;;  %4796 = vmatpush.bf16.msra.mxu0 %v6187_v44 }
  0x11   :  { %v6170_v47 = vld [vmem:[%s15004_s1 + $0x60] sm:$0xf]  ;;  %v9274_v48 = vld [vmem:[%s15004_s1 + $0x6c] sm:$0xf0]  ;;  %v6571_v50 = vor.u32 %v9374_v43, %v6570_v42  ;;  %4809 = vmatpush.bf16.msra.mxu1 %v6315_v45 }
  0x12   :  { %v6298_v49 = vld [vmem:[%s15004_s1 + $0x160] sm:$0xf]  ;;  %v9306_v51 = vld [vmem:[%s15004_s1 + $0x16c] sm:$0xf0]  ;;  %v6171_v56 = vor.u32 %v9274_v48, %v6170_v47  ;;  %4822 = vmatpush.bf16.msra.mxu2 %v6443_v46 }
  0x13   :  { %v6426_v52 = vld [vmem:[%s15004_s1 + $0x260] sm:$0xf]  ;;  %v9338_v53 = vld [vmem:[%s15004_s1 + $0x26c] sm:$0xf0]  ;;  %v6299_v57 = vor.u32 %v9306_v51, %v6298_v49  ;;  %4835 = vmatpush.bf16.msra.mxu3 %v6571_v50 }
  0x14   :  { %v6554_v54 = vld [vmem:[%s15004_s1 + $0x360] sm:$0xf]  ;;  %v9370_v55 = vld [vmem:[%s15004_s1 + $0x36c] sm:$0xf0]  ;;  %v6427_v58 = vor.u32 %v9338_v53, %v6426_v52  ;;  %4797 = vmatpush.bf16.msra.mxu0 %v6171_v56 }
  0x15   :  { %v6154_v59 = vld [vmem:[%s15004_s1 + $0x40] sm:$0xf]  ;;  %v9270_v60 = vld [vmem:[%s15004_s1 + $0x4c] sm:$0xf0]  ;;  %v6555_v62 = vor.u32 %v9370_v55, %v6554_v54  ;;  %4810 = vmatpush.bf16.msra.mxu1 %v6299_v57 }
  0x16   :  { %v6282_v61 = vld [vmem:[%s15004_s1 + $0x140] sm:$0xf]  ;;  %v9302_v63 = vld [vmem:[%s15004_s1 + $0x14c] sm:$0xf0]  ;;  %v6155_v4 = vor.u32 %v9270_v60, %v6154_v59  ;;  %4823 = vmatpush.bf16.msra.mxu2 %v6427_v58 }
  0x17   :  { %v6410_v0 = vld [vmem:[%s15004_s1 + $0x240] sm:$0xf]  ;;  %v9334_v1 = vld [vmem:[%s15004_s1 + $0x24c] sm:$0xf0]  ;;  %v6283_v5 = vor.u32 %v9302_v63, %v6282_v61  ;;  %4836 = vmatpush.bf16.msra.mxu3 %v6555_v62 }
  0x18   :  { %v6538_v2 = vld [vmem:[%s15004_s1 + $0x340] sm:$0xf]  ;;  %v9366_v3 = vld [vmem:[%s15004_s1 + $0x34c] sm:$0xf0]  ;;  %v6411_v6 = vor.u32 %v9334_v1, %v6410_v0  ;;  %4798 = vmatpush.bf16.msra.mxu0 %v6155_v4 }
  0x19   :  { %v6138_v7 = vld [vmem:[%s15004_s1 + $0x20] sm:$0xf]  ;;  %v9266_v8 = vld [vmem:[%s15004_s1 + $0x2c] sm:$0xf0]  ;;  %v6539_v10 = vor.u32 %v9366_v3, %v6538_v2  ;;  %4811 = vmatpush.bf16.msra.mxu1 %v6283_v5 }
  0x1a   :  { %v6266_v9 = vld [vmem:[%s15004_s1 + $0x120] sm:$0xf]  ;;  %v9298_v11 = vld [vmem:[%s15004_s1 + $0x12c] sm:$0xf0]  ;;  %v6139_v16 = vor.u32 %v9266_v8, %v6138_v7  ;;  %4824 = vmatpush.bf16.msra.mxu2 %v6411_v6 }
  0x1b   :  { %v6394_v12 = vld [vmem:[%s15004_s1 + $0x220] sm:$0xf]  ;;  %v9330_v13 = vld [vmem:[%s15004_s1 + $0x22c] sm:$0xf0]  ;;  %v6267_v19 = vor.u32 %v9298_v11, %v6266_v9  ;;  %4837 = vmatpush.bf16.msra.mxu3 %v6539_v10 }
  0x1c   :  { %v6522_v14 = vld [vmem:[%s15004_s1 + $0x320] sm:$0xf]  ;;  %v9362_v15 = vld [vmem:[%s15004_s1 + $0x32c] sm:$0xf0]  ;;  %v6395_v20 = vor.u32 %v9330_v13, %v6394_v12  ;;  %4799 = vmatpush.bf16.msra.mxu0 %v6139_v16 }
  0x1d   :  { %v6122_v17 = vld [vmem:[%s15004_s1] sm:$0xf]  ;;  %v9262_v18 = vld [vmem:[%s15004_s1 + $0xc] sm:$0xf0]  ;;  %v6523_v24 = vor.u32 %v9362_v15, %v6522_v14  ;;  %4812 = vmatpush.bf16.msra.mxu1 %v6267_v19 }
  0x1e   :  { %v6250_v21 = vld [vmem:[%s15004_s1 + $0x100] sm:$0xf]  ;;  %v9294_v22 = vld [vmem:[%s15004_s1 + $0x10c] sm:$0xf0]  ;;  %v6123_v31 = vor.u32 %v9262_v18, %v6122_v17  ;;  %4825 = vmatpush.bf16.msra.mxu2 %v6395_v20 }
  0x1f   :  { %v6378_v23 = vld [vmem:[%s15004_s1 + $0x200] sm:$0xf]  ;;  %v9326_v25 = vld [vmem:[%s15004_s1 + $0x20c] sm:$0xf0]  ;;  %v6251_v35 = vor.u32 %v9294_v22, %v6250_v21  ;;  %4838 = vmatpush.bf16.msra.mxu3 %v6523_v24 }
  0x20   :  { %v6506_v26 = vld [vmem:[%s15004_s1 + $0x300] sm:$0xf]  ;;  %v9358_v27 = vld [vmem:[%s15004_s1 + $0x30c] sm:$0xf0]  ;;  %v6379_v36 = vor.u32 %v9326_v25, %v6378_v23  ;;  %4800 = vmatpush.bf16.msra.mxu0 %v6123_v31 }
  0x21   :  { %v6746_v28 = vld [vmem:[%s15004_s1 + $0x4e0] sm:$0xf]  ;;  %v9418_v29 = vld [vmem:[%s15004_s1 + $0x4ec] sm:$0xf0]  ;;  %v6507_v39 = vor.u32 %v9358_v27, %v6506_v26  ;;  %4813 = vmatpush.bf16.msra.mxu1 %v6251_v35 }
  0x22   :  { %v6874_v30 = vld [vmem:[%s15004_s1 + $0x5e0] sm:$0xf]  ;;  %v9450_v32 = vld [vmem:[%s15004_s1 + $0x5ec] sm:$0xf0]  ;;  %v6747_v40 = vor.u32 %v9418_v29, %v6746_v28  ;;  %4826 = vmatpush.bf16.msra.mxu2 %v6379_v36 }
  0x23   :  { %v7002_v33 = vld [vmem:[%s15004_s1 + $0x6e0] sm:$0xf]  ;;  %v9482_v34 = vld [vmem:[%s15004_s1 + $0x6ec] sm:$0xf0]  ;;  %v6875_v41 = vor.u32 %v9450_v32, %v6874_v30  ;;  %4839 = vmatpush.bf16.msra.mxu3 %v6507_v39 }
  0x24   :  { %v7130_v37 = vld [vmem:[%s15004_s1 + $0x7e0] sm:$0xf]  ;;  %v9514_v38 = vld [vmem:[%s15004_s1 + $0x7ec] sm:$0xf0]  ;;  %v7003_v42 = vor.u32 %v9482_v34, %v7002_v33  ;;  %4845 = vmatpush.bf16.msrb.mxu0 %v6747_v40 }
  0x25   :  { %v6730_v43 = vld [vmem:[%s15004_s1 + $0x4c0] sm:$0xf]  ;;  %v9414_v44 = vld [vmem:[%s15004_s1 + $0x4cc] sm:$0xf0]  ;;  %v7131_v46 = vor.u32 %v9514_v38, %v7130_v37  ;;  %4858 = vmatpush.bf16.msrb.mxu1 %v6875_v41 }
  0x26   :  { %v6858_v45 = vld [vmem:[%s15004_s1 + $0x5c0] sm:$0xf]  ;;  %v9446_v47 = vld [vmem:[%s15004_s1 + $0x5cc] sm:$0xf0]  ;;  %v6731_v52 = vor.u32 %v9414_v44, %v6730_v43  ;;  %4871 = vmatpush.bf16.msrb.mxu2 %v7003_v42  ;;  %v16_v43 = vld [vmem:[%s15005_s0 + $0x8] sm:$0xff] }
  0x27   :  { %v6986_v48 = vld [vmem:[%s15004_s1 + $0x6c0] sm:$0xf]  ;;  %v9478_v49 = vld [vmem:[%s15004_s1 + $0x6cc] sm:$0xf0]  ;;  %v6859_v55 = vor.u32 %v9446_v47, %v6858_v45  ;;  %4884 = vmatpush.bf16.msrb.mxu3 %v7131_v46 }
  0x28   :  { %v7114_v50 = vld [vmem:[%s15004_s1 + $0x7c0] sm:$0xf]  ;;  %v9510_v51 = vld [vmem:[%s15004_s1 + $0x7cc] sm:$0xf0]  ;;  %v6987_v56 = vor.u32 %v9478_v49, %v6986_v48  ;;  %4846 = vmatpush.bf16.msrb.mxu0 %v6731_v52 }
  0x29   :  { %v6714_v53 = vld [vmem:[%s15004_s1 + $0x4a0] sm:$0xf]  ;;  %v9410_v54 = vld [vmem:[%s15004_s1 + $0x4ac] sm:$0xf0]  ;;  %v7115_v60 = vor.u32 %v9510_v51, %v7114_v50  ;;  %4859 = vmatpush.bf16.msrb.mxu1 %v6859_v55 }
  0x2a   :  { %v6842_v57 = vld [vmem:[%s15004_s1 + $0x5a0] sm:$0xf]  ;;  %v9442_v58 = vld [vmem:[%s15004_s1 + $0x5ac] sm:$0xf0]  ;;  %v6715_v1 = vor.u32 %v9410_v54, %v6714_v53  ;;  %4872 = vmatpush.bf16.msrb.mxu2 %v6987_v56 }
  0x2b   :  { %v15_v59 = vld [vmem:[%s15005_s0] sm:$0xff]  ;;  %v9474_v62 = vld [vmem:[%s15004_s1 + $0x6ac] sm:$0xf0]  ;;  %v6843_v2 = vor.u32 %v9442_v58, %v6842_v57  ;;  %4885 = vmatpush.bf16.msrb.mxu3 %v7115_v60 }
  0x2c   :  { %v6970_v61 = vld [vmem:[%s15004_s1 + $0x6a0] sm:$0xf]  ;;  %814 = vst [vmem:[#allocation1] ss:$9 sm:$0xff] %v15_v59  ;;  %v9506_v0 = vld [vmem:[%s15004_s1 + $0x7ac] sm:$0xf0]  ;;  %4847 = vmatpush.bf16.msrb.mxu0 %v6715_v1 }
  0x2d   :  { %v7098_v63 = vld [vmem:[%s15004_s1 + $0x7a0] sm:$0xf]  ;;  %v6971_v3 = vor.u32 %v9474_v62, %v6970_v61  ;;  %v9406_v5 = vld [vmem:[%s15004_s1 + $0x48c] sm:$0xf0]  ;;  %4860 = vmatpush.bf16.msrb.mxu1 %v6843_v2 }
  0x2e   :  { %v6698_v4 = vld [vmem:[%s15004_s1 + $0x480] sm:$0xf]  ;;  %v7099_v7 = vor.u32 %v9506_v0, %v7098_v63  ;;  %v9438_v8 = vld [vmem:[%s15004_s1 + $0x58c] sm:$0xf0] }
  0x2f   :  { %v6826_v6 = vld [vmem:[%s15004_s1 + $0x580] sm:$0xf]  ;;  %v9470_v10 = vld [vmem:[%s15004_s1 + $0x68c] sm:$0xf0]  ;;  %v6699_v14 = vor.u32 %v9406_v5, %v6698_v4  ;;  %4873 = vmatpush.bf16.msrb.mxu2 %v6971_v3 }
  0x30   :  { %v6954_v9 = vld [vmem:[%s15004_s1 + $0x680] sm:$0xf]  ;;  %v9502_v12 = vld [vmem:[%s15004_s1 + $0x78c] sm:$0xf0]  ;;  %v6827_v18 = vor.u32 %v9438_v8, %v6826_v6  ;;  %4886 = vmatpush.bf16.msrb.mxu3 %v7099_v7 }
  0x31   :  { %v7082_v11 = vld [vmem:[%s15004_s1 + $0x780] sm:$0xf]  ;;  %v9402_v15 = vld [vmem:[%s15004_s1 + $0x46c] sm:$0xf0]  ;;  %v6955_v19 = vor.u32 %v9470_v10, %v6954_v9  ;;  %4848 = vmatpush.bf16.msrb.mxu0 %v6699_v14 }
  0x32   :  { %v6682_v13 = vld [vmem:[%s15004_s1 + $0x460] sm:$0xf]  ;;  %v9434_v17 = vld [vmem:[%s15004_s1 + $0x56c] sm:$0xf0]  ;;  %v7083_v23 = vor.u32 %v9502_v12, %v7082_v11  ;;  %4861 = vmatpush.bf16.msrb.mxu1 %v6827_v18 }
  0x33   :  { %v6810_v16 = vld [vmem:[%s15004_s1 + $0x560] sm:$0xf]  ;;  %v10373_v20 = vld [vmem:[#allocation1 + $0x12] sm:$0xff]  ;;  %v10386_v26 = vld [vmem:[#allocation1 + $0x9] sm:$0xff]  ;;  %v6683_v29 = vor.u32 %v9402_v15, %v6682_v13  ;;  %4874 = vmatpush.bf16.msrb.mxu2 %v6955_v19 }
  0x34   :  { %v10375_v21 = vld [vmem:[#allocation1] sm:$0xff]  ;;  %v9466_v25 = vld [vmem:[%s15004_s1 + $0x66c] sm:$0xf0]  ;;  %4827 = vmatmul.bf16.vlgmr.msra.gmra.mxu2 %v10373_v20  ;;  %4814 = vmatmul.bf16.vlgmr.msra.gmra.mxu1 %v10386_v26  ;;  %v6811_v30 = vor.u32 %v9434_v17, %v6810_v16  ;;  %v10466_v61 = vld [vmem:[#allocation1 + $0x36] sm:$0xff] }
  0x35   :  { %v10377_v22 = vld [vmem:[#allocation1 + $0x1b] sm:$0xff]  ;;  %v9498_v28 = vld [vmem:[%s15004_s1 + $0x76c] sm:$0xf0]  ;;  %4801 = vmatmul.bf16.vlgmr.msra.gmra.mxu0 %v10375_v21  ;;  %4887 = vmatpush.bf16.msrb.mxu3 %v7083_v23  ;;  %v10468_v0 = vld [vmem:[#allocation1 + $0x24] sm:$0xff] }
  0x36   :  { %v6938_v24 = vld [vmem:[%s15004_s1 + $0x660] sm:$0xf]  ;;  %4840 = vmatmul.bf16.vlgmr.msra.gmra.mxu3 %v10377_v22  ;;  %v9398_v33 = vld [vmem:[%s15004_s1 + $0x44c] sm:$0xf0]  ;;  %4849 = vmatpush.bf16.msrb.mxu0 %v6683_v29 }
  0x37   :  { %v7066_v27 = vld [vmem:[%s15004_s1 + $0x760] sm:$0xf]  ;;  %v6939_v31 = vor.u32 %v9466_v25, %v6938_v24  ;;  %v9430_v36 = vld [vmem:[%s15004_s1 + $0x54c] sm:$0xf0]  ;;  %4862 = vmatpush.bf16.msrb.mxu1 %v6811_v30 }
  0x38   :  { %v6666_v32 = vld [vmem:[%s15004_s1 + $0x440] sm:$0xf]  ;;  %v7067_v35 = vor.u32 %v9498_v28, %v7066_v27  ;;  %v9462_v38 = vld [vmem:[%s15004_s1 + $0x64c] sm:$0xf0] }
  0x39   :  { %v6794_v34 = vld [vmem:[%s15004_s1 + $0x540] sm:$0xf]  ;;  %v9494_v40 = vld [vmem:[%s15004_s1 + $0x74c] sm:$0xf0]  ;;  %v6667_v41 = vor.u32 %v9398_v33, %v6666_v32  ;;  %4875 = vmatpush.bf16.msrb.mxu2 %v6939_v31 }
  0x3a   :  { %v6922_v37 = vld [vmem:[%s15004_s1 + $0x640] sm:$0xf]  ;;  %v6795_v44 = vor.u32 %v9430_v36, %v6794_v34  ;;  %v9394_v46 = vld [vmem:[%s15004_s1 + $0x42c] sm:$0xf0]  ;;  %4888 = vmatpush.bf16.msrb.mxu3 %v7067_v35 }
  0x3b   :  { %v7050_v39 = vld [vmem:[%s15004_s1 + $0x740] sm:$0xf]  ;;  %v6923_v45 = vor.u32 %v9462_v38, %v6922_v37  ;;  %v9426_v48 = vld [vmem:[%s15004_s1 + $0x52c] sm:$0xf0]  ;;  %4850 = vmatpush.bf16.msrb.mxu0 %v6667_v41 }
  0x3c   :  { %v6650_v42 = vld [vmem:[%s15004_s1 + $0x420] sm:$0xf]  ;;  %v7051_v49 = vor.u32 %v9494_v40, %v7050_v39  ;;  %v9458_v51 = vld [vmem:[%s15004_s1 + $0x62c] sm:$0xf0]  ;;  %4863 = vmatpush.bf16.msrb.mxu1 %v6795_v44 }
  0x3d   :  { %v6778_v47 = vld [vmem:[%s15004_s1 + $0x520] sm:$0xf]  ;;  %v9490_v53 = vld [vmem:[%s15004_s1 + $0x72c] sm:$0xf0]  ;;  %v6651_v56 = vor.u32 %v9394_v46, %v6650_v42  ;;  %4876 = vmatpush.bf16.msrb.mxu2 %v6923_v45 }
  0x3e   :  { %v6906_v50 = vld [vmem:[%s15004_s1 + $0x620] sm:$0xf]  ;;  %v9390_v55 = vld [vmem:[%s15004_s1 + $0x40c] sm:$0xf0]  ;;  %v6779_v62 = vor.u32 %v9426_v48, %v6778_v47  ;;  %4889 = vmatpush.bf16.msrb.mxu3 %v7051_v49 }
  0x3f   :  { %v7034_v52 = vld [vmem:[%s15004_s1 + $0x720] sm:$0xf]  ;;  %v9422_v58 = vld [vmem:[%s15004_s1 + $0x50c] sm:$0xf0]  ;;  %v6907_v63 = vor.u32 %v9458_v51, %v6906_v50  ;;  %4851 = vmatpush.bf16.msrb.mxu0 %v6651_v56 }
  0x40   :  { %v6634_v54 = vld [vmem:[%s15004_s1 + $0x400] sm:$0xf]  ;;  %v9454_v60 = vld [vmem:[%s15004_s1 + $0x60c] sm:$0xf0]  ;;  %v7035_v3 = vor.u32 %v9490_v53, %v7034_v52  ;;  %4864 = vmatpush.bf16.msrb.mxu1 %v6779_v62 }
  0x41   :  { %v6762_v57 = vld [vmem:[%s15004_s1 + $0x500] sm:$0xf]  ;;  %v10472_v2 = vld [vmem:[#allocation1 + $0x2d] sm:$0xff]  ;;  %v6635_v9 = vor.u32 %v9390_v55, %v6634_v54  ;;  %4877 = vmatpush.bf16.msrb.mxu2 %v6907_v63 }
  0x42   :  { %v6890_v59 = vld [vmem:[%s15004_s1 + $0x600] sm:$0xf]  ;;  %v9486_v5 = vld [vmem:[%s15004_s1 + $0x70c] sm:$0xf0]  ;;  %v6763_v13 = vor.u32 %v9422_v58, %v6762_v57  ;;  %4890 = vmatpush.bf16.msrb.mxu3 %v7035_v3 }
  0x43   :  { %v10470_v1 = vld [vmem:[#allocation1 + $0x3f] sm:$0xff]  ;;  %v9546_v7 = vld [vmem:[%s15004_s1 + $0x8ec] sm:$0xf0]  ;;  %v6891_v14 = vor.u32 %v9454_v60, %v6890_v59  ;;  %4852 = vmatpush.bf16.msrb.mxu0 %v6635_v9 }
  0x44   :  { %v7018_v4 = vld [vmem:[%s15004_s1 + $0x700] sm:$0xf]  ;;  %824 = vst [vmem:[#allocation1] ss:$9 sm:$0xff] %v16_v43  ;;  %v9578_v10 = vld [vmem:[%s15004_s1 + $0x9ec] sm:$0xf0]  ;;  %4865 = vmatpush.bf16.msrb.mxu1 %v6763_v13 }
  0x45   :  { %v7258_v6 = vld [vmem:[%s15004_s1 + $0x8e0] sm:$0xf]  ;;  %v9610_v12 = vld [vmem:[%s15004_s1 + $0xaec] sm:$0xf0]  ;;  %v7019_v17 = vor.u32 %v9486_v5, %v7018_v4  ;;  %4878 = vmatpush.bf16.msrb.mxu2 %v6891_v14 }
  0x46   :  { %v7386_v8 = vld [vmem:[%s15004_s1 + $0x9e0] sm:$0xf]  ;;  %v9642_v16 = vld [vmem:[%s15004_s1 + $0xbec] sm:$0xf0]  ;;  %v7259_v18 = vor.u32 %v9546_v7, %v7258_v6  ;;  %4853 = vmatmul.bf16.vlgmr.msrb.gmra.mxu0 %v10468_v0 }
  0x47   :  { %v7514_v11 = vld [vmem:[%s15004_s1 + $0xae0] sm:$0xf]  ;;  %v7387_v19 = vor.u32 %v9578_v10, %v7386_v8  ;;  %v9542_v25 = vld [vmem:[%s15004_s1 + $0x8cc] sm:$0xf0]  ;;  %4891 = vmatpush.bf16.msrb.mxu3 %v7019_v17  ;;  %4866 = vmatmul.bf16.vlgmr.msrb.gmra.mxu1 %v10472_v2 }
  0x48   :  { %v7642_v15 = vld [vmem:[%s15004_s1 + $0xbe0] sm:$0xf]  ;;  %v7515_v23 = vor.u32 %v9610_v12, %v7514_v11  ;;  %v9574_v29 = vld [vmem:[%s15004_s1 + $0x9cc] sm:$0xf0]  ;;  %4897 = vmatpush.bf16.msra.mxu0 %v7259_v18  ;;  %4879 = vmatmul.bf16.vlgmr.msrb.gmra.mxu2 %v10466_v61 }
  0x49   :  { %v7242_v24 = vld [vmem:[%s15004_s1 + $0x8c0] sm:$0xf]  ;;  %v7643_v28 = vor.u32 %v9642_v16, %v7642_v15  ;;  %v9606_v31 = vld [vmem:[%s15004_s1 + $0xacc] sm:$0xf0]  ;;  %4910 = vmatpush.bf16.msra.mxu1 %v7387_v19 }
  0x4a   :  { %v7370_v27 = vld [vmem:[%s15004_s1 + $0x9c0] sm:$0xf]  ;;  %v9638_v33 = vld [vmem:[%s15004_s1 + $0xbcc] sm:$0xf0]  ;;  %v7243_v34 = vor.u32 %v9542_v25, %v7242_v24  ;;  %4923 = vmatpush.bf16.msra.mxu2 %v7515_v23  ;;  %4892 = vmatmul.bf16.vlgmr.msrb.gmra.mxu3 %v10470_v1 }
  0x4b   :  { %v7498_v30 = vld [vmem:[%s15004_s1 + $0xac0] sm:$0xf]  ;;  %v7371_v35 = vor.u32 %v9574_v29, %v7370_v27  ;;  %v9538_v38 = vld [vmem:[%s15004_s1 + $0x8ac] sm:$0xf0]  ;;  %4936 = vmatpush.bf16.msra.mxu3 %v7643_v28 }
  0x4c   :  { %v7626_v32 = vld [vmem:[%s15004_s1 + $0xbc0] sm:$0xf]  ;;  %v7499_v36 = vor.u32 %v9606_v31, %v7498_v30  ;;  %v9570_v41 = vld [vmem:[%s15004_s1 + $0x9ac] sm:$0xf0]  ;;  %4898 = vmatpush.bf16.msra.mxu0 %v7243_v34 }
  0x4d   :  { %v7226_v37 = vld [vmem:[%s15004_s1 + $0x8a0] sm:$0xf]  ;;  %v7627_v40 = vor.u32 %v9638_v33, %v7626_v32  ;;  %v9602_v43 = vld [vmem:[%s15004_s1 + $0xaac] sm:$0xf0]  ;;  %4911 = vmatpush.bf16.msra.mxu1 %v7371_v35 }
  0x4e   :  { %v7354_v39 = vld [vmem:[%s15004_s1 + $0x9a0] sm:$0xf]  ;;  %v9634_v45 = vld [vmem:[%s15004_s1 + $0xbac] sm:$0xf0]  ;;  %v7227_v46 = vor.u32 %v9538_v38, %v7226_v37  ;;  %4924 = vmatpush.bf16.msra.mxu2 %v7499_v36 }
  0x4f   :  { %v7482_v42 = vld [vmem:[%s15004_s1 + $0xaa0] sm:$0xf]  ;;  %v7355_v47 = vor.u32 %v9570_v41, %v7354_v39  ;;  %v9534_v50 = vld [vmem:[%s15004_s1 + $0x88c] sm:$0xf0]  ;;  %4937 = vmatpush.bf16.msra.mxu3 %v7627_v40 }
  0x50   :  { %v7610_v44 = vld [vmem:[%s15004_s1 + $0xba0] sm:$0xf]  ;;  %v7483_v48 = vor.u32 %v9602_v43, %v7482_v42  ;;  %v9566_v53 = vld [vmem:[%s15004_s1 + $0x98c] sm:$0xf0]  ;;  %4899 = vmatpush.bf16.msra.mxu0 %v7227_v46 }
  0x51   :  { %v7210_v49 = vld [vmem:[%s15004_s1 + $0x880] sm:$0xf]  ;;  %v7611_v52 = vor.u32 %v9634_v45, %v7610_v44  ;;  %v9598_v55 = vld [vmem:[%s15004_s1 + $0xa8c] sm:$0xf0]  ;;  %4912 = vmatpush.bf16.msra.mxu1 %v7355_v47 }
  0x52   :  { %v7338_v51 = vld [vmem:[%s15004_s1 + $0x980] sm:$0xf]  ;;  %v9630_v57 = vld [vmem:[%s15004_s1 + $0xb8c] sm:$0xf0]  ;;  %v7211_v58 = vor.u32 %v9534_v50, %v7210_v49  ;;  %4925 = vmatpush.bf16.msra.mxu2 %v7483_v48 }
  0x53   :  { %v7466_v54 = vld [vmem:[%s15004_s1 + $0xa80] sm:$0xf]  ;;  %v7339_v59 = vor.u32 %v9566_v53, %v7338_v51  ;;  %v9530_v63 = vld [vmem:[%s15004_s1 + $0x86c] sm:$0xf0]  ;;  %4938 = vmatpush.bf16.msra.mxu3 %v7611_v52 }
  0x54   :  { %v7594_v56 = vld [vmem:[%s15004_s1 + $0xb80] sm:$0xf]  ;;  %v7467_v60 = vor.u32 %v9598_v55, %v7466_v54  ;;  %v9562_v5 = vld [vmem:[%s15004_s1 + $0x96c] sm:$0xf0]  ;;  %4900 = vmatpush.bf16.msra.mxu0 %v7211_v58 }
  0x55   :  { %v7194_v62 = vld [vmem:[%s15004_s1 + $0x860] sm:$0xf]  ;;  %v7595_v4 = vor.u32 %v9630_v57, %v7594_v56  ;;  %v9594_v7 = vld [vmem:[%s15004_s1 + $0xa6c] sm:$0xf0]  ;;  %4913 = vmatpush.bf16.msra.mxu1 %v7339_v59 }
  0x56   :  { %v7322_v3 = vld [vmem:[%s15004_s1 + $0x960] sm:$0xf]  ;;  %v9626_v9 = vld [vmem:[%s15004_s1 + $0xb6c] sm:$0xf0]  ;;  %v7195_v10 = vor.u32 %v9530_v63, %v7194_v62  ;;  %4926 = vmatpush.bf16.msra.mxu2 %v7467_v60 }
  0x57   :  { %v7450_v6 = vld [vmem:[%s15004_s1 + $0xa60] sm:$0xf]  ;;  %v7323_v11 = vor.u32 %v9562_v5, %v7322_v3  ;;  %v9526_v14 = vld [vmem:[%s15004_s1 + $0x84c] sm:$0xf0]  ;;  %4939 = vmatpush.bf16.msra.mxu3 %v7595_v4 }
  0x58   :  { %v7578_v8 = vld [vmem:[%s15004_s1 + $0xb60] sm:$0xf]  ;;  %v7451_v12 = vor.u32 %v9594_v7, %v7450_v6  ;;  %v9558_v17 = vld [vmem:[%s15004_s1 + $0x94c] sm:$0xf0]  ;;  %4901 = vmatpush.bf16.msra.mxu0 %v7195_v10 }
  0x59   :  { %v7178_v13 = vld [vmem:[%s15004_s1 + $0x840] sm:$0xf]  ;;  %v7579_v16 = vor.u32 %v9626_v9, %v7578_v8  ;;  %v9590_v19 = vld [vmem:[%s15004_s1 + $0xa4c] sm:$0xf0]  ;;  %4914 = vmatpush.bf16.msra.mxu1 %v7323_v11 }
  0x5a   :  { %v7306_v15 = vld [vmem:[%s15004_s1 + $0x940] sm:$0xf]  ;;  %v9622_v24 = vld [vmem:[%s15004_s1 + $0xb4c] sm:$0xf0]  ;;  %v7179_v25 = vor.u32 %v9526_v14, %v7178_v13  ;;  %4927 = vmatpush.bf16.msra.mxu2 %v7451_v12 }
  0x5b   :  { %v7434_v18 = vld [vmem:[%s15004_s1 + $0xa40] sm:$0xf]  ;;  %v7307_v27 = vor.u32 %v9558_v17, %v7306_v15  ;;  %v9522_v30 = vld [vmem:[%s15004_s1 + $0x82c] sm:$0xf0]  ;;  %4940 = vmatpush.bf16.msra.mxu3 %v7579_v16 }
  0x5c   :  { %v7562_v23 = vld [vmem:[%s15004_s1 + $0xb40] sm:$0xf]  ;;  %v7435_v28 = vor.u32 %v9590_v19, %v7434_v18  ;;  %v9554_v33 = vld [vmem:[%s15004_s1 + $0x92c] sm:$0xf0]  ;;  %4902 = vmatpush.bf16.msra.mxu0 %v7179_v25 }
  0x5d   :  { %v7162_v29 = vld [vmem:[%s15004_s1 + $0x820] sm:$0xf]  ;;  %v7563_v32 = vor.u32 %v9622_v24, %v7562_v23  ;;  %v9586_v35 = vld [vmem:[%s15004_s1 + $0xa2c] sm:$0xf0]  ;;  %4915 = vmatpush.bf16.msra.mxu1 %v7307_v27 }
  0x5e   :  { %v7290_v31 = vld [vmem:[%s15004_s1 + $0x920] sm:$0xf]  ;;  %v9618_v37 = vld [vmem:[%s15004_s1 + $0xb2c] sm:$0xf0]  ;;  %v7163_v38 = vor.u32 %v9522_v30, %v7162_v29  ;;  %4928 = vmatpush.bf16.msra.mxu2 %v7435_v28  ;;  %v10747_v28 = vld [vmem:[#allocation1 + $0x24] sm:$0xff] }
  0x5f   :  { %v7418_v34 = vld [vmem:[%s15004_s1 + $0xa20] sm:$0xf]  ;;  %v9518_v40 = vld [vmem:[%s15004_s1 + $0x80c] sm:$0xf0]  ;;  %v7291_v41 = vor.u32 %v9554_v33, %v7290_v31  ;;  %4941 = vmatpush.bf16.msra.mxu3 %v7563_v32  ;;  %v10749_v31 = vld [vmem:[#allocation1 + $0x36] sm:$0xff] }
  0x60   :  { %v7546_v36 = vld [vmem:[%s15004_s1 + $0xb20] sm:$0xf]  ;;  %v7419_v42 = vor.u32 %v9586_v35, %v7418_v34  ;;  %v9550_v44 = vld [vmem:[%s15004_s1 + $0x90c] sm:$0xf0]  ;;  %4903 = vmatpush.bf16.msra.mxu0 %v7163_v38 }
  0x61   :  { %v7146_v39 = vld [vmem:[%s15004_s1 + $0x800] sm:$0xf]  ;;  %v7547_v46 = vor.u32 %v9618_v37, %v7546_v36  ;;  %v9582_v47 = vld [vmem:[%s15004_s1 + $0xa0c] sm:$0xf0]  ;;  %4916 = vmatpush.bf16.msra.mxu1 %v7291_v41 }
  0x62   :  { %v7274_v43 = vld [vmem:[%s15004_s1 + $0x900] sm:$0xf]  ;;  %v9614_v49 = vld [vmem:[%s15004_s1 + $0xb0c] sm:$0xf0]  ;;  %v7147_v53 = vor.u32 %v9518_v40, %v7146_v39  ;;  %4929 = vmatpush.bf16.msra.mxu2 %v7419_v42 }
  0x63   :  { %v7402_v45 = vld [vmem:[%s15004_s1 + $0xa00] sm:$0xf]  ;;  %v9674_v51 = vld [vmem:[%s15004_s1 + $0xcec] sm:$0xf0]  ;;  %v7275_v57 = vor.u32 %v9550_v44, %v7274_v43  ;;  %4942 = vmatpush.bf16.msra.mxu3 %v7547_v46 }
  0x64   :  { %v7530_v48 = vld [vmem:[%s15004_s1 + $0xb00] sm:$0xf]  ;;  %v9706_v54 = vld [vmem:[%s15004_s1 + $0xdec] sm:$0xf0]  ;;  %v7403_v58 = vor.u32 %v9582_v47, %v7402_v45  ;;  %4904 = vmatpush.bf16.msra.mxu0 %v7147_v53 }
  0x65   :  { %v7770_v50 = vld [vmem:[%s15004_s1 + $0xce0] sm:$0xf]  ;;  %v9738_v56 = vld [vmem:[%s15004_s1 + $0xeec] sm:$0xf0]  ;;  %v7531_v62 = vor.u32 %v9614_v49, %v7530_v48  ;;  %4917 = vmatpush.bf16.msra.mxu1 %v7275_v57 }
  0x66   :  { %v7898_v52 = vld [vmem:[%s15004_s1 + $0xde0] sm:$0xf]  ;;  %v9770_v60 = vld [vmem:[%s15004_s1 + $0xfec] sm:$0xf0]  ;;  %v7771_v63 = vor.u32 %v9674_v51, %v7770_v50  ;;  %4930 = vmatpush.bf16.msra.mxu2 %v7403_v58 }
  0x67   :  { %v8026_v55 = vld [vmem:[%s15004_s1 + $0xee0] sm:$0xf]  ;;  %v17_v4 = vld [vmem:[%s15005_s0 + $0x10] sm:$0xff]  ;;  %v7899_v5 = vor.u32 %v9706_v54, %v7898_v52  ;;  %4943 = vmatpush.bf16.msra.mxu3 %v7531_v62 }
  0x68   :  { %v8154_v59 = vld [vmem:[%s15004_s1 + $0xfe0] sm:$0xf]  ;;  %v8027_v6 = vor.u32 %v9738_v56, %v8026_v55  ;;  %v9670_v8 = vld [vmem:[%s15004_s1 + $0xccc] sm:$0xf0]  ;;  %4949 = vmatpush.bf16.msrb.mxu0 %v7771_v63 }
  0x69   :  { %v7754_v3 = vld [vmem:[%s15004_s1 + $0xcc0] sm:$0xf]  ;;  %v9702_v10 = vld [vmem:[%s15004_s1 + $0xdcc] sm:$0xf0]  ;;  %v8155_v11 = vor.u32 %v9770_v60, %v8154_v59  ;;  %4962 = vmatpush.bf16.msrb.mxu1 %v7899_v5 }
  0x6a   :  { %v10706_v7 = vld [vmem:[#allocation1] sm:$0xff]  ;;  %v10717_v12 = vld [vmem:[#allocation1 + $0x12] sm:$0xff]  ;;  %v10719_v13 = vld [vmem:[#allocation1 + $0x9] sm:$0xff]  ;;  %v7755_v24 = vor.u32 %v9670_v8, %v7754_v3  ;;  %4975 = vmatpush.bf16.msrb.mxu2 %v8027_v6 }
  0x6b   :  { %v7882_v9 = vld [vmem:[%s15004_s1 + $0xdc0] sm:$0xf]  ;;  %v9734_v15 = vld [vmem:[%s15004_s1 + $0xecc] sm:$0xf0]  ;;  %4988 = vmatpush.bf16.msrb.mxu3 %v8155_v11  ;;  %4905 = vmatmul.bf16.vlgmr.msra.gmra.mxu0 %v10706_v7 }
  0x6c   :  { %v8010_v14 = vld [vmem:[%s15004_s1 + $0xec0] sm:$0xf]  ;;  %v9766_v18 = vld [vmem:[%s15004_s1 + $0xfcc] sm:$0xf0]  ;;  %v7883_v29 = vor.u32 %v9702_v10, %v7882_v9  ;;  %4931 = vmatmul.bf16.vlgmr.msra.gmra.mxu2 %v10717_v12  ;;  %4918 = vmatmul.bf16.vlgmr.msra.gmra.mxu1 %v10719_v13 }
  0x6d   :  { %v8138_v16 = vld [vmem:[%s15004_s1 + $0xfc0] sm:$0xf]  ;;  %v9666_v23 = vld [vmem:[%s15004_s1 + $0xcac] sm:$0xf0]  ;;  %v8011_v30 = vor.u32 %v9734_v15, %v8010_v14  ;;  %4950 = vmatpush.bf16.msrb.mxu0 %v7755_v24 }
  0x6e   :  { %v10730_v17 = vld [vmem:[#allocation1 + $0x1b] sm:$0xff]  ;;  %v9698_v27 = vld [vmem:[%s15004_s1 + $0xdac] sm:$0xf0]  ;;  %v8139_v34 = vor.u32 %v9766_v18, %v8138_v16  ;;  %4963 = vmatpush.bf16.msrb.mxu1 %v7883_v29 }
  0x6f   :  { %v7738_v19 = vld [vmem:[%s15004_s1 + $0xca0] sm:$0xf]  ;;  %v10751_v32 = vld [vmem:[#allocation1 + $0x2d] sm:$0xff]  ;;  %4944 = vmatmul.bf16.vlgmr.msra.gmra.mxu3 %v10730_v17  ;;  %4976 = vmatpush.bf16.msrb.mxu2 %v8011_v30 }
  0x70   :  { %v7866_v25 = vld [vmem:[%s15004_s1 + $0xda0] sm:$0xf]  ;;  %v9730_v36 = vld [vmem:[%s15004_s1 + $0xeac] sm:$0xf0]  ;;  %v7739_v39 = vor.u32 %v9666_v23, %v7738_v19  ;;  %4989 = vmatpush.bf16.msrb.mxu3 %v8139_v34 }
  0x71   :  { %v10753_v33 = vld [vmem:[#allocation1 + $0x3f] sm:$0xff]  ;;  %v9762_v38 = vld [vmem:[%s15004_s1 + $0xfac] sm:$0xf0]  ;;  %v7867_v40 = vor.u32 %v9698_v27, %v7866_v25 }
  0x72   :  { %v7994_v35 = vld [vmem:[%s15004_s1 + $0xea0] sm:$0xf]  ;;  %834 = vst [vmem:[#allocation1] ss:$9 sm:$0xff] %v17_v4  ;;  %v9662_v43 = vld [vmem:[%s15004_s1 + $0xc8c] sm:$0xf0]  ;;  %4951 = vmatpush.bf16.msrb.mxu0 %v7739_v39 }
  0x73   :  { %v8122_v37 = vld [vmem:[%s15004_s1 + $0xfa0] sm:$0xf]  ;;  %v7995_v41 = vor.u32 %v9730_v36, %v7994_v35  ;;  %v9694_v46 = vld [vmem:[%s15004_s1 + $0xd8c] sm:$0xf0]  ;;  %4964 = vmatpush.bf16.msrb.mxu1 %v7867_v40 }
  0x74   :  { %v7722_v42 = vld [vmem:[%s15004_s1 + $0xc80] sm:$0xf]  ;;  %v8123_v45 = vor.u32 %v9762_v38, %v8122_v37  ;;  %v9726_v48 = vld [vmem:[%s15004_s1 + $0xe8c] sm:$0xf0] }
  0x75   :  { %v7850_v44 = vld [vmem:[%s15004_s1 + $0xd80] sm:$0xf]  ;;  %v9758_v50 = vld [vmem:[%s15004_s1 + $0xf8c] sm:$0xf0]  ;;  %v7723_v51 = vor.u32 %v9662_v43, %v7722_v42  ;;  %4977 = vmatpush.bf16.msrb.mxu2 %v7995_v41 }
  0x76   :  { %v7978_v47 = vld [vmem:[%s15004_s1 + $0xe80] sm:$0xf]  ;;  %v7851_v52 = vor.u32 %v9694_v46, %v7850_v44  ;;  %v9658_v55 = vld [vmem:[%s15004_s1 + $0xc6c] sm:$0xf0]  ;;  %4990 = vmatpush.bf16.msrb.mxu3 %v8123_v45 }
  0x77   :  { %v8106_v49 = vld [vmem:[%s15004_s1 + $0xf80] sm:$0xf]  ;;  %v7979_v53 = vor.u32 %v9726_v48, %v7978_v47  ;;  %v9690_v58 = vld [vmem:[%s15004_s1 + $0xd6c] sm:$0xf0]  ;;  %4952 = vmatpush.bf16.msrb.mxu0 %v7723_v51 }
  0x78   :  { %v7706_v54 = vld [vmem:[%s15004_s1 + $0xc60] sm:$0xf]  ;;  %v8107_v57 = vor.u32 %v9758_v50, %v8106_v49  ;;  %v9722_v60 = vld [vmem:[%s15004_s1 + $0xe6c] sm:$0xf0]  ;;  %4965 = vmatpush.bf16.msrb.mxu1 %v7851_v52 }
  0x79   :  { %v7834_v56 = vld [vmem:[%s15004_s1 + $0xd60] sm:$0xf]  ;;  %v9754_v63 = vld [vmem:[%s15004_s1 + $0xf6c] sm:$0xf0]  ;;  %v7707_v3 = vor.u32 %v9658_v55, %v7706_v54  ;;  %4978 = vmatpush.bf16.msrb.mxu2 %v7979_v53 }
  0x7a   :  { %v7962_v59 = vld [vmem:[%s15004_s1 + $0xe60] sm:$0xf]  ;;  %v7835_v4 = vor.u32 %v9690_v58, %v7834_v56  ;;  %v9654_v8 = vld [vmem:[%s15004_s1 + $0xc4c] sm:$0xf0]  ;;  %4991 = vmatpush.bf16.msrb.mxu3 %v8107_v57 }
  0x7b   :  { %v8090_v62 = vld [vmem:[%s15004_s1 + $0xf60] sm:$0xf]  ;;  %v7963_v5 = vor.u32 %v9722_v60, %v7962_v59  ;;  %v9686_v11 = vld [vmem:[%s15004_s1 + $0xd4c] sm:$0xf0]  ;;  %4953 = vmatpush.bf16.msrb.mxu0 %v7707_v3 }
  0x7c   :  { %v7690_v6 = vld [vmem:[%s15004_s1 + $0xc40] sm:$0xf]  ;;  %v8091_v10 = vor.u32 %v9754_v63, %v8090_v62  ;;  %v9718_v15 = vld [vmem:[%s15004_s1 + $0xe4c] sm:$0xf0]  ;;  %4966 = vmatpush.bf16.msrb.mxu1 %v7835_v4 }
  0x7d   :  { %v7818_v9 = vld [vmem:[%s15004_s1 + $0xd40] sm:$0xf]  ;;  %v9750_v18 = vld [vmem:[%s15004_s1 + $0xf4c] sm:$0xf0]  ;;  %v7691_v19 = vor.u32 %v9654_v8, %v7690_v6  ;;  %4979 = vmatpush.bf16.msrb.mxu2 %v7963_v5 }
  0x7e   :  { %v7946_v14 = vld [vmem:[%s15004_s1 + $0xe40] sm:$0xf]  ;;  %v7819_v23 = vor.u32 %v9686_v11, %v7818_v9  ;;  %v9650_v27 = vld [vmem:[%s15004_s1 + $0xc2c] sm:$0xf0]  ;;  %4992 = vmatpush.bf16.msrb.mxu3 %v8091_v10 }
  0x7f   :  { %v8074_v16 = vld [vmem:[%s15004_s1 + $0xf40] sm:$0xf]  ;;  %v7947_v24 = vor.u32 %v9718_v15, %v7946_v14  ;;  %v9682_v34 = vld [vmem:[%s15004_s1 + $0xd2c] sm:$0xf0]  ;;  %4954 = vmatpush.bf16.msrb.mxu0 %v7691_v19 }
  0x80   :  { %v7674_v25 = vld [vmem:[%s15004_s1 + $0xc20] sm:$0xf]  ;;  %v8075_v30 = vor.u32 %v9750_v18, %v8074_v16  ;;  %v9714_v36 = vld [vmem:[%s15004_s1 + $0xe2c] sm:$0xf0]  ;;  %4967 = vmatpush.bf16.msrb.mxu1 %v7819_v23 }
  0x81   :  { %v7802_v29 = vld [vmem:[%s15004_s1 + $0xd20] sm:$0xf]  ;;  %v9746_v38 = vld [vmem:[%s15004_s1 + $0xf2c] sm:$0xf0]  ;;  %v7675_v39 = vor.u32 %v9650_v27, %v7674_v25  ;;  %4980 = vmatpush.bf16.msrb.mxu2 %v7947_v24 }
  0x82   :  { %v7930_v35 = vld [vmem:[%s15004_s1 + $0xe20] sm:$0xf]  ;;  %v9646_v41 = vld [vmem:[%s15004_s1 + $0xc0c] sm:$0xf0]  ;;  %v7803_v42 = vor.u32 %v9682_v34, %v7802_v29  ;;  %4993 = vmatpush.bf16.msrb.mxu3 %v8075_v30 }
  0x83   :  { %v8058_v37 = vld [vmem:[%s15004_s1 + $0xf20] sm:$0xf]  ;;  %v7931_v43 = vor.u32 %v9714_v36, %v7930_v35  ;;  %v9678_v45 = vld [vmem:[%s15004_s1 + $0xd0c] sm:$0xf0]  ;;  %4955 = vmatpush.bf16.msrb.mxu0 %v7675_v39 }
  0x84   :  { %v7658_v40 = vld [vmem:[%s15004_s1 + $0xc00] sm:$0xf]  ;;  %v8059_v47 = vor.u32 %v9746_v38, %v8058_v37  ;;  %v9710_v48 = vld [vmem:[%s15004_s1 + $0xe0c] sm:$0xf0]  ;;  %4968 = vmatpush.bf16.msrb.mxu1 %v7803_v42 }
  0x85   :  { %v7786_v44 = vld [vmem:[%s15004_s1 + $0xd00] sm:$0xf]  ;;  %v9742_v50 = vld [vmem:[%s15004_s1 + $0xf0c] sm:$0xf0]  ;;  %v7659_v54 = vor.u32 %v9646_v41, %v7658_v40  ;;  %4981 = vmatpush.bf16.msrb.mxu2 %v7931_v43 }
  0x86   :  { %v7914_v46 = vld [vmem:[%s15004_s1 + $0xe00] sm:$0xf]  ;;  %v9802_v52 = vld [vmem:[%s15004_s1 + $0x10ec] sm:$0xf0]  ;;  %v7787_v58 = vor.u32 %v9678_v45, %v7786_v44  ;;  %4994 = vmatpush.bf16.msrb.mxu3 %v8059_v47 }
  0x87   :  { %v8042_v49 = vld [vmem:[%s15004_s1 + $0xf00] sm:$0xf]  ;;  %v9834_v55 = vld [vmem:[%s15004_s1 + $0x11ec] sm:$0xf0]  ;;  %v7915_v59 = vor.u32 %v9710_v48, %v7914_v46  ;;  %4956 = vmatpush.bf16.msrb.mxu0 %v7659_v54 }
  0x88   :  { %v8282_v51 = vld [vmem:[%s15004_s1 + $0x10e0] sm:$0xf]  ;;  %v9866_v57 = vld [vmem:[%s15004_s1 + $0x12ec] sm:$0xf0]  ;;  %v8043_v63 = vor.u32 %v9742_v50, %v8042_v49  ;;  %4969 = vmatpush.bf16.msrb.mxu1 %v7787_v58 }
  0x89   :  { %v8410_v53 = vld [vmem:[%s15004_s1 + $0x11e0] sm:$0xf]  ;;  %v9898_v62 = vld [vmem:[%s15004_s1 + $0x13ec] sm:$0xf0]  ;;  %v8283_v3 = vor.u32 %v9802_v52, %v8282_v51  ;;  %4982 = vmatpush.bf16.msrb.mxu2 %v7915_v59 }
  0x8a   :  { %v8538_v56 = vld [vmem:[%s15004_s1 + $0x12e0] sm:$0xf]  ;;  %v8411_v4 = vor.u32 %v9834_v55, %v8410_v53  ;;  %v9798_v8 = vld [vmem:[%s15004_s1 + $0x10cc] sm:$0xf0]  ;;  %4995 = vmatpush.bf16.msrb.mxu3 %v8043_v63  ;;  %4957 = vmatmul.bf16.vlgmr.msrb.gmra.mxu0 %v10747_v28 }
  0x8b   :  { %v8666_v60 = vld [vmem:[%s15004_s1 + $0x13e0] sm:$0xf]  ;;  %v8539_v5 = vor.u32 %v9866_v57, %v8538_v56  ;;  %v9830_v11 = vld [vmem:[%s15004_s1 + $0x11cc] sm:$0xf0]  ;;  %5001 = vmatpush.bf16.msra.mxu0 %v8283_v3  ;;  %4970 = vmatmul.bf16.vlgmr.msrb.gmra.mxu1 %v10751_v32 }
  0x8c   :  { %v8266_v6 = vld [vmem:[%s15004_s1 + $0x10c0] sm:$0xf]  ;;  %v8667_v10 = vor.u32 %v9898_v62, %v8666_v60  ;;  %v9862_v15 = vld [vmem:[%s15004_s1 + $0x12cc] sm:$0xf0]  ;;  %5014 = vmatpush.bf16.msra.mxu1 %v8411_v4  ;;  %4983 = vmatmul.bf16.vlgmr.msrb.gmra.mxu2 %v10749_v31 }
  0x8d   :  { %v8394_v9 = vld [vmem:[%s15004_s1 + $0x11c0] sm:$0xf]  ;;  %v9894_v18 = vld [vmem:[%s15004_s1 + $0x13cc] sm:$0xf0]  ;;  %v8267_v19 = vor.u32 %v9798_v8, %v8266_v6  ;;  %5027 = vmatpush.bf16.msra.mxu2 %v8539_v5  ;;  %4996 = vmatmul.bf16.vlgmr.msrb.gmra.mxu3 %v10753_v33 }
  0x8e   :  { %v8522_v14 = vld [vmem:[%s15004_s1 + $0x12c0] sm:$0xf]  ;;  %v8395_v23 = vor.u32 %v9830_v11, %v8394_v9  ;;  %v9794_v27 = vld [vmem:[%s15004_s1 + $0x10ac] sm:$0xf0]  ;;  %5040 = vmatpush.bf16.msra.mxu3 %v8667_v10 }
  0x8f   :  { %v8650_v16 = vld [vmem:[%s15004_s1 + $0x13c0] sm:$0xf]  ;;  %v8523_v24 = vor.u32 %v9862_v15, %v8522_v14  ;;  %v9826_v34 = vld [vmem:[%s15004_s1 + $0x11ac] sm:$0xf0]  ;;  %5002 = vmatpush.bf16.msra.mxu0 %v8267_v19 }
  0x90   :  { %v8250_v25 = vld [vmem:[%s15004_s1 + $0x10a0] sm:$0xf]  ;;  %v8651_v30 = vor.u32 %v9894_v18, %v8650_v16  ;;  %v9858_v36 = vld [vmem:[%s15004_s1 + $0x12ac] sm:$0xf0]  ;;  %5015 = vmatpush.bf16.msra.mxu1 %v8395_v23 }
  0x91   :  { %v8378_v29 = vld [vmem:[%s15004_s1 + $0x11a0] sm:$0xf]  ;;  %v9890_v38 = vld [vmem:[%s15004_s1 + $0x13ac] sm:$0xf0]  ;;  %v8251_v39 = vor.u32 %v9794_v27, %v8250_v25  ;;  %5028 = vmatpush.bf16.msra.mxu2 %v8523_v24 }
  0x92   :  { %v8506_v35 = vld [vmem:[%s15004_s1 + $0x12a0] sm:$0xf]  ;;  %v8379_v40 = vor.u32 %v9826_v34, %v8378_v29  ;;  %v9790_v43 = vld [vmem:[%s15004_s1 + $0x108c] sm:$0xf0]  ;;  %5041 = vmatpush.bf16.msra.mxu3 %v8651_v30 }
  0x93   :  { %v8634_v37 = vld [vmem:[%s15004_s1 + $0x13a0] sm:$0xf]  ;;  %v8507_v41 = vor.u32 %v9858_v36, %v8506_v35  ;;  %v9822_v46 = vld [vmem:[%s15004_s1 + $0x118c] sm:$0xf0]  ;;  %5003 = vmatpush.bf16.msra.mxu0 %v8251_v39 }
  0x94   :  { %v8234_v42 = vld [vmem:[%s15004_s1 + $0x1080] sm:$0xf]  ;;  %v8635_v45 = vor.u32 %v9890_v38, %v8634_v37  ;;  %v9854_v48 = vld [vmem:[%s15004_s1 + $0x128c] sm:$0xf0]  ;;  %5016 = vmatpush.bf16.msra.mxu1 %v8379_v40 }
  0x95   :  { %v8362_v44 = vld [vmem:[%s15004_s1 + $0x1180] sm:$0xf]  ;;  %v9886_v50 = vld [vmem:[%s15004_s1 + $0x138c] sm:$0xf0]  ;;  %v8235_v51 = vor.u32 %v9790_v43, %v8234_v42  ;;  %5029 = vmatpush.bf16.msra.mxu2 %v8507_v41 }
  0x96   :  { %v8490_v47 = vld [vmem:[%s15004_s1 + $0x1280] sm:$0xf]  ;;  %v8363_v52 = vor.u32 %v9822_v46, %v8362_v44  ;;  %v9786_v55 = vld [vmem:[%s15004_s1 + $0x106c] sm:$0xf0]  ;;  %5042 = vmatpush.bf16.msra.mxu3 %v8635_v45 }
  0x97   :  { %v8618_v49 = vld [vmem:[%s15004_s1 + $0x1380] sm:$0xf]  ;;  %v8491_v53 = vor.u32 %v9854_v48, %v8490_v47  ;;  %v9818_v58 = vld [vmem:[%s15004_s1 + $0x116c] sm:$0xf0]  ;;  %5004 = vmatpush.bf16.msra.mxu0 %v8235_v51 }
  0x98   :  { %v8218_v54 = vld [vmem:[%s15004_s1 + $0x1060] sm:$0xf]  ;;  %v8619_v57 = vor.u32 %v9886_v50, %v8618_v49  ;;  %v9850_v60 = vld [vmem:[%s15004_s1 + $0x126c] sm:$0xf0]  ;;  %5017 = vmatpush.bf16.msra.mxu1 %v8363_v52 }
  0x99   :  { %v8346_v56 = vld [vmem:[%s15004_s1 + $0x1160] sm:$0xf]  ;;  %v9882_v63 = vld [vmem:[%s15004_s1 + $0x136c] sm:$0xf0]  ;;  %v8219_v3 = vor.u32 %v9786_v55, %v8218_v54  ;;  %5030 = vmatpush.bf16.msra.mxu2 %v8491_v53 }
  0x9a   :  { %v8474_v59 = vld [vmem:[%s15004_s1 + $0x1260] sm:$0xf]  ;;  %v8347_v4 = vor.u32 %v9818_v58, %v8346_v56  ;;  %v9782_v8 = vld [vmem:[%s15004_s1 + $0x104c] sm:$0xf0]  ;;  %5043 = vmatpush.bf16.msra.mxu3 %v8619_v57 }
  0x9b   :  { %v8602_v62 = vld [vmem:[%s15004_s1 + $0x1360] sm:$0xf]  ;;  %v8475_v5 = vor.u32 %v9850_v60, %v8474_v59  ;;  %v9814_v11 = vld [vmem:[%s15004_s1 + $0x114c] sm:$0xf0]  ;;  %5005 = vmatpush.bf16.msra.mxu0 %v8219_v3 }
  0x9c   :  { %v8202_v6 = vld [vmem:[%s15004_s1 + $0x1040] sm:$0xf]  ;;  %v8603_v10 = vor.u32 %v9882_v63, %v8602_v62  ;;  %v9846_v15 = vld [vmem:[%s15004_s1 + $0x124c] sm:$0xf0]  ;;  %5018 = vmatpush.bf16.msra.mxu1 %v8347_v4 }
  0x9d   :  { %v8330_v9 = vld [vmem:[%s15004_s1 + $0x1140] sm:$0xf]  ;;  %v9878_v18 = vld [vmem:[%s15004_s1 + $0x134c] sm:$0xf0]  ;;  %v8203_v19 = vor.u32 %v9782_v8, %v8202_v6  ;;  %5031 = vmatpush.bf16.msra.mxu2 %v8475_v5  ;;  %v18_v5 = vld [vmem:[%s15005_s0 + $0x18] sm:$0x1] }
  0x9e   :  { %v8458_v14 = vld [vmem:[%s15004_s1 + $0x1240] sm:$0xf]  ;;  %v8331_v23 = vor.u32 %v9814_v11, %v8330_v9  ;;  %v9778_v27 = vld [vmem:[%s15004_s1 + $0x102c] sm:$0xf0]  ;;  %5044 = vmatpush.bf16.msra.mxu3 %v8603_v10 }
  0x9f   :  { %v8586_v16 = vld [vmem:[%s15004_s1 + $0x1340] sm:$0xf]  ;;  %v8459_v24 = vor.u32 %v9846_v15, %v8458_v14  ;;  %v9810_v34 = vld [vmem:[%s15004_s1 + $0x112c] sm:$0xf0]  ;;  %5006 = vmatpush.bf16.msra.mxu0 %v8203_v19 }
  0xa0   :  { %v8186_v25 = vld [vmem:[%s15004_s1 + $0x1020] sm:$0xf]  ;;  %v8587_v30 = vor.u32 %v9878_v18, %v8586_v16  ;;  %v9842_v36 = vld [vmem:[%s15004_s1 + $0x122c] sm:$0xf0]  ;;  %5019 = vmatpush.bf16.msra.mxu1 %v8331_v23 }
  0xa1   :  { %v8314_v29 = vld [vmem:[%s15004_s1 + $0x1120] sm:$0xf]  ;;  %v9874_v38 = vld [vmem:[%s15004_s1 + $0x132c] sm:$0xf0]  ;;  %v8187_v39 = vor.u32 %v9778_v27, %v8186_v25  ;;  %5032 = vmatpush.bf16.msra.mxu2 %v8459_v24 }
  0xa2   :  { %v8442_v35 = vld [vmem:[%s15004_s1 + $0x1220] sm:$0xf]  ;;  %v9774_v41 = vld [vmem:[%s15004_s1 + $0x100c] sm:$0xf0]  ;;  %v8315_v42 = vor.u32 %v9810_v34, %v8314_v29  ;;  %5045 = vmatpush.bf16.msra.mxu3 %v8587_v30 }
  0xa3   :  { %v8570_v37 = vld [vmem:[%s15004_s1 + $0x1320] sm:$0xf]  ;;  %v8443_v43 = vor.u32 %v9842_v36, %v8442_v35  ;;  %v9806_v45 = vld [vmem:[%s15004_s1 + $0x110c] sm:$0xf0]  ;;  %5007 = vmatpush.bf16.msra.mxu0 %v8187_v39 }
  0xa4   :  { %v8170_v40 = vld [vmem:[%s15004_s1 + $0x1000] sm:$0xf]  ;;  %v8571_v47 = vor.u32 %v9874_v38, %v8570_v37  ;;  %v9838_v48 = vld [vmem:[%s15004_s1 + $0x120c] sm:$0xf0]  ;;  %5020 = vmatpush.bf16.msra.mxu1 %v8315_v42  ;;  %v11158_v37 = vld [vmem:[#allocation1 + $0x24] sm:$0xff] }
  0xa5   :  { %v8298_v44 = vld [vmem:[%s15004_s1 + $0x1100] sm:$0xf]  ;;  %v9870_v50 = vld [vmem:[%s15004_s1 + $0x130c] sm:$0xf0]  ;;  %v8171_v54 = vor.u32 %v9774_v41, %v8170_v40  ;;  %5033 = vmatpush.bf16.msra.mxu2 %v8443_v43  ;;  %v11160_v40 = vld [vmem:[#allocation1 + $0x36] sm:$0xff] }
  0xa6   :  { %v8426_v46 = vld [vmem:[%s15004_s1 + $0x1200] sm:$0xf]  ;;  %v9930_v52 = vld [vmem:[%s15004_s1 + $0x14ec] sm:$0xf0]  ;;  %v8299_v58 = vor.u32 %v9806_v45, %v8298_v44  ;;  %5046 = vmatpush.bf16.msra.mxu3 %v8571_v47 }
  0xa7   :  { %v8554_v49 = vld [vmem:[%s15004_s1 + $0x1300] sm:$0xf]  ;;  %v9962_v55 = vld [vmem:[%s15004_s1 + $0x15ec] sm:$0xf0]  ;;  %v8427_v59 = vor.u32 %v9838_v48, %v8426_v46  ;;  %5008 = vmatpush.bf16.msra.mxu0 %v8171_v54 }
  0xa8   :  { %v8794_v51 = vld [vmem:[%s15004_s1 + $0x14e0] sm:$0xf]  ;;  %v9994_v57 = vld [vmem:[%s15004_s1 + $0x16ec] sm:$0xf0]  ;;  %v8555_v63 = vor.u32 %v9870_v50, %v8554_v49  ;;  %5021 = vmatpush.bf16.msra.mxu1 %v8299_v58 }
  0xa9   :  { %v8922_v53 = vld [vmem:[%s15004_s1 + $0x15e0] sm:$0xf]  ;;  %v10026_v62 = vld [vmem:[%s15004_s1 + $0x17ec] sm:$0xf0]  ;;  %v8795_v3 = vor.u32 %v9930_v52, %v8794_v51  ;;  %5034 = vmatpush.bf16.msra.mxu2 %v8427_v59 }
  0xaa   :  { %v9050_v56 = vld [vmem:[%s15004_s1 + $0x16e0] sm:$0xf]  ;;  %v8923_v6 = vor.u32 %v9962_v55, %v8922_v53  ;;  %v9926_v10 = vld [vmem:[%s15004_s1 + $0x14cc] sm:$0xf0]  ;;  %5047 = vmatpush.bf16.msra.mxu3 %v8555_v63 }
  0xab   :  { %v9178_v60 = vld [vmem:[%s15004_s1 + $0x17e0] sm:$0xf]  ;;  %v9051_v8 = vor.u32 %v9994_v57, %v9050_v56  ;;  %v9958_v14 = vld [vmem:[%s15004_s1 + $0x15cc] sm:$0xf0]  ;;  %5053 = vmatpush.bf16.msrb.mxu0 %v8795_v3 }
  0xac   :  { %v8778_v4 = vld [vmem:[%s15004_s1 + $0x14c0] sm:$0xf]  ;;  %v9179_v15 = vor.u32 %v10026_v62, %v9178_v60  ;;  %v11128_v16 = vld [vmem:[#allocation1 + $0x12] sm:$0xff]  ;;  %v11130_v18 = vld [vmem:[#allocation1 + $0x9] sm:$0xff]  ;;  %5066 = vmatpush.bf16.msrb.mxu1 %v8923_v6 }
  0xad   :  { %v11117_v9 = vld [vmem:[#allocation1] sm:$0xff]  ;;  %v9990_v23 = vld [vmem:[%s15004_s1 + $0x16cc] sm:$0xf0]  ;;  %v8779_v34 = vor.u32 %v9926_v10, %v8778_v4  ;;  %5079 = vmatpush.bf16.msrb.mxu2 %v9051_v8  ;;  %5022 = vmatmul.bf16.vlgmr.msra.gmra.mxu1 %v11130_v18 }
  0xae   :  { %v8906_v11 = vld [vmem:[%s15004_s1 + $0x15c0] sm:$0xf]  ;;  %v10022_v27 = vld [vmem:[%s15004_s1 + $0x17cc] sm:$0xf0]  ;;  %5092 = vmatpush.bf16.msrb.mxu3 %v9179_v15  ;;  %5009 = vmatmul.bf16.vlgmr.msra.gmra.mxu0 %v11117_v9 }
  0xaf   :  { %v9034_v19 = vld [vmem:[%s15004_s1 + $0x16c0] sm:$0xf]  ;;  %v9922_v30 = vld [vmem:[%s15004_s1 + $0x14ac] sm:$0xf0]  ;;  %v8907_v38 = vor.u32 %v9958_v14, %v8906_v11  ;;  %5035 = vmatmul.bf16.vlgmr.msra.gmra.mxu2 %v11128_v16  ;;  %5054 = vmatpush.bf16.msrb.mxu0 %v8779_v34 }
  0xb0   :  { %v9162_v24 = vld [vmem:[%s15004_s1 + $0x17c0] sm:$0xf]  ;;  %v9954_v36 = vld [vmem:[%s15004_s1 + $0x15ac] sm:$0xf0]  ;;  %v9035_v39 = vor.u32 %v9990_v23, %v9034_v19 }
  0xb1   :  { %v11141_v25 = vld [vmem:[#allocation1 + $0x1b] sm:$0xff]  ;;  %v11162_v41 = vld [vmem:[#allocation1 + $0x2d] sm:$0xff]  ;;  %v9163_v43 = vor.u32 %v10022_v27, %v9162_v24  ;;  %5067 = vmatpush.bf16.msrb.mxu1 %v8907_v38 }
  0xb2   :  { %v8762_v29 = vld [vmem:[%s15004_s1 + $0x14a0] sm:$0xf]  ;;  %v9986_v45 = vld [vmem:[%s15004_s1 + $0x16ac] sm:$0xf0]  ;;  %5048 = vmatmul.bf16.vlgmr.msra.gmra.mxu3 %v11141_v25  ;;  %5080 = vmatpush.bf16.msrb.mxu2 %v9035_v39 }
  0xb3   :  { %v8890_v35 = vld [vmem:[%s15004_s1 + $0x15a0] sm:$0xf]  ;;  %v10018_v47 = vld [vmem:[%s15004_s1 + $0x17ac] sm:$0xf0]  ;;  %v8763_v48 = vor.u32 %v9922_v30, %v8762_v29  ;;  %5093 = vmatpush.bf16.msrb.mxu3 %v9163_v43 }
  0xb4   :  { %v11164_v42 = vld [vmem:[#allocation1 + $0x3f] sm:$0xff]  ;;  %v8891_v49 = vor.u32 %v9954_v36, %v8890_v35  ;;  %v9918_v52 = vld [vmem:[%s15004_s1 + $0x148c] sm:$0xf0] }
  0xb5   :  { %v9018_v44 = vld [vmem:[%s15004_s1 + $0x16a0] sm:$0xf]  ;;  %844 = vst [vmem:[#allocation1] ss:$9 sm:$0xff] %v18_v5  ;;  %v9950_v55 = vld [vmem:[%s15004_s1 + $0x158c] sm:$0xf0]  ;;  %5055 = vmatpush.bf16.msrb.mxu0 %v8763_v48 }
  0xb6   :  { %v9146_v46 = vld [vmem:[%s15004_s1 + $0x17a0] sm:$0xf]  ;;  %v9019_v50 = vor.u32 %v9986_v45, %v9018_v44  ;;  %v9982_v57 = vld [vmem:[%s15004_s1 + $0x168c] sm:$0xf0]  ;;  %5068 = vmatpush.bf16.msrb.mxu1 %v8891_v49 }
  0xb7   :  { %v8746_v51 = vld [vmem:[%s15004_s1 + $0x1480] sm:$0xf]  ;;  %v9147_v54 = vor.u32 %v10018_v47, %v9146_v46  ;;  %v10014_v59 = vld [vmem:[%s15004_s1 + $0x178c] sm:$0xf0]  ;;  %v4802_v47 = vpop.f32.mrf.mxu0 }
  0xb8   :  { %v8874_v53 = vld [vmem:[%s15004_s1 + $0x1580] sm:$0xf]  ;;  %v8747_v60 = vor.u32 %v9918_v52, %v8746_v51  ;;  %5081 = vmatpush.bf16.msrb.mxu2 %v9019_v50  ;;  %v9914_v4 = vld [vmem:[%s15004_s1 + $0x146c] sm:$0xf0] }
  0xb9   :  { %v9002_v56 = vld [vmem:[%s15004_s1 + $0x1680] sm:$0xf]  ;;  %v8875_v63 = vor.u32 %v9950_v55, %v8874_v53  ;;  %v9946_v6 = vld [vmem:[%s15004_s1 + $0x156c] sm:$0xf0]  ;;  %5094 = vmatpush.bf16.msrb.mxu3 %v9147_v54  ;;  %v4815_v54 = vpop.f32.mrf.mxu1 }
  0xba   :  { %v9130_v58 = vld [vmem:[%s15004_s1 + $0x1780] sm:$0xf]  ;;  %v9003_v3 = vor.u32 %v9982_v57, %v9002_v56  ;;  %v9978_v11 = vld [vmem:[%s15004_s1 + $0x166c] sm:$0xf0]  ;;  %5056 = vmatpush.bf16.msrb.mxu0 %v8747_v60 }
  0xbb   :  { %v8730_v62 = vld [vmem:[%s15004_s1 + $0x1460] sm:$0xf]  ;;  %v9131_v8 = vor.u32 %v10014_v59, %v9130_v58  ;;  %v10010_v19 = vld [vmem:[%s15004_s1 + $0x176c] sm:$0xf0]  ;;  %5069 = vmatpush.bf16.msrb.mxu1 %v8875_v63 }
  0xbc   :  { %v8858_v5 = vld [vmem:[%s15004_s1 + $0x1560] sm:$0xf]  ;;  %v8731_v23 = vor.u32 %v9914_v4, %v8730_v62  ;;  %5082 = vmatpush.bf16.msrb.mxu2 %v9003_v3  ;;  %v9910_v30 = vld [vmem:[%s15004_s1 + $0x144c] sm:$0xf0] }
  0xbd   :  { %v8986_v10 = vld [vmem:[%s15004_s1 + $0x1660] sm:$0xf]  ;;  %v8859_v27 = vor.u32 %v9946_v6, %v8858_v5  ;;  %5095 = vmatpush.bf16.msrb.mxu3 %v9131_v8  ;;  %v9942_v38 = vld [vmem:[%s15004_s1 + $0x154c] sm:$0xf0] }
  0xbe   :  { %v803_v14 = vld [vmem:[%s15006_s2] sm:$0xf]  ;;  %v8987_v29 = vor.u32 %v9978_v11, %v8986_v10  ;;  %v9974_v43 = vld [vmem:[%s15004_s1 + $0x164c] sm:$0xf0]  ;;  %5057 = vmatpush.bf16.msrb.mxu0 %v8731_v23 }
  0xbf   :  { %v9114_v15 = vld [vmem:[%s15004_s1 + $0x1760] sm:$0xf]  ;;  %v805_v35 = vperm.slane %v803_v14, 0  ;;  %v10006_v45 = vld [vmem:[%s15004_s1 + $0x174c] sm:$0xf0]  ;;  %5070 = vmatpush.bf16.msrb.mxu1 %v8859_v27  ;;  %v4828_v14 = vpop.f32.mrf.mxu2 }
  0xc0   :  { %v8714_v24 = vld [vmem:[%s15004_s1 + $0x1440] sm:$0xf]  ;;  %v9115_v36 = vor.u32 %v10010_v19, %v9114_v15  ;;  %5083 = vmatpush.bf16.msrb.mxu2 %v8987_v29  ;;  %v9906_v51 = vld [vmem:[%s15004_s1 + $0x142c] sm:$0xf0]  ;;  %v4841_v29 = vpop.f32.mrf.mxu3 }
  0xc1   :  { %v8842_v34 = vld [vmem:[%s15004_s1 + $0x1540] sm:$0xf]  ;;  %v8715_v46 = vor.u32 %v9910_v30, %v8714_v24  ;;  %v4803_v53 = vadd.f32 %v4802_v47, %v805_v35  ;;  %v9938_v56 = vld [vmem:[%s15004_s1 + $0x152c] sm:$0xf0]  ;;  %v9288_v35 = vld [vmem:[%s15004_s1 + $0xe4] sm:$0xf] }
  0xc2   :  { %v8970_v39 = vld [vmem:[%s15004_s1 + $0x1640] sm:$0xf]  ;;  %v8843_v48 = vor.u32 %v9942_v38, %v8842_v34  ;;  %5096 = vmatpush.bf16.msrb.mxu3 %v9115_v36  ;;  %v9970_v58 = vld [vmem:[%s15004_s1 + $0x162c] sm:$0xf0]  ;;  %v6236_v38 = vld [vmem:[%s15004_s1 + $0xf0] sm:$0xf0] }
  0xc3   :  { %v9098_v44 = vld [vmem:[%s15004_s1 + $0x1740] sm:$0xf]  ;;  %v8971_v49 = vor.u32 %v9974_v43, %v8970_v39  ;;  %v10002_v60 = vld [vmem:[%s15004_s1 + $0x172c] sm:$0xf0]  ;;  %v4816_v62 = vadd.f32 %v4815_v54, %v4803_v53  ;;  %5058 = vmatpush.bf16.msrb.mxu0 %v8715_v46  ;;  %v9320_v39 = vld [vmem:[%s15004_s1 + $0x1e4] sm:$0xf]  ;;  %v6239_v53 = vor.u32 %v9288_v35, %v6236_v38 }
  0xc4   :  { %v8698_v50 = vld [vmem:[%s15004_s1 + $0x1420] sm:$0xf]  ;;  %v9099_v55 = vor.u32 %v10006_v45, %v9098_v44  ;;  %v9902_v4 = vld [vmem:[%s15004_s1 + $0x140c] sm:$0xf0]  ;;  %5071 = vmatpush.bf16.msrb.mxu1 %v8843_v48  ;;  %v6364_v43 = vld [vmem:[%s15004_s1 + $0x1f0] sm:$0xf0]  ;;  %v4804_v45 = vpop.f32.mrf.mxu0 }
  0xc5   :  { %v8826_v52 = vld [vmem:[%s15004_s1 + $0x1520] sm:$0xf]  ;;  %v8699_v63 = vor.u32 %v9906_v51, %v8698_v50  ;;  %5084 = vmatpush.bf16.msrb.mxu2 %v8971_v49  ;;  %v9934_v10 = vld [vmem:[%s15004_s1 + $0x150c] sm:$0xf0]  ;;  %v4829_v27 = vadd.f32 %v4828_v14, %v4816_v62  ;;  %v9352_v48 = vld [vmem:[%s15004_s1 + $0x2e4] sm:$0xf]  ;;  %v4817_v50 = vpop.f32.mrf.mxu1  ;;  %v6367_v54 = vor.u32 %v9320_v39, %v6364_v43 }
  0xc6   :  { %v8954_v57 = vld [vmem:[%s15004_s1 + $0x1620] sm:$0xf]  ;;  %v8827_v5 = vor.u32 %v9938_v56, %v8826_v52  ;;  %5097 = vmatpush.bf16.msrb.mxu3 %v9099_v55  ;;  %v9966_v19 = vld [vmem:[%s15004_s1 + $0x160c] sm:$0xf0]  ;;  %v6492_v49 = vld [vmem:[%s15004_s1 + $0x2f0] sm:$0xf0] }
  0xc7   :  { %v9082_v59 = vld [vmem:[%s15004_s1 + $0x1720] sm:$0xf]  ;;  %v8955_v6 = vor.u32 %v9970_v58, %v8954_v57  ;;  %v9998_v24 = vld [vmem:[%s15004_s1 + $0x170c] sm:$0xf0]  ;;  %5059 = vmatpush.bf16.msrb.mxu0 %v8699_v63  ;;  %v11323_v44 = vadd.f32 %v4841_v29, %v4829_v27  ;;  %v9284_v57 = vld [vmem:[%s15004_s1 + $0xc4] sm:$0xf]  ;;  %v6495_v58 = vor.u32 %v9352_v48, %v6492_v49 }
  0xc8   :  { %v8682_v3 = vld [vmem:[%s15004_s1 + $0x1400] sm:$0xf]  ;;  %v9083_v15 = vor.u32 %v10002_v60, %v9082_v59  ;;  %v10042_v34 = vld [vmem:[%s15004_s1 + $0x186c] sm:$0xf0]  ;;  %5072 = vmatpush.bf16.msrb.mxu1 %v8827_v5  ;;  %v6220_v59 = vld [vmem:[%s15004_s1 + $0xd0] sm:$0xf0] }
  0xc9   :  { %v8810_v8 = vld [vmem:[%s15004_s1 + $0x1500] sm:$0xf]  ;;  %v8683_v36 = vor.u32 %v9902_v4, %v8682_v3  ;;  %5085 = vmatpush.bf16.msrb.mxu2 %v8955_v6  ;;  %v10038_v56 = vld [vmem:[%s15004_s1 + $0x184c] sm:$0xf0]  ;;  %v9316_v60 = vld [vmem:[%s15004_s1 + $0x1c4] sm:$0xf]  ;;  %v4830_v4 = vpop.f32.mrf.mxu2  ;;  %v4843_v6 = vpop.f32.mrf.mxu3 }
  0xca   :  { %v8938_v11 = vld [vmem:[%s15004_s1 + $0x1600] sm:$0xf]  ;;  %v8811_v46 = vor.u32 %v9934_v10, %v8810_v8  ;;  %5098 = vmatpush.bf16.msrb.mxu3 %v9083_v15  ;;  %v6348_v62 = vld [vmem:[%s15004_s1 + $0x1d0] sm:$0xf0]  ;;  %v9348_v63 = vld [vmem:[%s15004_s1 + $0x2c4] sm:$0xf]  ;;  %v6223_v8 = vor.u32 %v9284_v57, %v6220_v59 }
  0xcb   :  { %v9066_v23 = vld [vmem:[%s15004_s1 + $0x1700] sm:$0xf]  ;;  %v8939_v47 = vor.u32 %v9966_v19, %v8938_v11  ;;  %5060 = vmatpush.bf16.msrb.mxu0 %v8683_v36  ;;  %v6476_v3 = vld [vmem:[%s15004_s1 + $0x2d0] sm:$0xf0]  ;;  %v6351_v10 = vor.u32 %v9316_v60, %v6348_v62  ;;  %v10034_v14 = vld [vmem:[%s15004_s1 + $0x182c] sm:$0xf0] }
  0xcc   :  { %v9242_v30 = vld [vmem:[%s15004_s1 + $0x1860] sm:$0xf]  ;;  %v9067_v51 = vor.u32 %v9998_v24, %v9066_v23  ;;  %5073 = vmatpush.bf16.msrb.mxu1 %v8811_v46  ;;  %v9280_v15 = vld [vmem:[%s15004_s1 + $0xa4] sm:$0xf]  ;;  %v6479_v19 = vor.u32 %v9348_v63, %v6476_v3  ;;  %v6204_v23 = vld [vmem:[%s15004_s1 + $0xb0] sm:$0xf0] }
  0xcd   :  { %v9243_v52 = vor.u32 %v10042_v34, %v9242_v30  ;;  %v9226_v55 = vld [vmem:[%s15004_s1 + $0x1840] sm:$0xf]  ;;  %5086 = vmatpush.bf16.msrb.mxu2 %v8939_v47  ;;  %v9312_v24 = vld [vmem:[%s15004_s1 + $0x1a4] sm:$0xf]  ;;  %v6332_v27 = vld [vmem:[%s15004_s1 + $0x1b0] sm:$0xf0]  ;;  %v6207_v36 = vor.u32 %v9280_v15, %v6204_v23  ;;  %v4867_v60 = vpop.f32.mrf.mxu1 }
  0xce   :  { %5099 = vmatpush.bf16.msrb.mxu3 %v9067_v51  ;;  %v9227_v5 = vor.u32 %v10038_v56, %v9226_v55  ;;  %v9210_v11 = vld [vmem:[%s15004_s1 + $0x1820] sm:$0xf]  ;;  %5061 = vmatmul.bf16.vlgmr.msrb.gmra.mxu0 %v11158_v37  ;;  %v9344_v29 = vld [vmem:[%s15004_s1 + $0x2a4] sm:$0xf]  ;;  %v6460_v30 = vld [vmem:[%s15004_s1 + $0x2b0] sm:$0xf0]  ;;  %v6335_v38 = vor.u32 %v9312_v24, %v6332_v27 }
  0xcf   :  { %5109 = vmatpush.bf16.msra.mxu0 %v9243_v52  ;;  %5074 = vmatmul.bf16.vlgmr.msrb.gmra.mxu1 %v11162_v41  ;;  %v9211_v34 = vor.u32 %v10034_v14, %v9210_v11  ;;  %v9194_v35 = vld [vmem:[%s15004_s1 + $0x1800] sm:$0xf]  ;;  %v10030_v39 = vld [vmem:[%s15004_s1 + $0x180c] sm:$0xf0]  ;;  %v9276_v43 = vld [vmem:[%s15004_s1 + $0x84] sm:$0xf]  ;;  %v6463_v46 = vor.u32 %v9344_v29, %v6460_v30 }
  0xd0   :  { %5118 = vmatpush.bf16.msra.mxu1 %v6239_v53  ;;  %5087 = vmatmul.bf16.vlgmr.msrb.gmra.mxu2 %v11160_v40  ;;  %v6188_v45 = vld [vmem:[%s15004_s1 + $0x90] sm:$0xf0]  ;;  %v9308_v47 = vld [vmem:[%s15004_s1 + $0x184] sm:$0xf]  ;;  %v9195_v53 = vor.u32 %v10030_v39, %v9194_v35 }
  0xd1   :  { %5131 = vmatpush.bf16.msra.mxu2 %v6367_v54  ;;  %5100 = vmatmul.bf16.vlgmr.msrb.gmra.mxu3 %v11164_v42  ;;  %v6316_v48 = vld [vmem:[%s15004_s1 + $0x190] sm:$0xf0]  ;;  %v9340_v49 = vld [vmem:[%s15004_s1 + $0x284] sm:$0xf]  ;;  %v4854_v54 = vpop.f32.mrf.mxu0  ;;  %v6191_v55 = vor.u32 %v9276_v43, %v6188_v45  ;;  %v4880_v23 = vpop.f32.mrf.mxu2 }
  0xd2   :  { %5144 = vmatpush.bf16.msra.mxu3 %v6495_v58  ;;  %v6444_v50 = vld [vmem:[%s15004_s1 + $0x290] sm:$0xf0]  ;;  %v9384_v51 = vld [vmem:[%s15004_s1 + $0x3e4] sm:$0xf]  ;;  %v6319_v56 = vor.u32 %v9308_v47, %v6316_v48  ;;  %v4855_v59 = vadd.f32 %v4854_v54, %v11323_v44 }
  0xd3   :  { %5110 = vmatpush.bf16.msra.mxu0 %v9227_v5  ;;  %v6620_v52 = vld [vmem:[%s15004_s1 + $0x3f0] sm:$0xf0]  ;;  %v9272_v57 = vld [vmem:[%s15004_s1 + $0x64] sm:$0xf]  ;;  %v6447_v62 = vor.u32 %v9340_v49, %v6444_v50 }
  0xd4   :  { %5119 = vmatpush.bf16.msra.mxu1 %v6223_v8  ;;  %v6172_v58 = vld [vmem:[%s15004_s1 + $0x70] sm:$0xf0]  ;;  %v6623_v63 = vor.u32 %v9384_v51, %v6620_v52  ;;  %v9304_v3 = vld [vmem:[%s15004_s1 + $0x164] sm:$0xf] }
  0xd5   :  { %5132 = vmatpush.bf16.msra.mxu2 %v6351_v10  ;;  %v6300_v4 = vld [vmem:[%s15004_s1 + $0x170] sm:$0xf0]  ;;  %v9336_v5 = vld [vmem:[%s15004_s1 + $0x264] sm:$0xf]  ;;  %v4868_v10 = vadd.f32 %v4867_v60, %v4855_v59  ;;  %v6175_v11 = vor.u32 %v9272_v57, %v6172_v58  ;;  %v4869_v52 = vpop.f32.mrf.mxu1 }
  0xd6   :  { %5145 = vmatpush.bf16.msra.mxu3 %v6479_v19  ;;  %v6428_v44 = vld [vmem:[%s15004_s1 + $0x270] sm:$0xf0]  ;;  %v9380_v6 = vld [vmem:[%s15004_s1 + $0x3c4] sm:$0xf]  ;;  %v6303_v14 = vor.u32 %v9304_v3, %v6300_v4 }
  0xd7   :  { %5111 = vmatpush.bf16.msra.mxu0 %v9211_v34  ;;  %v6604_v8 = vld [vmem:[%s15004_s1 + $0x3d0] sm:$0xf0]  ;;  %v9268_v15 = vld [vmem:[%s15004_s1 + $0x44] sm:$0xf]  ;;  %v6431_v24 = vor.u32 %v9336_v5, %v6428_v44  ;;  %v4881_v35 = vadd.f32 %v4880_v23, %v4868_v10 }
  0xd8   :  { %5120 = vmatpush.bf16.msra.mxu1 %v6207_v36  ;;  %v6156_v19 = vld [vmem:[%s15004_s1 + $0x50] sm:$0xf0]  ;;  %v6607_v27 = vor.u32 %v9380_v6, %v6604_v8  ;;  %v9300_v29 = vld [vmem:[%s15004_s1 + $0x144] sm:$0xf]  ;;  %v4893_v36 = vpop.f32.mrf.mxu3 }
  0xd9   :  { %5133 = vmatpush.bf16.msra.mxu2 %v6335_v38  ;;  %v6284_v30 = vld [vmem:[%s15004_s1 + $0x150] sm:$0xf0]  ;;  %v9332_v34 = vld [vmem:[%s15004_s1 + $0x244] sm:$0xf]  ;;  %v4856_v47 = vpop.f32.mrf.mxu0  ;;  %v6159_v48 = vor.u32 %v9268_v15, %v6156_v19  ;;  %v4882_v44 = vpop.f32.mrf.mxu2 }
  0xda   :  { %5146 = vmatpush.bf16.msra.mxu3 %v6463_v46  ;;  %v6412_v38 = vld [vmem:[%s15004_s1 + $0x250] sm:$0xf0]  ;;  %v9376_v39 = vld [vmem:[%s15004_s1 + $0x3a4] sm:$0xf]  ;;  %v11462_v46 = vadd.f32 %v4893_v36, %v4881_v35  ;;  %v6287_v49 = vor.u32 %v9300_v29, %v6284_v30 }
  0xdb   :  { %5112 = vmatpush.bf16.msra.mxu0 %v9195_v53  ;;  %v6588_v43 = vld [vmem:[%s15004_s1 + $0x3b0] sm:$0xf0]  ;;  %v845_v45 = vld [vmem:[#allocation1] sm:$0xff]  ;;  %v6415_v53 = vor.u32 %v9332_v34, %v6412_v38 }
  0xdc   :  { %5121 = vmatpush.bf16.msra.mxu1 %v6191_v55  ;;  %v9264_v50 = vld [vmem:[%s15004_s1 + $0x24] sm:$0xf]  ;;  %v6140_v51 = vld [vmem:[%s15004_s1 + $0x30] sm:$0xf0]  ;;  %v6591_v54 = vor.u32 %v9376_v39, %v6588_v43 }
  0xdd   :  { %5134 = vmatpush.bf16.msra.mxu2 %v6319_v56  ;;  %v9296_v55 = vld [vmem:[%s15004_s1 + $0x124] sm:$0xf]  ;;  %v6268_v56 = vld [vmem:[%s15004_s1 + $0x130] sm:$0xf0] }
  0xde   :  { %5147 = vmatpush.bf16.msra.mxu3 %v6447_v62  ;;  %v9328_v57 = vld [vmem:[%s15004_s1 + $0x224] sm:$0xf]  ;;  %9256 = vmatmul.msk.bf16.vlgmr.msra.gmra.mxu0 %vm4790_vm0, %v845_v45  ;;  %v6396_v58 = vld [vmem:[%s15004_s1 + $0x230] sm:$0xf0]  ;;  %v6143_v62 = vor.u32 %v9264_v50, %v6140_v51 }
  0xdf   :  { %5157 = vmatpush.bf16.msrb.mxu0 %v6623_v63  ;;  %v9372_v59 = vld [vmem:[%s15004_s1 + $0x384] sm:$0xf]  ;;  %v6572_v60 = vld [vmem:[%s15004_s1 + $0x390] sm:$0xf0]  ;;  %v6271_v63 = vor.u32 %v9296_v55, %v6268_v56  ;;  %v6399_v6 = vor.u32 %v9328_v57, %v6396_v58 }
  0xe0   :  { %5122 = vmatpush.bf16.msra.mxu1 %v6175_v11  ;;  %v9260_v3 = vld [vmem:[%s15004_s1 + $0x4] sm:$0xf]  ;;  %v6124_v4 = vld [vmem:[%s15004_s1 + $0x10] sm:$0xf0]  ;;  %v6575_v8 = vor.u32 %v9372_v59, %v6572_v60  ;;  %v4895_v15 = vpop.f32.mrf.mxu3 }
  0xe1   :  { %5135 = vmatpush.bf16.msra.mxu2 %v6303_v14  ;;  %v9292_v5 = vld [vmem:[%s15004_s1 + $0x104] sm:$0xf]  ;;  %v6252_v10 = vld [vmem:[%s15004_s1 + $0x110] sm:$0xf0]  ;;  %v6127_v34 = vor.u32 %v9260_v3, %v6124_v4 }
  0xe2   :  { %5148 = vmatpush.bf16.msra.mxu3 %v6431_v24  ;;  %v9324_v11 = vld [vmem:[%s15004_s1 + $0x204] sm:$0xf]  ;;  %v6380_v14 = vld [vmem:[%s15004_s1 + $0x210] sm:$0xf0]  ;;  %v6255_v35 = vor.u32 %v9292_v5, %v6252_v10 }
  0xe3   :  { %5158 = vmatpush.bf16.msrb.mxu0 %v6607_v27  ;;  %v9368_v19 = vld [vmem:[%s15004_s1 + $0x364] sm:$0xf]  ;;  %v6556_v23 = vld [vmem:[%s15004_s1 + $0x370] sm:$0xf0]  ;;  %v6383_v39 = vor.u32 %v9324_v11, %v6380_v14 }
  0xe4   :  { %5123 = vmatpush.bf16.msra.mxu1 %v6159_v48  ;;  %v9416_v24 = vld [vmem:[%s15004_s1 + $0x4e4] sm:$0xf]  ;;  %v6748_v27 = vld [vmem:[%s15004_s1 + $0x4f0] sm:$0xf0]  ;;  %v6559_v43 = vor.u32 %v9368_v19, %v6556_v23 }
  0xe5   :  { %5136 = vmatpush.bf16.msra.mxu2 %v6287_v49  ;;  %v9448_v29 = vld [vmem:[%s15004_s1 + $0x5e4] sm:$0xf]  ;;  %v6876_v30 = vld [vmem:[%s15004_s1 + $0x5f0] sm:$0xf0]  ;;  %v6751_v45 = vor.u32 %v9416_v24, %v6748_v27 }
  0xe6   :  { %5149 = vmatpush.bf16.msra.mxu3 %v6415_v53  ;;  %v9480_v36 = vld [vmem:[%s15004_s1 + $0x6e4] sm:$0xf]  ;;  %v7004_v38 = vld [vmem:[%s15004_s1 + $0x6f0] sm:$0xf0]  ;;  %v6879_v47 = vor.u32 %v9448_v29, %v6876_v30 }
  0xe7   :  { %5159 = vmatpush.bf16.msrb.mxu0 %v6591_v54  ;;  %v9364_v48 = vld [vmem:[%s15004_s1 + $0x344] sm:$0xf]  ;;  %v6540_v49 = vld [vmem:[%s15004_s1 + $0x350] sm:$0xf0]  ;;  %v7007_v51 = vor.u32 %v9480_v36, %v7004_v38 }
  0xe8   :  { %5124 = vmatpush.bf16.msra.mxu1 %v6143_v62  ;;  %v9412_v50 = vld [vmem:[%s15004_s1 + $0x4c4] sm:$0xf]  ;;  %v6732_v52 = vld [vmem:[%s15004_s1 + $0x4d0] sm:$0xf0]  ;;  %v6543_v57 = vor.u32 %v9364_v48, %v6540_v49 }
  0xe9   :  { %5137 = vmatpush.bf16.msra.mxu2 %v6271_v63  ;;  %v9444_v53 = vld [vmem:[%s15004_s1 + $0x5c4] sm:$0xf]  ;;  %v6860_v54 = vld [vmem:[%s15004_s1 + $0x5d0] sm:$0xf0]  ;;  %v6735_v58 = vor.u32 %v9412_v50, %v6732_v52 }
  0xea   :  { %5150 = vmatpush.bf16.msra.mxu3 %v6399_v6  ;;  %v9476_v55 = vld [vmem:[%s15004_s1 + $0x6c4] sm:$0xf]  ;;  %v6988_v56 = vld [vmem:[%s15004_s1 + $0x6d0] sm:$0xf0]  ;;  %v6863_v59 = vor.u32 %v9444_v53, %v6860_v54 }
  0xeb   :  { %5160 = vmatpush.bf16.msrb.mxu0 %v6575_v8  ;;  %v9360_v60 = vld [vmem:[%s15004_s1 + $0x324] sm:$0xf]  ;;  %v6524_v62 = vld [vmem:[%s15004_s1 + $0x330] sm:$0xf0]  ;;  %v6991_v3 = vor.u32 %v9476_v55, %v6988_v56 }
  0xec   :  { %5125 = vmatpush.bf16.msra.mxu1 %v6127_v34  ;;  %v9408_v63 = vld [vmem:[%s15004_s1 + $0x4a4] sm:$0xf]  ;;  %v6716_v4 = vld [vmem:[%s15004_s1 + $0x4b0] sm:$0xf0]  ;;  %v6527_v10 = vor.u32 %v9360_v60, %v6524_v62 }
  0xed   :  { %5138 = vmatpush.bf16.msra.mxu2 %v6255_v35  ;;  %v9440_v5 = vld [vmem:[%s15004_s1 + $0x5a4] sm:$0xf]  ;;  %v6844_v44 = vld [vmem:[%s15004_s1 + $0x5b0] sm:$0xf0]  ;;  %v6719_v14 = vor.u32 %v9408_v63, %v6716_v4  ;;  %v4906_v35 = vpop.f32.mrf.mxu0 }
  0xee   :  { %5151 = vmatpush.bf16.msra.mxu3 %v6383_v39  ;;  %v9472_v6 = vld [vmem:[%s15004_s1 + $0x6a4] sm:$0xf]  ;;  %v6972_v8 = vld [vmem:[%s15004_s1 + $0x6b0] sm:$0xf0]  ;;  %v6847_v15 = vor.u32 %v9440_v5, %v6844_v44 }
  0xef   :  { %5161 = vmatpush.bf16.msrb.mxu0 %v6559_v43  ;;  %5126 = vmatmul.bf16.vlgmr.msra.gmra.mxu1 %v10375_v21  ;;  %v9356_v11 = vld [vmem:[%s15004_s1 + $0x304] sm:$0xf]  ;;  %v6508_v19 = vld [vmem:[%s15004_s1 + $0x310] sm:$0xf0]  ;;  %v6975_v27 = vor.u32 %v9472_v6, %v6972_v8  ;;  %v4907_v43 = vadd.f32 %v4906_v35, %v11462_v46  ;;  %v4932_v5 = vpop.f32.mrf.mxu2 }
  0xf0   :  { %5170 = vmatpush.bf16.msrb.mxu1 %v6751_v45  ;;  %5139 = vmatmul.bf16.vlgmr.msra.gmra.mxu2 %v10386_v26  ;;  %v9404_v23 = vld [vmem:[%s15004_s1 + $0x484] sm:$0xf]  ;;  %v6700_v24 = vld [vmem:[%s15004_s1 + $0x490] sm:$0xf0]  ;;  %v6511_v45 = vor.u32 %v9356_v11, %v6508_v19 }
  0xf1   :  { %5183 = vmatpush.bf16.msrb.mxu2 %v6879_v47  ;;  %5152 = vmatmul.bf16.vlgmr.msra.gmra.mxu3 %v10373_v20  ;;  %v9436_v29 = vld [vmem:[%s15004_s1 + $0x584] sm:$0xf]  ;;  %v6828_v30 = vld [vmem:[%s15004_s1 + $0x590] sm:$0xf0]  ;;  %v4919_v47 = vpop.f32.mrf.mxu1  ;;  %v6703_v48 = vor.u32 %v9404_v23, %v6700_v24 }
  0xf2   :  { %5196 = vmatpush.bf16.msrb.mxu3 %v7007_v51  ;;  %v9468_v34 = vld [vmem:[%s15004_s1 + $0x684] sm:$0xf]  ;;  %v6956_v36 = vld [vmem:[%s15004_s1 + $0x690] sm:$0xf0]  ;;  %v6831_v49 = vor.u32 %v9436_v29, %v6828_v30  ;;  %v4920_v53 = vadd.f32 %v4919_v47, %v4907_v43 }
  0xf3   :  { %5162 = vmatpush.bf16.msrb.mxu0 %v6543_v57  ;;  %v9512_v38 = vld [vmem:[%s15004_s1 + $0x7e4] sm:$0xf]  ;;  %v7132_v39 = vld [vmem:[%s15004_s1 + $0x7f0] sm:$0xf0]  ;;  %v6959_v52 = vor.u32 %v9468_v34, %v6956_v36 }
  0xf4   :  { %5171 = vmatpush.bf16.msrb.mxu1 %v6735_v58  ;;  %v9400_v50 = vld [vmem:[%s15004_s1 + $0x464] sm:$0xf]  ;;  %v6684_v51 = vld [vmem:[%s15004_s1 + $0x470] sm:$0xf0]  ;;  %v7135_v54 = vor.u32 %v9512_v38, %v7132_v39  ;;  %v4933_v11 = vadd.f32 %v4932_v5, %v4920_v53 }
  0xf5   :  { %5184 = vmatpush.bf16.msrb.mxu2 %v6863_v59  ;;  %v9432_v46 = vld [vmem:[%s15004_s1 + $0x564] sm:$0xf]  ;;  %v6812_v55 = vld [vmem:[%s15004_s1 + $0x570] sm:$0xf0]  ;;  %v6687_v60 = vor.u32 %v9400_v50, %v6684_v51  ;;  %v4908_v24 = vpop.f32.mrf.mxu0 }
  0xf6   :  { %5197 = vmatpush.bf16.msrb.mxu3 %v6991_v3  ;;  %v9464_v56 = vld [vmem:[%s15004_s1 + $0x664] sm:$0xf]  ;;  %v6940_v57 = vld [vmem:[%s15004_s1 + $0x670] sm:$0xf0]  ;;  %v6815_v62 = vor.u32 %v9432_v46, %v6812_v55 }
  0xf7   :  { %5163 = vmatpush.bf16.msrb.mxu0 %v6527_v10  ;;  %v9508_v58 = vld [vmem:[%s15004_s1 + $0x7c4] sm:$0xf]  ;;  %v7116_v59 = vld [vmem:[%s15004_s1 + $0x7d0] sm:$0xf0]  ;;  %v6943_v4 = vor.u32 %v9464_v56, %v6940_v57 }
  0xf8   :  { %5172 = vmatpush.bf16.msrb.mxu1 %v6719_v14  ;;  %v9396_v63 = vld [vmem:[%s15004_s1 + $0x444] sm:$0xf]  ;;  %v6668_v3 = vld [vmem:[%s15004_s1 + $0x450] sm:$0xf0]  ;;  %v7119_v44 = vor.u32 %v9508_v58, %v7116_v59  ;;  %v4945_v14 = vpop.f32.mrf.mxu3 }
  0xf9   :  { %5185 = vmatpush.bf16.msrb.mxu2 %v6847_v15  ;;  %v9428_v6 = vld [vmem:[%s15004_s1 + $0x544] sm:$0xf]  ;;  %v6796_v8 = vld [vmem:[%s15004_s1 + $0x550] sm:$0xf0]  ;;  %v11662_v29 = vadd.f32 %v4945_v14, %v4933_v11  ;;  %v6671_v30 = vor.u32 %v9396_v63, %v6668_v3 }
  0xfa   :  { %5198 = vmatpush.bf16.msrb.mxu3 %v6975_v27  ;;  %v9460_v10 = vld [vmem:[%s15004_s1 + $0x644] sm:$0xf]  ;;  %v6924_v15 = vld [vmem:[%s15004_s1 + $0x650] sm:$0xf0]  ;;  %v4921_v27 = vpop.f32.mrf.mxu1  ;;  %v6799_v34 = vor.u32 %v9428_v6, %v6796_v8 }
  0xfb   :  { %5164 = vmatpush.bf16.msrb.mxu0 %v6511_v45  ;;  %v9504_v19 = vld [vmem:[%s15004_s1 + $0x7a4] sm:$0xf]  ;;  %v7100_v23 = vld [vmem:[%s15004_s1 + $0x7b0] sm:$0xf0]  ;;  %v6927_v38 = vor.u32 %v9460_v10, %v6924_v15 }
  0xfc   :  { %5173 = vmatpush.bf16.msrb.mxu1 %v6703_v48  ;;  %v9392_v35 = vld [vmem:[%s15004_s1 + $0x424] sm:$0xf]  ;;  %v6652_v36 = vld [vmem:[%s15004_s1 + $0x430] sm:$0xf0]  ;;  %v7103_v39 = vor.u32 %v9504_v19, %v7100_v23 }
  0xfd   :  { %5186 = vmatpush.bf16.msrb.mxu2 %v6831_v49  ;;  %v9424_v43 = vld [vmem:[%s15004_s1 + $0x524] sm:$0xf]  ;;  %v6780_v45 = vld [vmem:[%s15004_s1 + $0x530] sm:$0xf0]  ;;  %v6655_v51 = vor.u32 %v9392_v35, %v6652_v36 }
  0xfe   :  { %5199 = vmatpush.bf16.msrb.mxu3 %v6959_v52  ;;  %5165 = vmatmul.bf16.vlgmr.msrb.gmra.mxu0 %v10377_v22  ;;  %v9456_v47 = vld [vmem:[%s15004_s1 + $0x624] sm:$0xf]  ;;  %v6908_v48 = vld [vmem:[%s15004_s1 + $0x630] sm:$0xf0]  ;;  %v6783_v52 = vor.u32 %v9424_v43, %v6780_v45 }
  0xff   :  { %5209 = vmatpush.bf16.msra.mxu0 %v7135_v54  ;;  %v9500_v49 = vld [vmem:[%s15004_s1 + $0x784] sm:$0xf]  ;;  %v7084_v50 = vld [vmem:[%s15004_s1 + $0x790] sm:$0xf0]  ;;  %v6911_v55 = vor.u32 %v9456_v47, %v6908_v48 }
 0x100   :  { %5174 = vmatpush.bf16.msrb.mxu1 %v6687_v60  ;;  %v9388_v53 = vld [vmem:[%s15004_s1 + $0x404] sm:$0xf]  ;;  %v6636_v54 = vld [vmem:[%s15004_s1 + $0x410] sm:$0xf0]  ;;  %v7087_v56 = vor.u32 %v9500_v49, %v7084_v50  ;;  %v4934_v60 = vpop.f32.mrf.mxu2 }
 0x101   :  { %5187 = vmatpush.bf16.msrb.mxu2 %v6815_v62  ;;  %v9420_v46 = vld [vmem:[%s15004_s1 + $0x504] sm:$0xf]  ;;  %v6764_v57 = vld [vmem:[%s15004_s1 + $0x510] sm:$0xf0]  ;;  %v6639_v8 = vor.u32 %v9388_v53, %v6636_v54 }
 0x102   :  { %5200 = vmatpush.bf16.msrb.mxu3 %v6943_v4  ;;  %v9452_v58 = vld [vmem:[%s15004_s1 + $0x604] sm:$0xf]  ;;  %v6892_v59 = vld [vmem:[%s15004_s1 + $0x610] sm:$0xf0]  ;;  %v4947_v4 = vpop.f32.mrf.mxu3  ;;  %v6767_v10 = vor.u32 %v9420_v46, %v6764_v57 }
 0x103   :  { %5210 = vmatpush.bf16.msra.mxu0 %v7119_v44  ;;  %v9496_v62 = vld [vmem:[%s15004_s1 + $0x764] sm:$0xf]  ;;  %v7068_v63 = vld [vmem:[%s15004_s1 + $0x770] sm:$0xf0]  ;;  %v6895_v15 = vor.u32 %v9452_v58, %v6892_v59 }
 0x104   :  { %5175 = vmatpush.bf16.msrb.mxu1 %v6671_v30  ;;  %v9544_v3 = vld [vmem:[%s15004_s1 + $0x8e4] sm:$0xf]  ;;  %v7260_v5 = vld [vmem:[%s15004_s1 + $0x8f0] sm:$0xf0]  ;;  %v7071_v19 = vor.u32 %v9496_v62, %v7068_v63 }
 0x105   :  { %5188 = vmatpush.bf16.msrb.mxu2 %v6799_v34  ;;  %v9576_v44 = vld [vmem:[%s15004_s1 + $0x9e4] sm:$0xf]  ;;  %v7388_v6 = vld [vmem:[%s15004_s1 + $0x9f0] sm:$0xf0]  ;;  %v7263_v23 = vor.u32 %v9544_v3, %v7260_v5 }
 0x106   :  { %5201 = vmatpush.bf16.msrb.mxu3 %v6927_v38  ;;  %v9608_v11 = vld [vmem:[%s15004_s1 + $0xae4] sm:$0xf]  ;;  %v7516_v14 = vld [vmem:[%s15004_s1 + $0xaf0] sm:$0xf0]  ;;  %v7391_v24 = vor.u32 %v9576_v44, %v7388_v6 }
 0x107   :  { %5211 = vmatpush.bf16.msra.mxu0 %v7103_v39  ;;  %v9492_v27 = vld [vmem:[%s15004_s1 + $0x744] sm:$0xf]  ;;  %v7052_v30 = vld [vmem:[%s15004_s1 + $0x750] sm:$0xf0]  ;;  %v7519_v35 = vor.u32 %v9608_v11, %v7516_v14 }
 0x108   :  { %5176 = vmatpush.bf16.msrb.mxu1 %v6655_v51  ;;  %v9540_v34 = vld [vmem:[%s15004_s1 + $0x8c4] sm:$0xf]  ;;  %v7244_v36 = vld [vmem:[%s15004_s1 + $0x8d0] sm:$0xf0]  ;;  %v7055_v47 = vor.u32 %v9492_v27, %v7052_v30 }
 0x109   :  { %5189 = vmatpush.bf16.msrb.mxu2 %v6783_v52  ;;  %v9572_v38 = vld [vmem:[%s15004_s1 + $0x9c4] sm:$0xf]  ;;  %v7372_v39 = vld [vmem:[%s15004_s1 + $0x9d0] sm:$0xf0]  ;;  %v7247_v48 = vor.u32 %v9540_v34, %v7244_v36 }
 0x10a   :  { %5202 = vmatpush.bf16.msrb.mxu3 %v6911_v55  ;;  %v9604_v43 = vld [vmem:[%s15004_s1 + $0xac4] sm:$0xf]  ;;  %v7500_v45 = vld [vmem:[%s15004_s1 + $0xad0] sm:$0xf0]  ;;  %v7375_v49 = vor.u32 %v9572_v38, %v7372_v39 }
 0x10b   :  { %5212 = vmatpush.bf16.msra.mxu0 %v7087_v56  ;;  %v9488_v50 = vld [vmem:[%s15004_s1 + $0x724] sm:$0xf]  ;;  %v7036_v51 = vld [vmem:[%s15004_s1 + $0x730] sm:$0xf0]  ;;  %v7503_v53 = vor.u32 %v9604_v43, %v7500_v45 }
 0x10c   :  { %5177 = vmatpush.bf16.msrb.mxu1 %v6639_v8  ;;  %v9536_v52 = vld [vmem:[%s15004_s1 + $0x8a4] sm:$0xf]  ;;  %v7228_v54 = vld [vmem:[%s15004_s1 + $0x8b0] sm:$0xf0]  ;;  %v7039_v58 = vor.u32 %v9488_v50, %v7036_v51 }
 0x10d   :  { %5190 = vmatpush.bf16.msrb.mxu2 %v6767_v10  ;;  %v9568_v46 = vld [vmem:[%s15004_s1 + $0x9a4] sm:$0xf]  ;;  %v7356_v55 = vld [vmem:[%s15004_s1 + $0x9b0] sm:$0xf0]  ;;  %v7231_v60 = vor.u32 %v9536_v52, %v7228_v54  ;;  %v4958_v10 = vpop.f32.mrf.mxu0 }
 0x10e   :  { %5203 = vmatpush.bf16.msrb.mxu3 %v6895_v15  ;;  %v9600_v56 = vld [vmem:[%s15004_s1 + $0xaa4] sm:$0xf]  ;;  %v7484_v57 = vld [vmem:[%s15004_s1 + $0xab0] sm:$0xf0]  ;;  %v7359_v62 = vor.u32 %v9568_v46, %v7356_v55 }
 0x10f   :  { %5213 = vmatpush.bf16.msra.mxu0 %v7071_v19  ;;  %5178 = vmatmul.bf16.vlgmr.msrb.gmra.mxu1 %v10468_v0  ;;  %v9484_v59 = vld [vmem:[%s15004_s1 + $0x704] sm:$0xf]  ;;  %v7020_v63 = vld [vmem:[%s15004_s1 + $0x710] sm:$0xf0]  ;;  %v7487_v5 = vor.u32 %v9600_v56, %v7484_v57  ;;  %v4959_v19 = vadd.f32 %v4958_v10, %v11662_v29  ;;  %v4984_v46 = vpop.f32.mrf.mxu2 }
 0x110   :  { %5222 = vmatpush.bf16.msra.mxu1 %v7263_v23  ;;  %5191 = vmatmul.bf16.vlgmr.msrb.gmra.mxu2 %v10472_v2  ;;  %v9532_v3 = vld [vmem:[%s15004_s1 + $0x884] sm:$0xf]  ;;  %v7212_v4 = vld [vmem:[%s15004_s1 + $0x890] sm:$0xf0]  ;;  %v7023_v23 = vor.u32 %v9484_v59, %v7020_v63 }
 0x111   :  { %5235 = vmatpush.bf16.msra.mxu2 %v7391_v24  ;;  %5204 = vmatmul.bf16.vlgmr.msrb.gmra.mxu3 %v10466_v61  ;;  %v9564_v44 = vld [vmem:[%s15004_s1 + $0x984] sm:$0xf]  ;;  %v7340_v6 = vld [vmem:[%s15004_s1 + $0x990] sm:$0xf0]  ;;  %v4971_v24 = vpop.f32.mrf.mxu1  ;;  %v7215_v27 = vor.u32 %v9532_v3, %v7212_v4 }
 0x112   :  { %5248 = vmatpush.bf16.msra.mxu3 %v7519_v35  ;;  %v9596_v8 = vld [vmem:[%s15004_s1 + $0xa84] sm:$0xf]  ;;  %v7468_v11 = vld [vmem:[%s15004_s1 + $0xa90] sm:$0xf0]  ;;  %v7343_v30 = vor.u32 %v9564_v44, %v7340_v6  ;;  %v4972_v38 = vadd.f32 %v4971_v24, %v4959_v19 }
 0x113   :  { %5214 = vmatpush.bf16.msra.mxu0 %v7055_v47  ;;  %v9640_v14 = vld [vmem:[%s15004_s1 + $0xbe4] sm:$0xf]  ;;  %v7644_v15 = vld [vmem:[%s15004_s1 + $0xbf0] sm:$0xf0]  ;;  %v7471_v36 = vor.u32 %v9596_v8, %v7468_v11 }
 0x114   :  { %5223 = vmatpush.bf16.msra.mxu1 %v7247_v48  ;;  %v9528_v34 = vld [vmem:[%s15004_s1 + $0x864] sm:$0xf]  ;;  %v7196_v35 = vld [vmem:[%s15004_s1 + $0x870] sm:$0xf0]  ;;  %v7647_v39 = vor.u32 %v9640_v14, %v7644_v15  ;;  %v4985_v59 = vadd.f32 %v4984_v46, %v4972_v38 }
 0x115   :  { %5236 = vmatpush.bf16.msra.mxu2 %v7375_v49  ;;  %v9560_v29 = vld [vmem:[%s15004_s1 + $0x964] sm:$0xf]  ;;  %v7324_v43 = vld [vmem:[%s15004_s1 + $0x970] sm:$0xf0]  ;;  %v7199_v50 = vor.u32 %v9528_v34, %v7196_v35  ;;  %v4960_v4 = vpop.f32.mrf.mxu0 }
 0x116   :  { %5249 = vmatpush.bf16.msra.mxu3 %v7503_v53  ;;  %v9592_v45 = vld [vmem:[%s15004_s1 + $0xa64] sm:$0xf]  ;;  %v7452_v47 = vld [vmem:[%s15004_s1 + $0xa70] sm:$0xf0]  ;;  %v7327_v51 = vor.u32 %v9560_v29, %v7324_v43 }
 0x117   :  { %5215 = vmatpush.bf16.msra.mxu0 %v7039_v58  ;;  %v9636_v48 = vld [vmem:[%s15004_s1 + $0xbc4] sm:$0xf]  ;;  %v7628_v49 = vld [vmem:[%s15004_s1 + $0xbd0] sm:$0xf0]  ;;  %v7455_v54 = vor.u32 %v9592_v45, %v7452_v47 }
 0x118   :  { %5224 = vmatpush.bf16.msra.mxu1 %v7231_v60  ;;  %v9524_v52 = vld [vmem:[%s15004_s1 + $0x844] sm:$0xf]  ;;  %v7180_v53 = vld [vmem:[%s15004_s1 + $0x850] sm:$0xf0]  ;;  %v7631_v55 = vor.u32 %v9636_v48, %v7628_v49  ;;  %v4997_v60 = vpop.f32.mrf.mxu3 }
 0x119   :  { %5237 = vmatpush.bf16.msra.mxu2 %v7359_v62  ;;  %v9556_v56 = vld [vmem:[%s15004_s1 + $0x944] sm:$0xf]  ;;  %v7308_v57 = vld [vmem:[%s15004_s1 + $0x950] sm:$0xf0]  ;;  %v11861_v44 = vadd.f32 %v4997_v60, %v4985_v59  ;;  %v7183_v6 = vor.u32 %v9524_v52, %v7180_v53 }
 0x11a   :  { %5250 = vmatpush.bf16.msra.mxu3 %v7487_v5  ;;  %v9588_v58 = vld [vmem:[%s15004_s1 + $0xa44] sm:$0xf]  ;;  %v7436_v62 = vld [vmem:[%s15004_s1 + $0xa50] sm:$0xf0]  ;;  %v4973_v5 = vpop.f32.mrf.mxu1  ;;  %v7311_v8 = vor.u32 %v9556_v56, %v7308_v57 }
 0x11b   :  { %5216 = vmatpush.bf16.msra.mxu0 %v7023_v23  ;;  %v9632_v63 = vld [vmem:[%s15004_s1 + $0xba4] sm:$0xf]  ;;  %v7612_v3 = vld [vmem:[%s15004_s1 + $0xbb0] sm:$0xf0]  ;;  %v7439_v14 = vor.u32 %v9588_v58, %v7436_v62 }
 0x11c   :  { %5225 = vmatpush.bf16.msra.mxu1 %v7215_v27  ;;  %v9520_v10 = vld [vmem:[%s15004_s1 + $0x824] sm:$0xf]  ;;  %v7164_v11 = vld [vmem:[%s15004_s1 + $0x830] sm:$0xf0]  ;;  %v7615_v15 = vor.u32 %v9632_v63, %v7612_v3 }
 0x11d   :  { %5238 = vmatpush.bf16.msra.mxu2 %v7343_v30  ;;  %v9552_v19 = vld [vmem:[%s15004_s1 + $0x924] sm:$0xf]  ;;  %v7292_v23 = vld [vmem:[%s15004_s1 + $0x930] sm:$0xf0]  ;;  %v7167_v35 = vor.u32 %v9520_v10, %v7164_v11 }
 0x11e   :  { %5251 = vmatpush.bf16.msra.mxu3 %v7471_v36  ;;  %5217 = vmatmul.bf16.vlgmr.msra.gmra.mxu0 %v10470_v1  ;;  %v9584_v24 = vld [vmem:[%s15004_s1 + $0xa24] sm:$0xf]  ;;  %v7420_v27 = vld [vmem:[%s15004_s1 + $0xa30] sm:$0xf0]  ;;  %v7295_v36 = vor.u32 %v9552_v19, %v7292_v23 }
 0x11f   :  { %5261 = vmatpush.bf16.msrb.mxu0 %v7647_v39  ;;  %v9628_v30 = vld [vmem:[%s15004_s1 + $0xb84] sm:$0xf]  ;;  %v7596_v34 = vld [vmem:[%s15004_s1 + $0xb90] sm:$0xf0]  ;;  %v7423_v43 = vor.u32 %v9584_v24, %v7420_v27 }
 0x120   :  { %5226 = vmatpush.bf16.msra.mxu1 %v7199_v50  ;;  %v9516_v38 = vld [vmem:[%s15004_s1 + $0x804] sm:$0xf]  ;;  %v7148_v39 = vld [vmem:[%s15004_s1 + $0x810] sm:$0xf0]  ;;  %v7599_v45 = vor.u32 %v9628_v30, %v7596_v34  ;;  %v4986_v50 = vpop.f32.mrf.mxu2 }
 0x121   :  { %5239 = vmatpush.bf16.msra.mxu2 %v7327_v51  ;;  %v9548_v29 = vld [vmem:[%s15004_s1 + $0x904] sm:$0xf]  ;;  %v7276_v47 = vld [vmem:[%s15004_s1 + $0x910] sm:$0xf0]  ;;  %v7151_v57 = vor.u32 %v9516_v38, %v7148_v39 }
 0x122   :  { %5252 = vmatpush.bf16.msra.mxu3 %v7455_v54  ;;  %v9580_v48 = vld [vmem:[%s15004_s1 + $0xa04] sm:$0xf]  ;;  %v7404_v49 = vld [vmem:[%s15004_s1 + $0xa10] sm:$0xf0]  ;;  %v4999_v54 = vpop.f32.mrf.mxu3  ;;  %v7279_v58 = vor.u32 %v9548_v29, %v7276_v47 }
 0x123   :  { %5262 = vmatpush.bf16.msrb.mxu0 %v7631_v55  ;;  %v9624_v51 = vld [vmem:[%s15004_s1 + $0xb64] sm:$0xf]  ;;  %v7580_v52 = vld [vmem:[%s15004_s1 + $0xb70] sm:$0xf0]  ;;  %v7407_v62 = vor.u32 %v9580_v48, %v7404_v49 }
 0x124   :  { %5227 = vmatpush.bf16.msra.mxu1 %v7183_v6  ;;  %v9672_v53 = vld [vmem:[%s15004_s1 + $0xce4] sm:$0xf]  ;;  %v7772_v46 = vld [vmem:[%s15004_s1 + $0xcf0] sm:$0xf0]  ;;  %v7583_v63 = vor.u32 %v9624_v51, %v7580_v52 }
 0x125   :  { %5240 = vmatpush.bf16.msra.mxu2 %v7311_v8  ;;  %v9704_v55 = vld [vmem:[%s15004_s1 + $0xde4] sm:$0xf]  ;;  %v7900_v56 = vld [vmem:[%s15004_s1 + $0xdf0] sm:$0xf0]  ;;  %v7775_v3 = vor.u32 %v9672_v53, %v7772_v46 }
 0x126   :  { %5253 = vmatpush.bf16.msra.mxu3 %v7439_v14  ;;  %v9736_v59 = vld [vmem:[%s15004_s1 + $0xee4] sm:$0xf]  ;;  %v8028_v60 = vld [vmem:[%s15004_s1 + $0xef0] sm:$0xf0]  ;;  %v7903_v4 = vor.u32 %v9704_v55, %v7900_v56 }
 0x127   :  { %5263 = vmatpush.bf16.msrb.mxu0 %v7615_v15  ;;  %v9620_v5 = vld [vmem:[%s15004_s1 + $0xb44] sm:$0xf]  ;;  %v7564_v6 = vld [vmem:[%s15004_s1 + $0xb50] sm:$0xf0]  ;;  %v8031_v10 = vor.u32 %v9736_v59, %v8028_v60 }
 0x128   :  { %5228 = vmatpush.bf16.msra.mxu1 %v7167_v35  ;;  %v9668_v8 = vld [vmem:[%s15004_s1 + $0xcc4] sm:$0xf]  ;;  %v7756_v11 = vld [vmem:[%s15004_s1 + $0xcd0] sm:$0xf0]  ;;  %v7567_v24 = vor.u32 %v9620_v5, %v7564_v6 }
 0x129   :  { %5241 = vmatpush.bf16.msra.mxu2 %v7295_v36  ;;  %v9700_v14 = vld [vmem:[%s15004_s1 + $0xdc4] sm:$0xf]  ;;  %v7884_v15 = vld [vmem:[%s15004_s1 + $0xdd0] sm:$0xf0]  ;;  %v7759_v27 = vor.u32 %v9668_v8, %v7756_v11 }
 0x12a   :  { %5254 = vmatpush.bf16.msra.mxu3 %v7423_v43  ;;  %v9732_v19 = vld [vmem:[%s15004_s1 + $0xec4] sm:$0xf]  ;;  %v8012_v23 = vld [vmem:[%s15004_s1 + $0xed0] sm:$0xf0]  ;;  %v7887_v30 = vor.u32 %v9700_v14, %v7884_v15 }
 0x12b   :  { %5264 = vmatpush.bf16.msrb.mxu0 %v7599_v45  ;;  %v9616_v34 = vld [vmem:[%s15004_s1 + $0xb24] sm:$0xf]  ;;  %v7548_v35 = vld [vmem:[%s15004_s1 + $0xb30] sm:$0xf0]  ;;  %v8015_v38 = vor.u32 %v9732_v19, %v8012_v23 }
 0x12c   :  { %5229 = vmatpush.bf16.msra.mxu1 %v7151_v57  ;;  %v9664_v36 = vld [vmem:[%s15004_s1 + $0xca4] sm:$0xf]  ;;  %v7740_v39 = vld [vmem:[%s15004_s1 + $0xcb0] sm:$0xf0]  ;;  %v7551_v48 = vor.u32 %v9616_v34, %v7548_v35 }
 0x12d   :  { %5242 = vmatpush.bf16.msra.mxu2 %v7279_v58  ;;  %v9696_v29 = vld [vmem:[%s15004_s1 + $0xda4] sm:$0xf]  ;;  %v7868_v43 = vld [vmem:[%s15004_s1 + $0xdb0] sm:$0xf0]  ;;  %v7743_v50 = vor.u32 %v9664_v36, %v7740_v39  ;;  %v5010_v58 = vpop.f32.mrf.mxu0 }
 0x12e   :  { %5255 = vmatpush.bf16.msra.mxu3 %v7407_v62  ;;  %v9728_v45 = vld [vmem:[%s15004_s1 + $0xea4] sm:$0xf]  ;;  %v7996_v47 = vld [vmem:[%s15004_s1 + $0xeb0] sm:$0xf0]  ;;  %v7871_v51 = vor.u32 %v9696_v29, %v7868_v43 }
 0x12f   :  { %5265 = vmatpush.bf16.msrb.mxu0 %v7583_v63  ;;  %5230 = vmatmul.bf16.vlgmr.msra.gmra.mxu1 %v10706_v7  ;;  %v9612_v49 = vld [vmem:[%s15004_s1 + $0xb04] sm:$0xf]  ;;  %v7532_v52 = vld [vmem:[%s15004_s1 + $0xb10] sm:$0xf0]  ;;  %v7999_v46 = vor.u32 %v9728_v45, %v7996_v47  ;;  %v5011_v63 = vadd.f32 %v5010_v58, %v11861_v44 }
 0x130   :  { %5274 = vmatpush.bf16.msrb.mxu1 %v7775_v3  ;;  %5243 = vmatmul.bf16.vlgmr.msra.gmra.mxu2 %v10719_v13  ;;  %v9660_v53 = vld [vmem:[%s15004_s1 + $0xc84] sm:$0xf]  ;;  %v7724_v54 = vld [vmem:[%s15004_s1 + $0xc90] sm:$0xf0]  ;;  %v7535_v3 = vor.u32 %v9612_v49, %v7532_v52 }
 0x131   :  { %5287 = vmatpush.bf16.msrb.mxu2 %v7903_v4  ;;  %5256 = vmatmul.bf16.vlgmr.msra.gmra.mxu3 %v10717_v12  ;;  %v9692_v55 = vld [vmem:[%s15004_s1 + $0xd84] sm:$0xf]  ;;  %v7852_v56 = vld [vmem:[%s15004_s1 + $0xd90] sm:$0xf0]  ;;  %v5023_v4 = vpop.f32.mrf.mxu1  ;;  %v7727_v5 = vor.u32 %v9660_v53, %v7724_v54 }
 0x132   :  { %5300 = vmatpush.bf16.msrb.mxu3 %v8031_v10  ;;  %v9724_v57 = vld [vmem:[%s15004_s1 + $0xe84] sm:$0xf]  ;;  %v7980_v59 = vld [vmem:[%s15004_s1 + $0xe90] sm:$0xf0]  ;;  %v7855_v6 = vor.u32 %v9692_v55, %v7852_v56  ;;  %v5024_v14 = vadd.f32 %v5023_v4, %v5011_v63  ;;  %v5036_v29 = vpop.f32.mrf.mxu2 }
 0x133   :  { %5266 = vmatpush.bf16.msrb.mxu0 %v7567_v24  ;;  %v9768_v60 = vld [vmem:[%s15004_s1 + $0xfe4] sm:$0xf]  ;;  %v8156_v62 = vld [vmem:[%s15004_s1 + $0xff0] sm:$0xf0]  ;;  %v7983_v11 = vor.u32 %v9724_v57, %v7980_v59 }
 0x134   :  { %5275 = vmatpush.bf16.msrb.mxu1 %v7759_v27  ;;  %v9656_v8 = vld [vmem:[%s15004_s1 + $0xc64] sm:$0xf]  ;;  %v7708_v10 = vld [vmem:[%s15004_s1 + $0xc70] sm:$0xf0]  ;;  %v8159_v15 = vor.u32 %v9768_v60, %v8156_v62  ;;  %v5037_v49 = vadd.f32 %v5036_v29, %v5024_v14 }
 0x135   :  { %5288 = vmatpush.bf16.msrb.mxu2 %v7887_v30  ;;  %v9688_v44 = vld [vmem:[%s15004_s1 + $0xd64] sm:$0xf]  ;;  %v7836_v19 = vld [vmem:[%s15004_s1 + $0xd70] sm:$0xf0]  ;;  %v7711_v34 = vor.u32 %v9656_v8, %v7708_v10  ;;  %v5012_v54 = vpop.f32.mrf.mxu0 }
 0x136   :  { %5301 = vmatpush.bf16.msrb.mxu3 %v8015_v38  ;;  %v9720_v23 = vld [vmem:[%s15004_s1 + $0xe64] sm:$0xf]  ;;  %v7964_v24 = vld [vmem:[%s15004_s1 + $0xe70] sm:$0xf0]  ;;  %v7839_v35 = vor.u32 %v9688_v44, %v7836_v19 }
 0x137   :  { %5267 = vmatpush.bf16.msrb.mxu0 %v7551_v48  ;;  %v9764_v27 = vld [vmem:[%s15004_s1 + $0xfc4] sm:$0xf]  ;;  %v8140_v30 = vld [vmem:[%s15004_s1 + $0xfd0] sm:$0xf0]  ;;  %v7967_v39 = vor.u32 %v9720_v23, %v7964_v24 }
 0x138   :  { %5276 = vmatpush.bf16.msrb.mxu1 %v7743_v50  ;;  %v9652_v36 = vld [vmem:[%s15004_s1 + $0xc44] sm:$0xf]  ;;  %v7692_v38 = vld [vmem:[%s15004_s1 + $0xc50] sm:$0xf0]  ;;  %v8143_v43 = vor.u32 %v9764_v27, %v8140_v30  ;;  %v5049_v50 = vpop.f32.mrf.mxu3 }
 0x139   :  { %5289 = vmatpush.bf16.msrb.mxu2 %v7871_v51  ;;  %v9684_v45 = vld [vmem:[%s15004_s1 + $0xd44] sm:$0xf]  ;;  %v7820_v47 = vld [vmem:[%s15004_s1 + $0xd50] sm:$0xf0]  ;;  %v12060_v55 = vadd.f32 %v5049_v50, %v5037_v49  ;;  %v7695_v56 = vor.u32 %v9652_v36, %v7692_v38 }
 0x13a   :  { %5302 = vmatpush.bf16.msrb.mxu3 %v7999_v46  ;;  %v9716_v48 = vld [vmem:[%s15004_s1 + $0xe44] sm:$0xf]  ;;  %v7948_v51 = vld [vmem:[%s15004_s1 + $0xe50] sm:$0xf0]  ;;  %v5025_v46 = vpop.f32.mrf.mxu1  ;;  %v7823_v57 = vor.u32 %v9684_v45, %v7820_v47 }
 0x13b   :  { %5268 = vmatpush.bf16.msrb.mxu0 %v7535_v3  ;;  %v9760_v52 = vld [vmem:[%s15004_s1 + $0xfa4] sm:$0xf]  ;;  %v8124_v53 = vld [vmem:[%s15004_s1 + $0xfb0] sm:$0xf0]  ;;  %v7951_v60 = vor.u32 %v9716_v48, %v7948_v51 }
 0x13c   :  { %5277 = vmatpush.bf16.msrb.mxu1 %v7727_v5  ;;  %v9648_v58 = vld [vmem:[%s15004_s1 + $0xc24] sm:$0xf]  ;;  %v7676_v59 = vld [vmem:[%s15004_s1 + $0xc30] sm:$0xf0]  ;;  %v8127_v62 = vor.u32 %v9760_v52, %v8124_v53 }
 0x13d   :  { %5290 = vmatpush.bf16.msrb.mxu2 %v7855_v6  ;;  %v9680_v63 = vld [vmem:[%s15004_s1 + $0xd24] sm:$0xf]  ;;  %v7804_v3 = vld [vmem:[%s15004_s1 + $0xd30] sm:$0xf0]  ;;  %v7679_v10 = vor.u32 %v9648_v58, %v7676_v59 }
 0x13e   :  { %5303 = vmatpush.bf16.msrb.mxu3 %v7983_v11  ;;  %5269 = vmatmul.bf16.vlgmr.msrb.gmra.mxu0 %v10730_v17  ;;  %v9712_v4 = vld [vmem:[%s15004_s1 + $0xe24] sm:$0xf]  ;;  %v7932_v5 = vld [vmem:[%s15004_s1 + $0xe30] sm:$0xf0]  ;;  %v7807_v11 = vor.u32 %v9680_v63, %v7804_v3 }
 0x13f   :  { %5313 = vmatpush.bf16.msra.mxu0 %v8159_v15  ;;  %v9756_v6 = vld [vmem:[%s15004_s1 + $0xf84] sm:$0xf]  ;;  %v8108_v8 = vld [vmem:[%s15004_s1 + $0xf90] sm:$0xf0]  ;;  %v7935_v19 = vor.u32 %v9712_v4, %v7932_v5 }
 0x140   :  { %5278 = vmatpush.bf16.msrb.mxu1 %v7711_v34  ;;  %v9644_v14 = vld [vmem:[%s15004_s1 + $0xc04] sm:$0xf]  ;;  %v7660_v15 = vld [vmem:[%s15004_s1 + $0xc10] sm:$0xf0]  ;;  %v8111_v23 = vor.u32 %v9756_v6, %v8108_v8  ;;  %v5038_v34 = vpop.f32.mrf.mxu2 }
 0x141   :  { %5291 = vmatpush.bf16.msrb.mxu2 %v7839_v35  ;;  %v9676_v44 = vld [vmem:[%s15004_s1 + $0xd04] sm:$0xf]  ;;  %v7788_v24 = vld [vmem:[%s15004_s1 + $0xd10] sm:$0xf0]  ;;  %v7663_v47 = vor.u32 %v9644_v14, %v7660_v15 }
 0x142   :  { %5304 = vmatpush.bf16.msrb.mxu3 %v7967_v39  ;;  %v9708_v27 = vld [vmem:[%s15004_s1 + $0xe04] sm:$0xf]  ;;  %v7916_v30 = vld [vmem:[%s15004_s1 + $0xe10] sm:$0xf0]  ;;  %v5051_v39 = vpop.f32.mrf.mxu3  ;;  %v7791_v48 = vor.u32 %v9676_v44, %v7788_v24 }
 0x143   :  { %5314 = vmatpush.bf16.msra.mxu0 %v8143_v43  ;;  %v9752_v35 = vld [vmem:[%s15004_s1 + $0xf64] sm:$0xf]  ;;  %v8092_v36 = vld [vmem:[%s15004_s1 + $0xf70] sm:$0xf0]  ;;  %v7919_v51 = vor.u32 %v9708_v27, %v7916_v30 }
 0x144   :  { %5279 = vmatpush.bf16.msrb.mxu1 %v7695_v56  ;;  %v9800_v38 = vld [vmem:[%s15004_s1 + $0x10e4] sm:$0xf]  ;;  %v8284_v29 = vld [vmem:[%s15004_s1 + $0x10f0] sm:$0xf0]  ;;  %v8095_v52 = vor.u32 %v9752_v35, %v8092_v36 }
 0x145   :  { %5292 = vmatpush.bf16.msrb.mxu2 %v7823_v57  ;;  %v9832_v43 = vld [vmem:[%s15004_s1 + $0x11e4] sm:$0xf]  ;;  %v8412_v45 = vld [vmem:[%s15004_s1 + $0x11f0] sm:$0xf0]  ;;  %v8287_v53 = vor.u32 %v9800_v38, %v8284_v29 }
 0x146   :  { %5305 = vmatpush.bf16.msrb.mxu3 %v7951_v60  ;;  %v9864_v49 = vld [vmem:[%s15004_s1 + $0x12e4] sm:$0xf]  ;;  %v8540_v50 = vld [vmem:[%s15004_s1 + $0x12f0] sm:$0xf0]  ;;  %v8415_v54 = vor.u32 %v9832_v43, %v8412_v45 }
 0x147   :  { %5315 = vmatpush.bf16.msra.mxu0 %v8127_v62  ;;  %v9748_v46 = vld [vmem:[%s15004_s1 + $0xf44] sm:$0xf]  ;;  %v8076_v56 = vld [vmem:[%s15004_s1 + $0xf50] sm:$0xf0]  ;;  %v8543_v58 = vor.u32 %v9864_v49, %v8540_v50 }
 0x148   :  { %5280 = vmatpush.bf16.msrb.mxu1 %v7679_v10  ;;  %v9796_v57 = vld [vmem:[%s15004_s1 + $0x10c4] sm:$0xf]  ;;  %v8268_v59 = vld [vmem:[%s15004_s1 + $0x10d0] sm:$0xf0]  ;;  %v8079_v4 = vor.u32 %v9748_v46, %v8076_v56 }
 0x149   :  { %5293 = vmatpush.bf16.msrb.mxu2 %v7807_v11  ;;  %v9828_v60 = vld [vmem:[%s15004_s1 + $0x11c4] sm:$0xf]  ;;  %v8396_v62 = vld [vmem:[%s15004_s1 + $0x11d0] sm:$0xf0]  ;;  %v8271_v5 = vor.u32 %v9796_v57, %v8268_v59 }
 0x14a   :  { %5306 = vmatpush.bf16.msrb.mxu3 %v7935_v19  ;;  %v9860_v63 = vld [vmem:[%s15004_s1 + $0x12c4] sm:$0xf]  ;;  %v8524_v3 = vld [vmem:[%s15004_s1 + $0x12d0] sm:$0xf0]  ;;  %v8399_v6 = vor.u32 %v9828_v60, %v8396_v62 }
 0x14b   :  { %5316 = vmatpush.bf16.msra.mxu0 %v8111_v23  ;;  %v9744_v8 = vld [vmem:[%s15004_s1 + $0xf24] sm:$0xf]  ;;  %v8060_v10 = vld [vmem:[%s15004_s1 + $0xf30] sm:$0xf0]  ;;  %v8527_v14 = vor.u32 %v9860_v63, %v8524_v3 }
 0x14c   :  { %5281 = vmatpush.bf16.msrb.mxu1 %v7663_v47  ;;  %v9792_v11 = vld [vmem:[%s15004_s1 + $0x10a4] sm:$0xf]  ;;  %v8252_v15 = vld [vmem:[%s15004_s1 + $0x10b0] sm:$0xf0]  ;;  %v8063_v27 = vor.u32 %v9744_v8, %v8060_v10 }
 0x14d   :  { %5294 = vmatpush.bf16.msrb.mxu2 %v7791_v48  ;;  %v9824_v44 = vld [vmem:[%s15004_s1 + $0x11a4] sm:$0xf]  ;;  %v8380_v19 = vld [vmem:[%s15004_s1 + $0x11b0] sm:$0xf0]  ;;  %v8255_v34 = vor.u32 %v9792_v11, %v8252_v15  ;;  %v5062_v48 = vpop.f32.mrf.mxu0 }
 0x14e   :  { %5307 = vmatpush.bf16.msrb.mxu3 %v7919_v51  ;;  %v9856_v23 = vld [vmem:[%s15004_s1 + $0x12a4] sm:$0xf]  ;;  %v8508_v24 = vld [vmem:[%s15004_s1 + $0x12b0] sm:$0xf0]  ;;  %v8383_v35 = vor.u32 %v9824_v44, %v8380_v19 }
 0x14f   :  { %5317 = vmatpush.bf16.msra.mxu0 %v8095_v52  ;;  %5282 = vmatmul.bf16.vlgmr.msrb.gmra.mxu1 %v10747_v28  ;;  %v9740_v30 = vld [vmem:[%s15004_s1 + $0xf04] sm:$0xf]  ;;  %v8044_v36 = vld [vmem:[%s15004_s1 + $0xf10] sm:$0xf0]  ;;  %v8511_v29 = vor.u32 %v9856_v23, %v8508_v24  ;;  %v5063_v52 = vadd.f32 %v5062_v48, %v12060_v55 }
 0x150   :  { %5326 = vmatpush.bf16.msra.mxu1 %v8287_v53  ;;  %5295 = vmatmul.bf16.vlgmr.msrb.gmra.mxu2 %v10751_v32  ;;  %v9788_v38 = vld [vmem:[%s15004_s1 + $0x1084] sm:$0xf]  ;;  %v8236_v39 = vld [vmem:[%s15004_s1 + $0x1090] sm:$0xf0]  ;;  %v8047_v53 = vor.u32 %v9740_v30, %v8044_v36 }
 0x151   :  { %5339 = vmatpush.bf16.msra.mxu2 %v8415_v54  ;;  %5308 = vmatmul.bf16.vlgmr.msrb.gmra.mxu3 %v10749_v31  ;;  %v9820_v43 = vld [vmem:[%s15004_s1 + $0x1184] sm:$0xf]  ;;  %v8364_v45 = vld [vmem:[%s15004_s1 + $0x1190] sm:$0xf0]  ;;  %v5075_v54 = vpop.f32.mrf.mxu1  ;;  %v8239_v46 = vor.u32 %v9788_v38, %v8236_v39 }
 0x152   :  { %5352 = vmatpush.bf16.msra.mxu3 %v8543_v58  ;;  %v9852_v47 = vld [vmem:[%s15004_s1 + $0x1284] sm:$0xf]  ;;  %v8492_v49 = vld [vmem:[%s15004_s1 + $0x1290] sm:$0xf0]  ;;  %v8367_v56 = vor.u32 %v9820_v43, %v8364_v45  ;;  %v5076_v60 = vadd.f32 %v5075_v54, %v5063_v52 }
 0x153   :  { %5318 = vmatpush.bf16.msra.mxu0 %v8079_v4  ;;  %v9896_v50 = vld [vmem:[%s15004_s1 + $0x13e4] sm:$0xf]  ;;  %v8668_v51 = vld [vmem:[%s15004_s1 + $0x13f0] sm:$0xf0]  ;;  %v8495_v59 = vor.u32 %v9852_v47, %v8492_v49  ;;  %v5088_v44 = vpop.f32.mrf.mxu2 }
 0x154   :  { %5327 = vmatpush.bf16.msra.mxu1 %v8271_v5  ;;  %v9784_v57 = vld [vmem:[%s15004_s1 + $0x1064] sm:$0xf]  ;;  %v8220_v58 = vld [vmem:[%s15004_s1 + $0x1070] sm:$0xf0]  ;;  %v8671_v62 = vor.u32 %v9896_v50, %v8668_v51  ;;  %v5089_v30 = vadd.f32 %v5088_v44, %v5076_v60 }
 0x155   :  { %5340 = vmatpush.bf16.msra.mxu2 %v8399_v6  ;;  %v9816_v55 = vld [vmem:[%s15004_s1 + $0x1164] sm:$0xf]  ;;  %v8348_v63 = vld [vmem:[%s15004_s1 + $0x1170] sm:$0xf0]  ;;  %v8223_v8 = vor.u32 %v9784_v57, %v8220_v58 }
 0x156   :  { %5353 = vmatpush.bf16.msra.mxu3 %v8527_v14  ;;  %v9848_v3 = vld [vmem:[%s15004_s1 + $0x1264] sm:$0xf]  ;;  %v8476_v4 = vld [vmem:[%s15004_s1 + $0x1270] sm:$0xf0]  ;;  %v8351_v10 = vor.u32 %v9816_v55, %v8348_v63 }
 0x157   :  { %5319 = vmatpush.bf16.msra.mxu0 %v8063_v27  ;;  %v9892_v5 = vld [vmem:[%s15004_s1 + $0x13c4] sm:$0xf]  ;;  %v8652_v6 = vld [vmem:[%s15004_s1 + $0x13d0] sm:$0xf0]  ;;  %v8479_v15 = vor.u32 %v9848_v3, %v8476_v4 }
 0x158   :  { %5328 = vmatpush.bf16.msra.mxu1 %v8255_v34  ;;  %v9780_v11 = vld [vmem:[%s15004_s1 + $0x1044] sm:$0xf]  ;;  %v8204_v14 = vld [vmem:[%s15004_s1 + $0x1050] sm:$0xf0]  ;;  %v8655_v19 = vor.u32 %v9892_v5, %v8652_v6  ;;  %v5064_v34 = vpop.f32.mrf.mxu0 }
 0x159   :  { %5341 = vmatpush.bf16.msra.mxu2 %v8383_v35  ;;  %v9812_v23 = vld [vmem:[%s15004_s1 + $0x1144] sm:$0xf]  ;;  %v8332_v24 = vld [vmem:[%s15004_s1 + $0x1150] sm:$0xf0]  ;;  %v5101_v35 = vpop.f32.mrf.mxu3  ;;  %v8207_v45 = vor.u32 %v9780_v11, %v8204_v14 }
 0x15a   :  { %5354 = vmatpush.bf16.msra.mxu3 %v8511_v29  ;;  %v9844_v27 = vld [vmem:[%s15004_s1 + $0x1244] sm:$0xf]  ;;  %v8460_v36 = vld [vmem:[%s15004_s1 + $0x1250] sm:$0xf0]  ;;  %v5077_v29 = vpop.f32.mrf.mxu1  ;;  %v5102_v43 = vadd.f32 %v5101_v35, %v5089_v30  ;;  %v8335_v47 = vor.u32 %v9812_v23, %v8332_v24 }
 0x15b   :  { %5320 = vmatpush.bf16.msra.mxu0 %v8047_v53  ;;  %v9888_v38 = vld [vmem:[%s15004_s1 + $0x13a4] sm:$0xf]  ;;  %v8636_v39 = vld [vmem:[%s15004_s1 + $0x13b0] sm:$0xf0]  ;;  %v8463_v50 = vor.u32 %v9844_v27, %v8460_v36 }
 0x15c   :  { %5329 = vmatpush.bf16.msra.mxu1 %v8239_v46  ;;  %v9776_v48 = vld [vmem:[%s15004_s1 + $0x1024] sm:$0xf]  ;;  %v8188_v49 = vld [vmem:[%s15004_s1 + $0x1030] sm:$0xf0]  ;;  %v8639_v51 = vor.u32 %v9888_v38, %v8636_v39 }
 0x15d   :  { %5342 = vmatpush.bf16.msra.mxu2 %v8367_v56  ;;  %v9808_v52 = vld [vmem:[%s15004_s1 + $0x1124] sm:$0xf]  ;;  %v8316_v53 = vld [vmem:[%s15004_s1 + $0x1130] sm:$0xf0]  ;;  %v8191_v58 = vor.u32 %v9776_v48, %v8188_v49 }
 0x15e   :  { %5355 = vmatpush.bf16.msra.mxu3 %v8495_v59  ;;  %5321 = vmatmul.bf16.vlgmr.msra.gmra.mxu0 %v10753_v33  ;;  %v9840_v54 = vld [vmem:[%s15004_s1 + $0x1224] sm:$0xf]  ;;  %v8444_v46 = vld [vmem:[%s15004_s1 + $0x1230] sm:$0xf0]  ;;  %v8319_v59 = vor.u32 %v9808_v52, %v8316_v53 }
 0x15f   :  { %5365 = vmatpush.bf16.msrb.mxu0 %v8671_v62  ;;  %v9884_v56 = vld [vmem:[%s15004_s1 + $0x1384] sm:$0xf]  ;;  %v8620_v57 = vld [vmem:[%s15004_s1 + $0x1390] sm:$0xf0]  ;;  %v8447_v63 = vor.u32 %v9840_v54, %v8444_v46 }
 0x160   :  { %5330 = vmatpush.bf16.msra.mxu1 %v8223_v8  ;;  %v9772_v60 = vld [vmem:[%s15004_s1 + $0x1004] sm:$0xf]  ;;  %v8172_v62 = vld [vmem:[%s15004_s1 + $0x1010] sm:$0xf0]  ;;  %v8623_v3 = vor.u32 %v9884_v56, %v8620_v57  ;;  %v5090_v8 = vpop.f32.mrf.mxu2  ;;  %v5114_v44 = vpop.f32.mrf.mxu0 }
 0x161   :  { %5343 = vmatpush.bf16.msra.mxu2 %v8351_v10  ;;  %v9804_v55 = vld [vmem:[%s15004_s1 + $0x1104] sm:$0xf]  ;;  %v8300_v4 = vld [vmem:[%s15004_s1 + $0x1110] sm:$0xf0]  ;;  %v12319_v27 = vadd.f32 %v5114_v44, %v5102_v43  ;;  %v8175_v30 = vor.u32 %v9772_v60, %v8172_v62 }
 0x162   :  { %5356 = vmatpush.bf16.msra.mxu3 %v8479_v15  ;;  %v9836_v5 = vld [vmem:[%s15004_s1 + $0x1204] sm:$0xf]  ;;  %v8428_v6 = vld [vmem:[%s15004_s1 + $0x1210] sm:$0xf0]  ;;  %v5103_v15 = vpop.f32.mrf.mxu3  ;;  %v8303_v34 = vor.u32 %v9804_v55, %v8300_v4 }
 0x163   :  { %5366 = vmatpush.bf16.msrb.mxu0 %v8655_v19  ;;  %v9880_v10 = vld [vmem:[%s15004_s1 + $0x1364] sm:$0xf]  ;;  %v8604_v11 = vld [vmem:[%s15004_s1 + $0x1370] sm:$0xf0]  ;;  %v8431_v38 = vor.u32 %v9836_v5, %v8428_v6 }
 0x164   :  { %5331 = vmatpush.bf16.msra.mxu1 %v8207_v45  ;;  %v9928_v14 = vld [vmem:[%s15004_s1 + $0x14e4] sm:$0xf]  ;;  %v8796_v19 = vld [vmem:[%s15004_s1 + $0x14f0] sm:$0xf0]  ;;  %v8607_v39 = vor.u32 %v9880_v10, %v8604_v11 }
 0x165   :  { %5344 = vmatpush.bf16.msra.mxu2 %v8335_v47  ;;  %v9960_v23 = vld [vmem:[%s15004_s1 + $0x15e4] sm:$0xf]  ;;  %v8924_v24 = vld [vmem:[%s15004_s1 + $0x15f0] sm:$0xf0]  ;;  %v8799_v29 = vor.u32 %v9928_v14, %v8796_v19 }
 0x166   :  { %5357 = vmatpush.bf16.msra.mxu3 %v8463_v50  ;;  %v9992_v35 = vld [vmem:[%s15004_s1 + $0x16e4] sm:$0xf]  ;;  %v9052_v36 = vld [vmem:[%s15004_s1 + $0x16f0] sm:$0xf0]  ;;  %v8927_v45 = vor.u32 %v9960_v23, %v8924_v24 }
 0x167   :  { %5367 = vmatpush.bf16.msrb.mxu0 %v8639_v51  ;;  %v9876_v43 = vld [vmem:[%s15004_s1 + $0x1344] sm:$0xf]  ;;  %v8588_v47 = vld [vmem:[%s15004_s1 + $0x1350] sm:$0xf0]  ;;  %v9055_v49 = vor.u32 %v9992_v35, %v9052_v36  ;;  %v10044_v35 = vld [vmem:[%s15006_s2] sm:$0xf] }
 0x168   :  { %5332 = vmatpush.bf16.msra.mxu1 %v8191_v58  ;;  %v9924_v48 = vld [vmem:[%s15004_s1 + $0x14c4] sm:$0xf]  ;;  %v8780_v50 = vld [vmem:[%s15004_s1 + $0x14d0] sm:$0xf0]  ;;  %v8591_v46 = vor.u32 %v9876_v43, %v8588_v47  ;;  %v5116_v4 = vpop.f32.mrf.mxu0  ;;  %v806_v36 = vperm.slane %v10044_v35, 1 }
 0x169   :  { %5345 = vmatpush.bf16.msra.mxu2 %v8319_v59  ;;  %v9956_v51 = vld [vmem:[%s15004_s1 + $0x15c4] sm:$0xf]  ;;  %v8908_v52 = vld [vmem:[%s15004_s1 + $0x15d0] sm:$0xf0]  ;;  %v8783_v56 = vor.u32 %v9924_v48, %v8780_v50 }
 0x16a   :  { %5358 = vmatpush.bf16.msra.mxu3 %v8447_v63  ;;  %v9988_v53 = vld [vmem:[%s15004_s1 + $0x16c4] sm:$0xf]  ;;  %v9036_v54 = vld [vmem:[%s15004_s1 + $0x16d0] sm:$0xf0]  ;;  %v8911_v57 = vor.u32 %v9956_v51, %v8908_v52 }
 0x16b   :  { %5368 = vmatpush.bf16.msrb.mxu0 %v8623_v3  ;;  %v9872_v58 = vld [vmem:[%s15004_s1 + $0x1324] sm:$0xf]  ;;  %v8572_v59 = vld [vmem:[%s15004_s1 + $0x1330] sm:$0xf0]  ;;  %v9039_v62 = vor.u32 %v9988_v53, %v9036_v54 }
 0x16c   :  { %5333 = vmatpush.bf16.msra.mxu1 %v8175_v30  ;;  %v9920_v60 = vld [vmem:[%s15004_s1 + $0x14a4] sm:$0xf]  ;;  %v8764_v55 = vld [vmem:[%s15004_s1 + $0x14b0] sm:$0xf0]  ;;  %v8575_v8 = vor.u32 %v9872_v58, %v8572_v59  ;;  %v5127_v43 = vpop.f32.mrf.mxu1 }
 0x16d   :  { %5346 = vmatpush.bf16.msra.mxu2 %v8303_v34  ;;  %v9952_v63 = vld [vmem:[%s15004_s1 + $0x15a4] sm:$0xf]  ;;  %v8892_v3 = vld [vmem:[%s15004_s1 + $0x15b0] sm:$0xf0]  ;;  %v8767_v14 = vor.u32 %v9920_v60, %v8764_v55 }
 0x16e   :  { %5359 = vmatpush.bf16.msra.mxu3 %v8431_v38  ;;  %v9984_v5 = vld [vmem:[%s15004_s1 + $0x16a4] sm:$0xf]  ;;  %v9020_v6 = vld [vmem:[%s15004_s1 + $0x16b0] sm:$0xf0]  ;;  %v8895_v15 = vor.u32 %v9952_v63, %v8892_v3 }
 0x16f   :  { %5369 = vmatpush.bf16.msrb.mxu0 %v8607_v39  ;;  %5334 = vmatmul.bf16.vlgmr.msra.gmra.mxu1 %v11117_v9  ;;  %v9868_v10 = vld [vmem:[%s15004_s1 + $0x1304] sm:$0xf]  ;;  %v8556_v11 = vld [vmem:[%s15004_s1 + $0x1310] sm:$0xf0]  ;;  %v9023_v24 = vor.u32 %v9984_v5, %v9020_v6 }
 0x170   :  { %5378 = vmatpush.bf16.msrb.mxu1 %v8799_v29  ;;  %5347 = vmatmul.bf16.vlgmr.msra.gmra.mxu2 %v11130_v18  ;;  %v9916_v44 = vld [vmem:[%s15004_s1 + $0x1484] sm:$0xf]  ;;  %v8748_v19 = vld [vmem:[%s15004_s1 + $0x1490] sm:$0xf0] }
 0x171   :  { %5391 = vmatpush.bf16.msrb.mxu2 %v8927_v45  ;;  %5360 = vmatmul.bf16.vlgmr.msra.gmra.mxu3 %v11128_v16  ;;  %v9948_v23 = vld [vmem:[%s15004_s1 + $0x1584] sm:$0xf]  ;;  %v8876_v30 = vld [vmem:[%s15004_s1 + $0x1590] sm:$0xf0]  ;;  %v8559_v45 = vor.u32 %v9868_v10, %v8556_v11  ;;  %v8751_v47 = vor.u32 %v9916_v44, %v8748_v19 }
 0x172   :  { %5404 = vmatpush.bf16.msrb.mxu3 %v9055_v49  ;;  %v9980_v34 = vld [vmem:[%s15004_s1 + $0x1684] sm:$0xf]  ;;  %v9004_v38 = vld [vmem:[%s15004_s1 + $0x1690] sm:$0xf0]  ;;  %v8879_v48 = vor.u32 %v9948_v23, %v8876_v30 }
 0x173   :  { %5370 = vmatpush.bf16.msrb.mxu0 %v8591_v46  ;;  %v10024_v39 = vld [vmem:[%s15004_s1 + $0x17e4] sm:$0xf]  ;;  %v9180_v29 = vld [vmem:[%s15004_s1 + $0x17f0] sm:$0xf0]  ;;  %v9007_v51 = vor.u32 %v9980_v34, %v9004_v38  ;;  %v5140_v3 = vpop.f32.mrf.mxu2 }
 0x174   :  { %5379 = vmatpush.bf16.msrb.mxu1 %v8783_v56  ;;  %v9912_v49 = vld [vmem:[%s15004_s1 + $0x1464] sm:$0xf]  ;;  %v8732_v50 = vld [vmem:[%s15004_s1 + $0x1470] sm:$0xf0]  ;;  %v9183_v52 = vor.u32 %v10024_v39, %v9180_v29  ;;  %v5128_v56 = vadd.f32 %v5127_v43, %v806_v36 }
 0x175   :  { %5392 = vmatpush.bf16.msrb.mxu2 %v8911_v57  ;;  %v9944_v53 = vld [vmem:[%s15004_s1 + $0x1564] sm:$0xf]  ;;  %v8860_v54 = vld [vmem:[%s15004_s1 + $0x1570] sm:$0xf0]  ;;  %v8735_v60 = vor.u32 %v9912_v49, %v8732_v50 }
 0x176   :  { %5405 = vmatpush.bf16.msrb.mxu3 %v9039_v62  ;;  %v9976_v46 = vld [vmem:[%s15004_s1 + $0x1664] sm:$0xf]  ;;  %v8988_v57 = vld [vmem:[%s15004_s1 + $0x1670] sm:$0xf0]  ;;  %v8863_v62 = vor.u32 %v9944_v53, %v8860_v54  ;;  %v5141_v11 = vadd.f32 %v5140_v3, %v5128_v56 }
 0x177   :  { %5371 = vmatpush.bf16.msrb.mxu0 %v8575_v8  ;;  %v10020_v58 = vld [vmem:[%s15004_s1 + $0x17c4] sm:$0xf]  ;;  %v9164_v59 = vld [vmem:[%s15004_s1 + $0x17d0] sm:$0xf0]  ;;  %v8991_v4 = vor.u32 %v9976_v46, %v8988_v57 }
 0x178   :  { %5380 = vmatpush.bf16.msrb.mxu1 %v8767_v14  ;;  %v9908_v55 = vld [vmem:[%s15004_s1 + $0x1444] sm:$0xf]  ;;  %v8716_v63 = vld [vmem:[%s15004_s1 + $0x1450] sm:$0xf0]  ;;  %v9167_v5 = vor.u32 %v10020_v58, %v9164_v59  ;;  %v5153_v14 = vpop.f32.mrf.mxu3 }
 0x179   :  { %5393 = vmatpush.bf16.msrb.mxu2 %v8895_v15  ;;  %v9940_v6 = vld [vmem:[%s15004_s1 + $0x1544] sm:$0xf]  ;;  %v8844_v8 = vld [vmem:[%s15004_s1 + $0x1550] sm:$0xf0]  ;;  %v5154_v23 = vadd.f32 %v5153_v14, %v5141_v11  ;;  %v8719_v30 = vor.u32 %v9908_v55, %v8716_v63 }
 0x17a   :  { %5406 = vmatpush.bf16.msrb.mxu3 %v9023_v24  ;;  %v9972_v10 = vld [vmem:[%s15004_s1 + $0x1644] sm:$0xf]  ;;  %v8972_v15 = vld [vmem:[%s15004_s1 + $0x1650] sm:$0xf0]  ;;  %v5129_v24 = vpop.f32.mrf.mxu1  ;;  %v8847_v34 = vor.u32 %v9940_v6, %v8844_v8  ;;  %v6242_v8 = vld [vmem:[%s15004_s1 + $0xe8] sm:$0xf] }
 0x17b   :  { %5372 = vmatpush.bf16.msrb.mxu0 %v8559_v45  ;;  %v10016_v44 = vld [vmem:[%s15004_s1 + $0x17a4] sm:$0xf]  ;;  %v9148_v19 = vld [vmem:[%s15004_s1 + $0x17b0] sm:$0xf0]  ;;  %v8975_v38 = vor.u32 %v9972_v10, %v8972_v15  ;;  %v5166_v50 = vpop.f32.mrf.mxu0  ;;  %v5142_v57 = vpop.f32.mrf.mxu2  ;;  %v9291_v10 = vld [vmem:[%s15004_s1 + $0xf4] sm:$0xf0] }
 0x17c   :  { %5381 = vmatpush.bf16.msrb.mxu1 %v8751_v47  ;;  %v9904_v35 = vld [vmem:[%s15004_s1 + $0x1424] sm:$0xf]  ;;  %v8700_v36 = vld [vmem:[%s15004_s1 + $0x1430] sm:$0xf0]  ;;  %v9151_v39 = vor.u32 %v10016_v44, %v9148_v19  ;;  %v12493_v56 = vadd.f32 %v5166_v50, %v5154_v23  ;;  %v6370_v15 = vld [vmem:[%s15004_s1 + $0x1e8] sm:$0xf] }
 0x17d   :  { %5394 = vmatpush.bf16.msrb.mxu2 %v8879_v48  ;;  %v9936_v29 = vld [vmem:[%s15004_s1 + $0x1524] sm:$0xf]  ;;  %v8828_v45 = vld [vmem:[%s15004_s1 + $0x1530] sm:$0xf0]  ;;  %v9323_v44 = vld [vmem:[%s15004_s1 + $0x1f4] sm:$0xf0] }
 0x17e   :  { %5407 = vmatpush.bf16.msrb.mxu3 %v9007_v51  ;;  %5373 = vmatmul.bf16.vlgmr.msrb.gmra.mxu0 %v11141_v25  ;;  %v9968_v43 = vld [vmem:[%s15004_s1 + $0x1624] sm:$0xf]  ;;  %v8956_v47 = vld [vmem:[%s15004_s1 + $0x1630] sm:$0xf0]  ;;  %v8703_v51 = vor.u32 %v9904_v35, %v8700_v36 }
 0x17f   :  { %5417 = vmatpush.bf16.msra.mxu0 %v9183_v52  ;;  %v10012_v48 = vld [vmem:[%s15004_s1 + $0x1784] sm:$0xf]  ;;  %v9132_v49 = vld [vmem:[%s15004_s1 + $0x1790] sm:$0xf0]  ;;  %v8831_v52 = vor.u32 %v9936_v29, %v8828_v45  ;;  %v8959_v58 = vor.u32 %v9968_v43, %v8956_v47  ;;  %v6226_v29 = vld [vmem:[%s15004_s1 + $0xc8] sm:$0xf] }
 0x180   :  { %5382 = vmatpush.bf16.msrb.mxu1 %v8735_v60  ;;  %v9900_v53 = vld [vmem:[%s15004_s1 + $0x1404] sm:$0xf]  ;;  %v8684_v54 = vld [vmem:[%s15004_s1 + $0x1410] sm:$0xf0]  ;;  %v9135_v59 = vor.u32 %v10012_v48, %v9132_v49  ;;  %v5155_v63 = vpop.f32.mrf.mxu3  ;;  %v9287_v45 = vld [vmem:[%s15004_s1 + $0xd4] sm:$0xf0] }
 0x181   :  { %5395 = vmatpush.bf16.msrb.mxu2 %v8863_v62  ;;  %v9932_v46 = vld [vmem:[%s15004_s1 + $0x1504] sm:$0xf]  ;;  %v8812_v60 = vld [vmem:[%s15004_s1 + $0x1510] sm:$0xf0]  ;;  %v8687_v11 = vor.u32 %v9900_v53, %v8684_v54  ;;  %v6354_v47 = vld [vmem:[%s15004_s1 + $0x1c8] sm:$0xf] }
 0x182   :  { %5408 = vmatpush.bf16.msrb.mxu3 %v8991_v4  ;;  %v9964_v62 = vld [vmem:[%s15004_s1 + $0x1604] sm:$0xf]  ;;  %v8940_v55 = vld [vmem:[%s15004_s1 + $0x1610] sm:$0xf0]  ;;  %v8815_v14 = vor.u32 %v9932_v46, %v8812_v60  ;;  %v9319_v48 = vld [vmem:[%s15004_s1 + $0x1d4] sm:$0xf0] }
 0x183   :  { %5418 = vmatpush.bf16.msra.mxu0 %v9167_v5  ;;  %v10008_v3 = vld [vmem:[%s15004_s1 + $0x1764] sm:$0xf]  ;;  %v9116_v4 = vld [vmem:[%s15004_s1 + $0x1770] sm:$0xf0]  ;;  %v8943_v19 = vor.u32 %v9964_v62, %v8940_v55  ;;  %v5168_v43 = vpop.f32.mrf.mxu0  ;;  %v6355_v46 = vor.u32 %v9319_v48, %v6354_v47  ;;  %v6338_v60 = vld [vmem:[%s15004_s1 + $0x1a8] sm:$0xf] }
 0x184   :  { %5383 = vmatpush.bf16.msrb.mxu1 %v8719_v30  ;;  %v10040_v5 = vld [vmem:[%s15004_s1 + $0x1864] sm:$0xf]  ;;  %v9244_v6 = vld [vmem:[%s15004_s1 + $0x1870] sm:$0xf0]  ;;  %v9119_v23 = vor.u32 %v10008_v3, %v9116_v4  ;;  %v6243_v30 = vor.u32 %v9291_v10, %v6242_v8  ;;  %v9315_v62 = vld [vmem:[%s15004_s1 + $0x1b4] sm:$0xf0] }
 0x185   :  { %5396 = vmatpush.bf16.msrb.mxu2 %v8847_v34  ;;  %v9247_v24 = vor.u32 %v10040_v5, %v9244_v6  ;;  %v10004_v34 = vld [vmem:[%s15004_s1 + $0x1744] sm:$0xf]  ;;  %v9100_v35 = vld [vmem:[%s15004_s1 + $0x1750] sm:$0xf0]  ;;  %v6339_v10 = vor.u32 %v9315_v62, %v6338_v60  ;;  %v6178_v43 = vld [vmem:[%s15004_s1 + $0x68] sm:$0xf] }
 0x186   :  { %5409 = vmatpush.bf16.msrb.mxu3 %v8975_v38  ;;  %v10036_v36 = vld [vmem:[%s15004_s1 + $0x1844] sm:$0xf]  ;;  %v6371_v38 = vor.u32 %v9323_v44, %v6370_v15  ;;  %v9103_v49 = vor.u32 %v10004_v34, %v9100_v35  ;;  %v9084_v53 = vld [vmem:[%s15004_s1 + $0x1730] sm:$0xf0]  ;;  %v6322_v15 = vld [vmem:[%s15004_s1 + $0x188] sm:$0xf] }
 0x187   :  { %5419 = vmatpush.bf16.msra.mxu0 %v9151_v39  ;;  %v9228_v39 = vld [vmem:[%s15004_s1 + $0x1850] sm:$0xf0]  ;;  %v10032_v54 = vld [vmem:[%s15004_s1 + $0x1824] sm:$0xf]  ;;  %v9311_v44 = vld [vmem:[%s15004_s1 + $0x194] sm:$0xf0] }
 0x188   :  { %5384 = vmatpush.bf16.msrb.mxu1 %v8703_v51  ;;  %v9231_v50 = vor.u32 %v10036_v36, %v9228_v39  ;;  %v6227_v51 = vor.u32 %v9287_v45, %v6226_v29  ;;  %v9212_v57 = vld [vmem:[%s15004_s1 + $0x1830] sm:$0xf0]  ;;  %v9996_v63 = vld [vmem:[%s15004_s1 + $0x1704] sm:$0xf]  ;;  %v9387_v34 = vld [vmem:[%s15004_s1 + $0x3f4] sm:$0xf0]  ;;  %v6323_v29 = vor.u32 %v9311_v44, %v6322_v15 }
 0x189   :  { %5397 = vmatpush.bf16.msrb.mxu2 %v8831_v52  ;;  %v10000_v52 = vld [vmem:[%s15004_s1 + $0x1724] sm:$0xf]  ;;  %v9215_v3 = vor.u32 %v10032_v54, %v9212_v57  ;;  %v9068_v5 = vld [vmem:[%s15004_s1 + $0x1710] sm:$0xf0]  ;;  %v9275_v47 = vld [vmem:[%s15004_s1 + $0x74] sm:$0xf0] }
 0x18a   :  { %5410 = vmatpush.bf16.msrb.mxu3 %v8959_v58  ;;  %v6210_v58 = vld [vmem:[%s15004_s1 + $0xa8] sm:$0xf]  ;;  %v9087_v55 = vor.u32 %v10000_v52, %v9084_v53  ;;  %v10028_v6 = vld [vmem:[%s15004_s1 + $0x1804] sm:$0xf]  ;;  %v9196_v8 = vld [vmem:[%s15004_s1 + $0x1810] sm:$0xf0]  ;;  %v6179_v54 = vor.u32 %v9275_v47, %v6178_v43 }
 0x18b   :  { %5420 = vmatpush.bf16.msra.mxu0 %v9135_v59  ;;  %v9283_v59 = vld [vmem:[%s15004_s1 + $0xb4] sm:$0xf0]  ;;  %v9199_v36 = vor.u32 %v10028_v6, %v9196_v8  ;;  %v6306_v48 = vld [vmem:[%s15004_s1 + $0x168] sm:$0xf] }
 0x18c   :  { %5385 = vmatpush.bf16.msrb.mxu1 %v8687_v11  ;;  %v6211_v4 = vor.u32 %v9283_v59, %v6210_v58  ;;  %v6194_v11 = vld [vmem:[%s15004_s1 + $0x88] sm:$0xf]  ;;  %v5179_v35 = vpop.f32.mrf.mxu1  ;;  %v9383_v53 = vld [vmem:[%s15004_s1 + $0x3d4] sm:$0xf0] }
 0x18d   :  { %5398 = vmatpush.bf16.msrb.mxu2 %v8815_v14  ;;  %v9279_v14 = vld [vmem:[%s15004_s1 + $0x94] sm:$0xf0]  ;;  %v5180_v39 = vadd.f32 %v5179_v35, %v12493_v56  ;;  %v6610_v52 = vld [vmem:[%s15004_s1 + $0x3c8] sm:$0xf] }
 0x18e   :  { %5411 = vmatpush.bf16.msrb.mxu3 %v8943_v19  ;;  %v6498_v19 = vld [vmem:[%s15004_s1 + $0x2e8] sm:$0xf]  ;;  %v9307_v56 = vld [vmem:[%s15004_s1 + $0x174] sm:$0xf0] }
 0x18f   :  { %5421 = vmatpush.bf16.msra.mxu0 %v9119_v23  ;;  %5386 = vmatmul.bf16.vlgmr.msrb.gmra.mxu1 %v11158_v37  ;;  %v9355_v23 = vld [vmem:[%s15004_s1 + $0x2f4] sm:$0xf0]  ;;  %v6307_v57 = vor.u32 %v9307_v56, %v6306_v48  ;;  %v6162_v59 = vld [vmem:[%s15004_s1 + $0x48] sm:$0xf] }
 0x190   :  { %5434 = vmatpush.bf16.msra.mxu1 %v9247_v24  ;;  %5399 = vmatmul.bf16.vlgmr.msrb.gmra.mxu2 %v11162_v41  ;;  %v9071_v24 = vor.u32 %v9996_v63, %v9068_v5  ;;  %v6499_v45 = vor.u32 %v9355_v23, %v6498_v19  ;;  %v9271_v60 = vld [vmem:[%s15004_s1 + $0x54] sm:$0xf0]  ;;  %v6290_v62 = vld [vmem:[%s15004_s1 + $0x148] sm:$0xf] }
 0x191   :  { %5443 = vmatpush.bf16.msra.mxu2 %v6243_v30  ;;  %5412 = vmatmul.bf16.vlgmr.msrb.gmra.mxu3 %v11160_v40  ;;  %v6626_v30 = vld [vmem:[%s15004_s1 + $0x3e8] sm:$0xf]  ;;  %v9347_v6 = vld [vmem:[%s15004_s1 + $0x2b4] sm:$0xf0]  ;;  %v6163_v15 = vor.u32 %v9271_v60, %v6162_v59 }
 0x192   :  { %5456 = vmatpush.bf16.msra.mxu3 %v6371_v38  ;;  %v6195_v38 = vor.u32 %v9279_v14, %v6194_v11  ;;  %v6466_v5 = vld [vmem:[%s15004_s1 + $0x2a8] sm:$0xf]  ;;  %v9299_v35 = vld [vmem:[%s15004_s1 + $0x134] sm:$0xf0] }
 0x193   :  { %5422 = vmatpush.bf16.msra.mxu0 %v9103_v49  ;;  %v6627_v49 = vor.u32 %v9387_v34, %v6626_v30  ;;  %v6594_v8 = vld [vmem:[%s15004_s1 + $0x3a8] sm:$0xf]  ;;  %v6467_v19 = vor.u32 %v9347_v6, %v6466_v5  ;;  %v9375_v43 = vld [vmem:[%s15004_s1 + $0x394] sm:$0xf0] }
 0x194   :  { %5435 = vmatpush.bf16.msra.mxu1 %v9231_v50  ;;  %v6482_v50 = vld [vmem:[%s15004_s1 + $0x2c8] sm:$0xf]  ;;  %v5205_v63 = vpop.f32.mrf.mxu3  ;;  %v5181_v14 = vpop.f32.mrf.mxu1  ;;  %v9339_v59 = vld [vmem:[%s15004_s1 + $0x274] sm:$0xf0] }
 0x195   :  { %5444 = vmatpush.bf16.msra.mxu2 %v6227_v51  ;;  %v9351_v51 = vld [vmem:[%s15004_s1 + $0x2d4] sm:$0xf0]  ;;  %v6146_v23 = vld [vmem:[%s15004_s1 + $0x28] sm:$0xf] }
 0x196   :  { %5457 = vmatpush.bf16.msra.mxu3 %v6355_v46  ;;  %v5192_v46 = vpop.f32.mrf.mxu2  ;;  %v6483_v58 = vor.u32 %v9351_v51, %v6482_v50  ;;  %v6274_v30 = vld [vmem:[%s15004_s1 + $0x128] sm:$0xf]  ;;  %v9451_v5 = vld [vmem:[%s15004_s1 + $0x5f4] sm:$0xf0] }
 0x197   :  { %5423 = vmatpush.bf16.msra.mxu0 %v9087_v55  ;;  %v5193_v55 = vadd.f32 %v5192_v46, %v5180_v39  ;;  %v10045_v39 = vld [vmem:[#allocation1] sm:$0xff]  ;;  %v6275_v50 = vor.u32 %v9299_v35, %v6274_v30  ;;  %v6562_v60 = vld [vmem:[%s15004_s1 + $0x368] sm:$0xf]  ;;  %v9415_v30 = vld [vmem:[%s15004_s1 + $0x4d4] sm:$0xf0] }
 0x198   :  { %5436 = vmatpush.bf16.msra.mxu1 %v9215_v3  ;;  %v6611_v3 = vor.u32 %v9383_v53, %v6610_v52  ;;  %v9263_v52 = vld [vmem:[%s15004_s1 + $0x14] sm:$0xf0]  ;;  %v6258_v53 = vld [vmem:[%s15004_s1 + $0x108] sm:$0xf] }
 0x199   :  { %5445 = vmatpush.bf16.msra.mxu2 %v6211_v4  ;;  %v9303_v4 = vld [vmem:[%s15004_s1 + $0x154] sm:$0xf0]  ;;  %v5206_v11 = vadd.f32 %v5205_v63, %v5193_v55  ;;  %v6754_v55 = vld [vmem:[%s15004_s1 + $0x4e8] sm:$0xf] }
 0x19a   :  { %5458 = vmatpush.bf16.msra.mxu3 %v6339_v10  ;;  %v9379_v10 = vld [vmem:[%s15004_s1 + $0x3b4] sm:$0xf0]  ;;  %v6291_v44 = vor.u32 %v9303_v4, %v6290_v62  ;;  %v6882_v4 = vld [vmem:[%s15004_s1 + $0x5e8] sm:$0xf] }
 0x19b   :  { %5424 = vmatpush.bf16.msra.mxu0 %v9071_v24  ;;  %v9267_v24 = vld [vmem:[%s15004_s1 + $0x34] sm:$0xf0]  ;;  %v6595_v34 = vor.u32 %v9379_v10, %v6594_v8  ;;  %v6418_v14 = vld [vmem:[%s15004_s1 + $0x248] sm:$0xf] }
 0x19c   :  { %5437 = vmatpush.bf16.msra.mxu1 %v9199_v36  ;;  %v6450_v36 = vld [vmem:[%s15004_s1 + $0x288] sm:$0xf]  ;;  %v6147_v47 = vor.u32 %v9267_v24, %v6146_v23  ;;  %v5207_v46 = vpop.f32.mrf.mxu3  ;;  %v9371_v62 = vld [vmem:[%s15004_s1 + $0x374] sm:$0xf0] }
 0x19d   :  { %5446 = vmatpush.bf16.msra.mxu2 %v6195_v38  ;;  %v9343_v38 = vld [vmem:[%s15004_s1 + $0x294] sm:$0xf0]  ;;  %v6563_v10 = vor.u32 %v9371_v62, %v6562_v60  ;;  %v6738_v24 = vld [vmem:[%s15004_s1 + $0x4c8] sm:$0xf] }
 0x19e   :  { %5459 = vmatpush.bf16.msra.mxu3 %v6323_v29  ;;  %5425 = vmatmul.bf16.vlgmr.msra.gmra.mxu0 %v11164_v42  ;;  %v5218_v29 = vpop.f32.mrf.mxu0  ;;  %v5194_v56 = vpop.f32.mrf.mxu2  ;;  %v6451_v51 = vor.u32 %v9343_v38, %v6450_v36  ;;  %v9419_v63 = vld [vmem:[%s15004_s1 + $0x4f4] sm:$0xf0]  ;;  %v6866_v35 = vld [vmem:[%s15004_s1 + $0x5c8] sm:$0xf] }
 0x19f   :  { %5469 = vmatpush.bf16.msrb.mxu0 %v6499_v45  ;;  %9257 = vmatmul.msk.bf16.vlgmr.msra.gmra.mxu1 %vm4790_vm0, %v10045_v39  ;;  %v6578_v45 = vld [vmem:[%s15004_s1 + $0x388] sm:$0xf]  ;;  %v12690_v48 = vadd.f32 %v5218_v29, %v5206_v11  ;;  %v6755_v11 = vor.u32 %v9419_v63, %v6754_v55  ;;  %v9367_v23 = vld [vmem:[%s15004_s1 + $0x354] sm:$0xf0]  ;;  %v6739_v29 = vor.u32 %v9415_v30, %v6738_v24 }
 0x1a0   :  { %5482 = vmatpush.bf16.msrb.mxu1 %v6627_v49  ;;  %v6130_v49 = vld [vmem:[%s15004_s1 + $0x8] sm:$0xf]  ;;  %v9447_v36 = vld [vmem:[%s15004_s1 + $0x5d4] sm:$0xf0] }
 0x1a1   :  { %5447 = vmatpush.bf16.msra.mxu2 %v6179_v54  ;;  %v9295_v54 = vld [vmem:[%s15004_s1 + $0x114] sm:$0xf0]  ;;  %v6386_v46 = vld [vmem:[%s15004_s1 + $0x208] sm:$0xf] }
 0x1a2   :  { %5460 = vmatpush.bf16.msra.mxu3 %v6307_v57  ;;  %v6579_v57 = vor.u32 %v9375_v43, %v6578_v45  ;;  %v6259_v6 = vor.u32 %v9295_v54, %v6258_v53  ;;  %v6402_v45 = vld [vmem:[%s15004_s1 + $0x228] sm:$0xf]  ;;  %v9331_v43 = vld [vmem:[%s15004_s1 + $0x234] sm:$0xf0] }
 0x1a3   :  { %5470 = vmatpush.bf16.msrb.mxu0 %v6483_v58  ;;  %v6434_v58 = vld [vmem:[%s15004_s1 + $0x268] sm:$0xf]  ;;  %v9363_v56 = vld [vmem:[%s15004_s1 + $0x334] sm:$0xf0]  ;;  %v6403_v54 = vor.u32 %v9331_v43, %v6402_v45 }
 0x1a4   :  { %5483 = vmatpush.bf16.msrb.mxu1 %v6611_v3  ;;  %v6131_v3 = vor.u32 %v9263_v52, %v6130_v49  ;;  %v6435_v8 = vor.u32 %v9339_v59, %v6434_v58  ;;  %v6867_v49 = vor.u32 %v9447_v36, %v6866_v35  ;;  %v6850_v52 = vld [vmem:[%s15004_s1 + $0x5a8] sm:$0xf]  ;;  %v9443_v53 = vld [vmem:[%s15004_s1 + $0x5b4] sm:$0xf0] }
 0x1a5   :  { %5448 = vmatpush.bf16.msra.mxu2 %v6163_v15  ;;  %v9335_v15 = vld [vmem:[%s15004_s1 + $0x254] sm:$0xf0]  ;;  %v6514_v60 = vld [vmem:[%s15004_s1 + $0x308] sm:$0xf]  ;;  %v6851_v55 = vor.u32 %v9443_v53, %v6850_v52 }
 0x1a6   :  { %5461 = vmatpush.bf16.msra.mxu3 %v6291_v44  ;;  %v6546_v44 = vld [vmem:[%s15004_s1 + $0x348] sm:$0xf]  ;;  %v6419_v38 = vor.u32 %v9335_v15, %v6418_v14  ;;  %v9327_v59 = vld [vmem:[%s15004_s1 + $0x214] sm:$0xf0] }
 0x1a7   :  { %5471 = vmatpush.bf16.msrb.mxu0 %v6467_v19  ;;  %v6883_v19 = vor.u32 %v9451_v5, %v6882_v4  ;;  %v6547_v39 = vor.u32 %v9367_v23, %v6546_v44  ;;  %v9359_v62 = vld [vmem:[%s15004_s1 + $0x314] sm:$0xf0]  ;;  %v6706_v63 = vld [vmem:[%s15004_s1 + $0x488] sm:$0xf]  ;;  %v6387_v14 = vor.u32 %v9327_v59, %v6386_v46 }
 0x1a8   :  { %5484 = vmatpush.bf16.msrb.mxu1 %v6595_v34  ;;  %v5220_v34 = vpop.f32.mrf.mxu0  ;;  %v6834_v4 = vld [vmem:[%s15004_s1 + $0x588] sm:$0xf]  ;;  %v9515_v44 = vld [vmem:[%s15004_s1 + $0x7f4] sm:$0xf0] }
 0x1a9   :  { %5449 = vmatpush.bf16.msra.mxu2 %v6147_v47  ;;  %v6530_v47 = vld [vmem:[%s15004_s1 + $0x328] sm:$0xf]  ;;  %v9403_v34 = vld [vmem:[%s15004_s1 + $0x474] sm:$0xf0] }
 0x1aa   :  { %5462 = vmatpush.bf16.msra.mxu3 %v6275_v50  ;;  %v6722_v50 = vld [vmem:[%s15004_s1 + $0x4a8] sm:$0xf]  ;;  %v9511_v43 = vld [vmem:[%s15004_s1 + $0x7d4] sm:$0xf0] }
 0x1ab   :  { %5472 = vmatpush.bf16.msrb.mxu0 %v6451_v51  ;;  %v9411_v51 = vld [vmem:[%s15004_s1 + $0x4b4] sm:$0xf0]  ;;  %v7138_v15 = vld [vmem:[%s15004_s1 + $0x7e8] sm:$0xf] }
 0x1ac   :  { %5485 = vmatpush.bf16.msrb.mxu1 %v6579_v57  ;;  %v6531_v57 = vor.u32 %v9363_v56, %v6530_v47  ;;  %v6723_v58 = vor.u32 %v9411_v51, %v6722_v50  ;;  %v5231_v5 = vpop.f32.mrf.mxu1  ;;  %v6818_v35 = vld [vmem:[%s15004_s1 + $0x568] sm:$0xf]  ;;  %v7139_v36 = vor.u32 %v9515_v44, %v7138_v15  ;;  %v9399_v53 = vld [vmem:[%s15004_s1 + $0x454] sm:$0xf0] }
 0x1ad   :  { %5450 = vmatpush.bf16.msra.mxu2 %v6131_v3  ;;  %v9407_v3 = vld [vmem:[%s15004_s1 + $0x494] sm:$0xf0]  ;;  %v7122_v45 = vld [vmem:[%s15004_s1 + $0x7c8] sm:$0xf] }
 0x1ae   :  { %5463 = vmatpush.bf16.msra.mxu3 %v6259_v6  ;;  %v9439_v6 = vld [vmem:[%s15004_s1 + $0x594] sm:$0xf0]  ;;  %v6707_v23 = vor.u32 %v9407_v3, %v6706_v63  ;;  %v6674_v52 = vld [vmem:[%s15004_s1 + $0x448] sm:$0xf] }
 0x1af   :  { %5473 = vmatpush.bf16.msrb.mxu0 %v6435_v8  ;;  %v7010_v8 = vld [vmem:[%s15004_s1 + $0x6e8] sm:$0xf]  ;;  %v6835_v24 = vor.u32 %v9439_v6, %v6834_v4  ;;  %v9507_v63 = vld [vmem:[%s15004_s1 + $0x7b4] sm:$0xf0]  ;;  %v6675_v4 = vor.u32 %v9399_v53, %v6674_v52 }
 0x1b0   :  { %5486 = vmatpush.bf16.msrb.mxu1 %v6563_v10  ;;  %5451 = vmatmul.bf16.vlgmr.msra.gmra.mxu2 %v10375_v21  ;;  %v9483_v10 = vld [vmem:[%s15004_s1 + $0x6f4] sm:$0xf0]  ;;  %v6978_v59 = vld [vmem:[%s15004_s1 + $0x6a8] sm:$0xf] }
 0x1b1   :  { %5495 = vmatpush.bf16.msrb.mxu2 %v6755_v11  ;;  %5464 = vmatmul.bf16.vlgmr.msra.gmra.mxu3 %v10386_v26  ;;  %v5232_v11 = vadd.f32 %v5231_v5, %v12690_v48  ;;  %v7011_v30 = vor.u32 %v9483_v10, %v7010_v8  ;;  %v6690_v48 = vld [vmem:[%s15004_s1 + $0x468] sm:$0xf]  ;;  %v9395_v10 = vld [vmem:[%s15004_s1 + $0x434] sm:$0xf0] }
 0x1b2   :  { %5508 = vmatpush.bf16.msrb.mxu3 %v6883_v19  ;;  %v6515_v19 = vor.u32 %v9359_v62, %v6514_v60  ;;  %v6691_v47 = vor.u32 %v9403_v34, %v6690_v48  ;;  %v9475_v60 = vld [vmem:[%s15004_s1 + $0x6b4] sm:$0xf0]  ;;  %v6658_v8 = vld [vmem:[%s15004_s1 + $0x428] sm:$0xf] }
 0x1b3   :  { %5474 = vmatpush.bf16.msrb.mxu0 %v6419_v38  ;;  %v9435_v38 = vld [vmem:[%s15004_s1 + $0x574] sm:$0xf0]  ;;  %v5244_v56 = vpop.f32.mrf.mxu2  ;;  %v6979_v6 = vor.u32 %v9475_v60, %v6978_v59  ;;  %v6962_v44 = vld [vmem:[%s15004_s1 + $0x688] sm:$0xf]  ;;  %v6659_v34 = vor.u32 %v9395_v10, %v6658_v8 }
 0x1b4   :  { %5487 = vmatpush.bf16.msrb.mxu1 %v6547_v39  ;;  %v6994_v39 = vld [vmem:[%s15004_s1 + $0x6c8] sm:$0xf]  ;;  %v5257_v51 = vpop.f32.mrf.mxu3  ;;  %v5245_v46 = vadd.f32 %v5244_v56, %v5232_v11  ;;  %v5233_v62 = vpop.f32.mrf.mxu1  ;;  %v9427_v15 = vld [vmem:[%s15004_s1 + $0x534] sm:$0xf0] }
 0x1b5   :  { %5496 = vmatpush.bf16.msrb.mxu2 %v6739_v29  ;;  %v9479_v29 = vld [vmem:[%s15004_s1 + $0x6d4] sm:$0xf0]  ;;  %v6786_v11 = vld [vmem:[%s15004_s1 + $0x528] sm:$0xf] }
 0x1b6   :  { %5509 = vmatpush.bf16.msrb.mxu3 %v6867_v49  ;;  %v6819_v49 = vor.u32 %v9435_v38, %v6818_v35  ;;  %v6995_v50 = vor.u32 %v9479_v29, %v6994_v39  ;;  %v5258_v3 = vadd.f32 %v5257_v51, %v5245_v46  ;;  %v6642_v35 = vld [vmem:[%s15004_s1 + $0x408] sm:$0xf]  ;;  %v9391_v39 = vld [vmem:[%s15004_s1 + $0x414] sm:$0xf0] }
 0x1b7   :  { %5475 = vmatpush.bf16.msrb.mxu0 %v6403_v54  ;;  %v6802_v54 = vld [vmem:[%s15004_s1 + $0x548] sm:$0xf]  ;;  %v9499_v52 = vld [vmem:[%s15004_s1 + $0x774] sm:$0xf0]  ;;  %v6643_v46 = vor.u32 %v9391_v39, %v6642_v35 }
 0x1b8   :  { %5488 = vmatpush.bf16.msrb.mxu1 %v6531_v57  ;;  %v7123_v57 = vor.u32 %v9511_v43, %v7122_v45  ;;  %v6770_v29 = vld [vmem:[%s15004_s1 + $0x508] sm:$0xf]  ;;  %v9423_v45 = vld [vmem:[%s15004_s1 + $0x514] sm:$0xf0] }
 0x1b9   :  { %5497 = vmatpush.bf16.msrb.mxu2 %v6723_v58  ;;  %v9431_v58 = vld [vmem:[%s15004_s1 + $0x554] sm:$0xf0]  ;;  %v6946_v56 = vld [vmem:[%s15004_s1 + $0x668] sm:$0xf]  ;;  %v6771_v59 = vor.u32 %v9423_v45, %v6770_v29 }
 0x1ba   :  { %5510 = vmatpush.bf16.msrb.mxu3 %v6851_v55  ;;  %v7106_v55 = vld [vmem:[%s15004_s1 + $0x7a8] sm:$0xf]  ;;  %v6803_v5 = vor.u32 %v9431_v58, %v6802_v54  ;;  %v9547_v54 = vld [vmem:[%s15004_s1 + $0x8f4] sm:$0xf0] }
 0x1bb   :  { %5476 = vmatpush.bf16.msrb.mxu0 %v6387_v14  ;;  %v7107_v14 = vor.u32 %v9507_v63, %v7106_v55  ;;  %v5246_v43 = vpop.f32.mrf.mxu2  ;;  %v7074_v51 = vld [vmem:[%s15004_s1 + $0x768] sm:$0xf]  ;;  %v9579_v58 = vld [vmem:[%s15004_s1 + $0x9f4] sm:$0xf0] }
 0x1bc   :  { %5489 = vmatpush.bf16.msrb.mxu1 %v6515_v19  ;;  %v9471_v19 = vld [vmem:[%s15004_s1 + $0x694] sm:$0xf0]  ;;  %v7266_v53 = vld [vmem:[%s15004_s1 + $0x8e8] sm:$0xf]  ;;  %v7075_v62 = vor.u32 %v9499_v52, %v7074_v51 }
 0x1bd   :  { %5498 = vmatpush.bf16.msrb.mxu2 %v6707_v23  ;;  %v5270_v23 = vpop.f32.mrf.mxu0  ;;  %v6963_v38 = vor.u32 %v9471_v19, %v6962_v44  ;;  %v7267_v55 = vor.u32 %v9547_v54, %v7266_v53  ;;  %v6930_v63 = vld [vmem:[%s15004_s1 + $0x648] sm:$0xf]  ;;  %v9543_v10 = vld [vmem:[%s15004_s1 + $0x8d4] sm:$0xf0] }
 0x1be   :  { %5511 = vmatpush.bf16.msrb.mxu3 %v6835_v24  ;;  %5477 = vmatmul.bf16.vlgmr.msrb.gmra.mxu0 %v10373_v20  ;;  %v7090_v24 = vld [vmem:[%s15004_s1 + $0x788] sm:$0xf]  ;;  %v12889_v48 = vadd.f32 %v5270_v23, %v5258_v3  ;;  %v9463_v3 = vld [vmem:[%s15004_s1 + $0x654] sm:$0xf0] }
 0x1bf   :  { %5521 = vmatpush.bf16.msra.mxu0 %v7011_v30  ;;  %5490 = vmatmul.bf16.vlgmr.msrb.gmra.mxu1 %v10377_v22  ;;  %v9503_v30 = vld [vmem:[%s15004_s1 + $0x794] sm:$0xf0]  ;;  %v7250_v8 = vld [vmem:[%s15004_s1 + $0x8c8] sm:$0xf]  ;;  %v6931_v44 = vor.u32 %v9463_v3, %v6930_v63 }
 0x1c0   :  { %5534 = vmatpush.bf16.msra.mxu1 %v7139_v36  ;;  %v6787_v36 = vor.u32 %v9427_v15, %v6786_v11  ;;  %v9575_v15 = vld [vmem:[%s15004_s1 + $0x9d4] sm:$0xf0]  ;;  %v7251_v23 = vor.u32 %v9543_v10, %v7250_v8  ;;  %v7362_v29 = vld [vmem:[%s15004_s1 + $0x9a8] sm:$0xf] }
 0x1c1   :  { %5499 = vmatpush.bf16.msrb.mxu2 %v6691_v47  ;;  %v5259_v47 = vpop.f32.mrf.mxu3  ;;  %v9539_v39 = vld [vmem:[%s15004_s1 + $0x8b4] sm:$0xf0]  ;;  %v7026_v51 = vld [vmem:[%s15004_s1 + $0x708] sm:$0xf] }
 0x1c2   :  { %5512 = vmatpush.bf16.msrb.mxu3 %v6819_v49  ;;  %v7091_v49 = vor.u32 %v9503_v30, %v7090_v24  ;;  %v6914_v24 = vld [vmem:[%s15004_s1 + $0x628] sm:$0xf]  ;;  %v9459_v30 = vld [vmem:[%s15004_s1 + $0x634] sm:$0xf0] }
 0x1c3   :  { %5522 = vmatpush.bf16.msra.mxu0 %v6995_v50  ;;  %v9467_v50 = vld [vmem:[%s15004_s1 + $0x674] sm:$0xf0]  ;;  %v6915_v43 = vor.u32 %v9459_v30, %v6914_v24  ;;  %v6898_v47 = vld [vmem:[%s15004_s1 + $0x608] sm:$0xf] }
 0x1c4   :  { %5535 = vmatpush.bf16.msra.mxu1 %v7123_v57  ;;  %v7394_v57 = vld [vmem:[%s15004_s1 + $0x9e8] sm:$0xf]  ;;  %v6947_v60 = vor.u32 %v9467_v50, %v6946_v56  ;;  %v9571_v45 = vld [vmem:[%s15004_s1 + $0x9b4] sm:$0xf0] }
 0x1c5   :  { %5500 = vmatpush.bf16.msrb.mxu2 %v6675_v4  ;;  %v7058_v4 = vld [vmem:[%s15004_s1 + $0x748] sm:$0xf]  ;;  %v5272_v11 = vpop.f32.mrf.mxu0  ;;  %v9455_v50 = vld [vmem:[%s15004_s1 + $0x614] sm:$0xf0]  ;;  %v7363_v53 = vor.u32 %v9571_v45, %v7362_v29 }
 0x1c6   :  { %5513 = vmatpush.bf16.msrb.mxu3 %v6803_v5  ;;  %v7395_v5 = vor.u32 %v9579_v58, %v7394_v57  ;;  %v9487_v52 = vld [vmem:[%s15004_s1 + $0x714] sm:$0xf0]  ;;  %v7218_v54 = vld [vmem:[%s15004_s1 + $0x888] sm:$0xf]  ;;  %v6899_v63 = vor.u32 %v9455_v50, %v6898_v47 }
 0x1c7   :  { %5523 = vmatpush.bf16.msra.mxu0 %v6979_v6  ;;  %v9495_v6 = vld [vmem:[%s15004_s1 + $0x754] sm:$0xf0]  ;;  %v7346_v57 = vld [vmem:[%s15004_s1 + $0x988] sm:$0xf] }
 0x1c8   :  { %5536 = vmatpush.bf16.msra.mxu1 %v7107_v14  ;;  %v7378_v14 = vld [vmem:[%s15004_s1 + $0x9c8] sm:$0xf]  ;;  %v7059_v19 = vor.u32 %v9495_v6, %v7058_v4  ;;  %v9643_v4 = vld [vmem:[%s15004_s1 + $0xbf4] sm:$0xf0] }
 0x1c9   :  { %5501 = vmatpush.bf16.msrb.mxu2 %v6659_v34  ;;  %v7042_v34 = vld [vmem:[%s15004_s1 + $0x728] sm:$0xf]  ;;  %v7379_v35 = vor.u32 %v9575_v15, %v7378_v14  ;;  %v9531_v11 = vld [vmem:[%s15004_s1 + $0x874] sm:$0xf0] }
 0x1ca   :  { %5514 = vmatpush.bf16.msrb.mxu3 %v6787_v36  ;;  %v9491_v36 = vld [vmem:[%s15004_s1 + $0x734] sm:$0xf0]  ;;  %v7650_v3 = vld [vmem:[%s15004_s1 + $0xbe8] sm:$0xf] }
 0x1cb   :  { %5524 = vmatpush.bf16.msra.mxu0 %v6963_v38  ;;  %v7234_v38 = vld [vmem:[%s15004_s1 + $0x8a8] sm:$0xf]  ;;  %v7651_v15 = vor.u32 %v9643_v4, %v7650_v3  ;;  %v9639_v30 = vld [vmem:[%s15004_s1 + $0xbd4] sm:$0xf0] }
 0x1cc   :  { %5537 = vmatpush.bf16.msra.mxu1 %v7091_v49  ;;  %v7043_v49 = vor.u32 %v9491_v36, %v7042_v34  ;;  %v7235_v56 = vor.u32 %v9539_v39, %v7234_v38  ;;  %v5283_v58 = vpop.f32.mrf.mxu1  ;;  %v7330_v14 = vld [vmem:[%s15004_s1 + $0x968] sm:$0xf]  ;;  %v9527_v45 = vld [vmem:[%s15004_s1 + $0x854] sm:$0xf0] }
 0x1cd   :  { %5502 = vmatpush.bf16.msrb.mxu2 %v6643_v46  ;;  %v9535_v46 = vld [vmem:[%s15004_s1 + $0x894] sm:$0xf0]  ;;  %v7634_v24 = vld [vmem:[%s15004_s1 + $0xbc8] sm:$0xf] }
 0x1ce   :  { %5515 = vmatpush.bf16.msrb.mxu3 %v6771_v59  ;;  %v9567_v59 = vld [vmem:[%s15004_s1 + $0x994] sm:$0xf0]  ;;  %v7219_v6 = vor.u32 %v9535_v46, %v7218_v54  ;;  %v7186_v29 = vld [vmem:[%s15004_s1 + $0x848] sm:$0xf] }
 0x1cf   :  { %5525 = vmatpush.bf16.msra.mxu0 %v6947_v60  ;;  %v7522_v60 = vld [vmem:[%s15004_s1 + $0xae8] sm:$0xf]  ;;  %v7347_v8 = vor.u32 %v9567_v59, %v7346_v57  ;;  %v9635_v54 = vld [vmem:[%s15004_s1 + $0xbb4] sm:$0xf0]  ;;  %v7187_v57 = vor.u32 %v9527_v45, %v7186_v29 }
 0x1d0   :  { %5538 = vmatpush.bf16.msra.mxu1 %v7075_v62  ;;  %5503 = vmatmul.bf16.vlgmr.msrb.gmra.mxu2 %v10468_v0  ;;  %v9611_v62 = vld [vmem:[%s15004_s1 + $0xaf4] sm:$0xf0]  ;;  %v7490_v50 = vld [vmem:[%s15004_s1 + $0xaa8] sm:$0xf] }
 0x1d1   :  { %5547 = vmatpush.bf16.msra.mxu2 %v7267_v55  ;;  %5516 = vmatmul.bf16.vlgmr.msrb.gmra.mxu3 %v10472_v2  ;;  %v5284_v55 = vadd.f32 %v5283_v58, %v12889_v48  ;;  %v7523_v10 = vor.u32 %v9611_v62, %v7522_v60  ;;  %v7202_v48 = vld [vmem:[%s15004_s1 + $0x868] sm:$0xf]  ;;  %v9523_v62 = vld [vmem:[%s15004_s1 + $0x834] sm:$0xf0] }
 0x1d2   :  { %5560 = vmatpush.bf16.msra.mxu3 %v7395_v5  ;;  %v7027_v5 = vor.u32 %v9487_v52, %v7026_v51  ;;  %v7203_v34 = vor.u32 %v9531_v11, %v7202_v48  ;;  %v9603_v51 = vld [vmem:[%s15004_s1 + $0xab4] sm:$0xf0]  ;;  %v7170_v60 = vld [vmem:[%s15004_s1 + $0x828] sm:$0xf] }
 0x1d3   :  { %5526 = vmatpush.bf16.msra.mxu0 %v6931_v44  ;;  %v9563_v44 = vld [vmem:[%s15004_s1 + $0x974] sm:$0xf0]  ;;  %v5296_v36 = vpop.f32.mrf.mxu2  ;;  %v7491_v59 = vor.u32 %v9603_v51, %v7490_v50  ;;  %v7474_v4 = vld [vmem:[%s15004_s1 + $0xa88] sm:$0xf]  ;;  %v7171_v11 = vor.u32 %v9523_v62, %v7170_v60 }
 0x1d4   :  { %5539 = vmatpush.bf16.msra.mxu1 %v7059_v19  ;;  %v7506_v19 = vld [vmem:[%s15004_s1 + $0xac8] sm:$0xf]  ;;  %v5309_v39 = vpop.f32.mrf.mxu3  ;;  %v5297_v47 = vadd.f32 %v5296_v36, %v5284_v55  ;;  %v5285_v52 = vpop.f32.mrf.mxu1  ;;  %v9555_v3 = vld [vmem:[%s15004_s1 + $0x934] sm:$0xf0] }
 0x1d5   :  { %5548 = vmatpush.bf16.msra.mxu2 %v7251_v23  ;;  %v9607_v23 = vld [vmem:[%s15004_s1 + $0xad4] sm:$0xf0]  ;;  %v7298_v55 = vld [vmem:[%s15004_s1 + $0x928] sm:$0xf] }
 0x1d6   :  { %5561 = vmatpush.bf16.msra.mxu3 %v7379_v35  ;;  %v7331_v35 = vor.u32 %v9563_v44, %v7330_v14  ;;  %v7507_v38 = vor.u32 %v9607_v23, %v7506_v19  ;;  %v5310_v46 = vadd.f32 %v5309_v39, %v5297_v47  ;;  %v7154_v14 = vld [vmem:[%s15004_s1 + $0x808] sm:$0xf]  ;;  %v9519_v19 = vld [vmem:[%s15004_s1 + $0x814] sm:$0xf0] }
 0x1d7   :  { %5527 = vmatpush.bf16.msra.mxu0 %v6915_v43  ;;  %v7314_v43 = vld [vmem:[%s15004_s1 + $0x948] sm:$0xf]  ;;  %v9627_v29 = vld [vmem:[%s15004_s1 + $0xb74] sm:$0xf0]  ;;  %v7155_v47 = vor.u32 %v9519_v19, %v7154_v14 }
 0x1d8   :  { %5540 = vmatpush.bf16.msra.mxu1 %v7043_v49  ;;  %v7635_v49 = vor.u32 %v9639_v30, %v7634_v24  ;;  %v7282_v23 = vld [vmem:[%s15004_s1 + $0x908] sm:$0xf]  ;;  %v9551_v24 = vld [vmem:[%s15004_s1 + $0x914] sm:$0xf0] }
 0x1d9   :  { %5549 = vmatpush.bf16.msra.mxu2 %v7235_v56  ;;  %v9559_v56 = vld [vmem:[%s15004_s1 + $0x954] sm:$0xf0]  ;;  %v7458_v36 = vld [vmem:[%s15004_s1 + $0xa68] sm:$0xf]  ;;  %v7283_v50 = vor.u32 %v9551_v24, %v7282_v23 }
 0x1da   :  { %5562 = vmatpush.bf16.msra.mxu3 %v7363_v53  ;;  %v7618_v53 = vld [vmem:[%s15004_s1 + $0xba8] sm:$0xf]  ;;  %v7315_v58 = vor.u32 %v9559_v56, %v7314_v43  ;;  %v9675_v43 = vld [vmem:[%s15004_s1 + $0xcf4] sm:$0xf0] }
 0x1db   :  { %5528 = vmatpush.bf16.msra.mxu0 %v6899_v63  ;;  %v7619_v63 = vor.u32 %v9635_v54, %v7618_v53  ;;  %v5298_v30 = vpop.f32.mrf.mxu2  ;;  %v7586_v39 = vld [vmem:[%s15004_s1 + $0xb68] sm:$0xf]  ;;  %v9707_v56 = vld [vmem:[%s15004_s1 + $0xdf4] sm:$0xf0] }
 0x1dc   :  { %5541 = vmatpush.bf16.msra.mxu1 %v7027_v5  ;;  %v9599_v5 = vld [vmem:[%s15004_s1 + $0xa94] sm:$0xf0]  ;;  %v7778_v45 = vld [vmem:[%s15004_s1 + $0xce8] sm:$0xf]  ;;  %v7587_v52 = vor.u32 %v9627_v29, %v7586_v39 }
 0x1dd   :  { %5550 = vmatpush.bf16.msra.mxu2 %v7219_v6  ;;  %v5322_v6 = vpop.f32.mrf.mxu0  ;;  %v7475_v44 = vor.u32 %v9599_v5, %v7474_v4  ;;  %v7779_v53 = vor.u32 %v9675_v43, %v7778_v45  ;;  %v7442_v54 = vld [vmem:[%s15004_s1 + $0xa48] sm:$0xf]  ;;  %v9671_v62 = vld [vmem:[%s15004_s1 + $0xcd4] sm:$0xf0] }
 0x1de   :  { %5563 = vmatpush.bf16.msra.mxu3 %v7347_v8  ;;  %5529 = vmatmul.bf16.vlgmr.msra.gmra.mxu0 %v10466_v61  ;;  %v7602_v8 = vld [vmem:[%s15004_s1 + $0xb88] sm:$0xf]  ;;  %v13088_v48 = vadd.f32 %v5322_v6, %v5310_v46  ;;  %v9591_v46 = vld [vmem:[%s15004_s1 + $0xa54] sm:$0xf0] }
 0x1df   :  { %5573 = vmatpush.bf16.msrb.mxu0 %v7523_v10  ;;  %5542 = vmatmul.bf16.vlgmr.msra.gmra.mxu1 %v10470_v1  ;;  %v9631_v10 = vld [vmem:[%s15004_s1 + $0xb94] sm:$0xf0]  ;;  %v7762_v60 = vld [vmem:[%s15004_s1 + $0xcc8] sm:$0xf]  ;;  %v7443_v4 = vor.u32 %v9591_v46, %v7442_v54 }
 0x1e0   :  { %5586 = vmatpush.bf16.msrb.mxu1 %v7651_v15  ;;  %v7299_v15 = vor.u32 %v9555_v3, %v7298_v55  ;;  %v9703_v3 = vld [vmem:[%s15004_s1 + $0xdd4] sm:$0xf0]  ;;  %v7763_v6 = vor.u32 %v9671_v62, %v7762_v60  ;;  %v7874_v23 = vld [vmem:[%s15004_s1 + $0xda8] sm:$0xf] }
 0x1e1   :  { %5551 = vmatpush.bf16.msra.mxu2 %v7203_v34  ;;  %v5311_v34 = vpop.f32.mrf.mxu3  ;;  %v9667_v19 = vld [vmem:[%s15004_s1 + $0xcb4] sm:$0xf0]  ;;  %v7538_v39 = vld [vmem:[%s15004_s1 + $0xb08] sm:$0xf] }
 0x1e2   :  { %5564 = vmatpush.bf16.msra.mxu3 %v7331_v35  ;;  %v7603_v35 = vor.u32 %v9631_v10, %v7602_v8  ;;  %v7426_v8 = vld [vmem:[%s15004_s1 + $0xa28] sm:$0xf]  ;;  %v9587_v10 = vld [vmem:[%s15004_s1 + $0xa34] sm:$0xf0] }
 0x1e3   :  { %5574 = vmatpush.bf16.msrb.mxu0 %v7507_v38  ;;  %v9595_v38 = vld [vmem:[%s15004_s1 + $0xa74] sm:$0xf0]  ;;  %v7427_v30 = vor.u32 %v9587_v10, %v7426_v8  ;;  %v7410_v34 = vld [vmem:[%s15004_s1 + $0xa08] sm:$0xf] }
 0x1e4   :  { %5587 = vmatpush.bf16.msrb.mxu1 %v7635_v49  ;;  %v7906_v49 = vld [vmem:[%s15004_s1 + $0xde8] sm:$0xf]  ;;  %v7459_v51 = vor.u32 %v9595_v38, %v7458_v36  ;;  %v9699_v24 = vld [vmem:[%s15004_s1 + $0xdb4] sm:$0xf0] }
 0x1e5   :  { %5552 = vmatpush.bf16.msra.mxu2 %v7187_v57  ;;  %v7570_v57 = vld [vmem:[%s15004_s1 + $0xb48] sm:$0xf]  ;;  %v5324_v55 = vpop.f32.mrf.mxu0  ;;  %v9583_v38 = vld [vmem:[%s15004_s1 + $0xa14] sm:$0xf0]  ;;  %v7875_v45 = vor.u32 %v9699_v24, %v7874_v23 }
 0x1e6   :  { %5565 = vmatpush.bf16.msra.mxu3 %v7315_v58  ;;  %v7907_v58 = vor.u32 %v9707_v56, %v7906_v49  ;;  %v9615_v29 = vld [vmem:[%s15004_s1 + $0xb14] sm:$0xf0]  ;;  %v7730_v43 = vld [vmem:[%s15004_s1 + $0xc88] sm:$0xf]  ;;  %v7411_v54 = vor.u32 %v9583_v38, %v7410_v34 }
 0x1e7   :  { %5575 = vmatpush.bf16.msrb.mxu0 %v7491_v59  ;;  %v9623_v59 = vld [vmem:[%s15004_s1 + $0xb54] sm:$0xf0]  ;;  %v7858_v49 = vld [vmem:[%s15004_s1 + $0xd88] sm:$0xf] }
 0x1e8   :  { %5588 = vmatpush.bf16.msrb.mxu1 %v7619_v63  ;;  %v7890_v63 = vld [vmem:[%s15004_s1 + $0xdc8] sm:$0xf]  ;;  %v7571_v5 = vor.u32 %v9623_v59, %v7570_v57  ;;  %v9771_v57 = vld [vmem:[%s15004_s1 + $0xff4] sm:$0xf0] }
 0x1e9   :  { %5553 = vmatpush.bf16.msra.mxu2 %v7171_v11  ;;  %v7554_v11 = vld [vmem:[%s15004_s1 + $0xb28] sm:$0xf]  ;;  %v7891_v14 = vor.u32 %v9703_v3, %v7890_v63  ;;  %v9659_v55 = vld [vmem:[%s15004_s1 + $0xc74] sm:$0xf0] }
 0x1ea   :  { %5566 = vmatpush.bf16.msra.mxu3 %v7299_v15  ;;  %v9619_v15 = vld [vmem:[%s15004_s1 + $0xb34] sm:$0xf0]  ;;  %v8162_v46 = vld [vmem:[%s15004_s1 + $0xfe8] sm:$0xf] }
 0x1eb   :  { %5576 = vmatpush.bf16.msrb.mxu0 %v7475_v44  ;;  %v7746_v44 = vld [vmem:[%s15004_s1 + $0xca8] sm:$0xf]  ;;  %v8163_v3 = vor.u32 %v9771_v57, %v8162_v46  ;;  %v9767_v10 = vld [vmem:[%s15004_s1 + $0xfd4] sm:$0xf0] }
 0x1ec   :  { %5589 = vmatpush.bf16.msrb.mxu1 %v7603_v35  ;;  %v7555_v35 = vor.u32 %v9619_v15, %v7554_v11  ;;  %v7747_v36 = vor.u32 %v9667_v19, %v7746_v44  ;;  %v5335_v56 = vpop.f32.mrf.mxu1  ;;  %v7842_v63 = vld [vmem:[%s15004_s1 + $0xd68] sm:$0xf]  ;;  %v9655_v24 = vld [vmem:[%s15004_s1 + $0xc54] sm:$0xf0] }
 0x1ed   :  { %5554 = vmatpush.bf16.msra.mxu2 %v7155_v47  ;;  %v9663_v47 = vld [vmem:[%s15004_s1 + $0xc94] sm:$0xf0]  ;;  %v8146_v8 = vld [vmem:[%s15004_s1 + $0xfc8] sm:$0xf] }
 0x1ee   :  { %5567 = vmatpush.bf16.msra.mxu3 %v7283_v50  ;;  %v9695_v50 = vld [vmem:[%s15004_s1 + $0xd94] sm:$0xf0]  ;;  %v7731_v59 = vor.u32 %v9663_v47, %v7730_v43  ;;  %v7698_v23 = vld [vmem:[%s15004_s1 + $0xc48] sm:$0xf] }
 0x1ef   :  { %5577 = vmatpush.bf16.msrb.mxu0 %v7459_v51  ;;  %v8034_v51 = vld [vmem:[%s15004_s1 + $0xee8] sm:$0xf]  ;;  %v7859_v60 = vor.u32 %v9695_v50, %v7858_v49  ;;  %v9763_v43 = vld [vmem:[%s15004_s1 + $0xfb4] sm:$0xf0]  ;;  %v7699_v49 = vor.u32 %v9655_v24, %v7698_v23 }
 0x1f0   :  { %5590 = vmatpush.bf16.msrb.mxu1 %v7587_v52  ;;  %5555 = vmatmul.bf16.vlgmr.msra.gmra.mxu2 %v10706_v7  ;;  %v9739_v52 = vld [vmem:[%s15004_s1 + $0xef4] sm:$0xf0]  ;;  %v8002_v38 = vld [vmem:[%s15004_s1 + $0xea8] sm:$0xf] }
 0x1f1   :  { %5599 = vmatpush.bf16.msrb.mxu2 %v7779_v53  ;;  %5568 = vmatmul.bf16.vlgmr.msra.gmra.mxu3 %v10719_v13  ;;  %v5336_v53 = vadd.f32 %v5335_v56, %v13088_v48  ;;  %v8035_v62 = vor.u32 %v9739_v52, %v8034_v51  ;;  %v7714_v48 = vld [vmem:[%s15004_s1 + $0xc68] sm:$0xf]  ;;  %v9651_v52 = vld [vmem:[%s15004_s1 + $0xc34] sm:$0xf0] }
 0x1f2   :  { %5612 = vmatpush.bf16.msrb.mxu3 %v7907_v58  ;;  %v7539_v58 = vor.u32 %v9615_v29, %v7538_v39  ;;  %v7715_v11 = vor.u32 %v9659_v55, %v7714_v48  ;;  %v9731_v39 = vld [vmem:[%s15004_s1 + $0xeb4] sm:$0xf0]  ;;  %v7682_v51 = vld [vmem:[%s15004_s1 + $0xc28] sm:$0xf] }
 0x1f3   :  { %5578 = vmatpush.bf16.msrb.mxu0 %v7443_v4  ;;  %v9691_v4 = vld [vmem:[%s15004_s1 + $0xd74] sm:$0xf0]  ;;  %v5348_v15 = vpop.f32.mrf.mxu2  ;;  %v8003_v50 = vor.u32 %v9731_v39, %v8002_v38  ;;  %v7986_v57 = vld [vmem:[%s15004_s1 + $0xe88] sm:$0xf]  ;;  %v7683_v55 = vor.u32 %v9651_v52, %v7682_v51 }
 0x1f4   :  { %5591 = vmatpush.bf16.msrb.mxu1 %v7571_v5  ;;  %v8018_v5 = vld [vmem:[%s15004_s1 + $0xec8] sm:$0xf]  ;;  %v5361_v19 = vpop.f32.mrf.mxu3  ;;  %v5349_v34 = vadd.f32 %v5348_v15, %v5336_v53  ;;  %v5337_v29 = vpop.f32.mrf.mxu1  ;;  %v9683_v46 = vld [vmem:[%s15004_s1 + $0xd34] sm:$0xf0] }
 0x1f5   :  { %5600 = vmatpush.bf16.msrb.mxu2 %v7763_v6  ;;  %v9735_v6 = vld [vmem:[%s15004_s1 + $0xed4] sm:$0xf0]  ;;  %v7810_v53 = vld [vmem:[%s15004_s1 + $0xd28] sm:$0xf] }
 0x1f6   :  { %5613 = vmatpush.bf16.msrb.mxu3 %v7891_v14  ;;  %v7843_v14 = vor.u32 %v9691_v4, %v7842_v63  ;;  %v8019_v44 = vor.u32 %v9735_v6, %v8018_v5  ;;  %v5362_v47 = vadd.f32 %v5361_v19, %v5349_v34  ;;  %v7666_v63 = vld [vmem:[%s15004_s1 + $0xc08] sm:$0xf]  ;;  %v9647_v5 = vld [vmem:[%s15004_s1 + $0xc14] sm:$0xf0] }
 0x1f7   :  { %5579 = vmatpush.bf16.msrb.mxu0 %v7427_v30  ;;  %v7826_v30 = vld [vmem:[%s15004_s1 + $0xd48] sm:$0xf]  ;;  %v9755_v23 = vld [vmem:[%s15004_s1 + $0xf74] sm:$0xf0]  ;;  %v7667_v34 = vor.u32 %v9647_v5, %v7666_v63 }
 0x1f8   :  { %5592 = vmatpush.bf16.msrb.mxu1 %v7555_v35  ;;  %v8147_v35 = vor.u32 %v9767_v10, %v8146_v8  ;;  %v7794_v6 = vld [vmem:[%s15004_s1 + $0xd08] sm:$0xf]  ;;  %v9679_v8 = vld [vmem:[%s15004_s1 + $0xd14] sm:$0xf0] }
 0x1f9   :  { %5601 = vmatpush.bf16.msrb.mxu2 %v7747_v36  ;;  %v9687_v36 = vld [vmem:[%s15004_s1 + $0xd54] sm:$0xf0]  ;;  %v7970_v15 = vld [vmem:[%s15004_s1 + $0xe68] sm:$0xf]  ;;  %v7795_v38 = vor.u32 %v9679_v8, %v7794_v6 }
 0x1fa   :  { %5614 = vmatpush.bf16.msrb.mxu3 %v7875_v45  ;;  %v8130_v45 = vld [vmem:[%s15004_s1 + $0xfa8] sm:$0xf]  ;;  %v7827_v56 = vor.u32 %v9687_v36, %v7826_v30  ;;  %v9803_v30 = vld [vmem:[%s15004_s1 + $0x10f4] sm:$0xf0] }
 0x1fb   :  { %5580 = vmatpush.bf16.msrb.mxu0 %v7411_v54  ;;  %v8131_v54 = vor.u32 %v9763_v43, %v8130_v45  ;;  %v5350_v10 = vpop.f32.mrf.mxu2  ;;  %v8098_v19 = vld [vmem:[%s15004_s1 + $0xf68] sm:$0xf]  ;;  %v9835_v36 = vld [vmem:[%s15004_s1 + $0x11f4] sm:$0xf0] }
 0x1fc   :  { %5593 = vmatpush.bf16.msrb.mxu1 %v7539_v58  ;;  %v9727_v58 = vld [vmem:[%s15004_s1 + $0xe94] sm:$0xf0]  ;;  %v8290_v24 = vld [vmem:[%s15004_s1 + $0x10e8] sm:$0xf]  ;;  %v8099_v29 = vor.u32 %v9755_v23, %v8098_v19 }
 0x1fd   :  { %5602 = vmatpush.bf16.msrb.mxu2 %v7731_v59  ;;  %v5374_v59 = vpop.f32.mrf.mxu0  ;;  %v7987_v4 = vor.u32 %v9727_v58, %v7986_v57  ;;  %v8291_v45 = vor.u32 %v9803_v30, %v8290_v24  ;;  %v7954_v43 = vld [vmem:[%s15004_s1 + $0xe48] sm:$0xf]  ;;  %v9799_v52 = vld [vmem:[%s15004_s1 + $0x10d4] sm:$0xf0] }
 0x1fe   :  { %5615 = vmatpush.bf16.msrb.mxu3 %v7859_v60  ;;  %5581 = vmatmul.bf16.vlgmr.msrb.gmra.mxu0 %v10717_v12  ;;  %v8114_v60 = vld [vmem:[%s15004_s1 + $0xf88] sm:$0xf]  ;;  %v13287_v48 = vadd.f32 %v5374_v59, %v5362_v47  ;;  %v9719_v47 = vld [vmem:[%s15004_s1 + $0xe54] sm:$0xf0] }
 0x1ff   :  { %5625 = vmatpush.bf16.msra.mxu0 %v8035_v62  ;;  %5594 = vmatmul.bf16.vlgmr.msrb.gmra.mxu1 %v10730_v17  ;;  %v9759_v62 = vld [vmem:[%s15004_s1 + $0xf94] sm:$0xf0]  ;;  %v8274_v51 = vld [vmem:[%s15004_s1 + $0x10c8] sm:$0xf]  ;;  %v7955_v57 = vor.u32 %v9719_v47, %v7954_v43 }
 0x200   :  { %5638 = vmatpush.bf16.msra.mxu1 %v8163_v3  ;;  %v7811_v3 = vor.u32 %v9683_v46, %v7810_v53  ;;  %v9831_v46 = vld [vmem:[%s15004_s1 + $0x11d4] sm:$0xf0]  ;;  %v8275_v59 = vor.u32 %v9799_v52, %v8274_v51  ;;  %v8386_v6 = vld [vmem:[%s15004_s1 + $0x11a8] sm:$0xf] }
 0x201   :  { %5603 = vmatpush.bf16.msrb.mxu2 %v7715_v11  ;;  %v5363_v11 = vpop.f32.mrf.mxu3  ;;  %v9795_v5 = vld [vmem:[%s15004_s1 + $0x10b4] sm:$0xf0]  ;;  %v8050_v19 = vld [vmem:[%s15004_s1 + $0xf08] sm:$0xf] }
 0x202   :  { %5616 = vmatpush.bf16.msrb.mxu3 %v7843_v14  ;;  %v8115_v14 = vor.u32 %v9759_v62, %v8114_v60  ;;  %v7938_v60 = vld [vmem:[%s15004_s1 + $0xe28] sm:$0xf]  ;;  %v9715_v62 = vld [vmem:[%s15004_s1 + $0xe34] sm:$0xf0] }
 0x203   :  { %5626 = vmatpush.bf16.msra.mxu0 %v8019_v44  ;;  %v9723_v44 = vld [vmem:[%s15004_s1 + $0xe74] sm:$0xf0]  ;;  %v7939_v10 = vor.u32 %v9715_v62, %v7938_v60  ;;  %v7922_v11 = vld [vmem:[%s15004_s1 + $0xe08] sm:$0xf] }
 0x204   :  { %5639 = vmatpush.bf16.msra.mxu1 %v8147_v35  ;;  %v8418_v35 = vld [vmem:[%s15004_s1 + $0x11e8] sm:$0xf]  ;;  %v7971_v39 = vor.u32 %v9723_v44, %v7970_v15  ;;  %v9827_v8 = vld [vmem:[%s15004_s1 + $0x11b4] sm:$0xf0] }
 0x205   :  { %5604 = vmatpush.bf16.msrb.mxu2 %v7699_v49  ;;  %v8082_v49 = vld [vmem:[%s15004_s1 + $0xf48] sm:$0xf]  ;;  %v5376_v53 = vpop.f32.mrf.mxu0  ;;  %v9711_v44 = vld [vmem:[%s15004_s1 + $0xe14] sm:$0xf0]  ;;  %v8387_v24 = vor.u32 %v9827_v8, %v8386_v6 }
 0x206   :  { %5617 = vmatpush.bf16.msrb.mxu3 %v7827_v56  ;;  %v8419_v56 = vor.u32 %v9835_v36, %v8418_v35  ;;  %v9743_v23 = vld [vmem:[%s15004_s1 + $0xf14] sm:$0xf0]  ;;  %v8242_v30 = vld [vmem:[%s15004_s1 + $0x1088] sm:$0xf]  ;;  %v7923_v43 = vor.u32 %v9711_v44, %v7922_v11 }
 0x207   :  { %5627 = vmatpush.bf16.msra.mxu0 %v8003_v50  ;;  %v9751_v50 = vld [vmem:[%s15004_s1 + $0xf54] sm:$0xf0]  ;;  %v8370_v35 = vld [vmem:[%s15004_s1 + $0x1188] sm:$0xf] }
 0x208   :  { %5640 = vmatpush.bf16.msra.mxu1 %v8131_v54  ;;  %v8402_v54 = vld [vmem:[%s15004_s1 + $0x11c8] sm:$0xf]  ;;  %v8083_v58 = vor.u32 %v9751_v50, %v8082_v49  ;;  %v9899_v49 = vld [vmem:[%s15004_s1 + $0x13f4] sm:$0xf0] }
 0x209   :  { %5605 = vmatpush.bf16.msrb.mxu2 %v7683_v55  ;;  %v8066_v55 = vld [vmem:[%s15004_s1 + $0xf28] sm:$0xf]  ;;  %v8403_v63 = vor.u32 %v9831_v46, %v8402_v54  ;;  %v9787_v53 = vld [vmem:[%s15004_s1 + $0x1074] sm:$0xf0] }
 0x20a   :  { %5618 = vmatpush.bf16.msrb.mxu3 %v7811_v3  ;;  %v9747_v3 = vld [vmem:[%s15004_s1 + $0xf34] sm:$0xf0]  ;;  %v8674_v47 = vld [vmem:[%s15004_s1 + $0x13e8] sm:$0xf] }
 0x20b   :  { %5628 = vmatpush.bf16.msra.mxu0 %v7987_v4  ;;  %v8258_v4 = vld [vmem:[%s15004_s1 + $0x10a8] sm:$0xf]  ;;  %v8675_v46 = vor.u32 %v9899_v49, %v8674_v47  ;;  %v9895_v62 = vld [vmem:[%s15004_s1 + $0x13d4] sm:$0xf0] }
 0x20c   :  { %5641 = vmatpush.bf16.msra.mxu1 %v8115_v14  ;;  %v8067_v14 = vor.u32 %v9747_v3, %v8066_v55  ;;  %v8259_v15 = vor.u32 %v9795_v5, %v8258_v4  ;;  %v5387_v36 = vpop.f32.mrf.mxu1  ;;  %v8354_v54 = vld [vmem:[%s15004_s1 + $0x1168] sm:$0xf]  ;;  %v9783_v8 = vld [vmem:[%s15004_s1 + $0x1054] sm:$0xf0] }
 0x20d   :  { %5606 = vmatpush.bf16.msrb.mxu2 %v7667_v34  ;;  %v9791_v34 = vld [vmem:[%s15004_s1 + $0x1094] sm:$0xf0]  ;;  %v8658_v60 = vld [vmem:[%s15004_s1 + $0x13c8] sm:$0xf] }
 0x20e   :  { %5619 = vmatpush.bf16.msrb.mxu3 %v7795_v38  ;;  %v9823_v38 = vld [vmem:[%s15004_s1 + $0x1194] sm:$0xf0]  ;;  %v8243_v50 = vor.u32 %v9791_v34, %v8242_v30  ;;  %v8210_v6 = vld [vmem:[%s15004_s1 + $0x1048] sm:$0xf] }
 0x20f   :  { %5629 = vmatpush.bf16.msra.mxu0 %v7971_v39  ;;  %v8546_v39 = vld [vmem:[%s15004_s1 + $0x12e8] sm:$0xf]  ;;  %v8371_v51 = vor.u32 %v9823_v38, %v8370_v35  ;;  %v9815_v44 = vld [vmem:[%s15004_s1 + $0x1154] sm:$0xf0]  ;;  %v8211_v35 = vor.u32 %v9783_v8, %v8210_v6 }
 0x210   :  { %5642 = vmatpush.bf16.msra.mxu1 %v8099_v29  ;;  %5607 = vmatmul.bf16.vlgmr.msrb.gmra.mxu2 %v10747_v28  ;;  %v9867_v29 = vld [vmem:[%s15004_s1 + $0x12f4] sm:$0xf0]  ;;  %v8498_v49 = vld [vmem:[%s15004_s1 + $0x1288] sm:$0xf] }
 0x211   :  { %5651 = vmatpush.bf16.msra.mxu2 %v8291_v45  ;;  %5620 = vmatmul.bf16.vlgmr.msrb.gmra.mxu3 %v10751_v32  ;;  %v5388_v45 = vadd.f32 %v5387_v36, %v13287_v48  ;;  %v8547_v52 = vor.u32 %v9867_v29, %v8546_v39  ;;  %v8226_v48 = vld [vmem:[%s15004_s1 + $0x1068] sm:$0xf]  ;;  %v9891_v30 = vld [vmem:[%s15004_s1 + $0x13b4] sm:$0xf0] }
 0x212   :  { %5664 = vmatpush.bf16.msra.mxu3 %v8419_v56  ;;  %v8051_v56 = vor.u32 %v9743_v23, %v8050_v19  ;;  %v8227_v55 = vor.u32 %v9787_v53, %v8226_v48  ;;  %v8514_v19 = vld [vmem:[%s15004_s1 + $0x12a8] sm:$0xf]  ;;  %v9859_v23 = vld [vmem:[%s15004_s1 + $0x12b4] sm:$0xf0] }
 0x213   :  { %5630 = vmatpush.bf16.msra.mxu0 %v7955_v57  ;;  %v9819_v57 = vld [vmem:[%s15004_s1 + $0x1174] sm:$0xf0]  ;;  %v5400_v3 = vpop.f32.mrf.mxu2  ;;  %v8515_v38 = vor.u32 %v9859_v23, %v8514_v19  ;;  %v8194_v39 = vld [vmem:[%s15004_s1 + $0x1028] sm:$0xf] }
 0x214   :  { %5643 = vmatpush.bf16.msra.mxu1 %v8083_v58  ;;  %v8530_v58 = vld [vmem:[%s15004_s1 + $0x12c8] sm:$0xf]  ;;  %v5413_v5 = vpop.f32.mrf.mxu3  ;;  %v5401_v11 = vadd.f32 %v5400_v3, %v5388_v45  ;;  %v9779_v29 = vld [vmem:[%s15004_s1 + $0x1034] sm:$0xf0] }
 0x215   :  { %5652 = vmatpush.bf16.msra.mxu2 %v8275_v59  ;;  %v9863_v59 = vld [vmem:[%s15004_s1 + $0x12d4] sm:$0xf0]  ;;  %v8322_v45 = vld [vmem:[%s15004_s1 + $0x1128] sm:$0xf]  ;;  %v8195_v53 = vor.u32 %v9779_v29, %v8194_v39  ;;  %v6093_v29 = vmax.f32 %v12319_v27, 0.0 }
 0x216   :  { %5665 = vmatpush.bf16.msra.mxu3 %v8403_v63  ;;  %v8355_v63 = vor.u32 %v9819_v57, %v8354_v54  ;;  %v8531_v4 = vor.u32 %v9863_v59, %v8530_v58  ;;  %v5414_v34 = vadd.f32 %v5413_v5, %v5401_v11  ;;  %v9811_v47 = vld [vmem:[%s15004_s1 + $0x1134] sm:$0xf0]  ;;  %v8178_v54 = vld [vmem:[%s15004_s1 + $0x1008] sm:$0xf] }
 0x217   :  { %5631 = vmatpush.bf16.msra.mxu0 %v7939_v10  ;;  %v8338_v10 = vld [vmem:[%s15004_s1 + $0x1148] sm:$0xf]  ;;  %v9775_v58 = vld [vmem:[%s15004_s1 + $0x1014] sm:$0xf0] }
 0x218   :  { %5644 = vmatpush.bf16.msra.mxu1 %v8067_v14  ;;  %v8659_v14 = vor.u32 %v9895_v62, %v8658_v60  ;;  %v8339_v36 = vor.u32 %v9815_v44, %v8338_v10  ;;  %v8306_v59 = vld [vmem:[%s15004_s1 + $0x1108] sm:$0xf]  ;;  %v9807_v60 = vld [vmem:[%s15004_s1 + $0x1114] sm:$0xf0] }
 0x219   :  { %5653 = vmatpush.bf16.msra.mxu2 %v8259_v15  ;;  %v5389_v15 = vpop.f32.mrf.mxu1  ;;  %v8482_v3 = vld [vmem:[%s15004_s1 + $0x1268] sm:$0xf]  ;;  %v9883_v6 = vld [vmem:[%s15004_s1 + $0x1374] sm:$0xf0]  ;;  %v8307_v23 = vor.u32 %v9807_v60, %v8306_v59 }
 0x21a   :  { %5666 = vmatpush.bf16.msra.mxu3 %v8387_v24  ;;  %v8642_v24 = vld [vmem:[%s15004_s1 + $0x13a8] sm:$0xf]  ;;  %v9931_v10 = vld [vmem:[%s15004_s1 + $0x14f4] sm:$0xf0] }
 0x21b   :  { %5632 = vmatpush.bf16.msra.mxu0 %v7923_v43  ;;  %v8643_v43 = vor.u32 %v9891_v30, %v8642_v24  ;;  %v8610_v5 = vld [vmem:[%s15004_s1 + $0x1368] sm:$0xf]  ;;  %v9963_v44 = vld [vmem:[%s15004_s1 + $0x15f4] sm:$0xf0] }
 0x21c   :  { %5645 = vmatpush.bf16.msra.mxu1 %v8051_v56  ;;  %v9855_v56 = vld [vmem:[%s15004_s1 + $0x1294] sm:$0xf0]  ;;  %v5415_v62 = vpop.f32.mrf.mxu3  ;;  %v8802_v8 = vld [vmem:[%s15004_s1 + $0x14e8] sm:$0xf] }
 0x21d   :  { %5654 = vmatpush.bf16.msra.mxu2 %v8243_v50  ;;  %v5426_v50 = vpop.f32.mrf.mxu0  ;;  %v8499_v57 = vor.u32 %v9855_v56, %v8498_v49  ;;  %v8930_v15 = vld [vmem:[%s15004_s1 + $0x15e8] sm:$0xf]  ;;  %v9879_v39 = vld [vmem:[%s15004_s1 + $0x1354] sm:$0xf0] }
 0x21e   :  { %5667 = vmatpush.bf16.msra.mxu3 %v8371_v51  ;;  %5633 = vmatmul.bf16.vlgmr.msra.gmra.mxu0 %v10749_v31  ;;  %v8626_v51 = vld [vmem:[%s15004_s1 + $0x1388] sm:$0xf]  ;;  %v5427_v48 = vadd.f32 %v5426_v50, %v5414_v34  ;;  %v8611_v34 = vor.u32 %v9883_v6, %v8610_v5  ;;  %v9927_v49 = vld [vmem:[%s15004_s1 + $0x14d4] sm:$0xf0] }
 0x21f   :  { %5677 = vmatpush.bf16.msrb.mxu0 %v8547_v52  ;;  %5646 = vmatmul.bf16.vlgmr.msra.gmra.mxu1 %v10753_v33  ;;  %v9887_v52 = vld [vmem:[%s15004_s1 + $0x1394] sm:$0xf0]  ;;  %v8466_v30 = vld [vmem:[%s15004_s1 + $0x1248] sm:$0xf] }
 0x220   :  { %5690 = vmatpush.bf16.msrb.mxu1 %v8675_v46  ;;  %v8323_v46 = vor.u32 %v9811_v47, %v8322_v45  ;;  %v8786_v47 = vld [vmem:[%s15004_s1 + $0x14c8] sm:$0xf]  ;;  %v9959_v27 = vld [vmem:[%s15004_s1 + $0x15d4] sm:$0xf0] }
 0x221   :  { %5655 = vmatpush.bf16.msra.mxu2 %v8227_v55  ;;  %v5402_v55 = vpop.f32.mrf.mxu2  ;;  %v5439_v11 = vpop.f32.mrf.mxu1  ;;  %v8914_v50 = vld [vmem:[%s15004_s1 + $0x15c8] sm:$0xf]  ;;  %v9875_v59 = vld [vmem:[%s15004_s1 + $0x1334] sm:$0xf0] }
 0x222   :  { %5668 = vmatpush.bf16.msra.mxu3 %v8355_v63  ;;  %v8627_v63 = vor.u32 %v9887_v52, %v8626_v51  ;;  %v5440_v19 = vadd.f32 %v5439_v11, %v5427_v48  ;;  %v8770_v60 = vld [vmem:[%s15004_s1 + $0x14a8] sm:$0xf]  ;;  %v9923_v62 = vld [vmem:[%s15004_s1 + $0x14b4] sm:$0xf0] }
 0x223   :  { %5678 = vmatpush.bf16.msrb.mxu0 %v8531_v4  ;;  %v9851_v4 = vld [vmem:[%s15004_s1 + $0x1274] sm:$0xf0]  ;;  %v8898_v55 = vld [vmem:[%s15004_s1 + $0x15a8] sm:$0xf] }
 0x224   :  { %5691 = vmatpush.bf16.msrb.mxu1 %v8659_v14  ;;  %v8179_v14 = vor.u32 %v9775_v58, %v8178_v54  ;;  %v8483_v24 = vor.u32 %v9851_v4, %v8482_v3  ;;  %v6094_v45 = vmax.f32 %v5440_v19, 0.0  ;;  %v8450_v54 = vld [vmem:[%s15004_s1 + $0x1228] sm:$0xf]  ;;  %v8915_v58 = vor.u32 %v9959_v27, %v8914_v50  ;;  %v9919_v19 = vld [vmem:[%s15004_s1 + $0x1494] sm:$0xf0] }
 0x225   :  { %5656 = vmatpush.bf16.msra.mxu2 %v8211_v35  ;;  %v8803_v35 = vor.u32 %v9931_v10, %v8802_v8  ;;  %v5428_v56 = vpop.f32.mrf.mxu0  ;;  %v8434_v5 = vld [vmem:[%s15004_s1 + $0x1208] sm:$0xf]  ;;  %v8771_v8 = vor.u32 %v9923_v62, %v8770_v60  ;;  %v9839_v10 = vld [vmem:[%s15004_s1 + $0x1214] sm:$0xf0]  ;;  %v10046_v50 = vld [vmem:[%s15006_s2] sm:$0xf] }
 0x226   :  { %5669 = vmatpush.bf16.msra.mxu3 %v8339_v36  ;;  %v9847_v36 = vld [vmem:[%s15004_s1 + $0x1254] sm:$0xf0]  ;;  %v13547_v51 = vpack.c.bf16 %v6094_v45, %v6093_v29  ;;  %v8562_v11 = vld [vmem:[%s15004_s1 + $0x1308] sm:$0xf]  ;;  %v807_v27 = vperm.slane %v10046_v50, 2 }
 0x227   :  { %5679 = vmatpush.bf16.msrb.mxu0 %v8515_v38  ;;  %v8594_v38 = vld [vmem:[%s15004_s1 + $0x1348] sm:$0xf]  ;;  %v8467_v52 = vor.u32 %v9847_v36, %v8466_v30 }
 0x228   :  { %5692 = vmatpush.bf16.msrb.mxu1 %v8643_v43  ;;  %v8931_v43 = vor.u32 %v9963_v44, %v8930_v15  ;;  %v8595_v48 = vor.u32 %v9879_v39, %v8594_v38  ;;  %v8754_v44 = vld [vmem:[%s15004_s1 + $0x1488] sm:$0xf]  ;;  %v10027_v38 = vld [vmem:[%s15004_s1 + $0x17f4] sm:$0xf0] }
 0x229   :  { %5657 = vmatpush.bf16.msra.mxu2 %v8195_v53  ;;  %v8787_v53 = vor.u32 %v9927_v49, %v8786_v47  ;;  %v5441_v3 = vpop.f32.mrf.mxu1  ;;  %v9058_v30 = vld [vmem:[%s15004_s1 + $0x16e8] sm:$0xf]  ;;  %v8755_v29 = vor.u32 %v9919_v19, %v8754_v44  ;;  %v9915_v49 = vld [vmem:[%s15004_s1 + $0x1474] sm:$0xf0] }
 0x22a   :  { %5670 = vmatpush.bf16.msra.mxu3 %v8323_v46  ;;  %v9843_v46 = vld [vmem:[%s15004_s1 + $0x1234] sm:$0xf0]  ;;  %v9186_v36 = vld [vmem:[%s15004_s1 + $0x17e8] sm:$0xf] }
 0x22b   :  { %5680 = vmatpush.bf16.msrb.mxu0 %v8499_v57  ;;  %v8578_v57 = vld [vmem:[%s15004_s1 + $0x1328] sm:$0xf]  ;;  %v8451_v4 = vor.u32 %v9843_v46, %v8450_v54  ;;  %v9991_v54 = vld [vmem:[%s15004_s1 + $0x16d4] sm:$0xf0] }
 0x22c   :  { %5693 = vmatpush.bf16.msrb.mxu1 %v8627_v63  ;;  %v9955_v63 = vld [vmem:[%s15004_s1 + $0x15b4] sm:$0xf0]  ;;  %v8579_v6 = vor.u32 %v9875_v59, %v8578_v57  ;;  %v8738_v45 = vld [vmem:[%s15004_s1 + $0x1468] sm:$0xf] }
 0x22d   :  { %5658 = vmatpush.bf16.msra.mxu2 %v8179_v14  ;;  %v9871_v14 = vld [vmem:[%s15004_s1 + $0x1314] sm:$0xf0]  ;;  %v8899_v15 = vor.u32 %v9955_v63, %v8898_v55  ;;  %v8866_v56 = vld [vmem:[%s15004_s1 + $0x1568] sm:$0xf] }
 0x22e   :  { %5671 = vmatpush.bf16.msra.mxu3 %v8307_v23  ;;  %v8882_v23 = vld [vmem:[%s15004_s1 + $0x1588] sm:$0xf]  ;;  %v8563_v39 = vor.u32 %v9871_v14, %v8562_v11  ;;  %v10023_v57 = vld [vmem:[%s15004_s1 + $0x17d4] sm:$0xf0] }
 0x22f   :  { %5681 = vmatpush.bf16.msrb.mxu0 %v8483_v24  ;;  %v9951_v24 = vld [vmem:[%s15004_s1 + $0x1594] sm:$0xf0]  ;;  %v9170_v46 = vld [vmem:[%s15004_s1 + $0x17c8] sm:$0xf] }
 0x230   :  { %5694 = vmatpush.bf16.msrb.mxu1 %v8611_v34  ;;  %5659 = vmatmul.bf16.vlgmr.msra.gmra.mxu2 %v11117_v9  ;;  %v9995_v34 = vld [vmem:[%s15004_s1 + $0x16f4] sm:$0xf0]  ;;  %v8722_v55 = vld [vmem:[%s15004_s1 + $0x1448] sm:$0xf] }
 0x231   :  { %5703 = vmatpush.bf16.msrb.mxu2 %v8803_v35  ;;  %5672 = vmatmul.bf16.vlgmr.msra.gmra.mxu3 %v11130_v18  ;;  %v8435_v35 = vor.u32 %v9839_v10, %v8434_v5  ;;  %v9059_v47 = vor.u32 %v9995_v34, %v9058_v30  ;;  %v9911_v63 = vld [vmem:[%s15004_s1 + $0x1454] sm:$0xf0]  ;;  %v8850_v3 = vld [vmem:[%s15004_s1 + $0x1548] sm:$0xf] }
 0x232   :  { %5716 = vmatpush.bf16.msrb.mxu3 %v8931_v43  ;;  %v8883_v43 = vor.u32 %v9951_v24, %v8882_v23  ;;  %v9026_v10 = vld [vmem:[%s15004_s1 + $0x16a8] sm:$0xf]  ;;  %v9987_v11 = vld [vmem:[%s15004_s1 + $0x16b4] sm:$0xf0]  ;;  %v8723_v19 = vor.u32 %v9911_v63, %v8722_v55 }
 0x233   :  { %5682 = vmatpush.bf16.msrb.mxu0 %v8467_v52  ;;  %v9187_v52 = vor.u32 %v10027_v38, %v9186_v36  ;;  %v5452_v59 = vpop.f32.mrf.mxu2  ;;  %v9154_v14 = vld [vmem:[%s15004_s1 + $0x17a8] sm:$0xf]  ;;  %v9027_v24 = vor.u32 %v9987_v11, %v9026_v10  ;;  %v9907_v34 = vld [vmem:[%s15004_s1 + $0x1434] sm:$0xf0]  ;;  %v6244_v10 = vld [vmem:[%s15004_s1 + $0xf8] sm:$0xf0] }
 0x234   :  { %5695 = vmatpush.bf16.msrb.mxu1 %v8595_v48  ;;  %v9947_v48 = vld [vmem:[%s15004_s1 + $0x1574] sm:$0xf0]  ;;  %v5465_v5 = vpop.f32.mrf.mxu3  ;;  %v8706_v30 = vld [vmem:[%s15004_s1 + $0x1428] sm:$0xf] }
 0x235   :  { %5704 = vmatpush.bf16.msrb.mxu2 %v8787_v53  ;;  %v9042_v53 = vld [vmem:[%s15004_s1 + $0x16c8] sm:$0xf]  ;;  %v8867_v60 = vor.u32 %v9947_v48, %v8866_v56  ;;  %v9939_v38 = vld [vmem:[%s15004_s1 + $0x1534] sm:$0xf0] }
 0x236   :  { %5717 = vmatpush.bf16.msrb.mxu3 %v8915_v58  ;;  %v8739_v58 = vor.u32 %v9915_v49, %v8738_v45  ;;  %v9043_v62 = vor.u32 %v9991_v54, %v9042_v53  ;;  %v9138_v45 = vld [vmem:[%s15004_s1 + $0x1788] sm:$0xf]  ;;  %v8707_v49 = vor.u32 %v9907_v34, %v8706_v30  ;;  %v9903_v54 = vld [vmem:[%s15004_s1 + $0x1414] sm:$0xf0] }
 0x237   :  { %5683 = vmatpush.bf16.msrb.mxu0 %v8451_v4  ;;  %v5453_v4 = vadd.f32 %v5452_v59, %v807_v27  ;;  %v8690_v56 = vld [vmem:[%s15004_s1 + $0x1408] sm:$0xf]  ;;  %v10007_v34 = vld [vmem:[%s15004_s1 + $0x1754] sm:$0xf0] }
 0x238   :  { %5696 = vmatpush.bf16.msrb.mxu1 %v8579_v6  ;;  %v9171_v6 = vor.u32 %v10023_v57, %v9170_v46  ;;  %v8818_v46 = vld [vmem:[%s15004_s1 + $0x1508] sm:$0xf]  ;;  %v9935_v57 = vld [vmem:[%s15004_s1 + $0x1514] sm:$0xf0] }
 0x239   :  { %5705 = vmatpush.bf16.msrb.mxu2 %v8771_v8  ;;  %v9943_v8 = vld [vmem:[%s15004_s1 + $0x1554] sm:$0xf0]  ;;  %v5466_v44 = vadd.f32 %v5465_v5, %v5453_v4  ;;  %v9122_v55 = vld [vmem:[%s15004_s1 + $0x1768] sm:$0xf]  ;;  %v8819_v11 = vor.u32 %v9935_v57, %v8818_v46  ;;  %v9281_v46 = vld [vmem:[%s15004_s1 + $0xac] sm:$0xf] }
 0x23a   :  { %5718 = vmatpush.bf16.msrb.mxu3 %v8899_v15  ;;  %v10019_v15 = vld [vmem:[%s15004_s1 + $0x17b4] sm:$0xf0]  ;;  %v8851_v23 = vor.u32 %v9943_v8, %v8850_v3  ;;  %v9250_v4 = vld [vmem:[%s15004_s1 + $0x1868] sm:$0xf]  ;;  %v9289_v8 = vld [vmem:[%s15004_s1 + $0xec] sm:$0xf] }
 0x23b   :  { %5684 = vmatpush.bf16.msrb.mxu0 %v8435_v35  ;;  %v8834_v35 = vld [vmem:[%s15004_s1 + $0x1528] sm:$0xf]  ;;  %v9155_v36 = vor.u32 %v10019_v15, %v9154_v14  ;;  %v10011_v3 = vld [vmem:[%s15004_s1 + $0x1774] sm:$0xf0]  ;;  %v6247_v30 = vor.u32 %v9289_v8, %v6244_v10  ;;  %v6212_v57 = vld [vmem:[%s15004_s1 + $0xb8] sm:$0xf0] }
 0x23c   :  { %5697 = vmatpush.bf16.msrb.mxu1 %v8563_v39  ;;  %v9010_v39 = vld [vmem:[%s15004_s1 + $0x1688] sm:$0xf]  ;;  %v5491_v27 = vpop.f32.mrf.mxu1  ;;  %v8835_v48 = vor.u32 %v9939_v38, %v8834_v35  ;;  %v10043_v5 = vld [vmem:[%s15004_s1 + $0x1874] sm:$0xf0]  ;;  %v9123_v15 = vor.u32 %v10011_v3, %v9122_v55  ;;  %v9277_v10 = vld [vmem:[%s15004_s1 + $0x8c] sm:$0xf] }
 0x23d   :  { %5706 = vmatpush.bf16.msrb.mxu2 %v8755_v29  ;;  %v9983_v29 = vld [vmem:[%s15004_s1 + $0x1694] sm:$0xf0]  ;;  %v9234_v35 = vld [vmem:[%s15004_s1 + $0x1848] sm:$0xf] }
 0x23e   :  { %5719 = vmatpush.bf16.msrb.mxu3 %v8883_v43  ;;  %5685 = vmatmul.bf16.vlgmr.msrb.gmra.mxu0 %v11128_v16  ;;  %v10015_v43 = vld [vmem:[%s15004_s1 + $0x1794] sm:$0xf0]  ;;  %v9011_v53 = vor.u32 %v9983_v29, %v9010_v39  ;;  %v9285_v39 = vld [vmem:[%s15004_s1 + $0xcc] sm:$0xf]  ;;  %v6228_v29 = vld [vmem:[%s15004_s1 + $0xd8] sm:$0xf0] }
 0x23f   :  { %5729 = vmatpush.bf16.msra.mxu0 %v9059_v47  ;;  %5698 = vmatmul.bf16.vlgmr.msrb.gmra.mxu1 %v11141_v25  ;;  %v5478_v47 = vpop.f32.mrf.mxu0  ;;  %v9139_v59 = vor.u32 %v10015_v43, %v9138_v45  ;;  %v9074_v3 = vld [vmem:[%s15004_s1 + $0x1708] sm:$0xf]  ;;  %v10031_v8 = vld [vmem:[%s15004_s1 + $0x1814] sm:$0xf0] }
 0x240   :  { %5742 = vmatpush.bf16.msra.mxu1 %v9187_v52  ;;  %v5479_v50 = vadd.f32 %v5478_v47, %v5466_v44  ;;  %v5454_v52 = vpop.f32.mrf.mxu2  ;;  %v9251_v44 = vor.u32 %v10043_v5, %v9250_v4  ;;  %v9999_v4 = vld [vmem:[%s15004_s1 + $0x1714] sm:$0xf0]  ;;  %v9202_v5 = vld [vmem:[%s15004_s1 + $0x1808] sm:$0xf] }
 0x241   :  { %5707 = vmatpush.bf16.msrb.mxu2 %v8739_v58  ;;  %v5467_v58 = vpop.f32.mrf.mxu3  ;;  %v6231_v52 = vor.u32 %v9285_v39, %v6228_v29  ;;  %v9273_v39 = vld [vmem:[%s15004_s1 + $0x6c] sm:$0xf]  ;;  %v6180_v29 = vld [vmem:[%s15004_s1 + $0x78] sm:$0xf0] }
 0x242   :  { %5720 = vmatpush.bf16.msrb.mxu3 %v8867_v60  ;;  %v8994_v60 = vld [vmem:[%s15004_s1 + $0x1668] sm:$0xf]  ;;  %v13709_v63 = vadd.f32 %v5491_v27, %v5479_v50  ;;  %v9971_v50 = vld [vmem:[%s15004_s1 + $0x1634] sm:$0xf0] }
 0x243   :  { %5730 = vmatpush.bf16.msra.mxu0 %v9043_v62  ;;  %v9979_v62 = vld [vmem:[%s15004_s1 + $0x1674] sm:$0xf0]  ;;  %v9090_v27 = vld [vmem:[%s15004_s1 + $0x1728] sm:$0xf] }
 0x244   :  { %5743 = vmatpush.bf16.msra.mxu1 %v9171_v6  ;;  %v8691_v6 = vor.u32 %v9903_v54, %v8690_v56  ;;  %v8995_v14 = vor.u32 %v9979_v62, %v8994_v60  ;;  %v5493_v45 = vpop.f32.mrf.mxu1  ;;  %v8962_v56 = vld [vmem:[%s15004_s1 + $0x1628] sm:$0xf]  ;;  %v10035_v54 = vld [vmem:[%s15004_s1 + $0x1834] sm:$0xf0] }
 0x245   :  { %5708 = vmatpush.bf16.msrb.mxu2 %v8723_v19  ;;  %v8978_v19 = vld [vmem:[%s15004_s1 + $0x1648] sm:$0xf]  ;;  %v8963_v58 = vor.u32 %v9971_v50, %v8962_v56  ;;  %v9967_v60 = vld [vmem:[%s15004_s1 + $0x1614] sm:$0xf0]  ;;  %v9349_v56 = vld [vmem:[%s15004_s1 + $0x2cc] sm:$0xf] }
 0x246   :  { %5721 = vmatpush.bf16.msrb.mxu3 %v8851_v23  ;;  %v9975_v23 = vld [vmem:[%s15004_s1 + $0x1654] sm:$0xf0]  ;;  %v6484_v50 = vld [vmem:[%s15004_s1 + $0x2d8] sm:$0xf0] }
 0x247   :  { %5731 = vmatpush.bf16.msra.mxu0 %v9027_v24  ;;  %v9106_v24 = vld [vmem:[%s15004_s1 + $0x1748] sm:$0xf]  ;;  %v5480_v38 = vpop.f32.mrf.mxu0  ;;  %v8979_v43 = vor.u32 %v9975_v23, %v8978_v19  ;;  %v6500_v23 = vld [vmem:[%s15004_s1 + $0x2f8] sm:$0xf0] }
 0x248   :  { %5744 = vmatpush.bf16.msra.mxu1 %v9155_v36  ;;  %v10039_v36 = vld [vmem:[%s15004_s1 + $0x1854] sm:$0xf0]  ;;  %v9107_v47 = vor.u32 %v10007_v34, %v9106_v24  ;;  %v9385_v24 = vld [vmem:[%s15004_s1 + $0x3ec] sm:$0xf]  ;;  %v9075_v34 = vor.u32 %v9999_v4, %v9074_v3  ;;  %v6340_v3 = vld [vmem:[%s15004_s1 + $0x1b8] sm:$0xf0] }
 0x249   :  { %5709 = vmatpush.bf16.msrb.mxu2 %v8707_v49  ;;  %v9235_v49 = vor.u32 %v10039_v36, %v9234_v35  ;;  %v9203_v35 = vor.u32 %v10031_v8, %v9202_v5  ;;  %v9345_v4 = vld [vmem:[%s15004_s1 + $0x2ac] sm:$0xf] }
 0x24a   :  { %5722 = vmatpush.bf16.msrb.mxu3 %v8835_v48  ;;  %v10003_v48 = vld [vmem:[%s15004_s1 + $0x1734] sm:$0xf0]  ;;  %v9377_v5 = vld [vmem:[%s15004_s1 + $0x3ac] sm:$0xf] }
 0x24b   :  { %5732 = vmatpush.bf16.msra.mxu0 %v9011_v53  ;;  %v9218_v53 = vld [vmem:[%s15004_s1 + $0x1828] sm:$0xf]  ;;  %v9091_v62 = vor.u32 %v10003_v48, %v9090_v27  ;;  %v9381_v27 = vld [vmem:[%s15004_s1 + $0x3cc] sm:$0xf] }
 0x24c   :  { %5745 = vmatpush.bf16.msra.mxu1 %v9139_v59  ;;  %v8946_v59 = vld [vmem:[%s15004_s1 + $0x1608] sm:$0xf]  ;;  %v9219_v55 = vor.u32 %v10035_v54, %v9218_v53  ;;  %v6183_v53 = vor.u32 %v9273_v39, %v6180_v29  ;;  %v6580_v39 = vld [vmem:[%s15004_s1 + $0x398] sm:$0xf0] }
 0x24d   :  { %5710 = vmatpush.bf16.msrb.mxu2 %v8691_v6  ;;  %v6215_v6 = vor.u32 %v9281_v46, %v6212_v57  ;;  %v8947_v19 = vor.u32 %v9967_v60, %v8946_v59  ;;  %v9269_v46 = vld [vmem:[%s15004_s1 + $0x4c] sm:$0xf]  ;;  %v6164_v57 = vld [vmem:[%s15004_s1 + $0x58] sm:$0xf0]  ;;  %v6487_v60 = vor.u32 %v9349_v56, %v6484_v50 }
 0x24e   :  { %5723 = vmatpush.bf16.msrb.mxu3 %v8819_v11  ;;  %v6196_v11 = vld [vmem:[%s15004_s1 + $0x98] sm:$0xf0]  ;;  %v9261_v56 = vld [vmem:[%s15004_s1 + $0xc] sm:$0xf] }
 0x24f   :  { %5733 = vmatpush.bf16.msra.mxu0 %v8995_v14  ;;  %v9321_v14 = vld [vmem:[%s15004_s1 + $0x1ec] sm:$0xf]  ;;  %v6199_v36 = vor.u32 %v9277_v10, %v6196_v11  ;;  %v6167_v10 = vor.u32 %v9269_v46, %v6164_v57  ;;  %v6132_v50 = vld [vmem:[%s15004_s1 + $0x18] sm:$0xf0] }
 0x250   :  { %5746 = vmatpush.bf16.msra.mxu1 %v9123_v15  ;;  %5711 = vmatmul.bf16.vlgmr.msrb.gmra.mxu2 %v11158_v37  ;;  %v6372_v15 = vld [vmem:[%s15004_s1 + $0x1f8] sm:$0xf0]  ;;  %v9337_v57 = vld [vmem:[%s15004_s1 + $0x26c] sm:$0xf] }
 0x251   :  { %5759 = vmatpush.bf16.msra.mxu2 %v9251_v44  ;;  %5724 = vmatmul.bf16.vlgmr.msrb.gmra.mxu3 %v11162_v41  ;;  %v9353_v44 = vld [vmem:[%s15004_s1 + $0x2ec] sm:$0xf]  ;;  %v6375_v38 = vor.u32 %v9321_v14, %v6372_v15  ;;  %v6148_v15 = vld [vmem:[%s15004_s1 + $0x38] sm:$0xf0] }
 0x252   :  { %5768 = vmatpush.bf16.msra.mxu3 %v6247_v30  ;;  %v6628_v30 = vld [vmem:[%s15004_s1 + $0x3f8] sm:$0xf0]  ;;  %v6503_v45 = vor.u32 %v9353_v44, %v6500_v23  ;;  %v9265_v14 = vld [vmem:[%s15004_s1 + $0x2c] sm:$0xf] }
 0x253   :  { %5734 = vmatpush.bf16.msra.mxu0 %v8979_v43  ;;  %v6631_v43 = vor.u32 %v9385_v24, %v6628_v30  ;;  %v5504_v48 = vpop.f32.mrf.mxu2  ;;  %v9309_v23 = vld [vmem:[%s15004_s1 + $0x18c] sm:$0xf]  ;;  %v6324_v24 = vld [vmem:[%s15004_s1 + $0x198] sm:$0xf0] }
 0x254   :  { %5747 = vmatpush.bf16.msra.mxu1 %v9107_v47  ;;  %v9317_v47 = vld [vmem:[%s15004_s1 + $0x1cc] sm:$0xf]  ;;  %v5517_v59 = vpop.f32.mrf.mxu3  ;;  %v6308_v46 = vld [vmem:[%s15004_s1 + $0x178] sm:$0xf0] }
 0x255   :  { %5760 = vmatpush.bf16.msra.mxu2 %v9235_v49  ;;  %v6356_v49 = vld [vmem:[%s15004_s1 + $0x1d8] sm:$0xf0]  ;;  %v9341_v30 = vld [vmem:[%s15004_s1 + $0x28c] sm:$0xf] }
 0x256   :  { %5769 = vmatpush.bf16.msra.mxu3 %v6231_v52  ;;  %v6612_v52 = vld [vmem:[%s15004_s1 + $0x3d8] sm:$0xf0]  ;;  %v6359_v54 = vor.u32 %v9317_v47, %v6356_v49  ;;  %v6151_v47 = vor.u32 %v9265_v14, %v6148_v15  ;;  %v6327_v49 = vor.u32 %v9309_v23, %v6324_v24  ;;  %v9365_v15 = vld [vmem:[%s15004_s1 + $0x34c] sm:$0xf] }
 0x257   :  { %5735 = vmatpush.bf16.msra.mxu0 %v8963_v58  ;;  %v5505_v58 = vadd.f32 %v5504_v48, %v13709_v63  ;;  %v6468_v63 = vld [vmem:[%s15004_s1 + $0x2b8] sm:$0xf0]  ;;  %v9413_v23 = vld [vmem:[%s15004_s1 + $0x4cc] sm:$0xf] }
 0x258   :  { %5748 = vmatpush.bf16.msra.mxu1 %v9091_v62  ;;  %v6615_v62 = vor.u32 %v9381_v27, %v6612_v52  ;;  %v6471_v44 = vor.u32 %v9345_v4, %v6468_v63  ;;  %v6420_v14 = vld [vmem:[%s15004_s1 + $0x258] sm:$0xf0] }
 0x259   :  { %5761 = vmatpush.bf16.msra.mxu2 %v9219_v55  ;;  %v9313_v55 = vld [vmem:[%s15004_s1 + $0x1ac] sm:$0xf]  ;;  %v5518_v8 = vadd.f32 %v5517_v59, %v5505_v58  ;;  %v6436_v58 = vld [vmem:[%s15004_s1 + $0x278] sm:$0xf0] }
 0x25a   :  { %5770 = vmatpush.bf16.msra.mxu3 %v6215_v6  ;;  %v6596_v6 = vld [vmem:[%s15004_s1 + $0x3b8] sm:$0xf0]  ;;  %v6343_v11 = vor.u32 %v9313_v55, %v6340_v3  ;;  %v9369_v59 = vld [vmem:[%s15004_s1 + $0x36c] sm:$0xf]  ;;  %v6135_v3 = vor.u32 %v9261_v56, %v6132_v50  ;;  %v6439_v63 = vor.u32 %v9337_v57, %v6436_v58 }
 0x25b   :  { %5736 = vmatpush.bf16.msra.mxu0 %v8947_v19  ;;  %v6599_v19 = vor.u32 %v9377_v5, %v6596_v6  ;;  %v6756_v55 = vld [vmem:[%s15004_s1 + $0x4f8] sm:$0xf0]  ;;  %v9301_v6 = vld [vmem:[%s15004_s1 + $0x14c] sm:$0xf] }
 0x25c   :  { %5749 = vmatpush.bf16.msra.mxu1 %v9075_v34  ;;  %v10047_v34 = vld [vmem:[#allocation1] sm:$0xff]  ;;  %v5519_v27 = vpop.f32.mrf.mxu3  ;;  %v6740_v24 = vld [vmem:[%s15004_s1 + $0x4d8] sm:$0xf0]  ;;  %v9409_v56 = vld [vmem:[%s15004_s1 + $0x4ac] sm:$0xf] }
 0x25d   :  { %5762 = vmatpush.bf16.msra.mxu2 %v9203_v35  ;;  %v5530_v35 = vpop.f32.mrf.mxu0  ;;  %v6724_v50 = vld [vmem:[%s15004_s1 + $0x4b8] sm:$0xf0]  ;;  %v9325_v57 = vld [vmem:[%s15004_s1 + $0x20c] sm:$0xf] }
 0x25e   :  { %5771 = vmatpush.bf16.msra.mxu3 %v6199_v36  ;;  %5737 = vmatmul.bf16.vlgmr.msra.gmra.mxu0 %v11160_v40  ;;  %v6452_v36 = vld [vmem:[%s15004_s1 + $0x298] sm:$0xf0]  ;;  %v5531_v29 = vadd.f32 %v5530_v35, %v5518_v8  ;;  %v9357_v58 = vld [vmem:[%s15004_s1 + $0x30c] sm:$0xf] }
 0x25f   :  { %5781 = vmatpush.bf16.msrb.mxu0 %v6375_v38  ;;  %5750 = vmatmul.bf16.vlgmr.msra.gmra.mxu1 %v11164_v42  ;;  %v9373_v38 = vld [vmem:[%s15004_s1 + $0x38c] sm:$0xf]  ;;  %v6455_v52 = vor.u32 %v9341_v30, %v6452_v36  ;;  %v6292_v8 = vld [vmem:[%s15004_s1 + $0x158] sm:$0xf0] }
 0x260   :  { %5794 = vmatpush.bf16.msrb.mxu1 %v6503_v45  ;;  %9258 = vmatmul.msk.bf16.vlgmr.msra.gmra.mxu2 %vm4790_vm0, %v10047_v34  ;;  %v5543_v45 = vpop.f32.mrf.mxu1  ;;  %v6583_v48 = vor.u32 %v9373_v38, %v6580_v39  ;;  %v6295_v34 = vor.u32 %v9301_v6, %v6292_v8  ;;  %v9297_v38 = vld [vmem:[%s15004_s1 + $0x12c] sm:$0xf]  ;;  %v6276_v39 = vld [vmem:[%s15004_s1 + $0x138] sm:$0xf0] }
 0x261   :  { %5807 = vmatpush.bf16.msrb.mxu2 %v6631_v43  ;;  %v5506_v43 = vpop.f32.mrf.mxu2  ;;  %v6279_v27 = vor.u32 %v9297_v38, %v6276_v39  ;;  %v7012_v6 = vld [vmem:[%s15004_s1 + $0x6f8] sm:$0xf0]  ;;  %v9513_v8 = vld [vmem:[%s15004_s1 + $0x7ec] sm:$0xf] }
 0x262   :  { %5772 = vmatpush.bf16.msra.mxu3 %v6183_v53  ;;  %v13900_v53 = vadd.f32 %v5543_v45, %v5531_v29  ;;  %v9329_v29 = vld [vmem:[%s15004_s1 + $0x22c] sm:$0xf]  ;;  %v6743_v45 = vor.u32 %v9413_v23, %v6740_v24  ;;  %v6404_v43 = vld [vmem:[%s15004_s1 + $0x238] sm:$0xf0] }
 0x263   :  { %5782 = vmatpush.bf16.msrb.mxu0 %v6359_v54  ;;  %v9305_v54 = vld [vmem:[%s15004_s1 + $0x16c] sm:$0xf]  ;;  %v6692_v23 = vld [vmem:[%s15004_s1 + $0x478] sm:$0xf0] }
 0x264   :  { %5795 = vmatpush.bf16.msrb.mxu1 %v6487_v60  ;;  %v6564_v60 = vld [vmem:[%s15004_s1 + $0x378] sm:$0xf0]  ;;  %v6311_v4 = vor.u32 %v9305_v54, %v6308_v46  ;;  %v6407_v54 = vor.u32 %v9329_v29, %v6404_v43  ;;  %v9509_v39 = vld [vmem:[%s15004_s1 + $0x7cc] sm:$0xf] }
 0x265   :  { %5808 = vmatpush.bf16.msrb.mxu2 %v6615_v62  ;;  %v9417_v62 = vld [vmem:[%s15004_s1 + $0x4ec] sm:$0xf]  ;;  %v6567_v5 = vor.u32 %v9369_v59, %v6564_v60  ;;  %v6727_v59 = vor.u32 %v9409_v56, %v6724_v50  ;;  %v6516_v60 = vld [vmem:[%s15004_s1 + $0x318] sm:$0xf0] }
 0x266   :  { %5773 = vmatpush.bf16.msra.mxu3 %v6167_v10  ;;  %v9333_v10 = vld [vmem:[%s15004_s1 + $0x24c] sm:$0xf]  ;;  %v6996_v38 = vld [vmem:[%s15004_s1 + $0x6d8] sm:$0xf0] }
 0x267   :  { %5783 = vmatpush.bf16.msrb.mxu0 %v6343_v11  ;;  %v6759_v11 = vor.u32 %v9417_v62, %v6756_v55  ;;  %v6423_v35 = vor.u32 %v9333_v10, %v6420_v14  ;;  %v9405_v62 = vld [vmem:[%s15004_s1 + $0x48c] sm:$0xf]  ;;  %v6708_v55 = vld [vmem:[%s15004_s1 + $0x498] sm:$0xf0]  ;;  %v6519_v14 = vor.u32 %v9357_v58, %v6516_v60 }
 0x268   :  { %5796 = vmatpush.bf16.msrb.mxu1 %v6471_v44  ;;  %v6548_v44 = vld [vmem:[%s15004_s1 + $0x358] sm:$0xf0]  ;;  %v5545_v30 = vpop.f32.mrf.mxu1  ;;  %v9397_v50 = vld [vmem:[%s15004_s1 + $0x44c] sm:$0xf] }
 0x269   :  { %5809 = vmatpush.bf16.msrb.mxu2 %v6599_v19  ;;  %v5532_v19 = vpop.f32.mrf.mxu0  ;;  %v6551_v36 = vor.u32 %v9365_v15, %v6548_v44  ;;  %v7140_v10 = vld [vmem:[%s15004_s1 + $0x7f8] sm:$0xf0]  ;;  %v6711_v15 = vor.u32 %v9405_v62, %v6708_v55  ;;  %v9505_v58 = vld [vmem:[%s15004_s1 + $0x7ac] sm:$0xf] }
 0x26a   :  { %5774 = vmatpush.bf16.msra.mxu3 %v6151_v47  ;;  %v9361_v47 = vld [vmem:[%s15004_s1 + $0x32c] sm:$0xf]  ;;  %v7143_v30 = vor.u32 %v9513_v8, %v7140_v10  ;;  %v7124_v29 = vld [vmem:[%s15004_s1 + $0x7d8] sm:$0xf0] }
 0x26b   :  { %5784 = vmatpush.bf16.msrb.mxu0 %v6327_v49  ;;  %v6532_v49 = vld [vmem:[%s15004_s1 + $0x338] sm:$0xf0]  ;;  %v9401_v19 = vld [vmem:[%s15004_s1 + $0x46c] sm:$0xf] }
 0x26c   :  { %5797 = vmatpush.bf16.msrb.mxu1 %v6455_v52  ;;  %v9293_v52 = vld [vmem:[%s15004_s1 + $0x10c] sm:$0xf]  ;;  %v6535_v46 = vor.u32 %v9361_v47, %v6532_v49  ;;  %v6695_v43 = vor.u32 %v9401_v19, %v6692_v23  ;;  %v7092_v10 = vld [vmem:[%s15004_s1 + $0x798] sm:$0xf0] }
 0x26d   :  { %5810 = vmatpush.bf16.msrb.mxu2 %v6583_v48  ;;  %v6260_v48 = vld [vmem:[%s15004_s1 + $0x118] sm:$0xf0]  ;;  %v9393_v55 = vld [vmem:[%s15004_s1 + $0x42c] sm:$0xf] }
 0x26e   :  { %5775 = vmatpush.bf16.msra.mxu3 %v6135_v3  ;;  %v9449_v3 = vld [vmem:[%s15004_s1 + $0x5ec] sm:$0xf] }
 0x26f   :  { %5785 = vmatpush.bf16.msrb.mxu0 %v6311_v4  ;;  %v6884_v4 = vld [vmem:[%s15004_s1 + $0x5f8] sm:$0xf0]  ;;  %v9501_v8 = vld [vmem:[%s15004_s1 + $0x78c] sm:$0xf] }
 0x270   :  { %5798 = vmatpush.bf16.msrb.mxu1 %v6439_v63  ;;  %v9481_v63 = vld [vmem:[%s15004_s1 + $0x6ec] sm:$0xf]  ;;  %v6887_v44 = vor.u32 %v9449_v3, %v6884_v4  ;;  %v6660_v3 = vld [vmem:[%s15004_s1 + $0x438] sm:$0xf0] }
 0x271   :  { %5811 = vmatpush.bf16.msrb.mxu2 %v6567_v5  ;;  %5776 = vmatmul.bf16.vlgmr.msra.gmra.mxu3 %v10375_v21  ;;  %v6388_v21 = vld [vmem:[%s15004_s1 + $0x218] sm:$0xf0]  ;;  %v6263_v5 = vor.u32 %v9293_v52, %v6260_v48  ;;  %v7015_v24 = vor.u32 %v9481_v63, %v7012_v6  ;;  %v7127_v48 = vor.u32 %v9509_v39, %v7124_v29  ;;  %v9469_v63 = vld [vmem:[%s15004_s1 + $0x68c] sm:$0xf] }
 0x272   :  { %5820 = vmatpush.bf16.msrb.mxu3 %v6759_v11  ;;  %v6391_v11 = vor.u32 %v9325_v57, %v6388_v21  ;;  %v6980_v21 = vld [vmem:[%s15004_s1 + $0x6b8] sm:$0xf0]  ;;  %v9389_v23 = vld [vmem:[%s15004_s1 + $0x40c] sm:$0xf] }
 0x273   :  { %5786 = vmatpush.bf16.msrb.mxu0 %v6295_v34  ;;  %v9445_v34 = vld [vmem:[%s15004_s1 + $0x5cc] sm:$0xf]  ;;  %v6964_v6 = vld [vmem:[%s15004_s1 + $0x698] sm:$0xf0] }
 0x274   :  { %5799 = vmatpush.bf16.msrb.mxu1 %v6423_v35  ;;  %v6868_v35 = vld [vmem:[%s15004_s1 + $0x5d8] sm:$0xf0]  ;;  %v5569_v56 = vpop.f32.mrf.mxu3  ;;  %v9465_v29 = vld [vmem:[%s15004_s1 + $0x66c] sm:$0xf] }
 0x275   :  { %5812 = vmatpush.bf16.msrb.mxu2 %v6551_v36  ;;  %v9477_v36 = vld [vmem:[%s15004_s1 + $0x6cc] sm:$0xf]  ;;  %v6871_v49 = vor.u32 %v9445_v34, %v6868_v35  ;;  %v6967_v34 = vor.u32 %v9469_v63, %v6964_v6  ;;  %v7095_v35 = vor.u32 %v9501_v8, %v7092_v10  ;;  %v6820_v39 = vld [vmem:[%s15004_s1 + $0x578] sm:$0xf0] }
 0x276   :  { %5821 = vmatpush.bf16.msrb.mxu3 %v6743_v45  ;;  %v5556_v45 = vpop.f32.mrf.mxu2  ;;  %v6999_v52 = vor.u32 %v9477_v36, %v6996_v38  ;;  %v9433_v38 = vld [vmem:[%s15004_s1 + $0x56c] sm:$0xf]  ;;  %v6788_v63 = vld [vmem:[%s15004_s1 + $0x538] sm:$0xf0] }
 0x277   :  { %5787 = vmatpush.bf16.msrb.mxu0 %v6279_v27  ;;  %v5557_v47 = vadd.f32 %v5556_v45, %v13900_v53  ;;  %v6676_v27 = vld [vmem:[%s15004_s1 + $0x458] sm:$0xf0]  ;;  %v9489_v10 = vld [vmem:[%s15004_s1 + $0x72c] sm:$0xf] }
 0x278   :  { %5800 = vmatpush.bf16.msrb.mxu1 %v6407_v54  ;;  %v9441_v54 = vld [vmem:[%s15004_s1 + $0x5ac] sm:$0xf]  ;;  %v6852_v53 = vld [vmem:[%s15004_s1 + $0x5b8] sm:$0xf0]  ;;  %v6679_v60 = vor.u32 %v9397_v50, %v6676_v27  ;;  %v6823_v27 = vor.u32 %v9433_v38, %v6820_v39 }
 0x279   :  { %5813 = vmatpush.bf16.msrb.mxu2 %v6535_v46  ;;  %v9473_v46 = vld [vmem:[%s15004_s1 + $0x6ac] sm:$0xf]  ;;  %v5570_v57 = vadd.f32 %v5569_v56, %v5557_v47  ;;  %v6855_v62 = vor.u32 %v9441_v54, %v6852_v53  ;;  %v6948_v45 = vld [vmem:[%s15004_s1 + $0x678] sm:$0xf0] }
 0x27a   :  { %5822 = vmatpush.bf16.msrb.mxu3 %v6727_v59  ;;  %v7108_v59 = vld [vmem:[%s15004_s1 + $0x7b8] sm:$0xf0]  ;;  %v6983_v4 = vor.u32 %v9473_v46, %v6980_v21  ;;  %v9429_v54 = vld [vmem:[%s15004_s1 + $0x54c] sm:$0xf] }
 0x27b   :  { %5788 = vmatpush.bf16.msrb.mxu0 %v6263_v5  ;;  %v5582_v5 = vpop.f32.mrf.mxu0  ;;  %v7076_v47 = vld [vmem:[%s15004_s1 + $0x778] sm:$0xf0]  ;;  %v9461_v46 = vld [vmem:[%s15004_s1 + $0x64c] sm:$0xf] }
 0x27c   :  { %5801 = vmatpush.bf16.msrb.mxu1 %v6391_v11  ;;  %v5583_v11 = vadd.f32 %v5582_v5, %v5570_v57  ;;  %v7268_v56 = vld [vmem:[%s15004_s1 + $0x8f8] sm:$0xf0]  ;;  %v9457_v5 = vld [vmem:[%s15004_s1 + $0x62c] sm:$0xf] }
 0x27d   :  { %5814 = vmatpush.bf16.msrb.mxu2 %v6519_v14  ;;  %v5595_v14 = vpop.f32.mrf.mxu1  ;;  %v6804_v53 = vld [vmem:[%s15004_s1 + $0x558] sm:$0xf0] }
 0x27e   :  { %5823 = vmatpush.bf16.msrb.mxu3 %v6711_v15  ;;  %5789 = vmatmul.bf16.vlgmr.msrb.gmra.mxu0 %v10386_v26  ;;  %v6836_v26 = vld [vmem:[%s15004_s1 + $0x598] sm:$0xf0]  ;;  %v5558_v15 = vpop.f32.mrf.mxu2  ;;  %v14099_v36 = vadd.f32 %v5595_v14, %v5583_v11  ;;  %v9537_v14 = vld [vmem:[%s15004_s1 + $0x8ac] sm:$0xf] }
 0x27f   :  { %5833 = vmatpush.bf16.msra.mxu0 %v6887_v44  ;;  %5802 = vmatmul.bf16.vlgmr.msrb.gmra.mxu1 %v10373_v20  ;;  %v9437_v20 = vld [vmem:[%s15004_s1 + $0x58c] sm:$0xf]  ;;  %v6663_v44 = vor.u32 %v9393_v55, %v6660_v3  ;;  %v6932_v21 = vld [vmem:[%s15004_s1 + $0x658] sm:$0xf0] }
 0x280   :  { %5846 = vmatpush.bf16.msra.mxu1 %v7015_v24  ;;  %5815 = vmatmul.bf16.vlgmr.msrb.gmra.mxu2 %v10377_v22  ;;  %v7111_v22 = vor.u32 %v9505_v58, %v7108_v59  ;;  %v6839_v19 = vor.u32 %v9437_v20, %v6836_v26  ;;  %v6644_v24 = vld [vmem:[%s15004_s1 + $0x418] sm:$0xf0]  ;;  %v9493_v58 = vld [vmem:[%s15004_s1 + $0x74c] sm:$0xf] }
 0x281   :  { %5859 = vmatpush.bf16.msra.mxu2 %v7143_v30  ;;  %v5571_v30 = vpop.f32.mrf.mxu3  ;;  %v6647_v50 = vor.u32 %v9389_v23, %v6644_v24  ;;  %v7060_v59 = vld [vmem:[%s15004_s1 + $0x758] sm:$0xf0]  ;;  %v9425_v26 = vld [vmem:[%s15004_s1 + $0x52c] sm:$0xf] }
 0x282   :  { %5824 = vmatpush.bf16.msrb.mxu3 %v6695_v43  ;;  %v9497_v43 = vld [vmem:[%s15004_s1 + $0x76c] sm:$0xf]  ;;  %v7252_v55 = vld [vmem:[%s15004_s1 + $0x8d8] sm:$0xf0]  ;;  %v7063_v20 = vor.u32 %v9493_v58, %v7060_v59 }
 0x283   :  { %5834 = vmatpush.bf16.msra.mxu0 %v6871_v49  ;;  %v9545_v49 = vld [vmem:[%s15004_s1 + $0x8ec] sm:$0xf]  ;;  %v6916_v8 = vld [vmem:[%s15004_s1 + $0x638] sm:$0xf0] }
 0x284   :  { %5847 = vmatpush.bf16.msra.mxu1 %v6999_v52  ;;  %v6951_v52 = vor.u32 %v9465_v29, %v6948_v45  ;;  %v7271_v57 = vor.u32 %v9545_v49, %v7268_v56  ;;  %v7044_v11 = vld [vmem:[%s15004_s1 + $0x738] sm:$0xf0]  ;;  %v9453_v30 = vld [vmem:[%s15004_s1 + $0x60c] sm:$0xf] }
 0x285   :  { %5860 = vmatpush.bf16.msra.mxu2 %v7127_v48  ;;  %v7079_v48 = vor.u32 %v9497_v43, %v7076_v47  ;;  %v5597_v3 = vpop.f32.mrf.mxu1  ;;  %v7236_v15 = vld [vmem:[%s15004_s1 + $0x8b8] sm:$0xf0]  ;;  %v7047_v24 = vor.u32 %v9489_v10, %v7044_v11  ;;  %v9533_v29 = vld [vmem:[%s15004_s1 + $0x88c] sm:$0xf] }
 0x286   :  { %5825 = vmatpush.bf16.msrb.mxu3 %v6679_v60  ;;  %v5584_v60 = vpop.f32.mrf.mxu0  ;;  %v6772_v23 = vld [vmem:[%s15004_s1 + $0x518] sm:$0xf0]  ;;  %v7239_v38 = vor.u32 %v9537_v14, %v7236_v15  ;;  %v9577_v43 = vld [vmem:[%s15004_s1 + $0x9ec] sm:$0xf] }
 0x287   :  { %5835 = vmatpush.bf16.msra.mxu0 %v6855_v62  ;;  %v9541_v62 = vld [vmem:[%s15004_s1 + $0x8cc] sm:$0xf]  ;;  %v7028_v39 = vld [vmem:[%s15004_s1 + $0x718] sm:$0xf0] }
 0x288   :  { %5848 = vmatpush.bf16.msra.mxu1 %v6983_v4  ;;  %v6807_v4 = vor.u32 %v9429_v54, %v6804_v53  ;;  %v7255_v6 = vor.u32 %v9541_v62, %v7252_v55  ;;  %v7220_v45 = vld [vmem:[%s15004_s1 + $0x898] sm:$0xf0]  ;;  %v9609_v49 = vld [vmem:[%s15004_s1 + $0xaec] sm:$0xf] }
 0x289   :  { %5861 = vmatpush.bf16.msra.mxu2 %v7111_v22  ;;  %v6935_v22 = vor.u32 %v9461_v46, %v6932_v21  ;;  %v7396_v47 = vld [vmem:[%s15004_s1 + $0x9f8] sm:$0xf0]  ;;  %v7223_v53 = vor.u32 %v9533_v29, %v7220_v45  ;;  %v9573_v60 = vld [vmem:[%s15004_s1 + $0x9cc] sm:$0xf] }
 0x28a   :  { %5826 = vmatpush.bf16.msrb.mxu3 %v6663_v44  ;;  %v6791_v44 = vor.u32 %v9425_v26, %v6788_v63  ;;  %v7399_v46 = vor.u32 %v9577_v43, %v7396_v47  ;;  %v7204_v21 = vld [vmem:[%s15004_s1 + $0x878] sm:$0xf0]  ;;  %v9605_v55 = vld [vmem:[%s15004_s1 + $0xacc] sm:$0xf] }
 0x28b   :  { %5836 = vmatpush.bf16.msra.mxu0 %v6839_v19  ;;  %v9421_v19 = vld [vmem:[%s15004_s1 + $0x50c] sm:$0xf]  ;;  %v7380_v62 = vld [vmem:[%s15004_s1 + $0x9d8] sm:$0xf0] }
 0x28c   :  { %5849 = vmatpush.bf16.msra.mxu1 %v6967_v34  ;;  %v6900_v34 = vld [vmem:[%s15004_s1 + $0x618] sm:$0xf0]  ;;  %v6775_v56 = vor.u32 %v9421_v19, %v6772_v23  ;;  %v9569_v15 = vld [vmem:[%s15004_s1 + $0x9ac] sm:$0xf] }
 0x28d   :  { %5862 = vmatpush.bf16.msra.mxu2 %v7095_v35  ;;  %v9485_v35 = vld [vmem:[%s15004_s1 + $0x70c] sm:$0xf]  ;;  %v7508_v3 = vld [vmem:[%s15004_s1 + $0xad8] sm:$0xf0] }
 0x28e   :  { %5827 = vmatpush.bf16.msrb.mxu3 %v6647_v50  ;;  %v7524_v50 = vld [vmem:[%s15004_s1 + $0xaf8] sm:$0xf0]  ;;  %v7031_v54 = vor.u32 %v9485_v35, %v7028_v39  ;;  %v7511_v11 = vor.u32 %v9605_v55, %v7508_v3  ;;  %v9597_v29 = vld [vmem:[%s15004_s1 + $0xa8c] sm:$0xf] }
 0x28f   :  { %5837 = vmatpush.bf16.msra.mxu0 %v6823_v27  ;;  %v9641_v27 = vld [vmem:[%s15004_s1 + $0xbec] sm:$0xf]  ;;  %v7527_v58 = vor.u32 %v9609_v49, %v7524_v50  ;;  %v7188_v10 = vld [vmem:[%s15004_s1 + $0x858] sm:$0xf0] }
 0x290   :  { %5850 = vmatpush.bf16.msra.mxu1 %v6951_v52  ;;  %v7652_v52 = vld [vmem:[%s15004_s1 + $0xbf8] sm:$0xf0]  ;;  %v9629_v47 = vld [vmem:[%s15004_s1 + $0xb8c] sm:$0xf] }
 0x291   :  { %5863 = vmatpush.bf16.msra.mxu2 %v7079_v48  ;;  %5828 = vmatmul.bf16.vlgmr.msrb.gmra.mxu3 %v10468_v0  ;;  %v6919_v0 = vor.u32 %v9457_v5, %v6916_v8  ;;  %v6903_v48 = vor.u32 %v9453_v30, %v6900_v34  ;;  %v7655_v59 = vor.u32 %v9641_v27, %v7652_v52  ;;  %v9525_v8 = vld [vmem:[%s15004_s1 + $0x84c] sm:$0xf]  ;;  %v7492_v23 = vld [vmem:[%s15004_s1 + $0xab8] sm:$0xf0] }
 0x292   :  { %5872 = vmatpush.bf16.msra.mxu3 %v7271_v57  ;;  %v9529_v57 = vld [vmem:[%s15004_s1 + $0x86c] sm:$0xf]  ;;  %v7383_v5 = vor.u32 %v9573_v60, %v7380_v62  ;;  %v7172_v34 = vld [vmem:[%s15004_s1 + $0x838] sm:$0xf0] }
 0x293   :  { %5838 = vmatpush.bf16.msra.mxu0 %v6807_v4  ;;  %v9637_v4 = vld [vmem:[%s15004_s1 + $0xbcc] sm:$0xf]  ;;  %v7207_v26 = vor.u32 %v9529_v57, %v7204_v21  ;;  %v7348_v39 = vld [vmem:[%s15004_s1 + $0x998] sm:$0xf0] }
 0x294   :  { %5851 = vmatpush.bf16.msra.mxu1 %v6935_v22  ;;  %v7636_v22 = vld [vmem:[%s15004_s1 + $0xbd8] sm:$0xf0]  ;;  %v9593_v62 = vld [vmem:[%s15004_s1 + $0xa6c] sm:$0xf] }
 0x295   :  { %5864 = vmatpush.bf16.msra.mxu2 %v7063_v20  ;;  %v5608_v20 = vpop.f32.mrf.mxu2  ;;  %v7639_v14 = vor.u32 %v9637_v4, %v7636_v22  ;;  %v7476_v43 = vld [vmem:[%s15004_s1 + $0xa98] sm:$0xf0]  ;;  %v9625_v3 = vld [vmem:[%s15004_s1 + $0xb6c] sm:$0xf] }
 0x296   :  { %5873 = vmatpush.bf16.msra.mxu3 %v7255_v6  ;;  %v5609_v63 = vadd.f32 %v5608_v20, %v14099_v36  ;;  %v5621_v6 = vpop.f32.mrf.mxu3  ;;  %v7364_v36 = vld [vmem:[%s15004_s1 + $0x9b8] sm:$0xf0]  ;;  %v7479_v57 = vor.u32 %v9597_v29, %v7476_v43  ;;  %v9673_v22 = vld [vmem:[%s15004_s1 + $0xcec] sm:$0xf] }
 0x297   :  { %5839 = vmatpush.bf16.msra.mxu0 %v6791_v44  ;;  %v9601_v44 = vld [vmem:[%s15004_s1 + $0xaac] sm:$0xf]  ;;  %v7367_v30 = vor.u32 %v9569_v15, %v7364_v36  ;;  %v7604_v49 = vld [vmem:[%s15004_s1 + $0xb98] sm:$0xf0] }
 0x298   :  { %5852 = vmatpush.bf16.msra.mxu1 %v6919_v0  ;;  %v5622_v19 = vadd.f32 %v5621_v6, %v5609_v63  ;;  %v9633_v0 = vld [vmem:[%s15004_s1 + $0xbac] sm:$0xf]  ;;  %v7495_v35 = vor.u32 %v9601_v44, %v7492_v23  ;;  %v7607_v21 = vor.u32 %v9629_v47, %v7604_v49  ;;  %v7332_v60 = vld [vmem:[%s15004_s1 + $0x978] sm:$0xf0] }
 0x299   :  { %5865 = vmatpush.bf16.msra.mxu2 %v7047_v24  ;;  %v7620_v24 = vld [vmem:[%s15004_s1 + $0xbb8] sm:$0xf0]  ;;  %v9621_v36 = vld [vmem:[%s15004_s1 + $0xb4c] sm:$0xf] }
 0x29a   :  { %5874 = vmatpush.bf16.msra.mxu3 %v7239_v38  ;;  %v7623_v38 = vor.u32 %v9633_v0, %v7620_v24  ;;  %v7460_v55 = vld [vmem:[%s15004_s1 + $0xa78] sm:$0xf0]  ;;  %v9669_v23 = vld [vmem:[%s15004_s1 + $0xccc] sm:$0xf] }
 0x29b   :  { %5840 = vmatpush.bf16.msra.mxu0 %v6775_v56  ;;  %v5634_v45 = vpop.f32.mrf.mxu0  ;;  %v7588_v4 = vld [vmem:[%s15004_s1 + $0xb78] sm:$0xf0]  ;;  %v9617_v29 = vld [vmem:[%s15004_s1 + $0xb2c] sm:$0xf] }
 0x29c   :  { %5853 = vmatpush.bf16.msra.mxu1 %v6903_v48  ;;  %v5635_v56 = vadd.f32 %v5634_v45, %v5622_v19  ;;  %v5647_v50 = vpop.f32.mrf.mxu1  ;;  %v7780_v20 = vld [vmem:[%s15004_s1 + $0xcf8] sm:$0xf0]  ;;  %v7591_v6 = vor.u32 %v9625_v3, %v7588_v4  ;;  %v9665_v43 = vld [vmem:[%s15004_s1 + $0xcac] sm:$0xf] }
 0x29d   :  { %5866 = vmatpush.bf16.msra.mxu2 %v7031_v54  ;;  %v5610_v27 = vpop.f32.mrf.mxu2  ;;  %v9517_v54 = vld [vmem:[%s15004_s1 + $0x80c] sm:$0xf]  ;;  %v7444_v15 = vld [vmem:[%s15004_s1 + $0xa58] sm:$0xf0] }
 0x29e   :  { %5875 = vmatpush.bf16.msra.mxu3 %v7223_v53  ;;  %5841 = vmatmul.bf16.vlgmr.msra.gmra.mxu0 %v10472_v2  ;;  %v9521_v2 = vld [vmem:[%s15004_s1 + $0x82c] sm:$0xf]  ;;  %v7156_v53 = vld [vmem:[%s15004_s1 + $0x818] sm:$0xf0] }
 0x29f   :  { %5885 = vmatpush.bf16.msrb.mxu0 %v7399_v46  ;;  %5854 = vmatmul.bf16.vlgmr.msra.gmra.mxu1 %v10466_v61  ;;  %v9565_v61 = vld [vmem:[%s15004_s1 + $0x98c] sm:$0xf]  ;;  %v7175_v52 = vor.u32 %v9521_v2, %v7172_v34  ;;  %v5623_v46 = vpop.f32.mrf.mxu3  ;;  %v7572_v44 = vld [vmem:[%s15004_s1 + $0xb58] sm:$0xf0] }
 0x2a0   :  { %5898 = vmatpush.bf16.msrb.mxu1 %v7527_v58  ;;  %5867 = vmatmul.bf16.vlgmr.msra.gmra.mxu2 %v10470_v1  ;;  %v7191_v1 = vor.u32 %v9525_v8, %v7188_v10  ;;  %v7351_v48 = vor.u32 %v9565_v61, %v7348_v39  ;;  %v14298_v58 = vadd.f32 %v5647_v50, %v5635_v56  ;;  %v9557_v8 = vld [vmem:[%s15004_s1 + $0x94c] sm:$0xf]  ;;  %v7316_v10 = vld [vmem:[%s15004_s1 + $0x958] sm:$0xf0] }
 0x2a1   :  { %5911 = vmatpush.bf16.msrb.mxu2 %v7655_v59  ;;  %v9561_v59 = vld [vmem:[%s15004_s1 + $0x96c] sm:$0xf]  ;;  %v7764_v0 = vld [vmem:[%s15004_s1 + $0xcd8] sm:$0xf0]  ;;  %v7575_v2 = vor.u32 %v9621_v36, %v7572_v44 }
 0x2a2   :  { %5876 = vmatpush.bf16.msra.mxu3 %v7207_v26  ;;  %v7159_v26 = vor.u32 %v9517_v54, %v7156_v53  ;;  %v7335_v63 = vor.u32 %v9561_v59, %v7332_v60  ;;  %v9553_v34 = vld [vmem:[%s15004_s1 + $0x92c] sm:$0xf]  ;;  %v7767_v61 = vor.u32 %v9669_v23, %v7764_v0  ;;  %v7428_v39 = vld [vmem:[%s15004_s1 + $0xa38] sm:$0xf0] }
 0x2a3   :  { %5886 = vmatpush.bf16.msrb.mxu0 %v7383_v5  ;;  %v7463_v5 = vor.u32 %v9593_v62, %v7460_v55  ;;  %v5636_v19 = vpop.f32.mrf.mxu0  ;;  %v7556_v45 = vld [vmem:[%s15004_s1 + $0xb38] sm:$0xf0]  ;;  %v9549_v56 = vld [vmem:[%s15004_s1 + $0x90c] sm:$0xf] }
 0x2a4   :  { %5899 = vmatpush.bf16.msrb.mxu1 %v7511_v11  ;;  %v9589_v11 = vld [vmem:[%s15004_s1 + $0xa4c] sm:$0xf]  ;;  %v5649_v24 = vpop.f32.mrf.mxu1  ;;  %v7748_v47 = vld [vmem:[%s15004_s1 + $0xcb8] sm:$0xf0]  ;;  %v7559_v27 = vor.u32 %v9617_v29, %v7556_v45 }
 0x2a5   :  { %5912 = vmatpush.bf16.msrb.mxu2 %v7639_v14  ;;  %v7783_v14 = vor.u32 %v9673_v22, %v7780_v20  ;;  %v7284_v50 = vld [vmem:[%s15004_s1 + $0x918] sm:$0xf0]  ;;  %v9613_v54 = vld [vmem:[%s15004_s1 + $0xb0c] sm:$0xf]  ;;  %v7751_v53 = vor.u32 %v9665_v43, %v7748_v47 }
 0x2a6   :  { %5877 = vmatpush.bf16.msra.mxu3 %v7191_v1  ;;  %v7319_v1 = vor.u32 %v9557_v8, %v7316_v10  ;;  %v7540_v46 = vld [vmem:[%s15004_s1 + $0xb18] sm:$0xf0]  ;;  %v9705_v59 = vld [vmem:[%s15004_s1 + $0xdec] sm:$0xf]  ;;  %v7287_v55 = vor.u32 %v9549_v56, %v7284_v50 }
 0x2a7   :  { %5887 = vmatpush.bf16.msrb.mxu0 %v7367_v30  ;;  %v7447_v30 = vor.u32 %v9589_v11, %v7444_v15  ;;  %v7908_v60 = vld [vmem:[%s15004_s1 + $0xdf8] sm:$0xf0]  ;;  %v9737_v62 = vld [vmem:[%s15004_s1 + $0xeec] sm:$0xf] }
 0x2a8   :  { %5900 = vmatpush.bf16.msrb.mxu1 %v7495_v35  ;;  %v7300_v35 = vld [vmem:[%s15004_s1 + $0x938] sm:$0xf0]  ;;  %v9769_v4 = vld [vmem:[%s15004_s1 + $0xfec] sm:$0xf] }
 0x2a9   :  { %5913 = vmatpush.bf16.msrb.mxu2 %v7623_v38  ;;  %v9585_v38 = vld [vmem:[%s15004_s1 + $0xa2c] sm:$0xf]  ;;  %v7303_v49 = vor.u32 %v9553_v34, %v7300_v35  ;;  %v8036_v3 = vld [vmem:[%s15004_s1 + $0xef8] sm:$0xf0] }
 0x2aa   :  { %5878 = vmatpush.bf16.msra.mxu3 %v7175_v52  ;;  %v9581_v52 = vld [vmem:[%s15004_s1 + $0xa0c] sm:$0xf]  ;;  %v8164_v22 = vld [vmem:[%s15004_s1 + $0xff8] sm:$0xf0]  ;;  %v8039_v10 = vor.u32 %v9737_v62, %v8036_v3 }
 0x2ab   :  { %5888 = vmatpush.bf16.msrb.mxu0 %v7351_v48  ;;  %v7412_v48 = vld [vmem:[%s15004_s1 + $0xa18] sm:$0xf0]  ;;  %v8167_v11 = vor.u32 %v9769_v4, %v8164_v22  ;;  %v9733_v36 = vld [vmem:[%s15004_s1 + $0xecc] sm:$0xf] }
 0x2ac   :  { %5901 = vmatpush.bf16.msrb.mxu1 %v7479_v57  ;;  %v9661_v57 = vld [vmem:[%s15004_s1 + $0xc8c] sm:$0xf]  ;;  %v7415_v20 = vor.u32 %v9581_v52, %v7412_v48  ;;  %v7716_v8 = vld [vmem:[%s15004_s1 + $0xc78] sm:$0xf0] }
 0x2ad   :  { %5914 = vmatpush.bf16.msrb.mxu2 %v7607_v21  ;;  %v7732_v21 = vld [vmem:[%s15004_s1 + $0xc98] sm:$0xf0]  ;;  %v9765_v19 = vld [vmem:[%s15004_s1 + $0xfcc] sm:$0xf] }
 0x2ae   :  { %5879 = vmatpush.bf16.msra.mxu3 %v7159_v26  ;;  %v7543_v26 = vor.u32 %v9613_v54, %v7540_v46  ;;  %v7892_v15 = vld [vmem:[%s15004_s1 + $0xdd8] sm:$0xf0]  ;;  %v9653_v34 = vld [vmem:[%s15004_s1 + $0xc4c] sm:$0xf] }
 0x2af   :  { %5889 = vmatpush.bf16.msrb.mxu0 %v7335_v63  ;;  %v7735_v63 = vor.u32 %v9661_v57, %v7732_v21  ;;  %v8020_v44 = vld [vmem:[%s15004_s1 + $0xed8] sm:$0xf0]  ;;  %v9729_v29 = vld [vmem:[%s15004_s1 + $0xeac] sm:$0xf] }
 0x2b0   :  { %5902 = vmatpush.bf16.msrb.mxu1 %v7463_v5  ;;  %v7911_v5 = vor.u32 %v9705_v59, %v7908_v60  ;;  %v8148_v23 = vld [vmem:[%s15004_s1 + $0xfd8] sm:$0xf0]  ;;  %v9761_v47 = vld [vmem:[%s15004_s1 + $0xfac] sm:$0xf] }
 0x2b1   :  { %5915 = vmatpush.bf16.msrb.mxu2 %v7591_v6  ;;  %5880 = vmatmul.bf16.vlgmr.msra.gmra.mxu3 %v10706_v7  ;;  %v7431_v7 = vor.u32 %v9585_v38, %v7428_v39  ;;  %v9657_v6 = vld [vmem:[%s15004_s1 + $0xc6c] sm:$0xf]  ;;  %v7700_v35 = vld [vmem:[%s15004_s1 + $0xc58] sm:$0xf0]  ;;  %v8023_v38 = vor.u32 %v9733_v36, %v8020_v44 }
 0x2b2   :  { %5924 = vmatpush.bf16.msrb.mxu3 %v7783_v14  ;;  %v9701_v14 = vld [vmem:[%s15004_s1 + $0xdcc] sm:$0xf]  ;;  %v7719_v24 = vor.u32 %v9657_v6, %v7716_v8  ;;  %v8004_v43 = vld [vmem:[%s15004_s1 + $0xeb8] sm:$0xf0] }
 0x2b3   :  { %5890 = vmatpush.bf16.msrb.mxu0 %v7319_v1  ;;  %v5660_v0 = vpop.f32.mrf.mxu2  ;;  %v9697_v39 = vld [vmem:[%s15004_s1 + $0xdac] sm:$0xf]  ;;  %v7684_v50 = vld [vmem:[%s15004_s1 + $0xc38] sm:$0xf0] }
 0x2b4   :  { %5903 = vmatpush.bf16.msrb.mxu1 %v7447_v30  ;;  %v5661_v1 = vadd.f32 %v5660_v0, %v14298_v58  ;;  %v7895_v30 = vor.u32 %v9701_v14, %v7892_v15  ;;  %v7876_v58 = vld [vmem:[%s15004_s1 + $0xdb8] sm:$0xf0]  ;;  %v9725_v48 = vld [vmem:[%s15004_s1 + $0xe8c] sm:$0xf] }
 0x2b5   :  { %5916 = vmatpush.bf16.msrb.mxu2 %v7575_v2  ;;  %v5673_v2 = vpop.f32.mrf.mxu3  ;;  %v7879_v56 = vor.u32 %v9697_v39, %v7876_v58  ;;  %v7860_v52 = vld [vmem:[%s15004_s1 + $0xd98] sm:$0xf0]  ;;  %v9757_v46 = vld [vmem:[%s15004_s1 + $0xf8c] sm:$0xf] }
 0x2b6   :  { %5925 = vmatpush.bf16.msrb.mxu3 %v7767_v61  ;;  %v8151_v61 = vor.u32 %v9765_v19, %v8148_v23  ;;  %v5674_v45 = vadd.f32 %v5673_v2, %v5661_v1  ;;  %v8116_v57 = vld [vmem:[%s15004_s1 + $0xf98] sm:$0xf0]  ;;  %v9645_v3 = vld [vmem:[%s15004_s1 + $0xc0c] sm:$0xf] }
 0x2b7   :  { %5891 = vmatpush.bf16.msrb.mxu0 %v7303_v49  ;;  %v8132_v49 = vld [vmem:[%s15004_s1 + $0xfb8] sm:$0xf0]  ;;  %v9721_v8 = vld [vmem:[%s15004_s1 + $0xe6c] sm:$0xf] }
 0x2b8   :  { %5904 = vmatpush.bf16.msrb.mxu1 %v7431_v7  ;;  %v8007_v7 = vor.u32 %v9729_v29, %v8004_v43  ;;  %v7668_v4 = vld [vmem:[%s15004_s1 + $0xc18] sm:$0xf0]  ;;  %v9801_v15 = vld [vmem:[%s15004_s1 + $0x10ec] sm:$0xf] }
 0x2b9   :  { %5917 = vmatpush.bf16.msrb.mxu2 %v7559_v27  ;;  %v8135_v27 = vor.u32 %v9761_v47, %v8132_v49  ;;  %v7844_v6 = vld [vmem:[%s15004_s1 + $0xd78] sm:$0xf0]  ;;  %v7671_v44 = vor.u32 %v9645_v3, %v7668_v4  ;;  %v9797_v39 = vld [vmem:[%s15004_s1 + $0x10cc] sm:$0xf] }
 0x2ba   :  { %5926 = vmatpush.bf16.msrb.mxu3 %v7751_v53  ;;  %v7988_v53 = vld [vmem:[%s15004_s1 + $0xe98] sm:$0xf0]  ;;  %v9681_v49 = vld [vmem:[%s15004_s1 + $0xd2c] sm:$0xf] }
 0x2bb   :  { %5892 = vmatpush.bf16.msrb.mxu0 %v7287_v55  ;;  %v5686_v54 = vpop.f32.mrf.mxu0  ;;  %v5662_v60 = vpop.f32.mrf.mxu2  ;;  %v8100_v14 = vld [vmem:[%s15004_s1 + $0xf78] sm:$0xf0]  ;;  %v9833_v4 = vld [vmem:[%s15004_s1 + $0x11ec] sm:$0xf] }
 0x2bc   :  { %5905 = vmatpush.bf16.msrb.mxu1 %v7415_v20  ;;  %v5687_v21 = vadd.f32 %v5686_v54, %v5674_v45  ;;  %v5699_v59 = vpop.f32.mrf.mxu1  ;;  %v7991_v20 = vor.u32 %v9725_v48, %v7988_v53  ;;  %v8292_v36 = vld [vmem:[%s15004_s1 + $0x10f8] sm:$0xf0]  ;;  %v9677_v54 = vld [vmem:[%s15004_s1 + $0xd0c] sm:$0xf] }
 0x2bd   :  { %5918 = vmatpush.bf16.msrb.mxu2 %v7543_v26  ;;  %v5675_v22 = vpop.f32.mrf.mxu3  ;;  %v8119_v26 = vor.u32 %v9757_v46, %v8116_v57  ;;  %v7828_v1 = vld [vmem:[%s15004_s1 + $0xd58] sm:$0xf0]  ;;  %v8295_v2 = vor.u32 %v9801_v15, %v8292_v36  ;;  %v9709_v57 = vld [vmem:[%s15004_s1 + $0xe0c] sm:$0xf] }
 0x2be   :  { %5927 = vmatpush.bf16.msrb.mxu3 %v7735_v63  ;;  %5893 = vmatmul.bf16.vlgmr.msrb.gmra.mxu0 %v10719_v13  ;;  %v7703_v13 = vor.u32 %v9653_v34, %v7700_v35  ;;  %v14497_v63 = vadd.f32 %v5699_v59, %v5687_v21  ;;  %v7956_v34 = vld [vmem:[%s15004_s1 + $0xe58] sm:$0xf0]  ;;  %v9749_v35 = vld [vmem:[%s15004_s1 + $0xf4c] sm:$0xf] }
 0x2bf   :  { %5937 = vmatpush.bf16.msra.mxu0 %v7911_v5  ;;  %5906 = vmatmul.bf16.vlgmr.msrb.gmra.mxu1 %v10717_v12  ;;  %v9693_v12 = vld [vmem:[%s15004_s1 + $0xd8c] sm:$0xf]  ;;  %v8276_v58 = vld [vmem:[%s15004_s1 + $0x10d8] sm:$0xf0] }
 0x2c0   :  { %5950 = vmatpush.bf16.msra.mxu1 %v8039_v10  ;;  %5919 = vmatmul.bf16.vlgmr.msrb.gmra.mxu2 %v10730_v17  ;;  %v9649_v17 = vld [vmem:[%s15004_s1 + $0xc2c] sm:$0xf]  ;;  %v7863_v55 = vor.u32 %v9693_v12, %v7860_v52  ;;  %v7972_v10 = vld [vmem:[%s15004_s1 + $0xe78] sm:$0xf0] }
 0x2c1   :  { %5963 = vmatpush.bf16.msra.mxu2 %v8167_v11  ;;  %v7687_v62 = vor.u32 %v9649_v17, %v7684_v50  ;;  %v9689_v5 = vld [vmem:[%s15004_s1 + $0xd6c] sm:$0xf]  ;;  %v7975_v23 = vor.u32 %v9721_v8, %v7972_v10  ;;  %v8279_v17 = vor.u32 %v9797_v39, %v8276_v58  ;;  %v7940_v50 = vld [vmem:[%s15004_s1 + $0xe38] sm:$0xf0] }
 0x2c2   :  { %5928 = vmatpush.bf16.msrb.mxu3 %v7719_v24  ;;  %v9753_v11 = vld [vmem:[%s15004_s1 + $0xf6c] sm:$0xf]  ;;  %v7847_v19 = vor.u32 %v9689_v5, %v7844_v6  ;;  %v8260_v52 = vld [vmem:[%s15004_s1 + $0x10b8] sm:$0xf0] }
 0x2c3   :  { %5938 = vmatpush.bf16.msra.mxu0 %v7895_v30  ;;  %v8103_v0 = vor.u32 %v9753_v11, %v8100_v14  ;;  %v9685_v24 = vld [vmem:[%s15004_s1 + $0xd4c] sm:$0xf]  ;;  %v7796_v53 = vld [vmem:[%s15004_s1 + $0xd18] sm:$0xf0] }
 0x2c4   :  { %5951 = vmatpush.bf16.msra.mxu1 %v8023_v38  ;;  %v9717_v30 = vld [vmem:[%s15004_s1 + $0xe4c] sm:$0xf]  ;;  %v8084_v38 = vld [vmem:[%s15004_s1 + $0xf58] sm:$0xf0]  ;;  %v5701_v29 = vpop.f32.mrf.mxu1  ;;  %v7831_v45 = vor.u32 %v9685_v24, %v7828_v1 }
 0x2c5   :  { %5964 = vmatpush.bf16.msra.mxu2 %v8151_v61  ;;  %v5688_v61 = vpop.f32.mrf.mxu0  ;;  %v7959_v43 = vor.u32 %v9717_v30, %v7956_v34  ;;  %v8087_v47 = vor.u32 %v9749_v35, %v8084_v38  ;;  %v9793_v12 = vld [vmem:[%s15004_s1 + $0x10ac] sm:$0xf]  ;;  %v7924_v21 = vld [vmem:[%s15004_s1 + $0xe18] sm:$0xf0] }
 0x2c6   :  { %5929 = vmatpush.bf16.msrb.mxu3 %v7703_v13  ;;  %v7812_v13 = vld [vmem:[%s15004_s1 + $0xd38] sm:$0xf0]  ;;  %v9741_v59 = vld [vmem:[%s15004_s1 + $0xf0c] sm:$0xf]  ;;  %v8263_v60 = vor.u32 %v9793_v12, %v8260_v52  ;;  %v7927_v10 = vor.u32 %v9709_v57, %v7924_v21 }
 0x2c7   :  { %5939 = vmatpush.bf16.msra.mxu0 %v7879_v56  ;;  %v9713_v56 = vld [vmem:[%s15004_s1 + $0xe2c] sm:$0xf]  ;;  %v7815_v48 = vor.u32 %v9681_v49, %v7812_v13  ;;  %v8244_v3 = vld [vmem:[%s15004_s1 + $0x1098] sm:$0xf0] }
 0x2c8   :  { %5952 = vmatpush.bf16.msra.mxu1 %v8007_v7  ;;  %v9745_v7 = vld [vmem:[%s15004_s1 + $0xf2c] sm:$0xf]  ;;  %v8420_v22 = vld [vmem:[%s15004_s1 + $0x11f8] sm:$0xf0] }
 0x2c9   :  { %5965 = vmatpush.bf16.msra.mxu2 %v8135_v27  ;;  %v8068_v27 = vld [vmem:[%s15004_s1 + $0xf38] sm:$0xf0]  ;;  %v9897_v6 = vld [vmem:[%s15004_s1 + $0x13ec] sm:$0xf]  ;;  %v8423_v15 = vor.u32 %v9833_v4, %v8420_v22 }
 0x2ca   :  { %5930 = vmatpush.bf16.msrb.mxu3 %v7687_v62  ;;  %v8071_v46 = vor.u32 %v9745_v7, %v8068_v27  ;;  %v8052_v62 = vld [vmem:[%s15004_s1 + $0xf18] sm:$0xf0]  ;;  %v9785_v36 = vld [vmem:[%s15004_s1 + $0x106c] sm:$0xf] }
 0x2cb   :  { %5940 = vmatpush.bf16.msra.mxu0 %v7863_v55  ;;  %v9789_v55 = vld [vmem:[%s15004_s1 + $0x108c] sm:$0xf]  ;;  %v8548_v5 = vld [vmem:[%s15004_s1 + $0x12f8] sm:$0xf0]  ;;  %v8055_v11 = vor.u32 %v9741_v59, %v8052_v62 }
 0x2cc   :  { %5953 = vmatpush.bf16.msra.mxu1 %v7991_v20  ;;  %v9865_v20 = vld [vmem:[%s15004_s1 + $0x12ec] sm:$0xf]  ;;  %v8676_v8 = vld [vmem:[%s15004_s1 + $0x13f8] sm:$0xf0]  ;;  %v8247_v14 = vor.u32 %v9789_v55, %v8244_v3 }
 0x2cd   :  { %5966 = vmatpush.bf16.msra.mxu2 %v8119_v26  ;;  %v7799_v26 = vor.u32 %v9677_v54, %v7796_v53  ;;  %v8404_v24 = vld [vmem:[%s15004_s1 + $0x11d8] sm:$0xf0]  ;;  %v9861_v1 = vld [vmem:[%s15004_s1 + $0x12cc] sm:$0xf] }
 0x2ce   :  { %5931 = vmatpush.bf16.msrb.mxu3 %v7671_v44  ;;  %v8228_v44 = vld [vmem:[%s15004_s1 + $0x1078] sm:$0xf0]  ;;  %v9781_v29 = vld [vmem:[%s15004_s1 + $0x104c] sm:$0xf] }
 0x2cf   :  { %5941 = vmatpush.bf16.msra.mxu0 %v7847_v19  ;;  %v8551_v19 = vor.u32 %v9865_v20, %v8548_v5  ;;  %v8532_v30 = vld [vmem:[%s15004_s1 + $0x12d8] sm:$0xf0]  ;;  %v8231_v38 = vor.u32 %v9785_v36, %v8228_v44  ;;  %v9825_v49 = vld [vmem:[%s15004_s1 + $0x11ac] sm:$0xf] }
 0x2d0   :  { %5954 = vmatpush.bf16.msra.mxu1 %v7975_v23  ;;  %v8679_v23 = vor.u32 %v9897_v6, %v8676_v8  ;;  %v8660_v34 = vld [vmem:[%s15004_s1 + $0x13d8] sm:$0xf0]  ;;  %v9857_v13 = vld [vmem:[%s15004_s1 + $0x12ac] sm:$0xf] }
 0x2d1   :  { %5967 = vmatpush.bf16.msra.mxu2 %v8103_v0  ;;  %5932 = vmatmul.bf16.vlgmr.msrb.gmra.mxu3 %v10747_v28  ;;  %v7943_v28 = vor.u32 %v9713_v56, %v7940_v50  ;;  %v9829_v0 = vld [vmem:[%s15004_s1 + $0x11cc] sm:$0xf]  ;;  %v8644_v7 = vld [vmem:[%s15004_s1 + $0x13b8] sm:$0xf0] }
 0x2d2   :  { %5976 = vmatpush.bf16.msra.mxu3 %v8295_v2  ;;  %v9893_v2 = vld [vmem:[%s15004_s1 + $0x13cc] sm:$0xf]  ;;  %v8407_v39 = vor.u32 %v9829_v0, %v8404_v24  ;;  %v8196_v12 = vld [vmem:[%s15004_s1 + $0x1038] sm:$0xf0] }
 0x2d3   :  { %5942 = vmatpush.bf16.msra.mxu0 %v7831_v45  ;;  %v5712_v35 = vpop.f32.mrf.mxu2  ;;  %v8212_v45 = vld [vmem:[%s15004_s1 + $0x1058] sm:$0xf0]  ;;  %v9889_v50 = vld [vmem:[%s15004_s1 + $0x13ac] sm:$0xf] }
 0x2d4   :  { %5955 = vmatpush.bf16.msra.mxu1 %v7959_v43  ;;  %v5713_v61 = vadd.f32 %v5712_v35, %v14497_v63  ;;  %v5725_v58 = vpop.f32.mrf.mxu3  ;;  %v8535_v43 = vor.u32 %v9861_v1, %v8532_v30  ;;  %v8388_v63 = vld [vmem:[%s15004_s1 + $0x11b8] sm:$0xf0]  ;;  %v9853_v53 = vld [vmem:[%s15004_s1 + $0x128c] sm:$0xf] }
 0x2d5   :  { %5968 = vmatpush.bf16.msra.mxu2 %v8087_v47  ;;  %v8663_v47 = vor.u32 %v9893_v2, %v8660_v34  ;;  %v8391_v27 = vor.u32 %v9825_v49, %v8388_v63  ;;  %v8372_v54 = vld [vmem:[%s15004_s1 + $0x1198] sm:$0xf0]  ;;  %v9773_v4 = vld [vmem:[%s15004_s1 + $0x100c] sm:$0xf] }
 0x2d6   :  { %5977 = vmatpush.bf16.msra.mxu3 %v8279_v17  ;;  %v5726_v56 = vadd.f32 %v5725_v58, %v5713_v61  ;;  %v8516_v17 = vld [vmem:[%s15004_s1 + $0x12b8] sm:$0xf0]  ;;  %v9817_v6 = vld [vmem:[%s15004_s1 + $0x116c] sm:$0xf] }
 0x2d7   :  { %5943 = vmatpush.bf16.msra.mxu0 %v7815_v48  ;;  %v8519_v52 = vor.u32 %v9857_v13, %v8516_v17  ;;  %v8647_v48 = vor.u32 %v9889_v50, %v8644_v7  ;;  %v8628_v57 = vld [vmem:[%s15004_s1 + $0x1398] sm:$0xf0]  ;;  %v9929_v44 = vld [vmem:[%s15004_s1 + $0x14ec] sm:$0xf] }
 0x2d8   :  { %5956 = vmatpush.bf16.msra.mxu1 %v7943_v28  ;;  %v8500_v28 = vld [vmem:[%s15004_s1 + $0x1298] sm:$0xf0]  ;;  %v9813_v30 = vld [vmem:[%s15004_s1 + $0x114c] sm:$0xf] }
 0x2d9   :  { %5969 = vmatpush.bf16.msra.mxu2 %v8071_v46  ;;  %v9885_v46 = vld [vmem:[%s15004_s1 + $0x138c] sm:$0xf]  ;;  %v8180_v22 = vld [vmem:[%s15004_s1 + $0x1018] sm:$0xf0] }
 0x2da   :  { %5978 = vmatpush.bf16.msra.mxu3 %v8263_v60  ;;  %v8631_v5 = vor.u32 %v9885_v46, %v8628_v57  ;;  %v8356_v8 = vld [vmem:[%s15004_s1 + $0x1178] sm:$0xf0]  ;;  %v9845_v34 = vld [vmem:[%s15004_s1 + $0x124c] sm:$0xf] }
 0x2db   :  { %5944 = vmatpush.bf16.msra.mxu0 %v7799_v26  ;;  %v5738_v21 = vpop.f32.mrf.mxu0  ;;  %v5714_v59 = vpop.f32.mrf.mxu2  ;;  %v8503_v26 = vor.u32 %v9853_v53, %v8500_v28  ;;  %v8612_v36 = vld [vmem:[%s15004_s1 + $0x1378] sm:$0xf0]  ;;  %v8359_v0 = vor.u32 %v9817_v6, %v8356_v8  ;;  %v9877_v61 = vld [vmem:[%s15004_s1 + $0x134c] sm:$0xf] }
 0x2dc   :  { %5957 = vmatpush.bf16.msra.mxu1 %v7927_v10  ;;  %v5739_v60 = vadd.f32 %v5738_v21, %v5726_v56  ;;  %v5751_v3 = vpop.f32.mrf.mxu1  ;;  %v5727_v20 = vpop.f32.mrf.mxu3  ;;  %v9849_v10 = vld [vmem:[%s15004_s1 + $0x126c] sm:$0xf]  ;;  %v8340_v2 = vld [vmem:[%s15004_s1 + $0x1158] sm:$0xf0] }
 0x2dd   :  { %5970 = vmatpush.bf16.msra.mxu2 %v8055_v11  ;;  %v9925_v58 = vld [vmem:[%s15004_s1 + $0x14cc] sm:$0xf]  ;;  %v8324_v17 = vld [vmem:[%s15004_s1 + $0x1138] sm:$0xf0] }
 0x2de   :  { %5979 = vmatpush.bf16.msra.mxu3 %v8247_v14  ;;  %5945 = vmatmul.bf16.vlgmr.msra.gmra.mxu0 %v10751_v32  ;;  %v8215_v32 = vor.u32 %v9781_v29, %v8212_v45  ;;  %v5752_v11 = vadd.f32 %v5751_v3, %v5739_v60  ;;  %v8484_v14 = vld [vmem:[%s15004_s1 + $0x1278] sm:$0xf0]  ;;  %v9809_v56 = vld [vmem:[%s15004_s1 + $0x112c] sm:$0xf] }
 0x2df   :  { %5989 = vmatpush.bf16.msrb.mxu0 %v8423_v15  ;;  %5958 = vmatmul.bf16.vlgmr.msra.gmra.mxu1 %v10749_v31  ;;  %v9821_v31 = vld [vmem:[%s15004_s1 + $0x118c] sm:$0xf]  ;;  %v8487_v24 = vor.u32 %v9849_v10, %v8484_v14  ;;  %v8788_v29 = vld [vmem:[%s15004_s1 + $0x14d8] sm:$0xf0] }
 0x2e0   :  { %6002 = vmatpush.bf16.msrb.mxu1 %v8551_v19  ;;  %5971 = vmatmul.bf16.vlgmr.msra.gmra.mxu2 %v10753_v33  ;;  %v9777_v33 = vld [vmem:[%s15004_s1 + $0x102c] sm:$0xf]  ;;  %v8375_v55 = vor.u32 %v9821_v31, %v8372_v54  ;;  %v8804_v19 = vld [vmem:[%s15004_s1 + $0x14f8] sm:$0xf0]  ;;  %v8327_v31 = vor.u32 %v9809_v56, %v8324_v17 }
 0x2e1   :  { %6015 = vmatpush.bf16.msrb.mxu2 %v8679_v23  ;;  %v8199_v62 = vor.u32 %v9777_v33, %v8196_v12  ;;  %v9881_v15 = vld [vmem:[%s15004_s1 + $0x136c] sm:$0xf]  ;;  %v8183_v23 = vor.u32 %v9773_v4, %v8180_v22  ;;  %v8807_v35 = vor.u32 %v9929_v44, %v8804_v19  ;;  %v8580_v12 = vld [vmem:[%s15004_s1 + $0x1338] sm:$0xf0] }
 0x2e2   :  { %5980 = vmatpush.bf16.msra.mxu3 %v8231_v38  ;;  %v8615_v1 = vor.u32 %v9881_v15, %v8612_v36  ;;  %v8468_v38 = vld [vmem:[%s15004_s1 + $0x1258] sm:$0xf0]  ;;  %v9841_v50 = vld [vmem:[%s15004_s1 + $0x122c] sm:$0xf] }
 0x2e3   :  { %5990 = vmatpush.bf16.msrb.mxu0 %v8407_v39  ;;  %v8596_v39 = vld [vmem:[%s15004_s1 + $0x1358] sm:$0xf0]  ;;  %v5740_v45 = vpop.f32.mrf.mxu0  ;;  %v5764_v49 = vpop.f32.mrf.mxu2  ;;  %v8471_v63 = vor.u32 %v9845_v34, %v8468_v38  ;;  %v9873_v33 = vld [vmem:[%s15004_s1 + $0x132c] sm:$0xf] }
 0x2e4   :  { %6003 = vmatpush.bf16.msrb.mxu1 %v8535_v43  ;;  %v8343_v43 = vor.u32 %v9813_v30, %v8340_v2  ;;  %v8599_v13 = vor.u32 %v9877_v61, %v8596_v39  ;;  %v14753_v7 = vadd.f32 %v5764_v49, %v5752_v11  ;;  %v9805_v54 = vld [vmem:[%s15004_s1 + $0x110c] sm:$0xf]  ;;  %v8308_v53 = vld [vmem:[%s15004_s1 + $0x1118] sm:$0xf0]  ;;  %v8583_v28 = vor.u32 %v9873_v33, %v8580_v12 }
 0x2e5   :  { %6016 = vmatpush.bf16.msrb.mxu2 %v8663_v47  ;;  %v5753_v47 = vpop.f32.mrf.mxu1  ;;  %v9837_v46 = vld [vmem:[%s15004_s1 + $0x120c] sm:$0xf]  ;;  %v8436_v57 = vld [vmem:[%s15004_s1 + $0x1218] sm:$0xf0]  ;;  %v8311_v20 = vor.u32 %v9805_v54, %v8308_v53 }
 0x2e6   :  { %5981 = vmatpush.bf16.msra.mxu3 %v8215_v32  ;;  %v8791_v32 = vor.u32 %v9925_v58, %v8788_v29  ;;  %v9869_v21 = vld [vmem:[%s15004_s1 + $0x130c] sm:$0xf]  ;;  %v8564_v60 = vld [vmem:[%s15004_s1 + $0x1318] sm:$0xf0]  ;;  %v8439_v8 = vor.u32 %v9837_v46, %v8436_v57  ;;  %v10048_v58 = vld [vmem:[%s15006_s2] sm:$0xf] }
 0x2e7   :  { %5991 = vmatpush.bf16.msrb.mxu0 %v8391_v27  ;;  %v8452_v27 = vld [vmem:[%s15004_s1 + $0x1238] sm:$0xf0]  ;;  %v9961_v3 = vld [vmem:[%s15004_s1 + $0x15ec] sm:$0xf]  ;;  %v8567_v10 = vor.u32 %v9869_v21, %v8564_v60  ;;  %v808_v29 = vperm.slane %v10048_v58, 3 }
 0x2e8   :  { %6004 = vmatpush.bf16.msrb.mxu1 %v8519_v52  ;;  %v9921_v52 = vld [vmem:[%s15004_s1 + $0x14ac] sm:$0xf]  ;;  %v8932_v4 = vld [vmem:[%s15004_s1 + $0x15f8] sm:$0xf0] }
 0x2e9   :  { %6017 = vmatpush.bf16.msrb.mxu2 %v8647_v48  ;;  %v8772_v48 = vld [vmem:[%s15004_s1 + $0x14b8] sm:$0xf0]  ;;  %v9993_v22 = vld [vmem:[%s15004_s1 + $0x16ec] sm:$0xf]  ;;  %v8935_v15 = vor.u32 %v9961_v3, %v8932_v4 }
 0x2ea   :  { %5982 = vmatpush.bf16.msra.mxu3 %v8199_v62  ;;  %v8775_v59 = vor.u32 %v9921_v52, %v8772_v48  ;;  %v9917_v62 = vld [vmem:[%s15004_s1 + $0x148c] sm:$0xf]  ;;  %v9188_v6 = vld [vmem:[%s15004_s1 + $0x17f8] sm:$0xf0] }
 0x2eb   :  { %5992 = vmatpush.bf16.msrb.mxu0 %v8375_v55  ;;  %v8756_v55 = vld [vmem:[%s15004_s1 + $0x1498] sm:$0xf0]  ;;  %v5766_v11 = vpop.f32.mrf.mxu2  ;;  %v9913_v36 = vld [vmem:[%s15004_s1 + $0x146c] sm:$0xf] }
 0x2ec   :  { %6005 = vmatpush.bf16.msrb.mxu1 %v8503_v26  ;;  %v9060_v26 = vld [vmem:[%s15004_s1 + $0x16f8] sm:$0xf0]  ;;  %v8759_v14 = vor.u32 %v9917_v62, %v8756_v55  ;;  %v10021_v2 = vld [vmem:[%s15004_s1 + $0x17cc] sm:$0xf] }
 0x2ed   :  { %6018 = vmatpush.bf16.msrb.mxu2 %v8631_v5  ;;  %v10025_v5 = vld [vmem:[%s15004_s1 + $0x17ec] sm:$0xf]  ;;  %v8740_v44 = vld [vmem:[%s15004_s1 + $0x1478] sm:$0xf0]  ;;  %v9063_v19 = vor.u32 %v9993_v22, %v9060_v26 }
 0x2ee   :  { %5983 = vmatpush.bf16.msra.mxu3 %v8183_v23  ;;  %v9191_v23 = vor.u32 %v10025_v5, %v9188_v6  ;;  %v9044_v30 = vld [vmem:[%s15004_s1 + $0x16d8] sm:$0xf0]  ;;  %v9909_v61 = vld [vmem:[%s15004_s1 + $0x144c] sm:$0xf] }
 0x2ef   :  { %5993 = vmatpush.bf16.msrb.mxu0 %v8359_v0  ;;  %v9957_v0 = vld [vmem:[%s15004_s1 + $0x15cc] sm:$0xf]  ;;  %v9172_v34 = vld [vmem:[%s15004_s1 + $0x17d8] sm:$0xf0] }
 0x2f0   :  { %6006 = vmatpush.bf16.msrb.mxu1 %v8487_v24  ;;  %v8916_v24 = vld [vmem:[%s15004_s1 + $0x15d8] sm:$0xf0]  ;;  %v9175_v47 = vor.u32 %v10021_v2, %v9172_v34  ;;  %v9953_v49 = vld [vmem:[%s15004_s1 + $0x15ac] sm:$0xf] }
 0x2f1   :  { %6019 = vmatpush.bf16.msrb.mxu2 %v8615_v1  ;;  %5984 = vmatmul.bf16.vlgmr.msra.gmra.mxu3 %v11117_v9  ;;  %v8455_v9 = vor.u32 %v9841_v50, %v8452_v27  ;;  %v9989_v1 = vld [vmem:[%s15004_s1 + $0x16cc] sm:$0xf]  ;;  %v8919_v38 = vor.u32 %v9957_v0, %v8916_v24  ;;  %v8724_v39 = vld [vmem:[%s15004_s1 + $0x1458] sm:$0xf0] }
 0x2f2   :  { %6028 = vmatpush.bf16.msrb.mxu3 %v8807_v35  ;;  %v8743_v35 = vor.u32 %v9913_v36, %v8740_v44  ;;  %v9028_v56 = vld [vmem:[%s15004_s1 + $0x16b8] sm:$0xf0]  ;;  %v10017_v17 = vld [vmem:[%s15004_s1 + $0x17ac] sm:$0xf] }
 0x2f3   :  { %5994 = vmatpush.bf16.msrb.mxu0 %v8343_v43  ;;  %v9047_v43 = vor.u32 %v9989_v1, %v9044_v30  ;;  %v9156_v50 = vld [vmem:[%s15004_s1 + $0x17b8] sm:$0xf0]  ;;  %v10013_v53 = vld [vmem:[%s15004_s1 + $0x178c] sm:$0xf] }
 0x2f4   :  { %6007 = vmatpush.bf16.msrb.mxu1 %v8471_v63  ;;  %v5777_v45 = vpop.f32.mrf.mxu3  ;;  %v8900_v63 = vld [vmem:[%s15004_s1 + $0x15b8] sm:$0xf0]  ;;  %v9159_v52 = vor.u32 %v10017_v17, %v9156_v50  ;;  %v9901_v21 = vld [vmem:[%s15004_s1 + $0x140c] sm:$0xf] }
 0x2f5   :  { %6020 = vmatpush.bf16.msrb.mxu2 %v8599_v13  ;;  %v9985_v13 = vld [vmem:[%s15004_s1 + $0x16ac] sm:$0xf]  ;;  %v8708_v27 = vld [vmem:[%s15004_s1 + $0x1438] sm:$0xf0]  ;;  %v5778_v33 = vadd.f32 %v5777_v45, %v808_v29 }
 0x2f6   :  { %6029 = vmatpush.bf16.msrb.mxu3 %v8791_v32  ;;  %v8727_v32 = vor.u32 %v9909_v61, %v8724_v39  ;;  %v9031_v12 = vor.u32 %v9985_v13, %v9028_v56  ;;  %v8884_v48 = vld [vmem:[%s15004_s1 + $0x1598] sm:$0xf0]  ;;  %v9945_v22 = vld [vmem:[%s15004_s1 + $0x156c] sm:$0xf] }
 0x2f7   :  { %5995 = vmatpush.bf16.msrb.mxu0 %v8327_v31  ;;  %v9981_v31 = vld [vmem:[%s15004_s1 + $0x168c] sm:$0xf]  ;;  %v9012_v54 = vld [vmem:[%s15004_s1 + $0x1698] sm:$0xf0] }
 0x2f8   :  { %6008 = vmatpush.bf16.msrb.mxu1 %v8455_v9  ;;  %v9140_v9 = vld [vmem:[%s15004_s1 + $0x1798] sm:$0xf0]  ;;  %v9015_v3 = vor.u32 %v9981_v31, %v9012_v54  ;;  %v9977_v26 = vld [vmem:[%s15004_s1 + $0x166c] sm:$0xf] }
 0x2f9   :  { %6021 = vmatpush.bf16.msrb.mxu2 %v8583_v28  ;;  %v9143_v4 = vor.u32 %v10013_v53, %v9140_v9  ;;  %v8996_v5 = vld [vmem:[%s15004_s1 + $0x1678] sm:$0xf0]  ;;  %v10009_v6 = vld [vmem:[%s15004_s1 + $0x176c] sm:$0xf] }
 0x2fa   :  { %6030 = vmatpush.bf16.msrb.mxu3 %v8775_v59  ;;  %v8692_v59 = vld [vmem:[%s15004_s1 + $0x1418] sm:$0xf0]  ;;  %v10041_v11 = vld [vmem:[%s15004_s1 + $0x186c] sm:$0xf]  ;;  %v8999_v44 = vor.u32 %v9977_v26, %v8996_v5 }
 0x2fb   :  { %5996 = vmatpush.bf16.msrb.mxu0 %v8311_v20  ;;  %v5790_v28 = vpop.f32.mrf.mxu0  ;;  %v8868_v20 = vld [vmem:[%s15004_s1 + $0x1578] sm:$0xf0]  ;;  %v9973_v24 = vld [vmem:[%s15004_s1 + $0x164c] sm:$0xf] }
 0x2fc   :  { %6009 = vmatpush.bf16.msrb.mxu1 %v8439_v8  ;;  %v5791_v60 = vadd.f32 %v5790_v28, %v5778_v33  ;;  %v5803_v62 = vpop.f32.mrf.mxu1  ;;  %v5779_v55 = vpop.f32.mrf.mxu3  ;;  %v9124_v8 = vld [vmem:[%s15004_s1 + $0x1778] sm:$0xf0]  ;;  %v8871_v36 = vor.u32 %v9945_v22, %v8868_v20  ;;  %v10005_v34 = vld [vmem:[%s15004_s1 + $0x174c] sm:$0xf] }
 0x2fd   :  { %6022 = vmatpush.bf16.msrb.mxu2 %v8567_v10  ;;  %v8852_v0 = vld [vmem:[%s15004_s1 + $0x1558] sm:$0xf0]  ;;  %v10037_v61 = vld [vmem:[%s15004_s1 + $0x184c] sm:$0xf] }
 0x2fe   :  { %6031 = vmatpush.bf16.msrb.mxu3 %v8759_v14  ;;  %5997 = vmatmul.bf16.vlgmr.msrb.gmra.mxu0 %v11130_v18  ;;  %v8903_v18 = vor.u32 %v9953_v49, %v8900_v63  ;;  %v5804_v10 = vadd.f32 %v5803_v62, %v5791_v60  ;;  %v9252_v14 = vld [vmem:[%s15004_s1 + $0x1878] sm:$0xf0]  ;;  %v9937_v49 = vld [vmem:[%s15004_s1 + $0x152c] sm:$0xf] }
 0x2ff   :  { %6041 = vmatpush.bf16.msra.mxu0 %v8935_v15  ;;  %6010 = vmatmul.bf16.vlgmr.msrb.gmra.mxu1 %v11128_v16  ;;  %v9949_v16 = vld [vmem:[%s15004_s1 + $0x158c] sm:$0xf]  ;;  %v8695_v15 = vor.u32 %v9901_v21, %v8692_v59  ;;  %v9255_v30 = vor.u32 %v10041_v11, %v9252_v14  ;;  %v8980_v2 = vld [vmem:[%s15004_s1 + $0x1658] sm:$0xf0] }
 0x300   :  { %6054 = vmatpush.bf16.msra.mxu1 %v9063_v19  ;;  %6023 = vmatmul.bf16.vlgmr.msrb.gmra.mxu2 %v11141_v25  ;;  %v9905_v25 = vld [vmem:[%s15004_s1 + $0x142c] sm:$0xf]  ;;  %v8887_v57 = vor.u32 %v9949_v16, %v8884_v48  ;;  %v9127_v19 = vor.u32 %v10009_v6, %v9124_v8  ;;  %v9236_v39 = vld [vmem:[%s15004_s1 + $0x1858] sm:$0xf0] }
 0x301   :  { %6067 = vmatpush.bf16.msra.mxu2 %v9191_v23  ;;  %v8711_v46 = vor.u32 %v9905_v25, %v8708_v27  ;;  %v9941_v23 = vld [vmem:[%s15004_s1 + $0x154c] sm:$0xf]  ;;  %v8836_v63 = vld [vmem:[%s15004_s1 + $0x1538] sm:$0xf0]  ;;  %v9239_v56 = vor.u32 %v10037_v61, %v9236_v39 }
 0x302   :  { %6032 = vmatpush.bf16.msrb.mxu3 %v8743_v35  ;;  %v9108_v35 = vld [vmem:[%s15004_s1 + $0x1758] sm:$0xf0]  ;;  %v8855_v29 = vor.u32 %v9941_v23, %v8852_v0  ;;  %v9969_v13 = vld [vmem:[%s15004_s1 + $0x162c] sm:$0xf]  ;;  %v8839_v27 = vor.u32 %v9937_v49, %v8836_v63 }
 0x303   :  { %6042 = vmatpush.bf16.msra.mxu0 %v8919_v38  ;;  %v5816_v1 = vpop.f32.mrf.mxu2  ;;  %v5792_v58 = vpop.f32.mrf.mxu0  ;;  %v8964_v17 = vld [vmem:[%s15004_s1 + $0x1638] sm:$0xf0]  ;;  %v10001_v50 = vld [vmem:[%s15004_s1 + $0x172c] sm:$0xf] }
 0x304   :  { %6055 = vmatpush.bf16.msra.mxu1 %v9047_v43  ;;  %v5817_v38 = vadd.f32 %v5816_v1, %v5804_v10  ;;  %v5805_v45 = vpop.f32.mrf.mxu1  ;;  %v8983_v43 = vor.u32 %v9973_v24, %v8980_v2  ;;  %v9220_v25 = vld [vmem:[%s15004_s1 + $0x1838] sm:$0xf0]  ;;  %v8967_v33 = vor.u32 %v9969_v13, %v8964_v17  ;;  %v9965_v16 = vld [vmem:[%s15004_s1 + $0x160c] sm:$0xf] }
 0x305   :  { %6068 = vmatpush.bf16.msra.mxu2 %v9175_v47  ;;  %v9111_v47 = vor.u32 %v10005_v34, %v9108_v35  ;;  %v8948_v54 = vld [vmem:[%s15004_s1 + $0x1618] sm:$0xf0]  ;;  %v9997_v53 = vld [vmem:[%s15004_s1 + $0x170c] sm:$0xf] }
 0x306   :  { %6033 = vmatpush.bf16.msrb.mxu3 %v8727_v32  ;;  %v9092_v32 = vld [vmem:[%s15004_s1 + $0x1738] sm:$0xf0]  ;;  %v10029_v28 = vld [vmem:[%s15004_s1 + $0x180c] sm:$0xf]  ;;  %v8951_v21 = vor.u32 %v9965_v16, %v8948_v54 }
 0x307   :  { %6043 = vmatpush.bf16.msra.mxu0 %v8903_v18  ;;  %v10033_v18 = vld [vmem:[%s15004_s1 + $0x182c] sm:$0xf]  ;;  %v9076_v9 = vld [vmem:[%s15004_s1 + $0x1718] sm:$0xf0] }
 0x308   :  { %6056 = vmatpush.bf16.msra.mxu1 %v9031_v12  ;;  %v9095_v12 = vor.u32 %v10001_v50, %v9092_v32  ;;  %v9223_v31 = vor.u32 %v10033_v18, %v9220_v25  ;;  %v9079_v59 = vor.u32 %v9997_v53, %v9076_v9 }
 0x309   :  { %6069 = vmatpush.bf16.msra.mxu2 %v9159_v52  ;;  %v9933_v52 = vld [vmem:[%s15004_s1 + $0x150c] sm:$0xf] }
 0x30a   :  { %6034 = vmatpush.bf16.msrb.mxu3 %v8711_v46  ;;  %v9204_v46 = vld [vmem:[%s15004_s1 + $0x1818] sm:$0xf0] }
 0x30b   :  { %6044 = vmatpush.bf16.msra.mxu0 %v8887_v57  ;;  %v5818_v48 = vpop.f32.mrf.mxu2  ;;  %v9207_v60 = vor.u32 %v10029_v28, %v9204_v46 }
 0x30c   :  { %6057 = vmatpush.bf16.msra.mxu1 %v9015_v3  ;;  %v10049_v3 = vld [vmem:[#allocation1] sm:$0xff] }
 0x30d   :  { %6070 = vmatpush.bf16.msra.mxu2 %v9143_v4 }
 0x30e   :  { %6035 = vmatpush.bf16.msrb.mxu3 %v8695_v15 }
 0x30f   :  { %6045 = vmatpush.bf16.msra.mxu0 %v8871_v36 }
 0x310   :  { %6058 = vmatpush.bf16.msra.mxu1 %v8999_v44 }
 0x311   :  { %6071 = vmatpush.bf16.msra.mxu2 %v9127_v19  ;;  %6036 = vmatmul.bf16.vlgmr.msrb.gmra.mxu3 %v11158_v37  ;;  %v8820_v37 = vld [vmem:[%s15004_s1 + $0x1518] sm:$0xf0] }
 0x312   :  { %6084 = vmatpush.bf16.msra.mxu3 %v9255_v30  ;;  %v8823_v57 = vor.u32 %v9933_v52, %v8820_v37 }
 0x313   :  { %6046 = vmatpush.bf16.msra.mxu0 %v8855_v29 }
 0x314   :  { %6059 = vmatpush.bf16.msra.mxu1 %v8983_v43  ;;  %v5829_v62 = vpop.f32.mrf.mxu3 }
 0x315   :  { %6072 = vmatpush.bf16.msra.mxu2 %v9111_v47  ;;  %v5830_v55 = vadd.f32 %v5829_v62, %v5817_v38  ;;  %v6095_v62 = vmax.f32 %v14753_v7, 0.0 }
 0x316   :  { %6085 = vmatpush.bf16.msra.mxu3 %v9239_v56 }
 0x317   :  { %6047 = vmatpush.bf16.msra.mxu0 %v8839_v27 }
 0x318   :  { %6060 = vmatpush.bf16.msra.mxu1 %v8967_v33 }
 0x319   :  { %6073 = vmatpush.bf16.msra.mxu2 %v9095_v12 }
 0x31a   :  { %6086 = vmatpush.bf16.msra.mxu3 %v9223_v31 }
 0x31b   :  { %6048 = vmatpush.bf16.msra.mxu0 %v8823_v57  ;;  %v5842_v4 = vpop.f32.mrf.mxu0 }
 0x31c   :  { %6061 = vmatpush.bf16.msra.mxu1 %v8951_v21  ;;  %v5843_v22 = vadd.f32 %v5842_v4, %v5830_v55  ;;  %v5855_v20 = vpop.f32.mrf.mxu1  ;;  %v5831_v26 = vpop.f32.mrf.mxu3 }
 0x31d   :  { %6074 = vmatpush.bf16.msra.mxu2 %v9079_v59 }
 0x31e   :  { %6087 = vmatpush.bf16.msra.mxu3 %v9207_v60  ;;  %6049 = vmatmul.bf16.vlgmr.msra.gmra.mxu0 %v11162_v41  ;;  %v5856_v5 = vadd.f32 %v5855_v20, %v5843_v22 }
 0x31f   :  { %6062 = vmatmul.bf16.vlgmr.msra.gmra.mxu1 %v11160_v40 }
 0x320   :  { %6075 = vmatmul.bf16.vlgmr.msra.gmra.mxu2 %v11164_v42 }
 0x321   :  { %9259 = vmatmul.msk.bf16.vlgmr.msra.gmra.mxu3 %vm4790_vm0, %v10049_v3  ;;  %v6101_v3 = vrot.slane %v13547_v51, 3 }
 0x323   :  { %v5868_v6 = vpop.f32.mrf.mxu2  ;;  %v5844_v10 = vpop.f32.mrf.mxu0 }
 0x324   :  { %v5869_v8 = vadd.f32 %v5868_v6, %v5856_v5  ;;  %v5857_v11 = vpop.f32.mrf.mxu1  ;;  %v6107_v6 = vsel %vm6104_vm1, %v13547_v51, %v6101_v3 }
 0x32b   :  { %v5870_v14 = vpop.f32.mrf.mxu2 }
 0x334   :  { %v5881_v15 = vpop.f32.mrf.mxu3 }
 0x335   :  { %v5882_v41 = vadd.f32 %v5881_v15, %v5869_v8 }
 0x33b   :  { %v5894_v36 = vpop.f32.mrf.mxu0 }
 0x33c   :  { %v5895_v44 = vadd.f32 %v5894_v36, %v5882_v41  ;;  %v5907_v40 = vpop.f32.mrf.mxu1  ;;  %v5883_v19 = vpop.f32.mrf.mxu3 }
 0x33e   :  { %v5908_v42 = vadd.f32 %v5907_v40, %v5895_v44 }
 0x343   :  { %v5920_v23 = vpop.f32.mrf.mxu2  ;;  %v5896_v24 = vpop.f32.mrf.mxu0 }
 0x344   :  { %v5921_v0 = vadd.f32 %v5920_v23, %v5908_v42  ;;  %v5909_v1 = vpop.f32.mrf.mxu1 }
 0x34b   :  { %v5922_v30 = vpop.f32.mrf.mxu2 }
 0x354   :  { %v5933_v2 = vpop.f32.mrf.mxu3 }
 0x355   :  { %v5934_v56 = vadd.f32 %v5933_v2, %v5921_v0 }
 0x35b   :  { %v5946_v34 = vpop.f32.mrf.mxu0 }
 0x35c   :  { %v5959_v35 = vpop.f32.mrf.mxu1  ;;  %v5935_v38 = vpop.f32.mrf.mxu3  ;;  %v5947_v50 = vadd.f32 %v5946_v34, %v5934_v56 }
 0x35e   :  { %v5960_v18 = vadd.f32 %v5959_v35, %v5947_v50 }
 0x363   :  { %v5972_v61 = vpop.f32.mrf.mxu2  ;;  %v5948_v39 = vpop.f32.mrf.mxu0 }
 0x364   :  { %v5961_v58 = vpop.f32.mrf.mxu1  ;;  %v5973_v25 = vadd.f32 %v5972_v61, %v5960_v18 }
 0x36b   :  { %v5974_v29 = vpop.f32.mrf.mxu2 }
 0x374   :  { %v5985_v45 = vpop.f32.mrf.mxu3 }
 0x375   :  { %v5986_v27 = vadd.f32 %v5985_v45, %v5973_v25 }
 0x37b   :  { %v5998_v43 = vpop.f32.mrf.mxu0 }
 0x37c   :  { %v6011_v47 = vpop.f32.mrf.mxu1  ;;  %v5987_v49 = vpop.f32.mrf.mxu3  ;;  %v5999_v33 = vadd.f32 %v5998_v43, %v5986_v27 }
 0x37e   :  { %v6012_v52 = vadd.f32 %v6011_v47, %v5999_v33 }
 0x383   :  { %v6024_v63 = vpop.f32.mrf.mxu2  ;;  %v6000_v13 = vpop.f32.mrf.mxu0 }
 0x384   :  { %v6013_v17 = vpop.f32.mrf.mxu1  ;;  %v6025_v37 = vadd.f32 %v6024_v63, %v6012_v52 }
 0x38b   :  { %v6026_v32 = vpop.f32.mrf.mxu2 }
 0x394   :  { %v6037_v12 = vpop.f32.mrf.mxu3 }
 0x395   :  { %v6038_v16 = vadd.f32 %v6037_v12, %v6025_v37 }
 0x39b   :  { %v6050_v48 = vpop.f32.mrf.mxu0 }
 0x39c   :  { %v6063_v31 = vpop.f32.mrf.mxu1  ;;  %v6051_v54 = vadd.f32 %v6050_v48, %v6038_v16  ;;  %v6039_v53 = vpop.f32.mrf.mxu3 }
 0x39e   :  { %v6064_v9 = vadd.f32 %v6063_v31, %v6051_v54 }
 0x3a3   :  { %v6076_v28 = vpop.f32.mrf.mxu2  ;;  %v6052_v57 = vpop.f32.mrf.mxu0 }
 0x3a4   :  { %v6077_v46 = vadd.f32 %v6076_v28, %v6064_v9  ;;  %v6065_v21 = vpop.f32.mrf.mxu1  ;;  %v6089_v59 = vpop.f32.mrf.mxu3 }
 0x3a6   :  { %v6090_v60 = vadd.f32 %v6089_v59, %v6077_v46 }
 0x3a8   :  { %v6096_v55 = vmax.f32 %v6090_v60, 0.0 }
 0x3aa   :  { %v6098_v4 = vpack.c.bf16 %v6096_v55, %v6095_v62 }
 0x3ab   :  { %v6078_v22 = vpop.f32.mrf.mxu2 }
 0x3ac   :  { %v6102_v20 = vrot.slane %v6098_v4, 6  ;;  %v6103_v26 = vrot.slane %v6098_v4, 1  ;;  %v6091_v5 = vpop.f32.mrf.mxu3 }
 0x3ae   :  { %v6111_v8 = vsel %vm6108_vm2, %v6102_v20, %v6103_v26 }
 0x3af   :  { %v6113_v10 = vsel %vm6112_vm3, %v6107_v6, %v6111_v8 }
 0x3b0   :  { %6115 = vst [vmem:[%s15007_s3] sm:$0xf] %v6113_v10 }

</bundles_post_ra>
